<compile_context>
chip_gen: v7x
topology: tpu7x:2x2x1
jax: 0.10.0
libtpu: 0.0.40
codegen_flags: <defaults>
</compile_context>

<pallas_src>
import functools

import jax
import jax.numpy as jnp
from jax.experimental import pallas as pl
from jax.experimental.pallas import tpu as pltpu

H = 32            # hidden width  (model_conf['hidden_layer_nodes'] = [32]*4)
D_OUT = 1         # model_conf['d_out']
BETA = 100.0      # softplus beta (model_conf['beta'])
INV_BETA = 1.0 / BETA
RADIUS_INIT = 1.0  # model_conf['radius_init']
# skip_in = (2,): raw coords re-injected before hidden layer 2


def _default_act_dtype():
    """bf16 activations on chips with a bf16 VPU/EUP (v6e/v7x); f32 otherwise."""
    try:
        kind = jax.devices()[0].device_kind.lower()
    except Exception:
        return jnp.float32
    for tag in ("v2", "v3", "v4", "v5"):   # no bf16 VPU/EUP path on these gens
        if tag in kind:
            return jnp.float32
    return jnp.bfloat16


def _softplus_scaled(z):
    # Softplus with the beta scaling already folded into z (and the trailing
    # 1/beta folded into the next layer's weights):
    #   beta * softplus_beta(x) == softplus_1(beta * x)
    # PyTorch threshold semantics: identity branch when beta*x > 20.
    # Clamp before exp so the unselected branch never produces inf; log(1+e)
    # instead of log1p keeps the op set bf16-friendly (error < 1e-7 / beta).
    e = jnp.exp(jnp.minimum(z, 20.0))
    return jnp.where(z > 20.0, z, jnp.log(1.0 + e))


def _mlp_kernel(x_ref, w03_ref, wh_ref, bh_ref, wo_ref, bo_ref, out_ref,
                *, mxu_dtype, act_dtype):
    # Lane-dense layout: N (points) rides the 128-lane axis, features on sublanes.
    x = x_ref[...].astype(mxu_dtype)                                  # (3, TN)

    def dense(w, h, b):
        return jnp.dot(w, h, preferred_element_type=jnp.float32) + b

    # layer 0 (beta folded into w0 / b0)
    h = _softplus_scaled(dense(w03_ref[0], x, bh_ref[0]).astype(act_dtype))
    # layer 1
    h = _softplus_scaled(dense(wh_ref[0], h.astype(mxu_dtype), bh_ref[1]).astype(act_dtype))
    # layer 2 + skip connection: two aligned dots instead of a width-(H+3) concat
    z = (jnp.dot(wh_ref[1], h.astype(mxu_dtype), preferred_element_type=jnp.float32)
         + jnp.dot(w03_ref[1], x, preferred_element_type=jnp.float32)
         + bh_ref[2])
    h = _softplus_scaled(z.astype(act_dtype))
    # layer 3
    h = _softplus_scaled(dense(wh_ref[2], h.astype(mxu_dtype), bh_ref[3]).astype(act_dtype))
    # output layer (1/beta folded into wo)
    out = dense(wo_ref[...], h.astype(mxu_dtype), bo_ref[...])
    out_ref[...] = out.astype(out_ref.dtype)                          # (1, TN)


def _const_spec(shape):
    nd = len(shape)
    return pl.BlockSpec(shape, lambda i: (0,) * nd)


def occupancy_forward(x, params, *, tile_n=8192, mxu_dtype=jnp.bfloat16, act_dtype=None):
    """Pallas forward. Returns dict matching the PyTorch module's output."""
    if act_dtype is None:
        act_dtype = _default_act_dtype()

    # Accept the module's (N, 3) layout or an already lane-dense (3, N) layout
    # (pass (3, N) to skip one XLA relayout pass of the coordinates).
    if x.ndim != 2:
        raise ValueError("expected a 2-D coordinate array")
    xt = x if (x.shape[0] == 3 and x.shape[1] != 3) else x.T
    xt = xt.astype(jnp.float32)                                       # (3, N)
    N = xt.shape[1]

    (w0, b0), (w1, b1), (w2, b2), (w3, b3), (wo, bo) = params

    # Host-side re-layout & packing (all tiny):
    #   weights -> (out_feat, in_feat); skip-layer weight split into HxH / Hx3;
    #   beta folded into w0/b0/w2x/b1/b2/b3 and 1/beta into wo so the kernel's
    #   softplus needs no per-element scaling; 11 operands packed into 5;
    #   MXU inputs cast to mxu_dtype (bf16 default, f32 accumulation).
    w03 = jnp.stack([(BETA * w0).T, (BETA * w2[H:]).T]).astype(mxu_dtype)   # (2, H, 3)
    wh = jnp.stack([w1.T, w2[:H].T, w3.T]).astype(mxu_dtype)                # (3, H, H)
    bh = jnp.stack([(BETA * b0).T, (BETA * b1).T,
                    (BETA * b2).T, (BETA * b3).T]).astype(jnp.float32)      # (4, H, 1)
    wop = (INV_BETA * wo).T.astype(mxu_dtype)                               # (1, H)
    bop = bo.T.astype(jnp.float32)                                          # (1, 1)

    # Tile sizing: large tiles amortize the ~0.35us/step pipeline overhead;
    # clamp to the 128-aligned problem size and split into >= 2 tiles so the
    # "parallel" grid axis can balance across v7x's two TensorCores.
    tile_n = max(128, (int(tile_n) // 128) * 128)
    tile_n = min(tile_n, ((N + 127) // 128) * 128)
    if pl.cdiv(N, tile_n) == 1 and N > 256:
        tile_n = ((pl.cdiv(N, 2) + 127) // 128) * 128
    num_tiles = pl.cdiv(N, tile_n)

    in_specs = [pl.BlockSpec((3, tile_n), lambda i: (0, i))]
    in_specs += [_const_spec(a.shape) for a in (w03, wh, bh, wop, bop)]

    flops = 2 * N * (3 * H + H * H + (H + 3) * H + H * H + H * D_OUT)
    weight_bytes = (int(w03.size + wh.size + wop.size) * w03.dtype.itemsize
                    + int(bh.size + bop.size) * 4)
    cost = pl.CostEstimate(
        flops=flops,
        transcendentals=8 * H * N,               # exp + log, 4 layers of width H
        bytes_accessed=(3 + D_OUT) * 4 * N + weight_bytes,
    )

    cp = dict(dimension_semantics=("parallel",))  # shard tiles across v7x's 2 TCs
    if tile_n > 8192:
        # v5e's scoped-VMEM default is only 16 MiB; larger tiles need headroom.
        cp["vmem_limit_bytes"] = 64 * 1024 * 1024

    kernel = functools.partial(_mlp_kernel, mxu_dtype=mxu_dtype, act_dtype=act_dtype)

    out_t = pl.pallas_call(
        kernel,
        out_shape=jax.ShapeDtypeStruct((D_OUT, N), jnp.float32),
        grid_spec=pltpu.PrefetchScalarGridSpec(
            num_scalar_prefetch=0,
            grid=(num_tiles,),
            in_specs=in_specs,
            out_specs=pl.BlockSpec((D_OUT, tile_n), lambda i: (0, i)),
        ),
        compiler_params=pltpu.CompilerParams(**cp),
        cost_estimate=cost,
    )(xt, w03, wh, bh, wop, bop)

    # d_out == 1, so the (1, N) -> (N, 1) relayout is a free reshape (no transpose).
    out = jnp.reshape(out_t, (N, D_OUT))
    # TODO(synk): coords.clone().detach().requires_grad_(True) / autograd graph
    # setup has no Pallas equivalent; only the forward value is produced here.
    return {"model_in": x, "model_out": out}


def init_params(key):
    """Deterministic geometric-ish init matching the module's __init__ shapes."""
    dims_in = [3, H, H + 3, H, H]
    dims_out = [H, H, H, H, D_OUT]
    keys = jax.random.split(key, len(dims_in))
    params = []
    for li, (din, dout) in enumerate(zip(dims_in, dims_out)):
        if li == len(dims_in) - 1:
            # geometric init of the final layer (sphere of radius RADIUS_INIT)
            w = (jnp.sqrt(jnp.pi) / jnp.sqrt(din)) * jnp.ones((din, dout), jnp.float32)
            w = w + 1e-4 * jax.random.normal(keys[li], (din, dout), jnp.float32)
            b = -RADIUS_INIT * jnp.ones((1, dout), jnp.float32)
        else:
            std = jnp.sqrt(2.0) / jnp.sqrt(dout)
            w = std * jax.random.normal(keys[li], (din, dout), jnp.float32)
            b = jnp.zeros((1, dout), jnp.float32)
        params.append((w, b))
    return params


def _reference_softplus(x):
    # PyTorch Softplus(beta=100, threshold=20), numerically stable.
    bx = BETA * x
    soft = jnp.log1p(jnp.exp(jnp.minimum(bx, 20.0))) * INV_BETA
    return jnp.where(bx > 20.0, x, soft)


def _reference_forward(x, params):
    """Pure-JAX f32 reference (original NC layout) for correctness checking."""
    (w0, b0), (w1, b1), (w2, b2), (w3, b3), (wo, bo) = params
    h = _reference_softplus(x @ w0 + b0)
    h = _reference_softplus(h @ w1 + b1)
    h = jnp.concatenate([h, x], axis=-1)
    h = _reference_softplus(h @ w2 + b2)
    h = _reference_softplus(h @ w3 + b3)
    return h @ wo + bo


if __name__ == "__main__":
    key = jax.random.PRNGKey(0)
    kx, kp = jax.random.split(key)
    N = 5000   # deliberately NOT a multiple of 128 -> exercises the ragged edge block
    x = jax.random.normal(kx, (N, 3), jnp.float32)
    params = init_params(kp)
    ref = _reference_forward(x, params)

    # 1) Full-precision path (f32 matmuls + f32 activations): tight structural check.
    res_f32 = occupancy_forward(x, params, mxu_dtype=jnp.float32, act_dtype=jnp.float32)
    out_f32 = jax.block_until_ready(res_f32["model_out"])
    assert out_f32.shape == (N, D_OUT)
    assert jnp.allclose(out_f32, ref, atol=1e-3, rtol=1e-4), "f32 path mismatch vs reference"

    # 2) Default fast path (bf16 MXU inputs; bf16 activations on v6e/v7x): loose check.
    res = occupancy_forward(x, params)
    out = jax.block_until_ready(res["model_out"])
    assert out.shape == (N, D_OUT)
    rel_err = float(jnp.max(jnp.abs(out - ref)) / (jnp.max(jnp.abs(ref)) + 1e-6))
    assert rel_err < 0.1, f"fast path error too large: {rel_err}"

    print("KERNEL_OK")
</pallas_src>

<mosaic_0001>
module attributes {stable_mosaic.version = 11 : i64} {
  func.func @_mlp_kernel(%arg0: i32, %arg1: memref<3x2560xf32, #tpu.memory_space<vmem>>, %arg2: memref<2x32x3xf32, #tpu.memory_space<vmem>>, %arg3: memref<3x32x32xf32, #tpu.memory_space<vmem>>, %arg4: memref<4x32x1xf32, #tpu.memory_space<vmem>>, %arg5: memref<1x32xf32, #tpu.memory_space<vmem>>, %arg6: memref<1x1xf32, #tpu.memory_space<vmem>>, %arg7: memref<1x2560xf32, #tpu.memory_space<vmem>>) attributes {dimension_semantics = [#tpu.dimension_semantics<parallel>], iteration_bounds = array<i64: 2>, scalar_prefetch = 0 : i64, scratch_operands = 0 : i64, tpu.core_type = #tpu.core_type<tc>, window_params = [{transform_indices = @transform_0, window_bounds = array<i64: 3, 2560>}, {pipeline_mode = #tpu.pipeline_mode<synchronous>, transform_indices = @transform_1, window_bounds = array<i64: 2, 32, 3>}, {pipeline_mode = #tpu.pipeline_mode<synchronous>, transform_indices = @transform_2, window_bounds = array<i64: 3, 32, 32>}, {pipeline_mode = #tpu.pipeline_mode<synchronous>, transform_indices = @transform_3, window_bounds = array<i64: 4, 32, 1>}, {pipeline_mode = #tpu.pipeline_mode<synchronous>, transform_indices = @transform_4, window_bounds = array<i64: 1, 32>}, {pipeline_mode = #tpu.pipeline_mode<synchronous>, transform_indices = @transform_5, window_bounds = array<i64: 1, 1>}, {transform_indices = @transform_6, window_bounds = array<i64: 1, 2560>}]} {
    %c0 = arith.constant 0 : index
    %c0_0 = arith.constant 0 : index
    %0 = vector.load %arg1[%c0, %c0_0] : memref<3x2560xf32, #tpu.memory_space<vmem>>, vector<3x2560xf32>
    %c0_1 = arith.constant 0 : index
    %c0_2 = arith.constant 0 : index
    %c0_3 = arith.constant 0 : index
    %1 = vector.load %arg2[%c0_1, %c0_2, %c0_3] : memref<2x32x3xf32, #tpu.memory_space<vmem>>, vector<1x32x3xf32>
    %2 = vector.shape_cast %1 : vector<1x32x3xf32> to vector<32x3xf32>
    %c0_4 = arith.constant 0 : index
    %c0_5 = arith.constant 0 : index
    %c0_6 = arith.constant 0 : index
    %3 = vector.load %arg4[%c0_4, %c0_5, %c0_6] : memref<4x32x1xf32, #tpu.memory_space<vmem>>, vector<1x32x1xf32>
    %4 = vector.shape_cast %3 : vector<1x32x1xf32> to vector<32x1xf32>
    %cst = arith.constant dense<0.000000e+00> : vector<32x2560xf32>
    %5 = tpu.matmul %2, %0, %cst {dimension_numbers = #tpu.dot_dimension_numbers<[1], [0], [0], [1], [0, 0, 1, 1], [], []>} : vector<32x3xf32>, vector<3x2560xf32>, vector<32x2560xf32> -> vector<32x2560xf32>
    %6 = vector.broadcast %4 : vector<32x1xf32> to vector<32x2560xf32>
    %7 = arith.addf %5, %6 : vector<32x2560xf32>
    %cst_7 = arith.constant 2.000000e+01 : f32
    %8 = vector.broadcast %cst_7 : f32 to vector<32x2560xf32>
    %9 = arith.minimumf %7, %8 : vector<32x2560xf32>
    %10 = math.exp %9 : vector<32x2560xf32>
    %cst_8 = arith.constant 2.000000e+01 : f32
    %11 = vector.broadcast %cst_8 : f32 to vector<32x2560xf32>
    %12 = arith.cmpf ogt, %7, %11 : vector<32x2560xf32>
    %cst_9 = arith.constant 1.000000e+00 : f32
    %13 = vector.broadcast %cst_9 : f32 to vector<32x2560xf32>
    %14 = arith.addf %13, %10 : vector<32x2560xf32>
    %15 = math.log %14 : vector<32x2560xf32>
    %16 = arith.select %12, %7, %15 : vector<32x2560xi1>, vector<32x2560xf32>
    %c0_10 = arith.constant 0 : index
    %c0_11 = arith.constant 0 : index
    %c0_12 = arith.constant 0 : index
    %17 = vector.load %arg3[%c0_10, %c0_11, %c0_12] : memref<3x32x32xf32, #tpu.memory_space<vmem>>, vector<1x32x32xf32>
    %18 = vector.shape_cast %17 : vector<1x32x32xf32> to vector<32x32xf32>
    %c1 = arith.constant 1 : index
    %c0_13 = arith.constant 0 : index
    %c0_14 = arith.constant 0 : index
    %19 = vector.load %arg4[%c1, %c0_13, %c0_14] : memref<4x32x1xf32, #tpu.memory_space<vmem>>, vector<1x32x1xf32>
    %20 = vector.shape_cast %19 : vector<1x32x1xf32> to vector<32x1xf32>
    %cst_15 = arith.constant dense<0.000000e+00> : vector<32x2560xf32>
    %21 = tpu.matmul %18, %16, %cst_15 {dimension_numbers = #tpu.dot_dimension_numbers<[1], [0], [0], [1], [0, 0, 1, 1], [], []>} : vector<32x32xf32>, vector<32x2560xf32>, vector<32x2560xf32> -> vector<32x2560xf32>
    %22 = vector.broadcast %20 : vector<32x1xf32> to vector<32x2560xf32>
    %23 = arith.addf %21, %22 : vector<32x2560xf32>
    %cst_16 = arith.constant 2.000000e+01 : f32
    %24 = vector.broadcast %cst_16 : f32 to vector<32x2560xf32>
    %25 = arith.minimumf %23, %24 : vector<32x2560xf32>
    %26 = math.exp %25 : vector<32x2560xf32>
    %cst_17 = arith.constant 2.000000e+01 : f32
    %27 = vector.broadcast %cst_17 : f32 to vector<32x2560xf32>
    %28 = arith.cmpf ogt, %23, %27 : vector<32x2560xf32>
    %cst_18 = arith.constant 1.000000e+00 : f32
    %29 = vector.broadcast %cst_18 : f32 to vector<32x2560xf32>
    %30 = arith.addf %29, %26 : vector<32x2560xf32>
    %31 = math.log %30 : vector<32x2560xf32>
    %32 = arith.select %28, %23, %31 : vector<32x2560xi1>, vector<32x2560xf32>
    %c1_19 = arith.constant 1 : index
    %c0_20 = arith.constant 0 : index
    %c0_21 = arith.constant 0 : index
    %33 = vector.load %arg3[%c1_19, %c0_20, %c0_21] : memref<3x32x32xf32, #tpu.memory_space<vmem>>, vector<1x32x32xf32>
    %34 = vector.shape_cast %33 : vector<1x32x32xf32> to vector<32x32xf32>
    %cst_22 = arith.constant dense<0.000000e+00> : vector<32x2560xf32>
    %35 = tpu.matmul %34, %32, %cst_22 {dimension_numbers = #tpu.dot_dimension_numbers<[1], [0], [0], [1], [0, 0, 1, 1], [], []>} : vector<32x32xf32>, vector<32x2560xf32>, vector<32x2560xf32> -> vector<32x2560xf32>
    %c1_23 = arith.constant 1 : index
    %c0_24 = arith.constant 0 : index
    %c0_25 = arith.constant 0 : index
    %36 = vector.load %arg2[%c1_23, %c0_24, %c0_25] : memref<2x32x3xf32, #tpu.memory_space<vmem>>, vector<1x32x3xf32>
    %37 = vector.shape_cast %36 : vector<1x32x3xf32> to vector<32x3xf32>
    %cst_26 = arith.constant dense<0.000000e+00> : vector<32x2560xf32>
    %38 = tpu.matmul %37, %0, %cst_26 {dimension_numbers = #tpu.dot_dimension_numbers<[1], [0], [0], [1], [0, 0, 1, 1], [], []>} : vector<32x3xf32>, vector<3x2560xf32>, vector<32x2560xf32> -> vector<32x2560xf32>
    %39 = arith.addf %35, %38 : vector<32x2560xf32>
    %c2 = arith.constant 2 : index
    %c0_27 = arith.constant 0 : index
    %c0_28 = arith.constant 0 : index
    %40 = vector.load %arg4[%c2, %c0_27, %c0_28] : memref<4x32x1xf32, #tpu.memory_space<vmem>>, vector<1x32x1xf32>
    %41 = vector.shape_cast %40 : vector<1x32x1xf32> to vector<32x1xf32>
    %42 = vector.broadcast %41 : vector<32x1xf32> to vector<32x2560xf32>
    %43 = arith.addf %39, %42 : vector<32x2560xf32>
    %cst_29 = arith.constant 2.000000e+01 : f32
    %44 = vector.broadcast %cst_29 : f32 to vector<32x2560xf32>
    %45 = arith.minimumf %43, %44 : vector<32x2560xf32>
    %46 = math.exp %45 : vector<32x2560xf32>
    %cst_30 = arith.constant 2.000000e+01 : f32
    %47 = vector.broadcast %cst_30 : f32 to vector<32x2560xf32>
    %48 = arith.cmpf ogt, %43, %47 : vector<32x2560xf32>
    %cst_31 = arith.constant 1.000000e+00 : f32
    %49 = vector.broadcast %cst_31 : f32 to vector<32x2560xf32>
    %50 = arith.addf %49, %46 : vector<32x2560xf32>
    %51 = math.log %50 : vector<32x2560xf32>
    %52 = arith.select %48, %43, %51 : vector<32x2560xi1>, vector<32x2560xf32>
    %c2_32 = arith.constant 2 : index
    %c0_33 = arith.constant 0 : index
    %c0_34 = arith.constant 0 : index
    %53 = vector.load %arg3[%c2_32, %c0_33, %c0_34] : memref<3x32x32xf32, #tpu.memory_space<vmem>>, vector<1x32x32xf32>
    %54 = vector.shape_cast %53 : vector<1x32x32xf32> to vector<32x32xf32>
    %c3 = arith.constant 3 : index
    %c0_35 = arith.constant 0 : index
    %c0_36 = arith.constant 0 : index
    %55 = vector.load %arg4[%c3, %c0_35, %c0_36] : memref<4x32x1xf32, #tpu.memory_space<vmem>>, vector<1x32x1xf32>
    %56 = vector.shape_cast %55 : vector<1x32x1xf32> to vector<32x1xf32>
    %cst_37 = arith.constant dense<0.000000e+00> : vector<32x2560xf32>
    %57 = tpu.matmul %54, %52, %cst_37 {dimension_numbers = #tpu.dot_dimension_numbers<[1], [0], [0], [1], [0, 0, 1, 1], [], []>} : vector<32x32xf32>, vector<32x2560xf32>, vector<32x2560xf32> -> vector<32x2560xf32>
    %58 = vector.broadcast %56 : vector<32x1xf32> to vector<32x2560xf32>
    %59 = arith.addf %57, %58 : vector<32x2560xf32>
    %cst_38 = arith.constant 2.000000e+01 : f32
    %60 = vector.broadcast %cst_38 : f32 to vector<32x2560xf32>
    %61 = arith.minimumf %59, %60 : vector<32x2560xf32>
    %62 = math.exp %61 : vector<32x2560xf32>
    %cst_39 = arith.constant 2.000000e+01 : f32
    %63 = vector.broadcast %cst_39 : f32 to vector<32x2560xf32>
    %64 = arith.cmpf ogt, %59, %63 : vector<32x2560xf32>
    %cst_40 = arith.constant 1.000000e+00 : f32
    %65 = vector.broadcast %cst_40 : f32 to vector<32x2560xf32>
    %66 = arith.addf %65, %62 : vector<32x2560xf32>
    %67 = math.log %66 : vector<32x2560xf32>
    %68 = arith.select %64, %59, %67 : vector<32x2560xi1>, vector<32x2560xf32>
    %c0_41 = arith.constant 0 : index
    %c0_42 = arith.constant 0 : index
    %69 = vector.load %arg5[%c0_41, %c0_42] : memref<1x32xf32, #tpu.memory_space<vmem>>, vector<1x32xf32>
    %c0_43 = arith.constant 0 : index
    %c0_44 = arith.constant 0 : index
    %70 = vector.load %arg6[%c0_43, %c0_44] : memref<1x1xf32, #tpu.memory_space<vmem>>, vector<1x1xf32>
    %cst_45 = arith.constant dense<0.000000e+00> : vector<1x2560xf32>
    %71 = tpu.matmul %69, %68, %cst_45 {dimension_numbers = #tpu.dot_dimension_numbers<[1], [0], [0], [1], [0, 0, 1, 1], [], []>} : vector<1x32xf32>, vector<32x2560xf32>, vector<1x2560xf32> -> vector<1x2560xf32>
    %72 = vector.broadcast %70 : vector<1x1xf32> to vector<1x2560xf32>
    %73 = arith.addf %71, %72 : vector<1x2560xf32>
    %c0_46 = arith.constant 0 : index
    %c0_47 = arith.constant 0 : index
    %74 = vector.load %arg7[%c0_46, %c0_47] : memref<1x2560xf32, #tpu.memory_space<vmem>>, vector<1x2560xf32>
    tpu.vector_store %arg7[%c0_46, %c0_47], %73 {strides = array<i32>} : memref<1x2560xf32, #tpu.memory_space<vmem>>, vector<1x2560xf32>,
    return
  }
  func.func @transform_0(%arg0: i32) -> (i32, i32) {
    %c0_i32 = arith.constant 0 : i32
    %c0_i32_0 = arith.constant 0 : i32
    return %c0_i32, %arg0 : i32, i32
  }
  func.func @transform_1(%arg0: i32) -> (i32, i32, i32) {
    %c0_i32 = arith.constant 0 : i32
    %c0_i32_0 = arith.constant 0 : i32
    %c0_i32_1 = arith.constant 0 : i32
    %c0_i32_2 = arith.constant 0 : i32
    return %c0_i32, %c0_i32_0, %c0_i32_1 : i32, i32, i32
  }
  func.func @transform_2(%arg0: i32) -> (i32, i32, i32) {
    %c0_i32 = arith.constant 0 : i32
    %c0_i32_0 = arith.constant 0 : i32
    %c0_i32_1 = arith.constant 0 : i32
    %c0_i32_2 = arith.constant 0 : i32
    return %c0_i32, %c0_i32_0, %c0_i32_1 : i32, i32, i32
  }
  func.func @transform_3(%arg0: i32) -> (i32, i32, i32) {
    %c0_i32 = arith.constant 0 : i32
    %c0_i32_0 = arith.constant 0 : i32
    %c0_i32_1 = arith.constant 0 : i32
    %c0_i32_2 = arith.constant 0 : i32
    return %c0_i32, %c0_i32_0, %c0_i32_1 : i32, i32, i32
  }
  func.func @transform_4(%arg0: i32) -> (i32, i32) {
    %c0_i32 = arith.constant 0 : i32
    %c0_i32_0 = arith.constant 0 : i32
    %c0_i32_1 = arith.constant 0 : i32
    return %c0_i32, %c0_i32_0 : i32, i32
  }
  func.func @transform_5(%arg0: i32) -> (i32, i32) {
    %c0_i32 = arith.constant 0 : i32
    %c0_i32_0 = arith.constant 0 : i32
    %c0_i32_1 = arith.constant 0 : i32
    return %c0_i32, %c0_i32_0 : i32, i32
  }
  func.func @transform_6(%arg0: i32) -> (i32, i32) {
    %c0_i32 = arith.constant 0 : i32
    %c0_i32_0 = arith.constant 0 : i32
    return %c0_i32, %arg0 : i32, i32
  }
}

</mosaic_0001>

<bundles_post_ra>
// kernel: tpu_custom_call.1
= control target key start
LH: loop header
LB: loop body
LE: loop exit
PB: predicated region body
PF: predicated region fallthrough
CT: control target
= control target key end

     0   :  { %s15618_s0 = inlined_call_operand.vmem [shape: f32[3,5000], index: 0, kind: input, shape index: {}]   ;;  %s15619_s1 = inlined_call_operand.vmem [shape: f32[2,32,3], index: 1, kind: input, shape index: {}]   ;;  %s15620_s2 = inlined_call_operand.hbm [shape: f32[3,32,32], index: 2, kind: input, shape index: {}]   ;;  %s15621_s3 = inlined_call_operand.vmem [shape: f32[4,32,1], index: 3, kind: input, shape index: {}]   ;;  %s15622_s4 = inlined_call_operand.vmem [shape: f32[1,32], index: 4, kind: input, shape index: {}]   ;;  %s15623_s5 = inlined_call_operand.<no memory space> [shape: f32[1,1], index: 5, kind: input, shape index: {}]   ;;  %s15624_s6 = inlined_call_operand.hbm [shape: f32[1,5000], index: 6, kind: output, shape index: {}]  }
   0x1   :  { %v11_v0 = vstv %s15623_s5 }
   0x2   :  { %12 = vst [vmem:[#allocation2] sm:$0x1] %v11_v0 }
   0x3   :  { %13 = vsyncpa [#allocation4], 0 }
   0x4   :  { %14 = vsyncpa [#allocation5], 0 }
   0x5   :  { %16 = vsyncpa [#allocation5 + $0x1], 0  ;;  %s10764_s23 = smov 0   ;;  %s10766_s24 = smov 0  }
   0x6   :  { %s10768_s25 = smov 0   ;;  %s10770_s26 = smov 0  }
   0x7 LB: > { %s10785_s5 = sadd.s32 4294967295, %s10717_s26   ;;  %s8577_s27 = sadd.s32 4294967294, %s10717_s26   ;;  %s10717_s26 = sphi %s10770_s26, %s16409_s26   ;;  %s10713_s25 = sphi %s10768_s25, %s16408_s25   ;;  %s10709_s24 = sphi %s10766_s24, %s16407_s24   ;;  %s10705_s23 = sphi %s10764_s23, %s16406_s23  }
   0x8   : > { %s10789_s28 = sadd.s32 1, %s10717_s26   ;;  %s160_s29 = sadd.s32 1, %s10713_s25 }
   0x9   : > { %s157_s30 = ssub.s32 %s10717_s26, %s10789_s28  ;;  %p170_p0 = scmp.ne.s32.totalorder %s10713_s25, %s10709_s24 }
   0xa   : > { %p158_p1 = scmp.eq.s32.totalorder %s157_s30, 0  ;;  %p171_p2 = scmp.eq.s32.totalorder %s10785_s5, 1 }
   0xb   : > { %p176_p3 = scmp.ne.s32.totalorder %s10709_s24, %s10705_s23  ;;  %p177_p4 = scmp.eq.s32.totalorder %s8577_s27, 1 }
   0xc   : > { %s10800_s7 = scalar_select %p158_p1, %s10713_s25, %s160_s29  }
   0xd   : > { %p10802_p5 = por %p171_p2, %p170_p0  ;;  %p10806_p6 = por %p177_p4, %p176_p3 }
   0xe   : > { %p8578_p7 = scmp.ge.s32.totalorder %s10717_s26, 1  ;;  %p184_p8 = scmp.lt.s32.totalorder %s10717_s26, 3 }
   0xf   : > { %s15854_s8 = scalar_select %p10802_p5, 1, 0 }
  0x10   : > { %s15855_s9 = scalar_select %p10806_p6, 1, 0 }
  0x11   : > { %p15625_p9 = scmp.eq.s32.totalorder %s10785_s5, 0  ;;  %p10813_p10 = pnand %p8578_p7, %p184_p8 }
  0x12   : > { %s10719_s11 = smov [#allocation3]   ;;  %s10623_s16 = scalar_lea.hbm %s15620_s2, 1536 }
  0x13   : > { %s15856_s10 = scalar_select %p10813_p10, 1, 0 }
  0x14   : > { %s199_s12 = sshll.u32 %s10719_s11, 4  ;;  %p9261_p11 = pneg %p10813_p10  ;;  %s200_s12 = int_to_ptr.vmem [resolvable:$true] %s199_s12 }
  0x15   : > { %p10624_p13 = scmp.ne.s32.totalorder %s15620_s2, %s10623_s16  ;;  %p10630_p3 = scmp.lt.u32.totalorder %s10623_s16, %s15620_s2 }
  0x16   : > { %p10821_p12 = pnand %p15625_p9, %p9261_p11 }
  0x18   : > { %p10625_p0 = pneg %p10821_p12 }
  0x1a   : > { %p10626_p1 = pnand %p10625_p0, %p10624_p13 }
  0x1c   : > { %p10627_p2 = pneg %p10626_p1 }
  0x1e   : > { %p10632_p4 = pnand %p10630_p3, %p10627_p2 }
  0x20   : > { %10635 = shalt.err (!%p10632_p4)
}
  0x21   : > { %s10636_s21 = scalar_lea.vmem %s200_s12, 1536  ;;  %p10644_p9 = scmp.lt.s32.totalorder %s200_s12, %s200_s12 }
  0x22   : > { %p10637_p7 = scmp.ne.s32.totalorder %s200_s12, %s10636_s21  ;;  %p10645_p6 = scmp.lt.s32.totalorder %s10636_s21, %s10636_s21 }
  0x24   : > { %p10639_p8 = pnand %p10637_p7, %p10625_p0  ;;  %p10646_p5 = por %p10645_p6, %p10644_p9 }
  0x26   : > { %p10640_p11 = pneg %p10639_p8 }
  0x28   : > { %p10647_p10 = pnand %p10646_p5, %p10640_p11 }
  0x2a   : > { %10650 = shalt.err (!%p10647_p10)
}
  0x2b   : > { %s10720_s22 = smov 128   ;;  %s10721_s27 = smov 8  }
  0x2c   : > { %9264 = dma.hbm_to_vmem [thread:$0]  (!%p10821_p12), %s15620_s2, 1536, %s200_s12, [#allocation4], %s10720_s22, %s10720_s22, %s10721_s27  }
  0x2d   : > { %p15858_p13 = scmp.ne.s32.totalorder %s15856_s10, 0 }
  0x2f   : > { %233 = sbr.rel (%p15858_p13) target bundleno = 1729 (0x6c1), region = 44 }
  0x36   : > { %p15859_p1 = scmp.eq.s32.totalorder %s10785_s5, 0 }
  0x38   : > { %10696 = dma.done.wait (%p15859_p1), [#allocation4], 1536   ;;  %p15860_p0 = pmov %p15859_p1 }
  0x39   : > { %s263_s11 = smul.u32 20, %s10785_s5  ;;  %v15628_v1 = vmov 0.0   ;;  %v10723_v2 = vmov 0   ;;  %vm15698_vm0 = vcmask 1042432   ;;  %v10866_v9 = vld [vmem:[%s15619_s1] sm:$0xff]  ;;  %vm15691_vm1 = vcmask 23552  }
  0x3a   : > { %10698 = vsyncadd (%p15860_p0), [#allocation4], 4294965760  ;;  %446 = vmatprep.mubr.f32.mxu0 %v15628_v1  ;;  %535 = vmatprep.mubr.f32.mxu1 %v15628_v1  ;;  %v10889_v14 = vld [vmem:[%s15619_s1 + $0x8] sm:$0xff]  ;;  %v284_v17 = vld [vmem:[%s15621_s3] sm:$0xff]  ;;  %s260_s21 = sand.u32 1, %s10709_s24   ;;  %s8853_s29 = smul.u32 320, %s10785_s5 }
  0x3b   : > { %p264_p5 = scmp.lt.s32.totalorder %s263_s11, 39  ;;  %9310 = vset.pattern.permute.xlu0 %v10723_v2  ;;  %9311 = vset.pattern.permute.xlu1 %v10723_v2  ;;  %v286_v18 = vld [vmem:[%s15621_s3 + $0x10] sm:$0xff]  ;;  %v285_v20 = vld [vmem:[%s15621_s3 + $0x8] sm:$0xff]  ;;  %v287_v21 = vld [vmem:[%s15621_s3 + $0x18] sm:$0xff]  ;;  %s9254_s22 = smul.u32 20, %s260_s21 }
  0x3c   : > { %v10916_v19 = vld [vmem:[%s15619_s1 + $0x10] sm:$0xff]  ;;  %290 = vperm.xlu0 %9310, %v284_v17   ;;  %300 = vperm.xlu1 %9311, %v286_v18   ;;  %v10937_v22 = vld [vmem:[%s15619_s1 + $0x18] sm:$0xff]  ;;  %v8644_v25 = vld [vmem:[%s15621_s3 + $0x20] sm:$0xff]  ;;  %s15573_s12 = scalar_lea.hbm %s15624_s6, %s8853_s29  ;;  %s8492_s13 = scalar_lea.sflag [#allocation5], %s260_s21 }
  0x3d   : > { %s16411_s11 = smov (!%p264_p5, %s263_s11), 39  ;;  %v8645_v26 = vld [vmem:[%s15621_s3 + $0x28] sm:$0xff]  ;;  %v8646_v29 = vld [vmem:[%s15621_s3 + $0x30] sm:$0xff]  ;;  %v8647_v30 = vld [vmem:[%s15621_s3 + $0x38] sm:$0xff]  ;;  %s15542_s27 = scalar_lea.vmem [#allocation6], %s9254_s22 }
  0x3e   : > { %s8583_s10 = sshll.u32 %s16411_s11, 2  ;;  %v8792_v31 = vld [vmem:[%s15621_s3 + $0x40] sm:$0xff]  ;;  %v8793_v32 = vld [vmem:[%s15621_s3 + $0x48] sm:$0xff]  ;;  %v8794_v33 = vld [vmem:[%s15621_s3 + $0x50] sm:$0xff]  ;;  %s8506_s30 = sshll.u32 %s15542_s27, 4  ;;  %s15575_s30 = int_to_ptr.vmem [resolvable:$true] %s8506_s30 }
  0x3f   : > { %s10853_s14 = scalar_lea.vmem %s15618_s0, %s8583_s10  ;;  %v8795_v34 = vld [vmem:[%s15621_s3 + $0x58] sm:$0xff]  ;;  %v8796_v39 = vld [vmem:[%s15621_s3 + $0x60] sm:$0xff]  ;;  %v8797_v40 = vld [vmem:[%s15621_s3 + $0x68] sm:$0xff]  ;;  %s10651_s5 = scalar_lea.vmem %s15575_s30, 320 }
  0x40   : > { %v270_v3 = vld [vmem:[%s10853_s14] sm:$0x77]  ;;  %v271_v4 = vld [vmem:[%s10853_s14 + $0x8] sm:$0x77]  ;;  %v272_v5 = vld [vmem:[%s10853_s14 + $0x10] sm:$0x77]  ;;  %295 = vperm.xlu0 %9310, %v285_v20   ;;  %305 = vperm.xlu1 %9311, %v287_v21   ;;  %p10652_p6 = scmp.ne.s32.totalorder %s15575_s30, %s10651_s5 }
  0x41   : > { %v10858_v6 = vcombine.high %v270_v3, %v270_v3  ;;  %v10860_v7 = vcombine.high %v271_v4, %v271_v4  ;;  %v273_v8 = vld [vmem:[%s10853_s14 + $0x18] sm:$0x77]  ;;  %v10872_v10 = vcombine.high %v272_v5, %v272_v5  ;;  %v274_v12 = vld [vmem:[%s10853_s14 + $0x20] sm:$0x77]  ;;  %v275_v13 = vld [vmem:[%s10853_s14 + $0x28] sm:$0x77] }
  0x42   : > { %v10874_v11 = vcombine.high %v273_v8, %v273_v8  ;;  %v10895_v15 = vcombine.high %v274_v12, %v274_v12  ;;  %v10897_v16 = vcombine.high %v275_v13, %v275_v13  ;;  %v276_v23 = vld [vmem:[%s10853_s14 + $0x30] sm:$0x77]  ;;  %v277_v24 = vld [vmem:[%s10853_s14 + $0x38] sm:$0x77]  ;;  %v278_v35 = vld [vmem:[%s10853_s14 + $0x40] sm:$0x77] }
  0x43   : > { %15861 = vst [vmem:[#allocation9_spill] sm:$0xff] %v10858_v6  ;;  %15862 = vst [vmem:[#allocation10_spill] sm:$0xff] %v10860_v7  ;;  %8584 = vmatprep.subr.msk.mxu0 %vm15698_vm0, %v10858_v6  ;;  %8590 = vmatprep.subr.msk.mxu1 %vm15698_vm0, %v10860_v7  ;;  %v10953_v27 = vcombine.high %v276_v23, %v276_v23  ;;  %v10955_v28 = vcombine.high %v277_v24, %v277_v24  ;;  %v279_v36 = vld [vmem:[%s10853_s14 + $0x48] sm:$0x77]  ;;  %v8798_v41 = vld [vmem:[%s15621_s3 + $0x70] sm:$0xff]  ;;  %p16404_p9 = scmp.ne.s32.totalorder %s15854_s8, 0 }
  0x44   : > { %15863 = vst [vmem:[#allocation11_spill] sm:$0xff] %v10872_v10  ;;  %15864 = vst [vmem:[#allocation12_spill] sm:$0xff] %v10874_v11  ;;  %8585 = vmatpush1.msk.msra.mxu0 %vm15698_vm0, %v270_v3  ;;  %8591 = vmatpush1.msk.msra.mxu1 %vm15698_vm0, %v271_v4  ;;  %v11007_v37 = vcombine.high %v278_v35, %v278_v35  ;;  %v11009_v38 = vcombine.high %v279_v36, %v279_v36  ;;  %v8799_v42 = vld [vmem:[%s15621_s3 + $0x78] sm:$0xff]  ;;  %v7616_v43 = vld [vmem:[#allocation2] sm:$0x1]  ;;  %s10725_s15 = smov [#allocation6]  }
  0x45   : > { %8586 = vmatmul.mubr.msk.f32.vlgmr.msra.gmra.mrb[0].mxu0 %vm15691_vm1, %v10866_v9  ;;  %8592 = vmatmul.mubr.msk.f32.vlgmr.msra.gmra.mrb[0].mxu1 %vm15691_vm1, %v10866_v9  ;;  %15865 = vst [vmem:[#allocation13_spill] sm:$0xff] %v10895_v15  ;;  %15866 = vst [vmem:[#allocation14_spill] sm:$0xff] %v10897_v16  ;;  %p10653_p10 = pnand %p10652_p6, %p16404_p9  ;;  %s10655_s16 = sshll.u32 %s10725_s15, 4  ;;  %s10656_s16 = int_to_ptr.vmem [resolvable:$false] %s10655_s16 }
  0x46   : > { %452 = vmatprep.mubr.f32.mxu0 %v15628_v1  ;;  %541 = vmatprep.mubr.f32.mxu1 %v15628_v1  ;;  %15867 = vst [vmem:[#allocation15_spill] sm:$0xff] %v10953_v27  ;;  %15868 = vst [vmem:[#allocation16_spill] sm:$0xff] %v10955_v28  ;;  %s10657_s17 = scalar_lea.vmem %s10656_s16, 640  ;;  %p10658_p2 = scmp.lt.s32.totalorder %s15575_s30, %s10656_s16 }
  0x47   : > { %8596 = vmatprep.subr.msk.mxu0 %vm15698_vm0, %v10872_v10  ;;  %8602 = vmatprep.subr.msk.mxu1 %vm15698_vm0, %v10874_v11  ;;  %15869 = vst [vmem:[#allocation17_spill] sm:$0xff] %v11007_v37  ;;  %15870 = vst [vmem:[#allocation18_spill] sm:$0xff] %v11009_v38  ;;  %p10654_p12 = pneg %p10653_p10  ;;  %p10659_p3 = scmp.lt.s32.totalorder %s10657_s17, %s10651_s5 }
  0x48   : > { %8597 = vmatpush1.msk.msra.mxu0 %vm15698_vm0, %v272_v5  ;;  %8603 = vmatpush1.msk.msra.mxu1 %vm15698_vm0, %v273_v8 }
  0x49   : > { %8587 = vmatmul.mubr.msk.f32.gmra.mrb[2].mxu0 %vm15691_vm1, %v10889_v14  ;;  %8593 = vmatmul.mubr.msk.f32.gmra.mrb[2].mxu1 %vm15691_vm1, %v10889_v14  ;;  %p10660_p4 = por %p10659_p3, %p10658_p2 }
  0x4a   : > { %458 = vmatprep.mubr.f32.mxu0 %v15628_v1  ;;  %547 = vmatprep.mubr.f32.mxu1 %v15628_v1 }
  0x4b   : > { %8608 = vmatprep.subr.msk.mxu0 %vm15698_vm0, %v10895_v15  ;;  %8614 = vmatprep.subr.msk.mxu1 %vm15698_vm0, %v10897_v16  ;;  %p10661_p7 = pnand %p10660_p4, %p10654_p12 }
  0x4c   : > { %1923 = vperm.xlu0 %9310, %v8644_v25   ;;  %1928 = vperm.xlu1 %9311, %v8645_v26  }
  0x4d   : > { %8588 = vmatmul.mubr.msk.f32.gmra.mrb[4].mxu0 %vm15691_vm1, %v10916_v19  ;;  %8594 = vmatmul.mubr.msk.f32.gmra.mrb[4].mxu1 %vm15691_vm1, %v10916_v19 }
  0x4e   : > { %464 = vmatprep.mubr.f32.mxu0 %v15628_v1  ;;  %553 = vmatprep.mubr.f32.mxu1 %v15628_v1 }
  0x50   : > { %1933 = vperm.xlu0 %9310, %v8646_v29   ;;  %1938 = vperm.xlu1 %9311, %v8647_v30  }
  0x51   : > { %8589 = vmatmul.mubr.msk.f32.gmra.mrb[6].mxu0 %vm15691_vm1, %v10937_v22  ;;  %8595 = vmatmul.mubr.msk.f32.gmra.mrb[6].mxu1 %vm15691_vm1, %v10937_v22 }
  0x52   : > { %624 = vmatprep.mubr.f32.mxu0 %v15628_v1  ;;  %713 = vmatprep.mubr.f32.mxu1 %v15628_v1 }
  0x54   : > { %5305 = vperm.xlu0 %9310, %v8792_v31   ;;  %5310 = vperm.xlu1 %9311, %v8793_v32  }
  0x55   : > { %8598 = vmatmul.mubr.msk.f32.vlgmr.msra.gmra.mrb[8].mxu0 %vm15691_vm1, %v10866_v9  ;;  %8604 = vmatmul.mubr.msk.f32.vlgmr.msra.gmra.mrb[8].mxu1 %vm15691_vm1, %v10866_v9 }
  0x56   : > { %630 = vmatprep.mubr.f32.mxu0 %v15628_v1  ;;  %719 = vmatprep.mubr.f32.mxu1 %v15628_v1 }
  0x57   : > { %8609 = vmatpush1.msk.msra.mxu0 %vm15698_vm0, %v274_v12  ;;  %8615 = vmatpush1.msk.msra.mxu1 %vm15698_vm0, %v275_v13 }
  0x58   : > { %8620 = vmatprep.subr.msk.mxu0 %vm15698_vm0, %v10953_v27  ;;  %8626 = vmatprep.subr.msk.mxu1 %vm15698_vm0, %v10955_v28 }
  0x59   : > { %8599 = vmatmul.mubr.msk.f32.gmra.mrb[10].mxu0 %vm15691_vm1, %v10889_v14  ;;  %8605 = vmatmul.mubr.msk.f32.gmra.mrb[10].mxu1 %vm15691_vm1, %v10889_v14 }
  0x5a   : > { %636 = vmatprep.mubr.f32.mxu0 %v15628_v1  ;;  %725 = vmatprep.mubr.f32.mxu1 %v15628_v1 }
  0x5b   : > { %5315 = vperm.xlu0 %9310, %v8794_v33   ;;  %5320 = vperm.xlu1 %9311, %v8795_v34  }
  0x5d   : > { %8600 = vmatmul.mubr.msk.f32.gmra.mrb[12].mxu0 %vm15691_vm1, %v10916_v19  ;;  %8606 = vmatmul.mubr.msk.f32.gmra.mrb[12].mxu1 %vm15691_vm1, %v10916_v19 }
  0x5e   : > { %642 = vmatprep.mubr.f32.mxu0 %v15628_v1  ;;  %731 = vmatprep.mubr.f32.mxu1 %v15628_v1 }
  0x5f   : > { %6055 = vperm.xlu0 %9310, %v8796_v39   ;;  %6060 = vperm.xlu1 %9311, %v8797_v40  }
  0x61   : > { %8601 = vmatmul.mubr.msk.f32.gmra.mrb[14].mxu0 %vm15691_vm1, %v10937_v22  ;;  %8607 = vmatmul.mubr.msk.f32.gmra.mrb[14].mxu1 %vm15691_vm1, %v10937_v22 }
  0x62   : > { %802 = vmatprep.mubr.f32.mxu0 %v15628_v1  ;;  %891 = vmatprep.mubr.f32.mxu1 %v15628_v1 }
  0x63   : > { %6065 = vperm.xlu0 %9310, %v8798_v41   ;;  %6070 = vperm.xlu1 %9311, %v8799_v42  }
  0x65   : > { %8610 = vmatmul.mubr.msk.f32.vlgmr.msra.gmra.mrb[16].mxu0 %vm15691_vm1, %v10866_v9  ;;  %8616 = vmatmul.mubr.msk.f32.vlgmr.msra.gmra.mrb[16].mxu1 %vm15691_vm1, %v10866_v9 }
  0x66   : > { %808 = vmatprep.mubr.f32.mxu0 %v15628_v1  ;;  %897 = vmatprep.mubr.f32.mxu1 %v15628_v1 }
  0x67   : > { %8621 = vmatpush1.msk.msra.mxu0 %vm15698_vm0, %v276_v23  ;;  %8627 = vmatpush1.msk.msra.mxu1 %vm15698_vm0, %v277_v24 }
  0x68   : > { %8632 = vmatprep.subr.msk.mxu0 %vm15698_vm0, %v11007_v37  ;;  %8638 = vmatprep.subr.msk.mxu1 %vm15698_vm0, %v11009_v38 }
  0x69   : > { %8611 = vmatmul.mubr.msk.f32.gmra.mrb[18].mxu0 %vm15691_vm1, %v10889_v14  ;;  %8617 = vmatmul.mubr.msk.f32.gmra.mrb[18].mxu1 %vm15691_vm1, %v10889_v14 }
  0x6a   : > { %814 = vmatprep.mubr.f32.mxu0 %v15628_v1  ;;  %903 = vmatprep.mubr.f32.mxu1 %v15628_v1 }
  0x6b   : > { %7619 = vperm.xlu0 %9310, %v7616_v43  }
  0x6d   : > { %8612 = vmatmul.mubr.msk.f32.gmra.mrb[20].mxu0 %vm15691_vm1, %v10916_v19  ;;  %8618 = vmatmul.mubr.msk.f32.gmra.mrb[20].mxu1 %vm15691_vm1, %v10916_v19 }
  0x6e   : > { %820 = vmatprep.mubr.f32.mxu0 %v15628_v1  ;;  %909 = vmatprep.mubr.f32.mxu1 %v15628_v1 }
  0x71   : > { %8613 = vmatmul.mubr.msk.f32.gmra.mrb[22].mxu0 %vm15691_vm1, %v10937_v22  ;;  %8619 = vmatmul.mubr.msk.f32.gmra.mrb[22].mxu1 %vm15691_vm1, %v10937_v22 }
  0x72   : > { %980 = vmatprep.mubr.f32.mxu0 %v15628_v1  ;;  %1069 = vmatprep.mubr.f32.mxu1 %v15628_v1 }
  0x75   : > { %8622 = vmatmul.mubr.msk.f32.vlgmr.msra.gmra.mrb[24].mxu0 %vm15691_vm1, %v10866_v9  ;;  %8628 = vmatmul.mubr.msk.f32.vlgmr.msra.gmra.mrb[24].mxu1 %vm15691_vm1, %v10866_v9 }
  0x76   : > { %986 = vmatprep.mubr.f32.mxu0 %v15628_v1  ;;  %1075 = vmatprep.mubr.f32.mxu1 %v15628_v1 }
  0x77   : > { %8633 = vmatpush1.msk.msra.mxu0 %vm15698_vm0, %v278_v35  ;;  %8639 = vmatpush1.msk.msra.mxu1 %vm15698_vm0, %v279_v36 }
  0x79   : > { %8623 = vmatmul.mubr.msk.f32.gmra.mrb[26].mxu0 %vm15691_vm1, %v10889_v14  ;;  %8629 = vmatmul.mubr.msk.f32.gmra.mrb[26].mxu1 %vm15691_vm1, %v10889_v14 }
  0x7a   : > { %992 = vmatprep.mubr.f32.mxu0 %v15628_v1  ;;  %1081 = vmatprep.mubr.f32.mxu1 %v15628_v1 }
  0x7d   : > { %8624 = vmatmul.mubr.msk.f32.gmra.mrb[28].mxu0 %vm15691_vm1, %v10916_v19  ;;  %8630 = vmatmul.mubr.msk.f32.gmra.mrb[28].mxu1 %vm15691_vm1, %v10916_v19 }
  0x7e   : > { %998 = vmatprep.mubr.f32.mxu0 %v15628_v1  ;;  %1087 = vmatprep.mubr.f32.mxu1 %v15628_v1 }
  0x81   : > { %8625 = vmatmul.mubr.msk.f32.gmra.mrb[30].mxu0 %vm15691_vm1, %v10937_v22  ;;  %8631 = vmatmul.mubr.msk.f32.gmra.mrb[30].mxu1 %vm15691_vm1, %v10937_v22 }
  0x82   : > { %1158 = vmatprep.mubr.f32.mxu0 %v15628_v1  ;;  %1247 = vmatprep.mubr.f32.mxu1 %v15628_v1 }
  0x85   : > { %8634 = vmatmul.mubr.msk.f32.vlgmr.msra.gmra.mrb[32].mxu0 %vm15691_vm1, %v10866_v9  ;;  %8640 = vmatmul.mubr.msk.f32.vlgmr.msra.gmra.mrb[32].mxu1 %vm15691_vm1, %v10866_v9 }
  0x86   : > { %1164 = vmatprep.mubr.f32.mxu0 %v15628_v1  ;;  %1253 = vmatprep.mubr.f32.mxu1 %v15628_v1 }
  0x89   : > { %8635 = vmatmul.mubr.msk.f32.gmra.mrb[34].mxu0 %vm15691_vm1, %v10889_v14  ;;  %8641 = vmatmul.mubr.msk.f32.gmra.mrb[34].mxu1 %vm15691_vm1, %v10889_v14 }
  0x8a   : > { %1170 = vmatprep.mubr.f32.mxu0 %v15628_v1  ;;  %1259 = vmatprep.mubr.f32.mxu1 %v15628_v1 }
  0x8d   : > { %8636 = vmatmul.mubr.msk.f32.gmra.mrb[36].mxu0 %vm15691_vm1, %v10916_v19  ;;  %8642 = vmatmul.mubr.msk.f32.gmra.mrb[36].mxu1 %vm15691_vm1, %v10916_v19 }
  0x8e   : > { %1176 = vmatprep.mubr.f32.mxu0 %v15628_v1  ;;  %1265 = vmatprep.mubr.f32.mxu1 %v15628_v1 }
  0x91   : > { %8637 = vmatmul.mubr.msk.f32.gmra.mrb[38].mxu0 %vm15691_vm1, %v10937_v22  ;;  %8643 = vmatmul.mubr.msk.f32.gmra.mrb[38].mxu1 %vm15691_vm1, %v10937_v22 }
  0x92   : > { %2018 = vmatprep.mubr.f32.mxu0 %v15628_v1  ;;  %2107 = vmatprep.mubr.f32.mxu1 %v15628_v1 }
  0xbb   : > { %v11103_v44 = vpop.permute.xlu0 %290  ;;  %v11138_v18 = vpop.permute.xlu1 %300 }
  0xbf   : > { %v11117_v53 = vpop.permute.xlu0 %295  ;;  %v11157_v43 = vpop.permute.xlu1 %305 }
 0x118   : > { %v448_v45 = vpop.f32.mrb[0].mxu0  ;;  %v537_v46 = vpop.f32.mrb[0].mxu1 }
 0x119   : > { %v11106_v47 = vadd.f32 %v448_v45, %v11103_v44  ;;  %v11109_v48 = vadd.f32 %v537_v46, %v11103_v44  ;;  %v450_v49 = vpop.f32.mrb[1].mxu0  ;;  %v539_v50 = vpop.f32.mrb[1].mxu1 }
 0x11a   : > { %v11112_v51 = vadd.f32 %v450_v49, %v11103_v44  ;;  %v11115_v52 = vadd.f32 %v539_v50, %v11103_v44 }
 0x11b   : > { %v1272_v54 = vmin.f32 %v11106_v47, 20.0  ;;  %v1274_v55 = vmin.f32 %v11109_v48, 20.0  ;;  %vm1512_vm2 = vcmp.gt.f32.partialorder %v11106_v47, 20.0  ;;  %vm1514_vm3 = vcmp.gt.f32.partialorder %v11109_v48, 20.0 }
 0x11c   : > { %v1273_v56 = vmin.f32 %v11112_v51, 20.0  ;;  %v1275_v57 = vmin.f32 %v11115_v52, 20.0  ;;  %v454_v58 = vpop.f32.mrb[2].mxu0  ;;  %v543_v59 = vpop.f32.mrb[2].mxu1  ;;  %vm1513_vm14 = vcmp.gt.f32.partialorder %v11112_v51, 20.0  ;;  %vm1515_vm15 = vcmp.gt.f32.partialorder %v11115_v52, 20.0 }
 0x11d   : > { %v1352_v60 = vmul.f32 1.442695, %v1272_v54  ;;  %v1356_v61 = vmul.f32 1.442695, %v1274_v55  ;;  %v11124_v62 = vadd.f32 %v454_v58, %v11117_v53  ;;  %v11127_v63 = vadd.f32 %v543_v59, %v11117_v53  ;;  %v456_v0 = vpop.f32.mrb[3].mxu0  ;;  %v545_v2 = vpop.f32.mrb[3].mxu1 }
 0x11e   : > { %v1354_v3 = vmul.f32 1.442695, %v1273_v56  ;;  %v1358_v4 = vmul.f32 1.442695, %v1275_v57  ;;  %v11130_v5 = vadd.f32 %v456_v0, %v11117_v53  ;;  %v11133_v8 = vadd.f32 %v545_v2, %v11117_v53 }
 0x11f   : > { %9322 = vpow2.f32 %v1352_v60  ;;  %v1292_v9 = vmin.f32 %v11124_v62, 20.0  ;;  %v1294_v12 = vmin.f32 %v11127_v63, 20.0  ;;  %vm1532_vm4 = vcmp.gt.f32.partialorder %v11124_v62, 20.0 }
 0x120   : > { %9324 = vpow2.f32 %v1356_v61  ;;  %v1293_v13 = vmin.f32 %v11130_v5, 20.0  ;;  %v460_v14 = vpop.f32.mrb[4].mxu0  ;;  %v549_v17 = vpop.f32.mrb[4].mxu1  ;;  %v1295_v21 = vmin.f32 %v11133_v8, 20.0  ;;  %vm1534_vm5 = vcmp.gt.f32.partialorder %v11127_v63, 20.0 }
 0x121   : > { %9326 = vpow2.f32 %v1354_v3  ;;  %v1392_v19 = vmul.f32 1.442695, %v1292_v9  ;;  %v1396_v20 = vmul.f32 1.442695, %v1294_v12  ;;  %v462_v22 = vpop.f32.mrb[5].mxu0  ;;  %v11142_v24 = vadd.f32 %v460_v14, %v11138_v18  ;;  %v551_v25 = vpop.f32.mrb[5].mxu1 }
 0x122   : > { %9328 = vpow2.f32 %v1358_v4  ;;  %v1394_v23 = vmul.f32 1.442695, %v1293_v13  ;;  %v1398_v26 = vmul.f32 1.442695, %v1295_v21  ;;  %v11145_v29 = vadd.f32 %v549_v17, %v11138_v18 }
 0x123   : > { %9330 = vpow2.f32 %v1392_v19  ;;  %v11148_v30 = vadd.f32 %v462_v22, %v11138_v18  ;;  %v1312_v31 = vmin.f32 %v11142_v24, 20.0  ;;  %v11152_v32 = vadd.f32 %v551_v25, %v11138_v18 }
 0x124   : > { %9332 = vpow2.f32 %v1396_v20  ;;  %v466_v33 = vpop.f32.mrb[6].mxu0  ;;  %v555_v34 = vpop.f32.mrb[6].mxu1  ;;  %v1314_v35 = vmin.f32 %v11145_v29, 20.0  ;;  %vm1552_vm6 = vcmp.gt.f32.partialorder %v11142_v24, 20.0  ;;  %vm1554_vm7 = vcmp.gt.f32.partialorder %v11145_v29, 20.0 }
 0x125   : > { %15871 = vst [vmem:[#allocation19_spill] sm:$0xff] %v11148_v30  ;;  %15872 = vst [vmem:[#allocation20_spill] sm:$0xff] %v11152_v32  ;;  %9334 = vpow2.f32 %v1394_v23  ;;  %v1313_v36 = vmin.f32 %v11148_v30, 20.0  ;;  %v468_v39 = vpop.f32.mrb[7].mxu0  ;;  %v557_v40 = vpop.f32.mrb[7].mxu1  ;;  %v1315_v42 = vmin.f32 %v11152_v32, 20.0  ;;  %v11160_v50 = vadd.f32 %v466_v33, %v11157_v43 }
 0x126   : > { %9336 = vpow2.f32 %v1398_v26  ;;  %v1432_v41 = vmul.f32 1.442695, %v1312_v31  ;;  %v1436_v45 = vmul.f32 1.442695, %v1314_v35  ;;  %v11163_v2 = vadd.f32 %v555_v34, %v11157_v43 }
 0x127   : > { %v1434_v46 = vmul.f32 1.442695, %v1313_v36  ;;  %v1438_v49 = vmul.f32 1.442695, %v1315_v42  ;;  %v1332_v9 = vmin.f32 %v11160_v50, 20.0  ;;  %v11169_v19 = vadd.f32 %v468_v39, %v11157_v43 }
 0x128   : > { %9338 = vpow2.f32 %v1432_v41  ;;  %v626_v54 = vpop.f32.mrb[8].mxu0  ;;  %v715_v55 = vpop.f32.mrb[8].mxu1  ;;  %v11176_v25 = vadd.f32 %v557_v40, %v11157_v43  ;;  %v1334_v33 = vmin.f32 %v11163_v2, 20.0  ;;  %vm1572_vm8 = vcmp.gt.f32.partialorder %v11160_v50, 20.0 }
 0x129   : > { %v9323_v56 = vpop.eup %9322  ;;  %9340 = vpow2.f32 %v1436_v45  ;;  %v628_v57 = vpop.f32.mrb[9].mxu0  ;;  %15873 = vst [vmem:[#allocation21_spill] sm:$0xff] %v11169_v19  ;;  %v11180_v34 = vadd.f32 %v626_v54, %v11103_v44  ;;  %v1472_v39 = vmul.f32 1.442695, %v1332_v9  ;;  %v11183_v41 = vadd.f32 %v715_v55, %v11103_v44 }
 0x12a   : > { %v717_v58 = vpop.f32.mrb[9].mxu1  ;;  %v9325_v59 = vpop.eup %9324  ;;  %v1592_v60 = vadd.f32 1.0, %v9323_v56  ;;  %9342 = vpow2.f32 %v1434_v46  ;;  %15874 = vst [vmem:[#allocation22_spill] sm:$0xff] %v11176_v25  ;;  %v1333_v46 = vmin.f32 %v11169_v19, 20.0  ;;  %vm1574_vm9 = vcmp.gt.f32.partialorder %v11163_v2, 20.0 }
 0x12b   : > { %v9327_v61 = vpop.eup %9326  ;;  %v1594_v0 = vadd.f32 1.0, %v9325_v59  ;;  %9344 = vpow2.f32 %v1438_v49  ;;  %v1335_v59 = vmin.f32 %v11176_v25, 20.0  ;;  %v11199_v55 = vadd.f32 %v717_v58, %v11103_v44 }
 0x12c   : > { %v9329_v3 = vpop.eup %9328  ;;  %9346 = vlog2.f32 %v1592_v60  ;;  %v1593_v4 = vadd.f32 1.0, %v9327_v61  ;;  %v632_v12 = vpop.f32.mrb[10].mxu0  ;;  %v11196_v60 = vadd.f32 %v628_v57, %v11103_v44  ;;  %v1278_v58 = vmin.f32 %v11183_v41, 20.0 }
 0x12d   : > { %v11166_v13 = vpop.f32.mrb[10].mxu1  ;;  %v9331_v14 = vpop.eup %9330  ;;  %9348 = vlog2.f32 %v1594_v0  ;;  %v1595_v17 = vadd.f32 1.0, %v9329_v3  ;;  %15876 = vst [vmem:[#allocation24_spill] sm:$0xff] %v11199_v55  ;;  %v1276_v3 = vmin.f32 %v11180_v34, 20.0  ;;  %vm1516_vm10 = vcmp.gt.f32.partialorder %v11180_v34, 20.0 }
 0x12e   : > { %v11171_v20 = vpop.f32.mrb[11].mxu0  ;;  %v11173_v21 = vpop.f32.mrb[11].mxu1  ;;  %9350 = vlog2.f32 %v1593_v4  ;;  %v1612_v23 = vadd.f32 1.0, %v9331_v14  ;;  %15875 = vst [vmem:[#allocation23_spill] sm:$0xff] %v11196_v60  ;;  %v11204_v4 = vadd.f32 %v632_v12, %v11117_v53  ;;  %v1476_v14 = vmul.f32 1.442695, %v1334_v33 }
 0x12f   : > { %v9333_v22 = vpop.eup %9332  ;;  %9352 = vlog2.f32 %v1595_v17  ;;  %v1277_v33 = vmin.f32 %v11196_v60, 20.0  ;;  %v1360_v1 = vmul.f32 1.442695, %v1276_v3  ;;  %v11225_v37 = vadd.f32 %v11166_v13, %v11117_v53 }
 0x130   : > { %v9335_v26 = vpop.eup %9334  ;;  %v1614_v31 = vadd.f32 1.0, %v9333_v22  ;;  %9354 = vlog2.f32 %v1612_v23  ;;  %v11185_v42 = vpop.f32.mrb[12].mxu0  ;;  %v1296_v38 = vmin.f32 %v11204_v4, 20.0  ;;  %v11239_v3 = vadd.f32 %v11173_v21, %v11117_v53 }
 0x131   : > { %v9337_v35 = vpop.eup %9336  ;;  %v1613_v36 = vadd.f32 1.0, %v9335_v26  ;;  %v11187_v45 = vpop.f32.mrb[12].mxu1  ;;  %v1474_v26 = vmul.f32 1.442695, %v1333_v46  ;;  %v1298_v16 = vmin.f32 %v11225_v37, 20.0  ;;  %vm1518_vm11 = vcmp.gt.f32.partialorder %v11183_v41, 20.0 }
 0x132   : > { %9356 = vlog2.f32 %v1614_v31  ;;  %v1615_v40 = vadd.f32 1.0, %v9337_v35  ;;  %v11190_v49 = vpop.f32.mrb[13].mxu0  ;;  %v11192_v56 = vpop.f32.mrb[13].mxu1  ;;  %15878 = vst [vmem:[#allocation26_spill] sm:$0xff] %v11239_v3  ;;  %v1400_v15 = vmul.f32 1.442695, %v1296_v38 }
 0x133   : > { %v9339_v54 = vpop.eup %9338  ;;  %9358 = vlog2.f32 %v1613_v36  ;;  %vm1536_vm12 = vcmp.gt.f32.partialorder %v11204_v4, 20.0  ;;  %vm1538_vm13 = vcmp.gt.f32.partialorder %v11225_v37, 20.0 }
 0x134   : > { %v9341_v61 = vpop.eup %9340  ;;  %9360 = vlog2.f32 %v1615_v40  ;;  %v1632_v0 = vadd.f32 1.0, %v9339_v54  ;;  %v11209_v17 = vpop.f32.mrb[14].mxu0  ;;  %v1279_v40 = vmin.f32 %v11199_v55, 20.0 }
 0x135   : > { %v9343_v9 = vpop.eup %9342  ;;  %v1634_v57 = vadd.f32 1.0, %v9341_v61  ;;  %9362 = vpow2.f32 %v1472_v39  ;;  %v11211_v22 = vpop.f32.mrb[14].mxu1  ;;  %v1478_v61 = vmul.f32 1.442695, %v1335_v59  ;;  %v11235_v59 = vadd.f32 %v11171_v20, %v11117_v53 }
 0x136   : > { %v9345_v23 = vpop.eup %9344  ;;  %9364 = vlog2.f32 %v1632_v0  ;;  %v1633_v12 = vadd.f32 1.0, %v9343_v9  ;;  %v11214_v31 = vpop.f32.mrb[15].mxu0  ;;  %v1364_v9 = vmul.f32 1.442695, %v1278_v58  ;;  %v1366_v27 = vmul.f32 1.442695, %v1279_v40 }
 0x137   : > { %v11216_v35 = vpop.f32.mrb[15].mxu1  ;;  %v9347_v36 = vpop.eup %9346  ;;  %9366 = vlog2.f32 %v1634_v57  ;;  %v1635_v39 = vadd.f32 1.0, %v9345_v23  ;;  %15877 = vst [vmem:[#allocation25_spill] sm:$0xff] %v11235_v59  ;;  %v1297_v20 = vmin.f32 %v11235_v59, 20.0  ;;  %v11326_v25 = vadd.f32 %v11209_v17, %v11157_v43 }
 0x138   : > { %v9349_v54 = vpop.eup %9348  ;;  %9368 = vlog2.f32 %v1633_v12  ;;  %v1673_v46 = vmul.f32 0.6931472, %v9347_v36  ;;  %v11227_v57 = vpop.f32.mrb[16].mxu0 }
 0x139   : > { %v11221_v0 = vpop.eup %9350  ;;  %9370 = vlog2.f32 %v1635_v39  ;;  %v11229_v23 = vpop.f32.mrb[16].mxu1  ;;  %v1677_v12 = vmul.f32 0.6931472, %v9349_v54  ;;  %v1362_v39 = vmul.f32 1.442695, %v1277_v33 }
 0x13a   : > { %v11231_v28 = vpop.eup %9352  ;;  %9372 = vpow2.f32 %v1476_v14  ;;  %v11241_v58 = vpop.f32.mrb[17].mxu0  ;;  %v11252_v21 = vsel %vm1512_vm2, %v11106_v47, %v1673_v46  ;;  %v1404_v47 = vmul.f32 1.442695, %v1298_v16  ;;  %vm1533_vm2 = vcmp.gt.f32.partialorder %v11130_v5, 20.0 }
 0x13b   : > { %v11243_v13 = vpop.f32.mrb[17].mxu1  ;;  %v9355_v36 = vpop.eup %9354  ;;  %9374 = vpow2.f32 %v1474_v26  ;;  %v1299_v26 = vmin.f32 %v11239_v3, 20.0  ;;  %v11262_v38 = vsel %vm1514_vm3, %v11109_v48, %v1677_v12  ;;  %v1402_v12 = vmul.f32 1.442695, %v1297_v20 }
 0x13c   : > { %v9357_v54 = vpop.eup %9356  ;;  %v1713_v14 = vmul.f32 0.6931472, %v9355_v36  ;;  %9376 = vpow2.f32 %v1478_v61  ;;  %v11255_v33 = vpop.f32.mrb[18].mxu0  ;;  %15879 = vst [vmem:[#allocation27_spill] sm:$0xff] %v11262_v38  ;;  %v11297_v20 = vadd.f32 %v11187_v45, %v11138_v18  ;;  %vm1535_vm3 = vcmp.gt.f32.partialorder %v11133_v8, 20.0 }
 0x13d   : > { %v11247_v11 = vpop.eup %9358  ;;  %v1717_v10 = vmul.f32 0.6931472, %v9357_v54  ;;  %9378 = vpow2.f32 %v1360_v1  ;;  %v11269_v46 = vpop.f32.mrb[18].mxu1  ;;  %v1406_v6 = vmul.f32 1.442695, %v1299_v26 }
 0x13e   : > { %v11257_v40 = vpop.eup %9360  ;;  %v11267_v61 = vsel %vm1532_vm4, %v11124_v62, %v1713_v14  ;;  %9380 = vpow2.f32 %v1364_v9  ;;  %v11271_v1 = vpop.f32.mrb[19].mxu0  ;;  %v11286_v14 = vadd.f32 %v11185_v42, %v11138_v18 }
 0x13f   : > { %v9363_v36 = vpop.eup %9362  ;;  %v11278_v48 = vsel %vm1534_vm5, %v11127_v63, %v1717_v10  ;;  %9382 = vpow2.f32 %v1362_v39  ;;  %v11280_v7 = vpop.f32.mrb[19].mxu1  ;;  %vm1558_vm5 = vcmp.gt.f32.partialorder %v11297_v20, 20.0 }
 0x140   : > { %15880 = vst [vmem:[#allocation28_spill] sm:$0xff] %v11278_v48  ;;  %v9365_v62 = vpop.eup %9364  ;;  %v1652_v9 = vadd.f32 1.0, %v9363_v36  ;;  %9384 = vpow2.f32 %v1366_v27  ;;  %v11288_v3 = vpop.f32.mrb[20].mxu0  ;;  %v1316_v39 = vmin.f32 %v11286_v14, 20.0  ;;  %vm1556_vm4 = vcmp.gt.f32.partialorder %v11286_v14, 20.0 }
 0x141   : > { %v9367_v54 = vpop.eup %9366  ;;  %9386 = vpow2.f32 %v1400_v15  ;;  %v11290_v10 = vpop.f32.mrb[20].mxu1  ;;  %v11307_v15 = vadd.f32 %v11190_v49, %v11138_v18  ;;  %v1753_v59 = vmul.f32 0.6931472, %v9365_v62  ;;  %v11317_v49 = vadd.f32 %v11192_v56, %v11138_v18 }
 0x142   : > { %v11292_v63 = vpop.eup %9368  ;;  %9388 = vlog2.f32 %v1652_v9  ;;  %v11299_v27 = vpop.f32.mrb[21].mxu0  ;;  %v1440_v9 = vmul.f32 1.442695, %v1316_v39  ;;  %v11331_v56 = vadd.f32 %v11211_v22, %v11157_v43 }
 0x143   : > { %15881 = vst [vmem:[#allocation29_spill] sm:$0xff] %v11292_v63  ;;  %v11301_v42 = vpop.f32.mrb[21].mxu1  ;;  %v11303_v36 = vpop.eup %9370  ;;  %9390 = vpow2.f32 %v1404_v47  ;;  %15883 = vst [vmem:[#allocation31_spill] sm:$0xff] %v11307_v15  ;;  %v1318_v47 = vmin.f32 %v11297_v20, 20.0  ;;  %v1319_v32 = vmin.f32 %v11317_v49, 20.0 }
 0x144   : > { %15882 = vst [vmem:[#allocation30_spill] sm:$0xff] %v11303_v36  ;;  %v9373_v26 = vpop.eup %9372  ;;  %9392 = vpow2.f32 %v1402_v12  ;;  %v11310_v55 = vpop.f32.mrb[22].mxu0  ;;  %15884 = vst [vmem:[#allocation32_spill] sm:$0xff] %v11317_v49  ;;  %v1338_v48 = vmin.f32 %v11331_v56, 20.0 }
 0x145   : > { %v9375_v16 = vpop.eup %9374  ;;  %v1654_v45 = vadd.f32 1.0, %v9373_v26  ;;  %9394 = vpow2.f32 %v1406_v6  ;;  %v11312_v60 = vpop.f32.mrb[22].mxu1  ;;  %v1317_v26 = vmin.f32 %v11307_v15, 20.0  ;;  %v1446_v38 = vmul.f32 1.442695, %v1319_v32 }
 0x146   : > { %v9377_v63 = vpop.eup %9376  ;;  %v1653_v36 = vadd.f32 1.0, %v9375_v16  ;;  %9396 = vpow2.f32 %v1440_v9  ;;  %v11319_v12 = vpop.f32.mrb[23].mxu0 }
 0x147   : > { %15885 = vst [vmem:[#allocation33_spill] sm:$0xff] %v11319_v12  ;;  %v11321_v39 = vpop.f32.mrb[23].mxu1  ;;  %v9379_v62 = vpop.eup %9378  ;;  %9398 = vlog2.f32 %v1654_v45  ;;  %v1655_v6 = vadd.f32 1.0, %v9377_v63 }
 0x148   : > { %15886 = vst [vmem:[#allocation34_spill] sm:$0xff] %v11321_v39  ;;  %v9381_v16 = vpop.eup %9380  ;;  %9400 = vlog2.f32 %v1653_v36  ;;  %v1596_v9 = vadd.f32 1.0, %v9379_v62  ;;  %v11335_v45 = vpop.f32.mrb[24].mxu0  ;;  %v11342_v36 = vsel %vm1552_vm6, %v11142_v24, %v1753_v59  ;;  %v1757_v62 = vmul.f32 0.6931472, %v9367_v54 }
 0x149   : > { %v9383_v19 = vpop.eup %9382  ;;  %9402 = vlog2.f32 %v1655_v6  ;;  %v1598_v63 = vadd.f32 1.0, %v9381_v16  ;;  %15887 = vst [vmem:[#allocation35_spill] sm:$0xff] %v11335_v45  ;;  %v11337_v17 = vpop.f32.mrb[24].mxu1  ;;  %v1444_v6 = vmul.f32 1.442695, %v1318_v47  ;;  %v1336_v45 = vmin.f32 %v11326_v25, 20.0 }
 0x14a   : > { %15888 = vst [vmem:[#allocation36_spill] sm:$0xff] %v11337_v17  ;;  %v9385_v15 = vpop.eup %9384  ;;  %9404 = vlog2.f32 %v1596_v9  ;;  %v1597_v22 = vadd.f32 1.0, %v9383_v19  ;;  %v11344_v49 = vpop.f32.mrb[25].mxu0  ;;  %v1442_v16 = vmul.f32 1.442695, %v1317_v26  ;;  %v11352_v24 = vadd.f32 %v11214_v31, %v11157_v43 }
 0x14b   : > { %15889 = vst [vmem:[#allocation37_spill] sm:$0xff] %v11344_v49  ;;  %v11346_v30 = vpop.f32.mrb[25].mxu1  ;;  %v9387_v39 = vpop.eup %9386  ;;  %9406 = vlog2.f32 %v1598_v63  ;;  %v1599_v54 = vadd.f32 1.0, %v9385_v15  ;;  %v11356_v9 = vadd.f32 %v11216_v35, %v11157_v43  ;;  %v11365_v31 = vadd.f32 %v11227_v57, %v11103_v44 }
 0x14c   : > { %15890 = vst [vmem:[#allocation38_spill] sm:$0xff] %v11346_v30  ;;  %v9389_v17 = vpop.eup %9388  ;;  %v1616_v12 = vadd.f32 1.0, %v9387_v39  ;;  %15891 = vst [vmem:[#allocation39_spill] sm:$0xff] %v11352_v24  ;;  %9408 = vlog2.f32 %v1597_v22  ;;  %v11358_v47 = vpop.f32.mrb[26].mxu0  ;;  %v1337_v63 = vmin.f32 %v11352_v24, 20.0  ;;  %v11422_v57 = vadd.f32 %v11255_v33, %v11117_v53 }
 0x14d   : > { %v9391_v19 = vpop.eup %9390  ;;  %v1793_v59 = vmul.f32 0.6931472, %v9389_v17  ;;  %15892 = vst [vmem:[#allocation40_spill] sm:$0xff] %v11356_v9  ;;  %15893 = vst [vmem:[#allocation41_spill] sm:$0xff] %v11358_v47  ;;  %v11360_v26 = vpop.f32.mrb[26].mxu1  ;;  %vm1576_vm6 = vcmp.gt.f32.partialorder %v11326_v25, 20.0 }
 0x14e   : > { %15894 = vst [vmem:[#allocation42_spill] sm:$0xff] %v11360_v26  ;;  %v9393_v39 = vpop.eup %9392  ;;  %9410 = vlog2.f32 %v1616_v12  ;;  %v1618_v32 = vadd.f32 1.0, %v9391_v19  ;;  %v11367_v17 = vpop.f32.mrb[27].mxu0  ;;  %v1339_v12 = vmin.f32 %v11356_v9, 20.0  ;;  %v1480_v24 = vmul.f32 1.442695, %v1336_v45 }
 0x14f   : > { %15895 = vst [vmem:[#allocation43_spill] sm:$0xff] %v11367_v17  ;;  %v11369_v15 = vpop.f32.mrb[27].mxu1  ;;  %v11371_v22 = vpop.eup %9394  ;;  %v11376_v35 = vsel %vm1572_vm8, %v11160_v50, %v1793_v59  ;;  %v1617_v26 = vadd.f32 1.0, %v9393_v39  ;;  %9412 = vpow2.f32 %v1444_v6  ;;  %v1484_v17 = vmul.f32 1.442695, %v1338_v48 }
 0x150   : > { %15896 = vst [vmem:[#allocation44_spill] sm:$0xff] %v11369_v15  ;;  %v9397_v19 = vpop.eup %9396  ;;  %9414 = vlog2.f32 %v1618_v32  ;;  %v1482_v30 = vmul.f32 1.442695, %v1337_v63  ;;  %v11382_v49 = vpop.f32.mrb[28].mxu0  ;;  %v11391_v59 = vsel %vm1554_vm7, %v11145_v29, %v1757_v62  ;;  %v1280_v48 = vmin.f32 %v11365_v31, 20.0 }
 0x151   : > { %v9399_v47 = vpop.eup %9398  ;;  %9416 = vlog2.f32 %v1599_v54  ;;  %v1636_v15 = vadd.f32 1.0, %v9397_v19  ;;  %v11384_v50 = vpop.f32.mrb[28].mxu1  ;;  %v1486_v63 = vmul.f32 1.442695, %v1339_v12  ;;  %v11402_v19 = vadd.f32 %v11229_v23, %v11103_v44 }
 0x152   : > { %v11386_v6 = vpop.eup %9400  ;;  %v1797_v39 = vmul.f32 0.6931472, %v9399_v47  ;;  %9418 = vlog2.f32 %v1617_v26  ;;  %v11394_v45 = vpop.f32.mrb[29].mxu0  ;;  %v11406_v29 = vadd.f32 %v11241_v58, %v11103_v44  ;;  %v1368_v26 = vmul.f32 1.442695, %v1280_v48 }
 0x153   : > { %v11396_v54 = vpop.f32.mrb[29].mxu1  ;;  %v11398_v32 = vpop.eup %9402  ;;  %9420 = vlog2.f32 %v1636_v15  ;;  %v11415_v15 = vadd.f32 %v11243_v13, %v11103_v44  ;;  %v1282_v58 = vmin.f32 %v11402_v19, 20.0  ;;  %vm1578_vm7 = vcmp.gt.f32.partialorder %v11331_v56, 20.0 }
 0x154   : > { %15897 = vst [vmem:[#allocation45_spill] sm:$0xff] %v11396_v54  ;;  %15898 = vst [vmem:[#allocation46_spill] sm:$0xff] %v11406_v29  ;;  %v9405_v62 = vpop.eup %9404  ;;  %v11411_v47 = vsel %vm1574_vm9, %v11163_v2, %v1797_v39  ;;  %9422 = vpow2.f32 %v1442_v16  ;;  %v11424_v9 = vpop.f32.mrb[30].mxu0  ;;  %v1281_v13 = vmin.f32 %v11406_v29, 20.0  ;;  %vm1520_vm8 = vcmp.gt.f32.partialorder %v11365_v31, 20.0 }
 0x155   : > { %15899 = vst [vmem:[#allocation47_spill] sm:$0xff] %v11415_v15  ;;  %v9407_v12 = vpop.eup %9406  ;;  %9424 = vpow2.f32 %v1446_v38  ;;  %15900 = vst [vmem:[#allocation48_spill] sm:$0xff] %v11424_v9  ;;  %v11426_v2 = vpop.f32.mrb[30].mxu1  ;;  %v1681_v16 = vmul.f32 0.6931472, %v9405_v62 }
 0x156   : > { %15901 = vst [vmem:[#allocation49_spill] sm:$0xff] %v11426_v2  ;;  %9426 = vpow2.f32 %v1480_v24  ;;  %v11430_v39 = vpop.f32.mrb[31].mxu0  ;;  %v11432_v48 = vpop.f32.mrb[31].mxu1  ;;  %v1372_v33 = vmul.f32 1.442695, %v1282_v58  ;;  %v1283_v24 = vmin.f32 %v11415_v15, 20.0 }
 0x157   : > { %15902 = vst [vmem:[#allocation50_spill] sm:$0xff] %v11430_v39  ;;  %15903 = vst [vmem:[#allocation51_spill] sm:$0xff] %v11432_v48  ;;  %v11434_v38 = vpop.eup %9408  ;;  %9428 = vpow2.f32 %v1484_v17  ;;  %v1685_v2 = vmul.f32 0.6931472, %v9407_v12  ;;  %v1370_v9 = vmul.f32 1.442695, %v1281_v13  ;;  %v11448_v17 = vsel %vm1516_vm10, %v11180_v34, %v1681_v16 }
 0x158   : > { %15904 = vst [vmem:[#allocation52_spill] sm:$0xff] %v11434_v38  ;;  %v9411_v23 = vpop.eup %9410  ;;  %9430 = vpow2.f32 %v1482_v30  ;;  %v1300_v48 = vmin.f32 %v11422_v57, 20.0  ;;  %v11441_v39 = vpop.f32.mrb[32].mxu0  ;;  %15907 = vst [vmem:[#allocation55_spill] sm:$0xff] %v11448_v17  ;;  %v1619_v30 = vadd.f32 1.0, %v11371_v22  ;;  %v11468_v16 = vadd.f32 %v11269_v46, %v11117_v53 }
 0x159   : > { %v9413_v62 = vpop.eup %9412  ;;  %v1721_v29 = vmul.f32 0.6931472, %v9411_v23  ;;  %9432 = vpow2.f32 %v1486_v63  ;;  %15905 = vst [vmem:[#allocation53_spill] sm:$0xff] %v11441_v39  ;;  %v11443_v38 = vpop.f32.mrb[32].mxu1  ;;  %v11497_v46 = vadd.f32 %v11280_v7, %v11117_v53  ;;  %v1675_v17 = vmul.f32 0.6931472, %v11221_v0 }
 0x15a   : > { %15906 = vst [vmem:[#allocation54_spill] sm:$0xff] %v11443_v38  ;;  %v9415_v54 = vpop.eup %9414  ;;  %v1638_v12 = vadd.f32 1.0, %v9413_v62  ;;  %9434 = vpow2.f32 %v1368_v26  ;;  %v11451_v23 = vpop.f32.mrb[33].mxu0  ;;  %v1408_v38 = vmul.f32 1.442695, %v1300_v48  ;;  %v1302_v22 = vmin.f32 %v11468_v16, 20.0 }
 0x15b   : > { %15908 = vst [vmem:[#allocation56_spill] sm:$0xff] %v11451_v23  ;;  %v11453_v58 = vpop.f32.mrb[33].mxu1  ;;  %v11455_v63 = vpop.eup %9416  ;;  %v11460_v13 = vsel %vm1536_vm12, %v11204_v4, %v1721_v29  ;;  %v1725_v15 = vmul.f32 0.6931472, %v9415_v54  ;;  %9436 = vpow2.f32 %v1372_v33  ;;  %v1374_v26 = vmul.f32 1.442695, %v1283_v24 }
 0x15c   : > { %15909 = vst [vmem:[#allocation57_spill] sm:$0xff] %v11453_v58  ;;  %v11462_v34 = vpop.eup %9418  ;;  %9438 = vlog2.f32 %v1638_v12  ;;  %v11473_v4 = vsel %vm1518_vm11, %v11183_v41, %v1685_v2  ;;  %v11480_v29 = vpop.f32.mrb[34].mxu0  ;;  %15917 = vst [vmem:[#allocation65_spill] sm:$0xff] %v11497_v46  ;;  %vm1522_vm10 = vcmp.gt.f32.partialorder %v11402_v19, 20.0  ;;  %vm1540_vm12 = vcmp.gt.f32.partialorder %v11422_v57, 20.0 }
 0x15d   : > { %v9421_v62 = vpop.eup %9420  ;;  %15910 = vst [vmem:[#allocation58_spill] sm:$0xff] %v11473_v4  ;;  %v11478_v54 = vsel %vm1538_vm13, %v11225_v37, %v1725_v15  ;;  %9440 = vpow2.f32 %v1370_v9  ;;  %15912 = vst [vmem:[#allocation60_spill] sm:$0xff] %v11480_v29  ;;  %v11482_v48 = vpop.f32.mrb[34].mxu1  ;;  %v11492_v37 = vadd.f32 %v11271_v1, %v11117_v53 }
 0x15e   : > { %15911 = vst [vmem:[#allocation59_spill] sm:$0xff] %v11478_v54  ;;  %15913 = vst [vmem:[#allocation61_spill] sm:$0xff] %v11482_v48  ;;  %v9423_v33 = vpop.eup %9422  ;;  %9442 = vlog2.f32 %v1619_v30  ;;  %v11486_v24 = vpop.f32.mrb[35].mxu0  ;;  %v1761_v29 = vmul.f32 0.6931472, %v9421_v62 }
 0x15f   : > { %15914 = vst [vmem:[#allocation62_spill] sm:$0xff] %v11486_v24  ;;  %v11488_v12 = vpop.f32.mrb[35].mxu1  ;;  %v9425_v41 = vpop.eup %9424  ;;  %v1637_v2 = vadd.f32 1.0, %v9423_v33  ;;  %9444 = vpow2.f32 %v1408_v38  ;;  %15916 = vst [vmem:[#allocation64_spill] sm:$0xff] %v11492_v37  ;;  %v11501_v33 = vadd.f32 %v11288_v3, %v11138_v18  ;;  %v1412_v3 = vmul.f32 1.442695, %v1302_v22 }
 0x160   : > { %15915 = vst [vmem:[#allocation63_spill] sm:$0xff] %v11488_v12  ;;  %v9427_v9 = vpop.eup %9426  ;;  %v1639_v15 = vadd.f32 1.0, %v9425_v41  ;;  %9446 = vpow2.f32 %v1374_v26  ;;  %v11503_v38 = vpop.f32.mrb[36].mxu0 }
 0x161   : > { %v9429_v30 = vpop.eup %9428  ;;  %9448 = vlog2.f32 %v1637_v2  ;;  %v1656_v24 = vadd.f32 1.0, %v9427_v9  ;;  %15918 = vst [vmem:[#allocation66_spill] sm:$0xff] %v11503_v38  ;;  %v11505_v1 = vpop.f32.mrb[36].mxu1  ;;  %v1301_v9 = vmin.f32 %v11492_v37, 20.0  ;;  %v11524_v37 = vadd.f32 %v11299_v27, %v11138_v18 }
 0x162   : > { %15919 = vst [vmem:[#allocation67_spill] sm:$0xff] %v11505_v1  ;;  %v9431_v12 = vpop.eup %9430  ;;  %9450 = vlog2.f32 %v1639_v15  ;;  %v1658_v26 = vadd.f32 1.0, %v9429_v30  ;;  %v11507_v41 = vpop.f32.mrb[37].mxu0  ;;  %v1303_v15 = vmin.f32 %v11497_v46, 20.0  ;;  %v11518_v30 = vadd.f32 %v11290_v10, %v11138_v18 }
 0x163   : > { %15920 = vst [vmem:[#allocation68_spill] sm:$0xff] %v11507_v41  ;;  %v11509_v48 = vpop.f32.mrb[37].mxu1  ;;  %v9433_v7 = vpop.eup %9432  ;;  %9452 = vlog2.f32 %v1656_v24  ;;  %v1657_v2 = vadd.f32 1.0, %v9431_v12  ;;  %v1320_v12 = vmin.f32 %v11501_v33, 20.0  ;;  %15922 = vst [vmem:[#allocation70_spill] sm:$0xff] %v11524_v37  ;;  %v11541_v38 = vsel %vm1556_vm4, %v11286_v14, %v1761_v29 }
 0x164   : > { %15921 = vst [vmem:[#allocation69_spill] sm:$0xff] %v11509_v48  ;;  %v9435_v58 = vpop.eup %9434  ;;  %9454 = vlog2.f32 %v1658_v26  ;;  %v11528_v26 = vadd.f32 %v11301_v42, %v11138_v18  ;;  %v11530_v22 = vpop.f32.mrb[38].mxu0  ;;  %v1659_v42 = vadd.f32 1.0, %v9433_v7  ;;  %vm1562_vm4 = vcmp.gt.f32.partialorder %v11518_v30, 20.0 }
 0x165   : > { %v9437_v62 = vpop.eup %9436  ;;  %v1600_v24 = vadd.f32 1.0, %v9435_v58  ;;  %15923 = vst [vmem:[#allocation71_spill] sm:$0xff] %v11530_v22  ;;  %v11532_v46 = vpop.f32.mrb[38].mxu1  ;;  %9456 = vlog2.f32 %v1657_v2  ;;  %v1322_v58 = vmin.f32 %v11518_v30, 20.0  ;;  %v1448_v29 = vmul.f32 1.442695, %v1320_v12 }
 0x166   : > { %15924 = vst [vmem:[#allocation72_spill] sm:$0xff] %v11532_v46  ;;  %v9439_v10 = vpop.eup %9438  ;;  %v1602_v48 = vadd.f32 1.0, %v9437_v62  ;;  %v11536_v41 = vpop.f32.mrb[39].mxu0  ;;  %v1321_v46 = vmin.f32 %v11524_v37, 20.0  ;;  %v1410_v62 = vmul.f32 1.442695, %v1301_v9  ;;  %v11560_v12 = vadd.f32 %v11310_v55, %v11157_v43 }
 0x167   : > { %15925 = vst [vmem:[#allocation73_spill] sm:$0xff] %v11536_v41  ;;  %v11538_v1 = vpop.f32.mrb[39].mxu1  ;;  %v9441_v27 = vpop.eup %9440  ;;  %9458 = vlog2.f32 %v1600_v24  ;;  %v1414_v41 = vmul.f32 1.442695, %v1303_v15  ;;  %v1765_v14 = vmul.f32 0.6931472, %v9439_v10 }
 0x168   : > { %15926 = vst [vmem:[#allocation74_spill] sm:$0xff] %v11538_v1  ;;  %v11546_v2 = vpop.eup %9442  ;;  %9460 = vlog2.f32 %v1602_v48  ;;  %v1323_v1 = vmin.f32 %v11528_v26, 20.0  ;;  %v1452_v23 = vmul.f32 1.442695, %v1322_v58  ;;  %v1601_v4 = vadd.f32 1.0, %v9441_v27 }
 0x169   : > { %v9445_v22 = vpop.eup %9444  ;;  %9462 = vpow2.f32 %v1412_v3  ;;  %v1450_v24 = vmul.f32 1.442695, %v1321_v46  ;;  %v1715_v48 = vmul.f32 0.6931472, %v11247_v11  ;;  %v1679_v9 = vmul.f32 0.6931472, %v11231_v28 }
 0x16a   : > { %v9447_v39 = vpop.eup %9446  ;;  %v1620_v7 = vadd.f32 1.0, %v9445_v22  ;;  %v1454_v54 = vmul.f32 1.442695, %v1323_v1  ;;  %9464 = vlog2.f32 %v1659_v42  ;;  %v1719_v3 = vmul.f32 0.6931472, %v11257_v40 }
 0x16b   : > { %v11550_v37 = vpop.eup %9448  ;;  %v11564_v46 = vadd.f32 %v11312_v60, %v11157_v43  ;;  %v1833_v11 = vsel %vm1513_vm14, %v11112_v51, %v1675_v17  ;;  %v1853_v28 = vsel %vm1533_vm2, %v11130_v5, %v1715_v48  ;;  %v1835_v0 = vsel %vm1515_vm15, %v11115_v52, %v1679_v9 }
 0x16c   : > { %v11555_v15 = vpop.eup %9450  ;;  %9466 = vlog2.f32 %v1620_v7  ;;  %v8854_v22 = vpack.c.bf16 %v1853_v28, %v1833_v11  ;;  %v1855_v60 = vsel %vm1535_vm3, %v11133_v8, %v1719_v3  ;;  %v1340_v51 = vmin.f32 %v11560_v12, 20.0  ;;  %v15932_v11 = vld [vmem:[#allocation34_spill] sm:$0xff] }
 0x16d   : > { %v9453_v1 = vpop.eup %9452  ;;  %9468 = vpow2.f32 %v1410_v62  ;;  %v8862_v58 = vpack.c.bf16 %v1855_v60, %v1835_v0  ;;  %v11584_v5 = vsel %vm1558_vm5, %v11297_v20, %v1765_v14  ;;  %v1342_v8 = vmin.f32 %v11564_v46, 20.0  ;;  %v15928_v14 = vld [vmem:[#allocation28_spill] sm:$0xff] }
 0x16e   : > { %v9455_v55 = vpop.eup %9454  ;;  %v1801_v40 = vmul.f32 0.6931472, %v9453_v1  ;;  %9470 = vpow2.f32 %v1414_v41  ;;  %8855 = vmatprep.subr.bf16.mxu0 %v8854_v22  ;;  %v15927_v20 = vpack.c.bf16 %v11267_v61, %v11252_v21  ;;  %v1603_v3 = vadd.f32 1.0, %v9447_v39  ;;  %v15933_v39 = vld [vmem:[#allocation35_spill] sm:$0xff] }
 0x16f   : > { %v1805_v10 = vmul.f32 0.6931472, %v9455_v55  ;;  %9472 = vpow2.f32 %v1448_v29  ;;  %v11579_v17 = vpop.eup %9456  ;;  %8863 = vmatprep.subr.bf16.mxu1 %v8862_v58  ;;  %v15929_v29 = vld [vmem:[#allocation27_spill] sm:$0xff]  ;;  %v1492_v48 = vmul.f32 1.442695, %v1342_v8  ;;  %v11613_v28 = vadd.f32 %v15932_v11, %v11157_v43  ;;  %v15938_v11 = vld [vmem:[#allocation22_spill] sm:$0xff] }
 0x170   : > { %v11589_v52 = vsel %vm1576_vm6, %v11326_v25, %v1801_v40  ;;  %9474 = vpow2.f32 %v1452_v23  ;;  %8857 = vmatpush1.bf16.msra.mxu0 %v15927_v20  ;;  %v1488_v25 = vmul.f32 1.442695, %v1340_v51  ;;  %v15930_v7 = vpack.c.bf16 %v15928_v14, %v15929_v29  ;;  %v15934_v22 = vld [vmem:[#allocation19_spill] sm:$0xff] }
 0x171   : > { %v9459_v41 = vpop.eup %9458  ;;  %v11597_v42 = vsel %vm1578_vm7, %v11331_v56, %v1805_v10  ;;  %9476 = vpow2.f32 %v1450_v24  ;;  %v15931_v24 = vld [vmem:[#allocation33_spill] sm:$0xff]  ;;  %v11621_v55 = vadd.f32 %v15933_v39, %v11103_v44  ;;  %vm1553_vm9 = vcmp.gt.f32.partialorder %v15934_v22, 20.0  ;;  %v15935_v10 = vld [vmem:[#allocation36_spill] sm:$0xff] }
 0x172   : > { %v9461_v23 = vpop.eup %9460  ;;  %9478 = vpow2.f32 %v1454_v54  ;;  %8865 = vmatpush1.bf16.msra.mxu1 %v15930_v7  ;;  %v1689_v56 = vmul.f32 0.6931472, %v9459_v41  ;;  %v11609_v1 = vadd.f32 %v15931_v24, %v11157_v43  ;;  %v1343_v60 = vmin.f32 %v11613_v28, 20.0 }
 0x173   : > { %v9463_v9 = vpop.eup %9462  ;;  %9480 = vpow2.f32 %v1488_v25  ;;  %v1693_v21 = vmul.f32 0.6931472, %v9461_v23  ;;  %v11628_v58 = vadd.f32 %v15935_v10, %v11103_v44  ;;  %v1284_v29 = vmin.f32 %v11621_v55, 20.0 }
 0x174   : > { %v1622_v61 = vadd.f32 1.0, %v9463_v9  ;;  %9482 = vpow2.f32 %v1492_v48  ;;  %v11615_v54 = vpop.eup %9464  ;;  %v1341_v0 = vmin.f32 %v11609_v1, 20.0  ;;  %v11635_v25 = vsel %vm1520_vm8, %v11365_v31, %v1689_v56  ;;  %v15937_v48 = vld [vmem:[#allocation20_spill] sm:$0xff] }
 0x175   : > { %9484 = vlog2.f32 %v1601_v4  ;;  %v15936_v4 = vld [vmem:[#allocation21_spill] sm:$0xff]  ;;  %v11638_v23 = vsel %vm1522_vm10, %v11402_v19, %v1693_v21  ;;  %vm1555_vm13 = vcmp.gt.f32.partialorder %v15937_v48, 20.0  ;;  %v1494_v24 = vmul.f32 1.442695, %v1343_v60 }
 0x176   : > { %v9467_v40 = vpop.eup %9466  ;;  %9486 = vlog2.f32 %v1622_v61  ;;  %vm1573_vm11 = vcmp.gt.f32.partialorder %v15936_v4, 20.0  ;;  %v1490_v41 = vmul.f32 1.442695, %v1341_v0  ;;  %vm1575_vm14 = vcmp.gt.f32.partialorder %v15938_v11, 20.0 }
 0x177   : > { %v9469_v51 = vpop.eup %9468  ;;  %9488 = vlog2.f32 %v1603_v3  ;;  %v1729_v8 = vmul.f32 0.6931472, %v9467_v40  ;;  %vm1542_vm15 = vcmp.gt.f32.partialorder %v11468_v16, 20.0  ;;  %v1286_v56 = vmin.f32 %v11628_v58, 20.0  ;;  %v15940_v40 = vld [vmem:[#allocation38_spill] sm:$0xff] }
 0x178   : > { %v9471_v20 = vpop.eup %9470  ;;  %v1621_v14 = vadd.f32 1.0, %v9469_v51  ;;  %9490 = vpow2.f32 %v1490_v41  ;;  %v11656_v60 = vadd.f32 %v15940_v40, %v11103_v44  ;;  %vm1941_vm2 = vcmask 261120  }
 0x179   : > { %v9473_v7 = vpop.eup %9472  ;;  %v11643_v9 = vsel %vm1540_vm12, %v11422_v57, %v1729_v8  ;;  %v1623_v3 = vadd.f32 1.0, %v9471_v20  ;;  %v15939_v57 = vld [vmem:[#allocation37_spill] sm:$0xff]  ;;  %v1795_v20 = vmul.f32 0.6931472, %v11386_v6  ;;  %v1380_v62 = vmul.f32 1.442695, %v1286_v56 }
 0x17a   : > { %v9475_v61 = vpop.eup %9474  ;;  %9492 = vlog2.f32 %v1621_v14  ;;  %v1640_v19 = vadd.f32 1.0, %v9473_v7  ;;  %v11652_v39 = vadd.f32 %v15939_v57, %v11103_v44  ;;  %v15941_v8 = vld [vmem:[#allocation29_spill] sm:$0xff]  ;;  %v1287_v40 = vmin.f32 %v11656_v60, 20.0 }
 0x17b   : > { %v9477_v21 = vpop.eup %9476  ;;  %9494 = vlog2.f32 %v1623_v3  ;;  %v1642_v0 = vadd.f32 1.0, %v9475_v61  ;;  %v1755_v41 = vmul.f32 0.6931472, %v15941_v8  ;;  %v1376_v3 = vmul.f32 1.442695, %v1284_v29 }
 0x17c   : > { %v9479_v10 = vpop.eup %9478  ;;  %9496 = vlog2.f32 %v1640_v19  ;;  %v1641_v51 = vadd.f32 1.0, %v9477_v21  ;;  %v1285_v61 = vmin.f32 %v11652_v39, 20.0  ;;  %v1382_v29 = vmul.f32 1.442695, %v1287_v40 }
 0x17d   : > { %v9481_v14 = vpop.eup %9480  ;;  %9498 = vlog2.f32 %v1642_v0  ;;  %v1643_v7 = vadd.f32 1.0, %v9479_v10  ;;  %v1873_v6 = vsel %vm1553_vm9, %v15934_v22, %v1755_v41  ;;  %v1893_v10 = vsel %vm1573_vm11, %v15936_v4, %v1795_v20  ;;  %v15944_v4 = vld [vmem:[#allocation42_spill] sm:$0xff] }
 0x17e   : > { %v9483_v57 = vpop.eup %9482  ;;  %9500 = vlog2.f32 %v1641_v51  ;;  %v1660_v31 = vadd.f32 1.0, %v9481_v14  ;;  %v1378_v21 = vmul.f32 1.442695, %v1285_v61  ;;  %v15942_v51 = vld [vmem:[#allocation30_spill] sm:$0xff]  ;;  %v1799_v61 = vmul.f32 0.6931472, %v11398_v32 }
 0x17f   : > { %v11662_v27 = vpop.eup %9484  ;;  %9502 = vlog2.f32 %v1643_v7  ;;  %v1662_v19 = vadd.f32 1.0, %v9483_v57  ;;  %v1759_v56 = vmul.f32 0.6931472, %v15942_v51  ;;  %v8858_v7 = vpack.c.bf16 %v1893_v10, %v1873_v6 }
 0x180   : > { %v9487_v0 = vpop.eup %9486  ;;  %9504 = vlog2.f32 %v1660_v31  ;;  %v15943_v31 = vld [vmem:[#allocation41_spill] sm:$0xff]  ;;  %v11683_v20 = vadd.f32 %v15944_v4, %v11117_v53  ;;  %v1895_v32 = vsel %vm1575_vm14, %v15938_v11, %v1799_v61  ;;  %vm1560_vm3 = vcmp.gt.f32.partialorder %v11501_v33, 20.0  ;;  %v15949_v4 = vld [vmem:[#allocation44_spill] sm:$0xff] }
 0x181   : > { %v11671_v8 = vpop.eup %9488  ;;  %v1733_v14 = vmul.f32 0.6931472, %v9487_v0  ;;  %9506 = vlog2.f32 %v1662_v19  ;;  %v1875_v22 = vsel %vm1555_vm13, %v15937_v48, %v1759_v56  ;;  %v11679_v41 = vadd.f32 %v15943_v31, %v11117_v53  ;;  %8859 = vmatprep.subr.bf16.mxu0 %v8858_v7  ;;  %v15945_v48 = vld [vmem:[#allocation43_spill] sm:$0xff] }
 0x182   : > { %9508 = vpow2.f32 %v1494_v24  ;;  %v9491_v57 = vpop.eup %9490  ;;  %v11695_v24 = vadd.f32 %v15945_v48, %v11117_v53  ;;  %v8866_v10 = vpack.c.bf16 %v1895_v32, %v1875_v22  ;;  %v1306_v56 = vmin.f32 %v11683_v20, 20.0 }
 0x183   : > { %v11688_v40 = vsel %vm1542_vm15, %v11468_v16, %v1733_v14  ;;  %9510 = vpow2.f32 %v1376_v3  ;;  %v1661_v0 = vadd.f32 1.0, %v9491_v57  ;;  %v15946_v16 = vpack.c.bf16 %v11376_v35, %v11342_v36  ;;  %v11704_v3 = vld [vmem:[#allocation3] sm:$0xff] }
 0x184   : > { %v11697_v19 = vpop.eup %9492  ;;  %9512 = vpow2.f32 %v1380_v62  ;;  %v1304_v11 = vmin.f32 %v11679_v41, 20.0  ;;  %8867 = vmatprep.subr.bf16.mxu1 %v8866_v10  ;;  %v1305_v7 = vmin.f32 %v11695_v24, 20.0  ;;  %v15947_v36 = vpack.c.bf16 %v11411_v47, %v11391_v59  ;;  %v11728_v59 = vld [vmem:[#allocation3 + $0x8] sm:$0xff] }
 0x185   : > { %8861 = vmatpush1.bf16.msra.mxu0 %v15946_v16  ;;  %v11706_v51 = vpop.eup %9494  ;;  %9514 = vpow2.f32 %v1378_v21  ;;  %v1420_v61 = vmul.f32 1.442695, %v1306_v56  ;;  %v11721_v57 = vadd.f32 %v15949_v4, %v11117_v53  ;;  %v15950_v32 = vmov 0.0   ;;  %v15953_v56 = vld [vmem:[#allocation24_spill] sm:$0xff]  ;;  %v11759_v4 = vld [vmem:[#allocation3 + $0x10] sm:$0xff] }
 0x186   : > { %v9497_v14 = vpop.eup %9496  ;;  %9516 = vlog2.f32 %v1661_v0  ;;  %8869 = vmatpush1.bf16.msra.mxu1 %v15947_v36  ;;  %v1416_v35 = vmul.f32 1.442695, %v1304_v11  ;;  %v1418_v31 = vmul.f32 1.442695, %v1305_v7  ;;  %v11735_v0 = vadd.f32 %v11384_v50, %v11138_v18  ;;  %v15952_v11 = vld [vmem:[#allocation23_spill] sm:$0xff] }
 0x187   : > { %v9499_v62 = vpop.eup %9498  ;;  %9518 = vpow2.f32 %v1382_v29  ;;  %v1769_v22 = vmul.f32 0.6931472, %v9497_v14  ;;  %v11725_v29 = vadd.f32 %v11382_v49, %v11138_v18  ;;  %vm1580_vm5 = vcmp.gt.f32.partialorder %v11560_v12, 20.0 }
 0x188   : > { %8648 = vmatmul.mubr.msk.f32.vlgmr.msra.gmra.mrb[40].mxu0 %vm1941_vm2, %v11704_v3  ;;  %v11717_v21 = vpop.eup %9500  ;;  %v1773_v48 = vmul.f32 0.6931472, %v9499_v62  ;;  %9520 = vpow2.f32 %v1416_v35  ;;  %vm1582_vm6 = vcmp.gt.f32.partialorder %v11564_v46, 20.0  ;;  %v1307_v49 = vmin.f32 %v11721_v57, 20.0 }
 0x189   : > { %15948 = vst [vmem:[#allocation28_spill] sm:$0xff] %v11717_v21  ;;  %2024 = vmatprep.mubr.f32.mxu0 %v15950_v32  ;;  %v11730_v47 = vpop.eup %9502  ;;  %9522 = vpow2.f32 %v1420_v61  ;;  %8652 = vmatmul.mubr.msk.f32.vlgmr.msra.gmra.mrb[40].mxu1 %vm1941_vm2, %v11704_v3  ;;  %vm1517_vm7 = vcmp.gt.f32.partialorder %v15952_v11, 20.0  ;;  %vm1519_vm8 = vcmp.gt.f32.partialorder %v15953_v56, 20.0  ;;  %v1324_v50 = vmin.f32 %v11725_v29, 20.0 }
 0x18a   : > { %15951 = vst [vmem:[#allocation27_spill] sm:$0xff] %v11730_v47  ;;  %v9505_v10 = vpop.eup %9504  ;;  %9524 = vpow2.f32 %v1418_v31  ;;  %2113 = vmatprep.mubr.f32.mxu1 %v15950_v32  ;;  %v11748_v7 = vadd.f32 %v11394_v45, %v11138_v18  ;;  %v11755_v36 = vsel %vm1560_vm3, %v11501_v33, %v1769_v22  ;;  %v1422_v61 = vmul.f32 1.442695, %v1307_v49 }
 0x18b   : > { %v9507_v16 = vpop.eup %9506  ;;  %v1809_v14 = vmul.f32 0.6931472, %v9505_v10  ;;  %15954 = vst [vmem:[#allocation33_spill] sm:$0xff] %v11755_v36  ;;  %v1326_v31 = vmin.f32 %v11735_v0, 20.0  ;;  %v11764_v45 = vsel %vm1562_vm4, %v11518_v30, %v1773_v48  ;;  %v1456_v22 = vmul.f32 1.442695, %v1324_v50 }
 0x18c   : > { %8649 = vmatmul.mubr.msk.f32.gmra.mrb[42].mxu0 %vm1941_vm2, %v11728_v59  ;;  %v9509_v62 = vpop.eup %9508  ;;  %v1813_v35 = vmul.f32 0.6931472, %v9507_v16  ;;  %15955 = vst [vmem:[#allocation34_spill] sm:$0xff] %v11764_v45  ;;  %9526 = vpow2.f32 %v1422_v61  ;;  %v15959_v50 = vld [vmem:[#allocation25_spill] sm:$0xff]  ;;  %v11790_v61 = vld [vmem:[#allocation3 + $0x18] sm:$0xff]  ;;  %vm1524_vm11 = vcmp.gt.f32.partialorder %v11621_v55, 20.0 }
 0x18d   : > { %2030 = vmatprep.mubr.f32.mxu0 %v15950_v32  ;;  %v9511_v10 = vpop.eup %9510  ;;  %v11769_v6 = vsel %vm1580_vm5, %v11560_v12, %v1809_v14  ;;  %v1663_v33 = vadd.f32 1.0, %v9509_v62  ;;  %8653 = vmatmul.mubr.msk.f32.gmra.mrb[42].mxu1 %vm1941_vm2, %v11728_v59  ;;  %v1325_v14 = vmin.f32 %v11748_v7, 20.0  ;;  %vm1537_vm9 = vcmp.gt.f32.partialorder %v15959_v50, 20.0  ;;  %v15962_v12 = vld [vmem:[#allocation52_spill] sm:$0xff] }
 0x18e   : > { %15956 = vst [vmem:[#allocation35_spill] sm:$0xff] %v11769_v6  ;;  %v9513_v49 = vpop.eup %9512  ;;  %v11776_v47 = vsel %vm1582_vm6, %v11564_v46, %v1813_v35  ;;  %v1604_v21 = vadd.f32 1.0, %v9511_v10  ;;  %2119 = vmatprep.mubr.f32.mxu1 %v15950_v32  ;;  %v1460_v35 = vmul.f32 1.442695, %v1326_v31  ;;  %v1683_v16 = vmul.f32 0.6931472, %v15962_v12 }
 0x18f   : > { %15957 = vst [vmem:[#allocation19_spill] sm:$0xff] %v11776_v47  ;;  %v9515_v30 = vpop.eup %9514  ;;  %9528 = vlog2.f32 %v1663_v33  ;;  %v1606_v48 = vadd.f32 1.0, %v9513_v49  ;;  %v15960_v33 = vld [vmem:[#allocation45_spill] sm:$0xff]  ;;  %v1723_v45 = vmul.f32 0.6931472, %v11462_v34  ;;  %v15963_v47 = vld [vmem:[#allocation26_spill] sm:$0xff] }
 0x190   : > { %8650 = vmatmul.mubr.msk.f32.gmra.mrb[44].mxu0 %vm1941_vm2, %v11759_v4  ;;  %v11786_v46 = vpop.eup %9516  ;;  %9530 = vlog2.f32 %v1604_v21  ;;  %v1605_v62 = vadd.f32 1.0, %v9515_v30  ;;  %v11794_v49 = vadd.f32 %v15960_v33, %v11138_v18  ;;  %vm1539_vm10 = vcmp.gt.f32.partialorder %v15963_v47, 20.0 }
 0x191   : > { %15958 = vst [vmem:[#allocation36_spill] sm:$0xff] %v11786_v46  ;;  %2036 = vmatprep.mubr.f32.mxu0 %v15950_v32  ;;  %v9519_v10 = vpop.eup %9518  ;;  %9532 = vlog2.f32 %v1606_v48  ;;  %v1687_v21 = vmul.f32 0.6931472, %v11455_v63  ;;  %v1727_v31 = vmul.f32 0.6931472, %v11546_v2  ;;  %8654 = vmatmul.mubr.msk.f32.gmra.mrb[44].mxu1 %vm1941_vm2, %v11759_v4  ;;  %v1837_v63 = vsel %vm1517_vm7, %v15952_v11, %v1683_v16  ;;  %v15964_v16 = vld [vmem:[#allocation48_spill] sm:$0xff] }
 0x192   : > { %15961 = vst [vmem:[#allocation21_spill] sm:$0xff] %v11794_v49  ;;  %9534 = vlog2.f32 %v1605_v62  ;;  %v9521_v30 = vpop.eup %9520  ;;  %v1607_v48 = vadd.f32 1.0, %v9519_v10  ;;  %v1458_v36 = vmul.f32 1.442695, %v1325_v14  ;;  %v1327_v33 = vmin.f32 %v11794_v49, 20.0  ;;  %2125 = vmatprep.mubr.f32.mxu1 %v15950_v32  ;;  %v15980_v46 = vld [vmem:[#allocation57_spill] sm:$0xff] }
 0x193   : > { %9536 = vpow2.f32 %v1456_v22  ;;  %v9523_v34 = vpop.eup %9522  ;;  %v1624_v12 = vadd.f32 1.0, %v9521_v30  ;;  %v1857_v2 = vsel %vm1537_vm9, %v15959_v50, %v1723_v45  ;;  %v1839_v22 = vsel %vm1519_vm8, %v15953_v56, %v1687_v21  ;;  %v15965_v50 = vld [vmem:[#allocation49_spill] sm:$0xff]  ;;  %v15966_v21 = vld [vmem:[#allocation50_spill] sm:$0xff] }
 0x194   : > { %8651 = vmatmul.mubr.msk.f32.gmra.mrb[46].mxu0 %vm1941_vm2, %v11790_v61  ;;  %v9525_v14 = vpop.eup %9524  ;;  %v1626_v62 = vadd.f32 1.0, %v9523_v34  ;;  %9538 = vpow2.f32 %v1460_v35  ;;  %v1462_v10 = vmul.f32 1.442695, %v1327_v33  ;;  %v8870_v6 = vpack.c.bf16 %v1857_v2, %v1837_v63 }
 0x195   : > { %2196 = vmatprep.mubr.f32.mxu0 %v15950_v32  ;;  %9540 = vlog2.f32 %v1624_v12  ;;  %v1625_v30 = vadd.f32 1.0, %v9525_v14  ;;  %v1859_v11 = vsel %vm1539_vm10, %v15963_v47, %v1727_v31  ;;  %v11822_v45 = vadd.f32 %v15964_v16, %v11157_v43  ;;  %8655 = vmatmul.mubr.msk.f32.gmra.mrb[46].mxu1 %vm1941_vm2, %v11790_v61  ;;  %v15968_v31 = vld [vmem:[#allocation55_spill] sm:$0xff] }
 0x196   : > { %9542 = vlog2.f32 %v1626_v62  ;;  %8871 = vmatprep.subr.bf16.mxu0 %v8870_v6  ;;  %v8878_v56 = vpack.c.bf16 %v1859_v11, %v1839_v22  ;;  %v11828_v35 = vadd.f32 %v15965_v50, %v11157_v43  ;;  %v11832_v33 = vadd.f32 %v15966_v21, %v11157_v43  ;;  %2285 = vmatprep.mubr.f32.mxu1 %v15950_v32  ;;  %v9527_v47 = vpop.eup %9526  ;;  %v15970_v6 = vld [vmem:[#allocation51_spill] sm:$0xff]  ;;  %v15974_v11 = vld [vmem:[#allocation58_spill] sm:$0xff] }
 0x197   : > { %9544 = vlog2.f32 %v1607_v48  ;;  %v15969_v34 = vpack.c.bf16 %v11460_v13, %v15968_v31  ;;  %v1344_v12 = vmin.f32 %v11822_v45, 20.0  ;;  %v11841_v63 = vadd.f32 %v15970_v6, %v11157_v43  ;;  %v15973_v48 = vld [vmem:[#allocation59_spill] sm:$0xff] }
 0x198   : > { %15967 = vst [vmem:[#allocation20_spill] sm:$0xff] %v11832_v33  ;;  %9546 = vpow2.f32 %v1458_v36  ;;  %8879 = vmatprep.subr.bf16.mxu1 %v8878_v56  ;;  %v1346_v22 = vmin.f32 %v11828_v35, 20.0  ;;  %v1627_v62 = vadd.f32 1.0, %v9527_v47  ;;  %v15975_v16 = vpack.c.bf16 %v15973_v48, %v15974_v11 }
 0x199   : > { %8873 = vmatpush1.bf16.msra.mxu0 %v15969_v34  ;;  %15971 = vst [vmem:[#allocation22_spill] sm:$0xff] %v11841_v63  ;;  %v11843_v2 = vpop.eup %9528  ;;  %9548 = vlog2.f32 %v1625_v30  ;;  %v1496_v13 = vmul.f32 1.442695, %v1344_v12  ;;  %v1345_v50 = vmin.f32 %v11832_v33, 20.0  ;;  %v1347_v30 = vmin.f32 %v11841_v63, 20.0  ;;  %v15977_v12 = vld [vmem:[#allocation53_spill] sm:$0xff] }
 0x19a   : > { %15972 = vst [vmem:[#allocation37_spill] sm:$0xff] %v11843_v2  ;;  %v9531_v14 = vpop.eup %9530  ;;  %8881 = vmatpush1.bf16.msra.mxu1 %v15975_v16  ;;  %9550 = vpow2.f32 %v1462_v10  ;;  %v1500_v31 = vmul.f32 1.442695, %v1346_v22  ;;  %vm1526_vm12 = vcmp.gt.f32.partialorder %v11628_v58, 20.0  ;;  %vm1544_vm13 = vcmp.gt.f32.partialorder %v11679_v41, 20.0  ;;  %v15978_v22 = vld [vmem:[#allocation54_spill] sm:$0xff] }
 0x19b   : > { %v9533_v21 = vpop.eup %9532  ;;  %v1697_v36 = vmul.f32 0.6931472, %v9531_v14  ;;  %9552 = vpow2.f32 %v1496_v13  ;;  %v1498_v56 = vmul.f32 1.442695, %v1345_v50  ;;  %v11858_v6 = vadd.f32 %v15977_v12, %v11103_v44  ;;  %v15979_v13 = vld [vmem:[#allocation56_spill] sm:$0xff] }
 0x19c   : > { %v11851_v34 = vpop.eup %9534  ;;  %9554 = vpow2.f32 %v1500_v31  ;;  %vm1546_vm14 = vcmp.gt.f32.partialorder %v11683_v20, 20.0  ;;  %v11863_v14 = vadd.f32 %v15978_v22, %v11103_v44  ;;  %v1701_v11 = vmul.f32 0.6931472, %v9533_v21 }
 0x19d   : > { %15976 = vst [vmem:[#allocation38_spill] sm:$0xff] %v11851_v34  ;;  %v9537_v47 = vpop.eup %9536  ;;  %9556 = vlog2.f32 %v1627_v62  ;;  %v1288_v16 = vmin.f32 %v11858_v6, 20.0  ;;  %v11868_v50 = vadd.f32 %v15979_v13, %v11103_v44  ;;  %v11873_v12 = vsel %vm1524_vm11, %v11621_v55, %v1697_v36 }
 0x19e   : > { %v1644_v10 = vadd.f32 1.0, %v9537_v47  ;;  %v9539_v48 = vpop.eup %9538  ;;  %9558 = vpow2.f32 %v1498_v56  ;;  %v1502_v47 = vmul.f32 1.442695, %v1347_v30  ;;  %v1290_v22 = vmin.f32 %v11863_v14, 20.0 }
 0x19f   : > { %v9541_v31 = vpop.eup %9540  ;;  %v1646_v62 = vadd.f32 1.0, %v9539_v48  ;;  %v1384_v21 = vmul.f32 1.442695, %v1288_v16  ;;  %v1289_v56 = vmin.f32 %v11868_v50, 20.0  ;;  %v11881_v33 = vadd.f32 %v15980_v46, %v11103_v44 }
 0x1a0   : > { %v9543_v63 = vpop.eup %9542  ;;  %v1737_v49 = vmul.f32 0.6931472, %v9541_v31  ;;  %9560 = vlog2.f32 %v1644_v10  ;;  %v1388_v2 = vmul.f32 1.442695, %v1290_v22  ;;  %v1763_v10 = vmul.f32 0.6931472, %v11550_v37 }
 0x1a1   : > { %v11877_v34 = vpop.eup %9544  ;;  %v1741_v13 = vmul.f32 0.6931472, %v9543_v63  ;;  %9562 = vlog2.f32 %v1646_v62  ;;  %v1386_v30 = vmul.f32 1.442695, %v1289_v56  ;;  %v11894_v63 = vsel %vm1526_vm12, %v11628_v58, %v1701_v11  ;;  %v15984_v37 = vld [vmem:[#allocation32_spill] sm:$0xff]  ;;  %v15985_v11 = vld [vmem:[#allocation39_spill] sm:$0xff] }
 0x1a2   : > { %v9547_v55 = vpop.eup %9546  ;;  %v11886_v36 = vsel %vm1544_vm13, %v11679_v41, %v1737_v49  ;;  %9564 = vpow2.f32 %v1384_v21  ;;  %15981 = vst [vmem:[#allocation29_spill] sm:$0xff] %v11894_v63  ;;  %v15983_v49 = vld [vmem:[#allocation31_spill] sm:$0xff]  ;;  %vm1559_vm3 = vcmp.gt.f32.partialorder %v15984_v37, 20.0  ;;  %vm1577_vm4 = vcmp.gt.f32.partialorder %v15985_v11, 20.0  ;;  %v15987_v63 = vld [vmem:[#allocation40_spill] sm:$0xff] }
 0x1a3   : > { %v11889_v48 = vpop.eup %9548  ;;  %v11901_v46 = vsel %vm1546_vm14, %v11683_v20, %v1741_v13  ;;  %9566 = vpow2.f32 %v1388_v2  ;;  %vm1557_vm15 = vcmp.gt.f32.partialorder %v15983_v49, 20.0  ;;  %v1645_v31 = vadd.f32 1.0, %v9547_v55  ;;  %v15986_v55 = vld [vmem:[#allocation60_spill] sm:$0xff] }
 0x1a4   : > { %15982 = vst [vmem:[#allocation30_spill] sm:$0xff] %v11901_v46  ;;  %v9551_v41 = vpop.eup %9550  ;;  %9568 = vpow2.f32 %v1502_v47  ;;  %v1803_v62 = vmul.f32 0.6931472, %v11579_v17  ;;  %v1291_v2 = vmin.f32 %v11881_v33, 20.0  ;;  %v1877_v21 = vsel %vm1557_vm15, %v15983_v49, %v1763_v10 }
 0x1a5   : > { %v9553_v58 = vpop.eup %9552  ;;  %9570 = vpow2.f32 %v1386_v30  ;;  %v1767_v56 = vmul.f32 0.6931472, %v11555_v15  ;;  %v1807_v16 = vmul.f32 0.6931472, %v11615_v54  ;;  %v11918_v30 = vadd.f32 %v15986_v55, %v11117_v53 }
 0x1a6   : > { %v9555_v22 = vpop.eup %9554  ;;  %v1664_v20 = vadd.f32 1.0, %v9553_v58  ;;  %v1897_v47 = vsel %vm1577_vm4, %v15985_v11, %v1803_v62  ;;  %vm1579_vm5 = vcmp.gt.f32.partialorder %v15987_v63, 20.0  ;;  %v1647_v58 = vadd.f32 1.0, %v9551_v41 }
 0x1a7   : > { %v11912_v13 = vpop.eup %9556  ;;  %v1666_v44 = vadd.f32 1.0, %v9555_v22  ;;  %v8874_v46 = vpack.c.bf16 %v1897_v47, %v1877_v21  ;;  %v1879_v15 = vsel %vm1559_vm3, %v15984_v37, %v1767_v56  ;;  %v1899_v10 = vsel %vm1579_vm5, %v15987_v63, %v1807_v16  ;;  %v15990_v63 = vld [vmem:[#allocation62_spill] sm:$0xff] }
 0x1a8   : > { %v9559_v17 = vpop.eup %9558  ;;  %9572 = vlog2.f32 %v1664_v20  ;;  %v1308_v49 = vmin.f32 %v11918_v30, 20.0  ;;  %v1390_v11 = vmul.f32 1.442695, %v1291_v2  ;;  %v8882_v62 = vpack.c.bf16 %v1899_v10, %v1879_v15  ;;  %v15989_v20 = vld [vmem:[#allocation61_spill] sm:$0xff] }
 0x1a9   : > { %9574 = vlog2.f32 %v1666_v44  ;;  %8875 = vmatprep.subr.bf16.mxu0 %v8874_v46  ;;  %v1665_v55 = vadd.f32 1.0, %v9559_v17  ;;  %v15988_v41 = vpack.c.bf16 %v11589_v52, %v11541_v38  ;;  %v11931_v21 = vadd.f32 %v15989_v20, %v11117_v53  ;;  %v15991_v46 = vld [vmem:[#allocation63_spill] sm:$0xff] }
 0x1aa   : > { %v9561_v54 = vpop.eup %9560  ;;  %9576 = vlog2.f32 %v1645_v31  ;;  %v1424_v44 = vmul.f32 1.442695, %v1308_v49  ;;  %v11935_v37 = vadd.f32 %v15990_v63, %v11117_v53  ;;  %vm1564_vm6 = vcmp.gt.f32.partialorder %v11725_v29, 20.0  ;;  %8883 = vmatprep.subr.bf16.mxu1 %v8882_v62  ;;  %v15996_v63 = vld [vmem:[#allocation46_spill] sm:$0xff] }
 0x1ab   : > { %v9563_v22 = vpop.eup %9562  ;;  %8877 = vmatpush1.bf16.msra.mxu0 %v15988_v41  ;;  %vm1566_vm7 = vcmp.gt.f32.partialorder %v11735_v0, 20.0  ;;  %9578 = vlog2.f32 %v1647_v58  ;;  %v11941_v38 = vadd.f32 %v15991_v46, %v11117_v53  ;;  %vm1584_vm8 = vcmp.gt.f32.partialorder %v11822_v45, 20.0 }
 0x1ac   : > { %v9565_v16 = vpop.eup %9564  ;;  %v15992_v2 = vpack.c.bf16 %v11597_v42, %v11584_v5  ;;  %9580 = vpow2.f32 %v1424_v44  ;;  %v1310_v56 = vmin.f32 %v11931_v21, 20.0  ;;  %vm1586_vm9 = vcmp.gt.f32.partialorder %v11828_v35, 20.0  ;;  %v15995_v44 = vld [vmem:[#allocation68_spill] sm:$0xff] }
 0x1ad   : > { %v9567_v52 = vpop.eup %9566  ;;  %v1608_v31 = vadd.f32 1.0, %v9565_v16  ;;  %9582 = vpow2.f32 %v1390_v11  ;;  %v1309_v58 = vmin.f32 %v11935_v37, 20.0  ;;  %v1777_v15 = vmul.f32 0.6931472, %v9561_v54  ;;  %v15993_v11 = vld [vmem:[#allocation66_spill] sm:$0xff]  ;;  %v15994_v54 = vld [vmem:[#allocation67_spill] sm:$0xff] }
 0x1ae   : > { %8885 = vmatpush1.bf16.msra.mxu1 %v15992_v2  ;;  %v9569_v47 = vpop.eup %9568  ;;  %v1610_v17 = vadd.f32 1.0, %v9567_v52  ;;  %8656 = vmatmul.mubr.msk.f32.vlgmr.msra.gmra.mrb[48].mxu0 %vm1941_vm2, %v11704_v3  ;;  %9584 = vlog2.f32 %v1665_v55  ;;  %v1428_v10 = vmul.f32 1.442695, %v1310_v56  ;;  %v1311_v5 = vmin.f32 %v11941_v38, 20.0  ;;  %v15997_v52 = vld [vmem:[#allocation69_spill] sm:$0xff]  ;;  %v15999_v56 = vld [vmem:[#allocation47_spill] sm:$0xff] }
 0x1af   : > { %v9571_v53 = vpop.eup %9570  ;;  %2202 = vmatprep.mubr.f32.mxu0 %v15950_v32  ;;  %v1781_v42 = vmul.f32 0.6931472, %v9563_v22  ;;  %9586 = vlog2.f32 %v1608_v31  ;;  %v1426_v49 = vmul.f32 1.442695, %v1309_v58  ;;  %v11958_v62 = vadd.f32 %v15993_v11, %v11138_v18 }
 0x1b0   : > { %9588 = vlog2.f32 %v1610_v17  ;;  %v1430_v41 = vmul.f32 1.442695, %v1311_v5  ;;  %v11962_v55 = vadd.f32 %v15994_v54, %v11138_v18  ;;  %v11967_v22 = vadd.f32 %v15995_v44, %v11138_v18 }
 0x1b1   : > { %8660 = vmatmul.mubr.msk.f32.vlgmr.msra.gmra.mrb[48].mxu1 %vm1941_vm2, %v11704_v3  ;;  %vm1521_vm10 = vcmp.gt.f32.partialorder %v15996_v63, 20.0  ;;  %v1667_v16 = vadd.f32 1.0, %v9569_v47  ;;  %9590 = vpow2.f32 %v1428_v10  ;;  %v1328_v46 = vmin.f32 %v11958_v62, 20.0 }
 0x1b2   : > { %2291 = vmatprep.mubr.f32.mxu1 %v15950_v32  ;;  %v9573_v20 = vpop.eup %9572  ;;  %v11973_v31 = vadd.f32 %v15997_v52, %v11138_v18  ;;  %8657 = vmatmul.mubr.msk.f32.gmra.mrb[50].mxu0 %vm1941_vm2, %v11728_v59  ;;  %vm1523_vm11 = vcmp.gt.f32.partialorder %v15999_v56, 20.0  ;;  %v11981_v17 = vsel %vm1564_vm6, %v11725_v29, %v1777_v15  ;;  %9592 = vpow2.f32 %v1426_v49 }
 0x1b3   : > { %v9575_v2 = vpop.eup %9574  ;;  %v1817_v58 = vmul.f32 0.6931472, %v9573_v20  ;;  %v1330_v47 = vmin.f32 %v11962_v55, 20.0  ;;  %2208 = vmatprep.mubr.f32.mxu0 %v15950_v32  ;;  %9594 = vpow2.f32 %v1430_v41  ;;  %v1464_v5 = vmul.f32 1.442695, %v1328_v46  ;;  %v16000_v20 = vld [vmem:[#allocation64_spill] sm:$0xff] }
 0x1b4   : > { %15998 = vst [vmem:[#allocation41_spill] sm:$0xff] %v11973_v31  ;;  %v11985_v10 = vpop.eup %9576  ;;  %v1821_v18 = vmul.f32 0.6931472, %v9575_v2  ;;  %v1329_v11 = vmin.f32 %v11967_v22, 20.0  ;;  %v11993_v29 = vsel %vm1566_vm7, %v11735_v0, %v1781_v42  ;;  %v1331_v54 = vmin.f32 %v11973_v31, 20.0  ;;  %v16015_v31 = vld [vmem:[#allocation37_spill] sm:$0xff] }
 0x1b5   : > { %8661 = vmatmul.mubr.msk.f32.gmra.mrb[50].mxu1 %vm1941_vm2, %v11728_v59  ;;  %v11998_v15 = vsel %vm1584_vm8, %v11822_v45, %v1817_v58  ;;  %v1468_v49 = vmul.f32 1.442695, %v1330_v47  ;;  %v12002_v41 = vpop.eup %9578  ;;  %9596 = vpow2.f32 %v1464_v5  ;;  %vm1541_vm12 = vcmp.gt.f32.partialorder %v16000_v20, 20.0 }
 0x1b6   : > { %2297 = vmatprep.mubr.f32.mxu1 %v15950_v32  ;;  %v12009_v0 = vsel %vm1586_vm9, %v11828_v35, %v1821_v18  ;;  %v1466_v42 = vmul.f32 1.442695, %v1329_v11  ;;  %8658 = vmatmul.mubr.msk.f32.gmra.mrb[52].mxu0 %vm1941_vm2, %v11759_v4  ;;  %v9581_v45 = vpop.eup %9580  ;;  %v1470_v52 = vmul.f32 1.442695, %v1331_v54  ;;  %v1609_v58 = vadd.f32 1.0, %v9571_v53  ;;  %v16001_v53 = vld [vmem:[#allocation65_spill] sm:$0xff] }
 0x1b7   : > { %9598 = vpow2.f32 %v1468_v49  ;;  %2214 = vmatprep.mubr.f32.mxu0 %v15950_v32  ;;  %v9583_v2 = vpop.eup %9582  ;;  %v1628_v47 = vadd.f32 1.0, %v9581_v45  ;;  %v1691_v35 = vmul.f32 0.6931472, %v11662_v27  ;;  %v1731_v5 = vmul.f32 0.6931472, %v11697_v19  ;;  %v16002_v27 = vld [vmem:[#allocation71_spill] sm:$0xff] }
 0x1b8   : > { %9600 = vpow2.f32 %v1466_v42  ;;  %v12020_v18 = vpop.eup %9584  ;;  %v1695_v11 = vmul.f32 0.6931472, %v11671_v8  ;;  %v1735_v49 = vmul.f32 0.6931472, %v11706_v51  ;;  %vm1543_vm13 = vcmp.gt.f32.partialorder %v16001_v53, 20.0 }
 0x1b9   : > { %8662 = vmatmul.mubr.msk.f32.gmra.mrb[52].mxu1 %vm1941_vm2, %v11759_v4  ;;  %9602 = vlog2.f32 %v1667_v16  ;;  %v9587_v54 = vpop.eup %9586  ;;  %vm1528_vm14 = vcmp.gt.f32.partialorder %v11858_v6, 20.0  ;;  %v12030_v42 = vadd.f32 %v16002_v27, %v11157_v43  ;;  %v1611_v16 = vadd.f32 1.0, %v9583_v2  ;;  %v16003_v2 = vld [vmem:[#allocation70_spill] sm:$0xff] }
 0x1ba   : > { %2303 = vmatprep.mubr.f32.mxu1 %v15950_v32  ;;  %9604 = vlog2.f32 %v1628_v47  ;;  %8659 = vmatmul.mubr.msk.f32.gmra.mrb[54].mxu0 %vm1941_vm2, %v11790_v61  ;;  %v9589_v19 = vpop.eup %9588  ;;  %v1841_v8 = vsel %vm1521_vm10, %v15996_v63, %v1691_v35  ;;  %v1861_v51 = vsel %vm1541_vm12, %v16000_v20, %v1731_v5  ;;  %v1843_v27 = vsel %vm1523_vm11, %v15999_v56, %v1695_v11 }
 0x1bb   : > { %9606 = vpow2.f32 %v1470_v52  ;;  %2374 = vmatprep.mubr.f32.mxu0 %v15950_v32  ;;  %v9591_v45 = vpop.eup %9590  ;;  %v8886_v47 = vpack.c.bf16 %v1861_v51, %v1841_v8  ;;  %v1863_v46 = vsel %vm1543_vm13, %v16001_v53, %v1735_v49  ;;  %v1348_v52 = vmin.f32 %v12030_v42, 20.0  ;;  %v16004_v53 = vld [vmem:[#allocation72_spill] sm:$0xff]  ;;  %v16005_v51 = vld [vmem:[#allocation73_spill] sm:$0xff] }
 0x1bc   : > { %v9593_v63 = vpop.eup %9592  ;;  %vm1561_vm15 = vcmp.gt.f32.partialorder %v16003_v2, 20.0  ;;  %vm1563_vm3 = vcmp.gt.f32.partialorder %v11528_v26, 20.0  ;;  %vm1581_vm4 = vcmp.gt.f32.partialorder %v11609_v1, 20.0  ;;  %v1705_v20 = vmul.f32 0.6931472, %v9587_v54  ;;  %v16008_v54 = vld [vmem:[#allocation74_spill] sm:$0xff] }
 0x1bd   : > { %8663 = vmatmul.mubr.msk.f32.gmra.mrb[54].mxu1 %vm1941_vm2, %v11790_v61  ;;  %9608 = vlog2.f32 %v1609_v58  ;;  %v1630_v35 = vadd.f32 1.0, %v9591_v45  ;;  %v8894_v5 = vpack.c.bf16 %v1863_v46, %v1843_v27  ;;  %v9595_v56 = vpop.eup %9594  ;;  %vm1583_vm5 = vcmp.gt.f32.partialorder %v11613_v28, 20.0  ;;  %8887 = vmatprep.subr.bf16.mxu0 %v8886_v47 }
 0x1be   : > { %2463 = vmatprep.mubr.f32.mxu1 %v15950_v32  ;;  %v1629_v11 = vadd.f32 1.0, %v9593_v63  ;;  %v1504_v49 = vmul.f32 1.442695, %v1348_v52  ;;  %v12055_v8 = vadd.f32 %v16004_v53, %v11157_v43  ;;  %v12059_v44 = vadd.f32 %v16005_v51, %v11157_v43 }
 0x1bf   : > { %vm1530_vm6 = vcmp.gt.f32.partialorder %v11863_v14, 20.0  ;;  %9610 = vlog2.f32 %v1630_v35  ;;  %v1631_v46 = vadd.f32 1.0, %v9595_v56  ;;  %8895 = vmatprep.subr.bf16.mxu1 %v8894_v5  ;;  %v16007_v58 = vpack.c.bf16 %v11643_v9, %v11635_v25  ;;  %v9597_v47 = vpop.eup %9596 }
 0x1c0   : > { %16006 = vst [vmem:[#allocation42_spill] sm:$0xff] %v12059_v44  ;;  %v12067_v45 = vadd.f32 %v16008_v54, %v11157_v43  ;;  %vm1525_vm7 = vcmp.gt.f32.partialorder %v11652_v39, 20.0  ;;  %v1709_v27 = vmul.f32 0.6931472, %v9589_v19  ;;  %9612 = vlog2.f32 %v1611_v16  ;;  %v16011_v19 = vld [vmem:[#allocation28_spill] sm:$0xff] }
 0x1c1   : > { %8889 = vmatpush1.bf16.msra.mxu0 %v16007_v58  ;;  %v16010_v52 = vpack.c.bf16 %v11688_v40, %v11638_v23  ;;  %v1350_v63 = vmin.f32 %v12055_v8, 20.0  ;;  %v1349_v35 = vmin.f32 %v12059_v44, 20.0  ;;  %v9599_v5 = vpop.eup %9598  ;;  %vm1545_vm8 = vcmp.gt.f32.partialorder %v11695_v24, 20.0  ;;  %v16017_v44 = vld [vmem:[#allocation21_spill] sm:$0xff] }
 0x1c2   : > { %16009 = vst [vmem:[#allocation43_spill] sm:$0xff] %v12067_v45  ;;  %vm1548_vm9 = vcmp.gt.f32.partialorder %v11918_v30, 20.0  ;;  %9614 = vlog2.f32 %v1629_v11  ;;  %v1648_v43 = vadd.f32 1.0, %v9597_v47  ;;  %v1351_v25 = vmin.f32 %v12067_v45, 20.0  ;;  %v9601_v9 = vpop.eup %9600  ;;  %v16012_v11 = vld [vmem:[#allocation20_spill] sm:$0xff] }
 0x1c3   : > { %8897 = vmatpush1.bf16.msra.mxu1 %v16010_v52  ;;  %vm1527_vm10 = vcmp.gt.f32.partialorder %v11656_v60, 20.0  ;;  %vm1547_vm11 = vcmp.gt.f32.partialorder %v11721_v57, 20.0  ;;  %v12083_v23 = vsel %vm1528_vm14, %v11858_v6, %v1705_v20  ;;  %9616 = vpow2.f32 %v1504_v49  ;;  %v12086_v56 = vpop.eup %9602  ;;  %v16013_v49 = vld [vmem:[#allocation36_spill] sm:$0xff]  ;;  %v16014_v52 = vld [vmem:[#allocation27_spill] sm:$0xff] }
 0x1c4   : > { %v1508_v40 = vmul.f32 1.442695, %v1350_v63  ;;  %v1771_v16 = vmul.f32 0.6931472, %v16011_v19  ;;  %vm1565_vm12 = vcmp.gt.f32.partialorder %v11748_v7, 20.0  ;;  %vm1585_vm13 = vcmp.gt.f32.partialorder %v16012_v11, 20.0  ;;  %v9605_v54 = vpop.eup %9604 }
 0x1c5   : > { %vm1550_vm1 = vcmp.gt.f32.partialorder %v11931_v21, 20.0  ;;  %9618 = vlog2.f32 %v1631_v46  ;;  %v1650_v53 = vadd.f32 1.0, %v9599_v5  ;;  %v12091_v51 = vadd.f32 1.0, %v9601_v9  ;;  %v9607_v19 = vpop.eup %9606  ;;  %v16016_v5 = vld [vmem:[#allocation38_spill] sm:$0xff] }
 0x1c6   : > { %v1506_v58 = vmul.f32 1.442695, %v1349_v35  ;;  %v12096_v6 = vsel %vm1530_vm6, %v11863_v14, %v1709_v27  ;;  %v1510_v20 = vmul.f32 1.442695, %v1351_v25  ;;  %v1811_v47 = vmul.f32 0.6931472, %v16013_v49 }
 0x1c7   : > { %v1775_v63 = vmul.f32 0.6931472, %v16014_v52  ;;  %v1745_v45 = vmul.f32 0.6931472, %v9605_v54  ;;  %9620 = vlog2.f32 %v1648_v43  ;;  %v1815_v46 = vmul.f32 0.6931472, %v16015_v31  ;;  %v9609_v31 = vpop.eup %9608 }
 0x1c8   : > { %v1699_v9 = vmul.f32 0.6931472, %v16016_v5  ;;  %vm1567_vm14 = vcmp.gt.f32.partialorder %v16017_v44, 20.0  ;;  %v16018_v35 = vld [vmem:[#allocation22_spill] sm:$0xff]  ;;  %9622 = vpow2.f32 %v1508_v40  ;;  %v1881_v14 = vsel %vm1561_vm15, %v16003_v2, %v1771_v16  ;;  %v16019_v52 = vld [vmem:[#allocation35_spill] sm:$0xff] }
 0x1c9   : > { %vm1587_vm0 = vcmp.gt.f32.partialorder %v16018_v35, 20.0  ;;  %v1901_v27 = vsel %vm1581_vm4, %v11609_v1, %v1811_v47  ;;  %v1883_v43 = vsel %vm1563_vm3, %v11528_v26, %v1775_v63  ;;  %v12116_v25 = vsel %vm1548_vm9, %v11918_v30, %v1745_v45  ;;  %v9611_v49 = vpop.eup %9610  ;;  %v16020_v63 = vld [vmem:[#allocation33_spill] sm:$0xff]  ;;  %v16022_v5 = vld [vmem:[#allocation19_spill] sm:$0xff] }
 0x1ca   : > { %9624 = vpow2.f32 %v1506_v58  ;;  %v8890_v40 = vpack.c.bf16 %v1901_v27, %v1881_v14  ;;  %v1903_v2 = vsel %vm1583_vm5, %v11613_v28, %v1815_v46  ;;  %vm1529_vm15 = vcmp.gt.f32.partialorder %v11868_v50, 20.0  ;;  %v9613_v58 = vpop.eup %9612 }
 0x1cb   : > { %v8920_v1 = vpack.c.bf16 %v12116_v25, %v12083_v23  ;;  %v1651_v16 = vadd.f32 1.0, %v9607_v19  ;;  %v8898_v54 = vpack.c.bf16 %v1903_v2, %v1883_v43  ;;  %v1739_v26 = vmul.f32 0.6931472, %v11889_v48 }
 0x1cc   : > { %vm1531_vm3 = vcmp.gt.f32.partialorder %v11881_v33, 20.0  ;;  %9626 = vpow2.f32 %v1510_v20  ;;  %8891 = vmatprep.subr.bf16.mxu0 %v8890_v40  ;;  %v1845_v30 = vsel %vm1525_vm7, %v11652_v39, %v1699_v9  ;;  %v1703_v28 = vmul.f32 0.6931472, %v11877_v34  ;;  %v9615_v39 = vpop.eup %9614  ;;  %v16023_v34 = vld [vmem:[#allocation34_spill] sm:$0xff] }
 0x1cd   : > { %v1743_v45 = vmul.f32 0.6931472, %v11912_v13  ;;  %v1749_v47 = vmul.f32 0.6931472, %v9611_v49  ;;  %8899 = vmatprep.subr.bf16.mxu1 %v8898_v54  ;;  %v16021_v19 = vpack.c.bf16 %v16019_v52, %v16020_v63  ;;  %v1865_v48 = vsel %vm1545_vm8, %v11695_v24, %v1739_v26  ;;  %v9617_v43 = vpop.eup %9616 }
 0x1ce   : > { %v1779_v20 = vmul.f32 0.6931472, %v11985_v10  ;;  %v1819_v46 = vmul.f32 0.6931472, %v12020_v18  ;;  %v16024_v9 = vpack.c.bf16 %v16022_v5, %v16023_v34  ;;  %v8902_v13 = vpack.c.bf16 %v1865_v48, %v1845_v30 }
 0x1cf   : > { %8893 = vmatpush1.bf16.msra.mxu0 %v16021_v19  ;;  %v1847_v14 = vsel %vm1527_vm10, %v11656_v60, %v1703_v28  ;;  %v1867_v27 = vsel %vm1547_vm11, %v11721_v57, %v1743_v45  ;;  %v1783_v24 = vmul.f32 0.6931472, %v12002_v41  ;;  %v12152_v10 = vsel %vm1550_vm1, %v11931_v21, %v1749_v47  ;;  %v9619_v2 = vpop.eup %9618  ;;  %v16026_v28 = vld [vmem:[#allocation30_spill] sm:$0xff]  ;;  %v16027_v45 = vld [vmem:[#allocation29_spill] sm:$0xff] }
 0x1d0   : > { %8901 = vmatpush1.bf16.msra.mxu1 %v16024_v9  ;;  %v8910_v18 = vpack.c.bf16 %v1867_v27, %v1847_v14  ;;  %v1885_v40 = vsel %vm1565_vm12, %v11748_v7, %v1779_v20  ;;  %v1905_v60 = vsel %vm1585_vm13, %v16012_v11, %v1819_v46  ;;  %v8928_v57 = vpack.c.bf16 %v12152_v10, %v12096_v6 }
 0x1d1   : > { %v1668_v41 = vadd.f32 1.0, %v9617_v43  ;;  %8903 = vmatprep.subr.bf16.mxu0 %v8902_v13  ;;  %v8906_v21 = vpack.c.bf16 %v1905_v60, %v1885_v40  ;;  %v1823_v54 = vmul.f32 0.6931472, %v12086_v56  ;;  %vm1549_vm1 = vcmp.gt.f32.partialorder %v11935_v37, 20.0  ;;  %v9621_v26 = vpop.eup %9620  ;;  %v16031_v40 = vld [vmem:[#allocation42_spill] sm:$0xff] }
 0x1d2   : > { %8664 = vmatmul.mubr.msk.f32.vlgmr.msra.gmra.mrb[56].mxu0 %vm1941_vm2, %v11704_v3  ;;  %9628 = vlog2.f32 %v1650_v53  ;;  %v1707_v7 = vmul.f32 0.6931472, %v9609_v31  ;;  %v1747_v11 = vmul.f32 0.6931472, %v9615_v39  ;;  %8911 = vmatprep.subr.bf16.mxu1 %v8910_v18  ;;  %v1887_v49 = vsel %vm1567_vm14, %v16017_v44, %v1783_v24  ;;  %v9623_v30 = vpop.eup %9622 }
 0x1d3   : > { %8668 = vmatmul.mubr.msk.f32.vlgmr.msra.gmra.mrb[56].mxu1 %vm1941_vm2, %v11704_v3  ;;  %2380 = vmatprep.mubr.f32.mxu0 %v15950_v32  ;;  %9630 = vlog2.f32 %v1668_v41  ;;  %v1907_v56 = vsel %vm1587_vm0, %v16018_v35, %v1823_v54  ;;  %v1711_v53 = vmul.f32 0.6931472, %v9613_v58  ;;  %vm1551_vm4 = vcmp.gt.f32.partialorder %v11941_v38, 20.0  ;;  %v10602_v41 = vld [vmem:[#allocation3] sm:$0xff] }
 0x1d4   : > { %2469 = vmatprep.mubr.f32.mxu1 %v15950_v32  ;;  %9632 = vlog2.f32 %v12091_v51  ;;  %v16025_v31 = vpack.c.bf16 %v11886_v36, %v11873_v12  ;;  %v16028_v47 = vpack.c.bf16 %v16026_v28, %v16027_v45  ;;  %v8914_v52 = vpack.c.bf16 %v1907_v56, %v1887_v49  ;;  %v9625_v63 = vpop.eup %9624  ;;  %v10604_v54 = vld [vmem:[%s10853_s14 + $0x8] sm:$0x77]  ;;  %v12300_v49 = vld [vmem:[%s15619_s1 + $0x20] sm:$0xff]  ;;  %v10607_v56 = vld [vmem:[%s10853_s14 + $0x18] sm:$0x77] }
 0x1d5   : > { %v1751_v44 = vmul.f32 0.6931472, %v9619_v2  ;;  %9634 = vlog2.f32 %v1651_v16  ;;  %v1670_v19 = vadd.f32 1.0, %v9623_v30  ;;  %v1849_v51 = vsel %vm1529_vm15, %v11868_v50, %v1707_v7  ;;  %v16033_v2 = vld [vmem:[#allocation43_spill] sm:$0xff]  ;;  %v16051_v30 = vld [vmem:[#allocation14_spill] sm:$0xff] }
 0x1d6   : > { %8905 = vmatpush1.bf16.msra.mxu0 %v16025_v31  ;;  %8913 = vmatpush1.bf16.msra.mxu1 %v16028_v47  ;;  %v1869_v12 = vsel %vm1549_vm1, %v11935_v37, %v1747_v11  ;;  %v1669_v36 = vadd.f32 1.0, %v9625_v63  ;;  %v1851_v16 = vsel %vm1531_vm3, %v11881_v33, %v1711_v53  ;;  %v9627_v50 = vpop.eup %9626  ;;  %v16029_v20 = vpack.c.bf16 %v11998_v15, %v11981_v17  ;;  %v16040_v7 = vld [vmem:[#allocation11_spill] sm:$0xff]  ;;  %v10605_v11 = vld [vmem:[#allocation3 + $0x8] sm:$0xff] }
 0x1d7   : > { %8665 = vmatmul.mubr.msk.f32.gmra.mrb[58].mxu0 %vm1941_vm2, %v11728_v59  ;;  %8907 = vmatprep.subr.bf16.mxu0 %v8906_v21  ;;  %v8918_v35 = vpack.c.bf16 %v1869_v12, %v1849_v51  ;;  %v1871_v58 = vsel %vm1551_vm4, %v11941_v38, %v1751_v44  ;;  %9636 = vlog2.f32 %v1670_v19  ;;  %v1671_v48 = vadd.f32 1.0, %v9627_v50  ;;  %v10603_v21 = vld [vmem:[%s10853_s14] sm:$0x77]  ;;  %v16048_v53 = vld [vmem:[#allocation13_spill] sm:$0xff]  ;;  %v12341_v28 = vld [vmem:[%s15619_s1 + $0x38] sm:$0xff] }
 0x1d8   : > { %8669 = vmatmul.mubr.msk.f32.gmra.mrb[58].mxu1 %vm1941_vm2, %v11728_v59  ;;  %2386 = vmatprep.mubr.f32.mxu0 %v15950_v32  ;;  %v8926_v37 = vpack.c.bf16 %v1871_v58, %v1851_v16  ;;  %9638 = vlog2.f32 %v1669_v36  ;;  %v16030_v46 = vpack.c.bf16 %v12009_v0, %v11993_v29  ;;  %v1785_v38 = vmul.f32 0.6931472, %v9621_v26  ;;  %v16042_v26 = vld [vmem:[#allocation12_spill] sm:$0xff]  ;;  %v12330_v31 = vld [vmem:[%s15619_s1 + $0x30] sm:$0xff]  ;;  %v10611_v19 = vld [vmem:[%s10853_s14 + $0x38] sm:$0x77]  ;;  %v12466_v16 = vpop.permute.xlu0 %1923 }
 0x1d9   : > { %2475 = vmatprep.mubr.f32.mxu1 %v15950_v32  ;;  %8915 = vmatprep.subr.bf16.mxu1 %v8914_v52  ;;  %9640 = vlog2.f32 %v1671_v48  ;;  %vm1568_vm0 = vcmp.gt.f32.partialorder %v11958_v62, 20.0  ;;  %vm1588_vm5 = vcmp.gt.f32.partialorder %v12030_v42, 20.0  ;;  %vm1570_vm6 = vcmp.gt.f32.partialorder %v11962_v55, 20.0  ;;  %v10608_v45 = vld [vmem:[%s10853_s14 + $0x20] sm:$0x77]  ;;  %v16075_v51 = vld [vmem:[#allocation17_spill] sm:$0xff] }
 0x1da   : > { %8909 = vmatpush1.bf16.msra.mxu0 %v16029_v20  ;;  %8917 = vmatpush1.bf16.msra.mxu1 %v16030_v46  ;;  %v1888_v39 = vsel %vm1568_vm0, %v11958_v62, %v1785_v38  ;;  %vm1590_vm7 = vcmp.gt.f32.partialorder %v12055_v8, 20.0  ;;  %vm1569_vm8 = vcmp.gt.f32.partialorder %v11967_v22, 20.0  ;;  %vm1589_vm9 = vcmp.gt.f32.partialorder %v16031_v40, 20.0  ;;  %v10609_v47 = vld [vmem:[%s10853_s14 + $0x28] sm:$0x77]  ;;  %v16061_v52 = vld [vmem:[#allocation15_spill] sm:$0xff]  ;;  %v12474_v20 = vpop.permute.xlu1 %1928 }
 0x1db   : > { %8666 = vmatmul.mubr.msk.f32.gmra.mrb[60].mxu0 %vm1941_vm2, %v11759_v4  ;;  %8919 = vmatprep.subr.bf16.mxu0 %v8918_v35  ;;  %vm1591_vm11 = vcmp.gt.f32.partialorder %v16033_v2, 20.0  ;;  %vm16035_vm12 = vcmask 1042432   ;;  %vm16044_vm4 = vcmask 23552   ;;  %v16064_v44 = vld [vmem:[#allocation16_spill] sm:$0xff]  ;;  %v10610_v63 = vld [vmem:[%s10853_s14 + $0x30] sm:$0x77] }
 0x1dc   : > { %8670 = vmatmul.mubr.msk.f32.gmra.mrb[60].mxu1 %vm1941_vm2, %v11759_v4  ;;  %2392 = vmatprep.mubr.f32.mxu0 %v15950_v32  ;;  %v9629_v33 = vpop.eup %9628  ;;  %vm16037_vm13 = vmmov %vm16035_vm12  ;;  %v16078_v12 = vld [vmem:[#allocation18_spill] sm:$0xff]  ;;  %v10612_v36 = vld [vmem:[%s10853_s14 + $0x40] sm:$0x77] }
 0x1dd   : > { %2481 = vmatprep.mubr.f32.mxu1 %v15950_v32  ;;  %8927 = vmatprep.subr.bf16.mxu1 %v8926_v37  ;;  %v9631_v17 = vpop.eup %9630  ;;  %v1789_v5 = vmul.f32 0.6931472, %v9629_v33  ;;  %vm16038_vm14 = vmmov %vm16035_vm12  ;;  %v10613_v35 = vld [vmem:[%s10853_s14 + $0x48] sm:$0x77] }
 0x1de   : > { %v9633_v29 = vpop.eup %9632  ;;  %v1825_v15 = vmul.f32 0.6931472, %v9631_v17  ;;  %vm16039_vm15 = vmmov %vm16035_vm12 }
 0x1df   : > { %8667 = vmatmul.mubr.msk.f32.gmra.mrb[62].mxu0 %vm1941_vm2, %v11790_v61  ;;  %v9635_v0 = vpop.eup %9634  ;;  %v1787_v14 = vmul.f32 0.6931472, %v9633_v29  ;;  %v1890_v18 = vsel %vm1570_vm6, %v11962_v55, %v1789_v5  ;;  %v16032_v55 = vld [vmem:[#allocation41_spill] sm:$0xff]  ;;  %vm16041_vm3 = vmmov %vm16035_vm12 }
 0x1e0   : > { %8671 = vmatmul.mubr.msk.f32.gmra.mrb[62].mxu1 %vm1941_vm2, %v11790_v61  ;;  %2552 = vmatprep.mubr.f32.mxu0 %v15950_v32  ;;  %v1908_v34 = vsel %vm1588_vm5, %v12030_v42, %v1825_v15  ;;  %v1791_v42 = vmul.f32 0.6931472, %v9635_v0  ;;  %vm1571_vm10 = vcmp.gt.f32.partialorder %v16032_v55, 20.0  ;;  %vm16043_vm1 = vmmov %vm16041_vm3 }
 0x1e1   : > { %2641 = vmatprep.mubr.f32.mxu1 %v15950_v32  ;;  %v9637_v9 = vpop.eup %9636  ;;  %v8924_v13 = vpack.c.bf16 %v1908_v34, %v1888_v39  ;;  %v1889_v23 = vsel %vm1569_vm8, %v11967_v22, %v1787_v14  ;;  %vm16045_vm0 = vmmov %vm16044_vm4 }
 0x1e2   : > { %v9639_v27 = vpop.eup %9638  ;;  %v1829_v24 = vmul.f32 0.6931472, %v9637_v9  ;;  %v1891_v6 = vsel %vm1571_vm10, %v16032_v55, %v1791_v42  ;;  %vm16046_vm5 = vmmov %vm16043_vm1 }
 0x1e3   : > { %8672 = vmatmul.mubr.msk.f32.vlgmr.msra.gmra.mrb[64].mxu0 %vm1941_vm2, %v11704_v3  ;;  %v1827_v62 = vmul.f32 0.6931472, %v9639_v27  ;;  %v9641_v43 = vpop.eup %9640  ;;  %vm16047_vm6 = vmmov %vm16043_vm1 }
 0x1e4   : > { %8676 = vmatmul.mubr.msk.f32.vlgmr.msra.gmra.mrb[64].mxu1 %vm1941_vm2, %v11704_v3  ;;  %2558 = vmatprep.mubr.f32.mxu0 %v15950_v32  ;;  %v1910_v3 = vsel %vm1590_vm7, %v12055_v8, %v1829_v24  ;;  %vm16049_vm7 = vmmov %vm16043_vm1 }
 0x1e5   : > { %2647 = vmatprep.mubr.f32.mxu1 %v15950_v32  ;;  %8921 = vmatpush1.bf16.msra.mxu0 %v8920_v1  ;;  %v8932_v60 = vpack.c.bf16 %v1910_v3, %v1890_v18  ;;  %v1909_v25 = vsel %vm1589_vm9, %v16031_v40, %v1827_v62  ;;  %v1831_v1 = vmul.f32 0.6931472, %v9641_v43  ;;  %vm16050_vm8 = vmmov %vm16045_vm0 }
 0x1e6   : > { %8929 = vmatpush1.bf16.msra.mxu1 %v8928_v57  ;;  %v8922_v8 = vpack.c.bf16 %v1909_v25, %v1889_v23  ;;  %v16036_v57 = vld [vmem:[#allocation10_spill] sm:$0xff]  ;;  %vm16052_vm9 = vmmov %vm16043_vm1 }
 0x1e7   : > { %8673 = vmatmul.mubr.msk.f32.gmra.mrb[66].mxu0 %vm1941_vm2, %v11728_v59  ;;  %v1911_v10 = vsel %vm1591_vm11, %v16033_v2, %v1831_v1  ;;  %vm16053_vm10 = vmmov %vm16045_vm0 }
 0x1e8   : > { %8677 = vmatmul.mubr.msk.f32.gmra.mrb[66].mxu1 %vm1941_vm2, %v11728_v59  ;;  %2564 = vmatprep.mubr.f32.mxu0 %v15950_v32  ;;  %v8930_v22 = vpack.c.bf16 %v1911_v10, %v1891_v6  ;;  %v16034_v59 = vld [vmem:[#allocation9_spill] sm:$0xff]  ;;  %vm16054_vm11 = vmmov %vm16045_vm0 }
 0x1e9   : > { %2653 = vmatprep.mubr.f32.mxu1 %v15950_v32  ;;  %8923 = vmatprep.subr.bf16.mxu0 %v8922_v8 }
 0x1ea   : > { %8931 = vmatprep.subr.bf16.mxu1 %v8930_v22  ;;  %8925 = vmatpush1.bf16.msra.mxu0 %v8924_v13 }
 0x1eb   : > { %8674 = vmatmul.mubr.msk.f32.gmra.mrb[68].mxu0 %vm1941_vm2, %v11759_v4  ;;  %8933 = vmatpush1.bf16.msra.mxu1 %v8932_v60  ;;  %v12496_v60 = vpop.permute.xlu0 %1933 }
 0x1ec   : > { %8678 = vmatmul.mubr.msk.f32.gmra.mrb[68].mxu1 %vm1941_vm2, %v11759_v4  ;;  %2570 = vmatprep.mubr.f32.mxu0 %v15950_v32 }
 0x1ed   : > { %2659 = vmatprep.mubr.f32.mxu1 %v15950_v32  ;;  %8692 = vmatprep.subr.msk.mxu0 %vm16035_vm12, %v16034_v59  ;;  %vm16055_vm12 = vmmov %vm16045_vm0 }
 0x1ee   : > { %8698 = vmatprep.subr.msk.mxu1 %vm16037_vm13, %v16036_v57  ;;  %vm16056_vm13 = vmmov %vm16045_vm0 }
 0x1ef   : > { %8675 = vmatmul.mubr.msk.f32.gmra.mrb[70].mxu0 %vm1941_vm2, %v11790_v61 }
 0x1f0   : > { %8679 = vmatmul.mubr.msk.f32.gmra.mrb[70].mxu1 %vm1941_vm2, %v11790_v61  ;;  %2730 = vmatprep.mubr.f32.mxu0 %v15950_v32 }
 0x1f1   : > { %2819 = vmatprep.mubr.f32.mxu1 %v15950_v32 }
 0x1f3   : > { %8680 = vmatmul.mubr.msk.f32.vlgmr.msra.gmra.mrb[72].mxu0 %vm1941_vm2, %v10602_v41 }
 0x1f4   : > { %8684 = vmatmul.mubr.msk.f32.vlgmr.msra.gmra.mrb[72].mxu1 %vm1941_vm2, %v10602_v41  ;;  %2736 = vmatprep.mubr.f32.mxu0 %v15950_v32 }
 0x1f5   : > { %2825 = vmatprep.mubr.f32.mxu1 %v15950_v32  ;;  %8693 = vmatpush1.msk.msra.mxu0 %vm16038_vm14, %v10603_v21  ;;  %vm16057_vm14 = vmmov %vm16045_vm0 }
 0x1f6   : > { %8699 = vmatpush1.msk.msra.mxu1 %vm16039_vm15, %v10604_v54  ;;  %8704 = vmatprep.subr.msk.mxu0 %vm16041_vm3, %v16040_v7  ;;  %vm16058_vm15 = vmmov %vm16045_vm0 }
 0x1f7   : > { %8681 = vmatmul.mubr.msk.f32.gmra.mrb[74].mxu0 %vm1941_vm2, %v10605_v11  ;;  %8710 = vmatprep.subr.msk.mxu1 %vm16043_vm1, %v16042_v26  ;;  %vm16059_vm3 = vmmov %vm16045_vm0  ;;  %v12514_v26 = vpop.permute.xlu1 %1938 }
 0x1f8   : > { %8685 = vmatmul.mubr.msk.f32.gmra.mrb[74].mxu1 %vm1941_vm2, %v10605_v11  ;;  %2742 = vmatprep.mubr.f32.mxu0 %v15950_v32 }
 0x1f9   : > { %2831 = vmatprep.mubr.f32.mxu1 %v15950_v32 }
 0x1fb   : > { %8682 = vmatmul.mubr.msk.f32.gmra.mrb[76].mxu0 %vm1941_vm2, %v11759_v4 }
 0x1fc   : > { %8686 = vmatmul.mubr.msk.f32.gmra.mrb[76].mxu1 %vm1941_vm2, %v11759_v4  ;;  %2748 = vmatprep.mubr.f32.mxu0 %v15950_v32  ;;  %v12311_v4 = vld [vmem:[%s15619_s1 + $0x28] sm:$0xff] }
 0x1fd   : > { %2837 = vmatprep.mubr.f32.mxu1 %v15950_v32 }
 0x1ff   : > { %8683 = vmatmul.mubr.msk.f32.gmra.mrb[78].mxu0 %vm1941_vm2, %v11790_v61 }
 0x200   : > { %8687 = vmatmul.mubr.msk.f32.gmra.mrb[78].mxu1 %vm1941_vm2, %v11790_v61  ;;  %3570 = vmatprep.mubr.f32.mxu0 %v15950_v32  ;;  %v10606_v61 = vld [vmem:[%s10853_s14 + $0x10] sm:$0x77] }
 0x201   : > { %3659 = vmatprep.mubr.f32.mxu1 %v15950_v32 }
 0x203   : > { %8694 = vmatmul.mubr.msk.f32.vlgmr.msra.gmra.mrb[80].mxu0 %vm16044_vm4, %v12300_v49  ;;  %vm16060_vm4 = vmmov %vm16043_vm1 }
 0x204   : > { %8700 = vmatmul.mubr.msk.f32.vlgmr.msra.gmra.mrb[80].mxu1 %vm16045_vm0, %v12300_v49  ;;  %3576 = vmatprep.mubr.f32.mxu0 %v15950_v32  ;;  %vm16062_vm0 = vmmov %vm16043_vm1 }
 0x205   : > { %3665 = vmatprep.mubr.f32.mxu1 %v15950_v32  ;;  %8705 = vmatpush1.msk.msra.mxu0 %vm16046_vm5, %v10606_v61  ;;  %vm16063_vm5 = vmmov %vm16059_vm3 }
 0x206   : > { %8711 = vmatpush1.msk.msra.mxu1 %vm16047_vm6, %v10607_v56  ;;  %8716 = vmatprep.subr.msk.mxu0 %vm16049_vm7, %v16048_v53  ;;  %vm16065_vm6 = vmmov %vm16062_vm0 }
 0x207   : > { %8695 = vmatmul.mubr.msk.f32.gmra.mrb[82].mxu0 %vm16050_vm8, %v12311_v4  ;;  %8722 = vmatprep.subr.msk.mxu1 %vm16052_vm9, %v16051_v30  ;;  %vm16066_vm7 = vmmov %vm16059_vm3 }
 0x208   : > { %8701 = vmatmul.mubr.msk.f32.gmra.mrb[82].mxu1 %vm16053_vm10, %v12311_v4  ;;  %3582 = vmatprep.mubr.f32.mxu0 %v15950_v32  ;;  %vm16067_vm8 = vmmov %vm16059_vm3 }
 0x209   : > { %3671 = vmatprep.mubr.f32.mxu1 %v15950_v32  ;;  %vm16068_vm9 = vmmov %vm16059_vm3 }
 0x20a   : > { %vm16069_vm10 = vmmov %vm16059_vm3 }
 0x20b   : > { %8696 = vmatmul.mubr.msk.f32.gmra.mrb[84].mxu0 %vm16054_vm11, %v12330_v31  ;;  %vm16070_vm11 = vmmov %vm16059_vm3 }
 0x20c   : > { %8702 = vmatmul.mubr.msk.f32.gmra.mrb[84].mxu1 %vm16055_vm12, %v12330_v31  ;;  %3588 = vmatprep.mubr.f32.mxu0 %v15950_v32  ;;  %vm16071_vm12 = vmmov %vm16059_vm3 }
 0x20d   : > { %3677 = vmatprep.mubr.f32.mxu1 %v15950_v32 }
 0x20f   : > { %8697 = vmatmul.mubr.msk.f32.gmra.mrb[86].mxu0 %vm16056_vm13, %v12341_v28  ;;  %vm16072_vm13 = vmmov %vm16059_vm3 }
 0x210   : > { %8703 = vmatmul.mubr.msk.f32.gmra.mrb[86].mxu1 %vm16057_vm14, %v12341_v28  ;;  %3748 = vmatprep.mubr.f32.mxu0 %v15950_v32  ;;  %vm16073_vm14 = vmmov %vm16062_vm0 }
 0x211   : > { %3837 = vmatprep.mubr.f32.mxu1 %v15950_v32 }
 0x213   : > { %8706 = vmatmul.mubr.msk.f32.vlgmr.msra.gmra.mrb[88].mxu0 %vm16058_vm15, %v12300_v49  ;;  %vm16074_vm15 = vmmov %vm16062_vm0 }
 0x214   : > { %8712 = vmatmul.mubr.msk.f32.vlgmr.msra.gmra.mrb[88].mxu1 %vm16059_vm3, %v12300_v49  ;;  %3754 = vmatprep.mubr.f32.mxu0 %v15950_v32  ;;  %vm16076_vm3 = vmmov %vm16062_vm0 }
 0x215   : > { %3843 = vmatprep.mubr.f32.mxu1 %v15950_v32  ;;  %8717 = vmatpush1.msk.msra.mxu0 %vm16043_vm1, %v10608_v45  ;;  %vm16077_vm1 = vmmov %vm16063_vm5 }
 0x216   : > { %8723 = vmatpush1.msk.msra.mxu1 %vm16060_vm4, %v10609_v47  ;;  %8728 = vmatprep.subr.msk.mxu0 %vm16062_vm0, %v16061_v52  ;;  %vm16079_vm4 = vmmov %vm16062_vm0 }
 0x217   : > { %8707 = vmatmul.mubr.msk.f32.gmra.mrb[90].mxu0 %vm16063_vm5, %v12311_v4  ;;  %8734 = vmatprep.subr.msk.mxu1 %vm16065_vm6, %v16064_v44  ;;  %vm16080_vm0 = vmmov %vm16077_vm1 }
 0x218   : > { %8713 = vmatmul.mubr.msk.f32.gmra.mrb[90].mxu1 %vm16066_vm7, %v12311_v4  ;;  %3760 = vmatprep.mubr.f32.mxu0 %v15950_v32  ;;  %vm16081_vm5 = vmmov %vm16080_vm0 }
 0x219   : > { %3849 = vmatprep.mubr.f32.mxu1 %v15950_v32  ;;  %vm16082_vm6 = vmmov %vm16080_vm0 }
 0x21a   : > { %vm16083_vm7 = vmmov %vm16080_vm0 }
 0x21b   : > { %8708 = vmatmul.mubr.msk.f32.gmra.mrb[92].mxu0 %vm16067_vm8, %v12330_v31  ;;  %vm16084_vm8 = vmmov %vm16080_vm0 }
 0x21c   : > { %8714 = vmatmul.mubr.msk.f32.gmra.mrb[92].mxu1 %vm16068_vm9, %v12330_v31  ;;  %3766 = vmatprep.mubr.f32.mxu0 %v15950_v32  ;;  %vm16085_vm9 = vmmov %vm16080_vm0 }
 0x21d   : > { %3855 = vmatprep.mubr.f32.mxu1 %v15950_v32 }
 0x21f   : > { %8709 = vmatmul.mubr.msk.f32.gmra.mrb[94].mxu0 %vm16069_vm10, %v12341_v28  ;;  %vm16086_vm10 = vmmov %vm16080_vm0 }
 0x220   : > { %8715 = vmatmul.mubr.msk.f32.gmra.mrb[94].mxu1 %vm16070_vm11, %v12341_v28  ;;  %3926 = vmatprep.mubr.f32.mxu0 %v15950_v32  ;;  %vm16087_vm11 = vmmov %vm16076_vm3 }
 0x221   : > { %4015 = vmatprep.mubr.f32.mxu1 %v15950_v32 }
 0x223   : > { %8718 = vmatmul.mubr.msk.f32.vlgmr.msra.gmra.mrb[96].mxu0 %vm16071_vm12, %v12300_v49  ;;  %vm16088_vm12 = vmmov %vm16076_vm3 }
 0x224   : > { %8724 = vmatmul.mubr.msk.f32.vlgmr.msra.gmra.mrb[96].mxu1 %vm16072_vm13, %v12300_v49  ;;  %3932 = vmatprep.mubr.f32.mxu0 %v15950_v32  ;;  %vm16089_vm13 = vmmov %vm16080_vm0 }
 0x225   : > { %4021 = vmatprep.mubr.f32.mxu1 %v15950_v32  ;;  %8729 = vmatpush1.msk.msra.mxu0 %vm16073_vm14, %v10610_v63  ;;  %vm16090_vm14 = vmmov %vm16080_vm0 }
 0x226   : > { %8735 = vmatpush1.msk.msra.mxu1 %vm16074_vm15, %v10611_v19  ;;  %8740 = vmatprep.subr.msk.mxu0 %vm16076_vm3, %v16075_v51  ;;  %vm16091_vm15 = vmmov %vm16080_vm0 }
 0x227   : > { %8719 = vmatmul.mubr.msk.f32.gmra.mrb[98].mxu0 %vm16077_vm1, %v12311_v4  ;;  %8746 = vmatprep.subr.msk.mxu1 %vm16079_vm4, %v16078_v12  ;;  %vm16092_vm3 = vmmov %vm16080_vm0 }
 0x228   : > { %8725 = vmatmul.mubr.msk.f32.gmra.mrb[98].mxu1 %vm16080_vm0, %v12311_v4  ;;  %3938 = vmatprep.mubr.f32.mxu0 %v15950_v32  ;;  %vm16093_vm1 = vmmov %vm16080_vm0 }
 0x229   : > { %4027 = vmatprep.mubr.f32.mxu1 %v15950_v32  ;;  %vm16094_vm4 = vmmov %vm16080_vm0 }
 0x22b   : > { %8720 = vmatmul.mubr.msk.f32.gmra.mrb[100].mxu0 %vm16081_vm5, %v12330_v31  ;;  %vm16095_vm5 = vmmov %vm16080_vm0 }
 0x22c   : > { %8726 = vmatmul.mubr.msk.f32.gmra.mrb[100].mxu1 %vm16082_vm6, %v12330_v31  ;;  %3944 = vmatprep.mubr.f32.mxu0 %v15950_v32  ;;  %vm16096_vm6 = vmmov %vm16080_vm0 }
 0x22d   : > { %4033 = vmatprep.mubr.f32.mxu1 %v15950_v32 }
 0x22f   : > { %8721 = vmatmul.mubr.msk.f32.gmra.mrb[102].mxu0 %vm16083_vm7, %v12341_v28  ;;  %vm16097_vm7 = vmmov %vm16080_vm0 }
 0x230   : > { %8727 = vmatmul.mubr.msk.f32.gmra.mrb[102].mxu1 %vm16084_vm8, %v12341_v28  ;;  %4104 = vmatprep.mubr.f32.mxu0 %v15950_v32  ;;  %vm16098_vm8 = vmmov %vm16080_vm0 }
 0x231   : > { %4193 = vmatprep.mubr.f32.mxu1 %v15950_v32 }
 0x233   : > { %8730 = vmatmul.mubr.msk.f32.vlgmr.msra.gmra.mrb[104].mxu0 %vm16085_vm9, %v12300_v49  ;;  %vm16099_vm9 = vmmov %vm16080_vm0 }
 0x234   : > { %8736 = vmatmul.mubr.msk.f32.vlgmr.msra.gmra.mrb[104].mxu1 %vm16086_vm10, %v12300_v49  ;;  %4110 = vmatprep.mubr.f32.mxu0 %v15950_v32  ;;  %vm16100_vm10 = vmmov %vm16080_vm0 }
 0x235   : > { %4199 = vmatprep.mubr.f32.mxu1 %v15950_v32  ;;  %8741 = vmatpush1.msk.msra.mxu0 %vm16087_vm11, %v10612_v36  ;;  %vm16101_vm11 = vmmov %vm16080_vm0 }
 0x236   : > { %8747 = vmatpush1.msk.msra.mxu1 %vm16088_vm12, %v10613_v35 }
 0x237   : > { %8731 = vmatmul.mubr.msk.f32.gmra.mrb[106].mxu0 %vm16089_vm13, %v12311_v4 }
 0x238   : > { %8737 = vmatmul.mubr.msk.f32.gmra.mrb[106].mxu1 %vm16090_vm14, %v12311_v4  ;;  %4116 = vmatprep.mubr.f32.mxu0 %v15950_v32 }
 0x239   : > { %4205 = vmatprep.mubr.f32.mxu1 %v15950_v32 }
 0x23b   : > { %8732 = vmatmul.mubr.msk.f32.gmra.mrb[108].mxu0 %vm16091_vm15, %v12330_v31 }
 0x23c   : > { %8738 = vmatmul.mubr.msk.f32.gmra.mrb[108].mxu1 %vm16092_vm3, %v12330_v31  ;;  %4122 = vmatprep.mubr.f32.mxu0 %v15950_v32 }
 0x23d   : > { %4211 = vmatprep.mubr.f32.mxu1 %v15950_v32 }
 0x23f   : > { %8733 = vmatmul.mubr.msk.f32.gmra.mrb[110].mxu0 %vm16093_vm1, %v12341_v28 }
 0x240   : > { %8739 = vmatmul.mubr.msk.f32.gmra.mrb[110].mxu1 %vm16094_vm4, %v12341_v28  ;;  %4282 = vmatprep.mubr.f32.mxu0 %v15950_v32 }
 0x241   : > { %4371 = vmatprep.mubr.f32.mxu1 %v15950_v32 }
 0x243   : > { %8742 = vmatmul.mubr.msk.f32.vlgmr.msra.gmra.mrb[112].mxu0 %vm16080_vm0, %v12300_v49 }
 0x244   : > { %8748 = vmatmul.mubr.msk.f32.vlgmr.msra.gmra.mrb[112].mxu1 %vm16095_vm5, %v12300_v49  ;;  %4288 = vmatprep.mubr.f32.mxu0 %v15950_v32 }
 0x245   : > { %4377 = vmatprep.mubr.f32.mxu1 %v15950_v32 }
 0x247   : > { %8743 = vmatmul.mubr.msk.f32.gmra.mrb[114].mxu0 %vm16096_vm6, %v12311_v4 }
 0x248   : > { %8749 = vmatmul.mubr.msk.f32.gmra.mrb[114].mxu1 %vm16097_vm7, %v12311_v4  ;;  %4294 = vmatprep.mubr.f32.mxu0 %v15950_v32 }
 0x249   : > { %4383 = vmatprep.mubr.f32.mxu1 %v15950_v32 }
 0x24b   : > { %8744 = vmatmul.mubr.msk.f32.gmra.mrb[116].mxu0 %vm16098_vm8, %v12330_v31 }
 0x24c   : > { %8750 = vmatmul.mubr.msk.f32.gmra.mrb[116].mxu1 %vm16099_vm9, %v12330_v31  ;;  %4300 = vmatprep.mubr.f32.mxu0 %v15950_v32 }
 0x24d   : > { %4389 = vmatprep.mubr.f32.mxu1 %v15950_v32 }
 0x24f   : > { %8745 = vmatmul.mubr.msk.f32.gmra.mrb[118].mxu0 %vm16100_vm10, %v12341_v28 }
 0x250   : > { %8751 = vmatmul.mubr.msk.f32.gmra.mrb[118].mxu1 %vm16101_vm11, %v12341_v28  ;;  %4472 = vmatprep.mubr.f32.mxu0 %v15950_v32 }
 0x251   : > { %4561 = vmatprep.mubr.f32.mxu1 %v15950_v32 }
 0x25b   : > { %v2020_v58 = vpop.f32.mrb[40].mxu0 }
 0x25c   : > { %v12469_v50 = vadd.f32 %v2020_v58, %v12466_v16  ;;  %v2022_v37 = vpop.f32.mrb[41].mxu0  ;;  %v2109_v33 = vpop.f32.mrb[40].mxu1 }
 0x25d   : > { %v12472_v48 = vadd.f32 %v2022_v37, %v12466_v16  ;;  %v12478_v38 = vadd.f32 %v2109_v33, %v12466_v16  ;;  %v2111_v29 = vpop.f32.mrb[41].mxu1 }
 0x25e   : > { %v2844_v46 = vmin.f32 %v12469_v50, 20.0  ;;  %v12486_v13 = vadd.f32 %v2111_v29, %v12466_v16  ;;  %vm3084_vm12 = vcmp.gt.f32.partialorder %v12469_v50, 20.0 }
 0x25f   : > { %v2845_v17 = vmin.f32 %v12472_v48, 20.0  ;;  %v2026_v15 = vpop.f32.mrb[42].mxu0  ;;  %v2846_v34 = vmin.f32 %v12478_v38, 20.0  ;;  %vm3085_vm13 = vcmp.gt.f32.partialorder %v12472_v48, 20.0  ;;  %vm3086_vm14 = vcmp.gt.f32.partialorder %v12478_v38, 20.0 }
 0x260   : > { %v2924_v0 = vmul.f32 1.442695, %v2844_v46  ;;  %v12482_v39 = vadd.f32 %v2026_v15, %v12474_v20  ;;  %v2028_v5 = vpop.f32.mrb[43].mxu0  ;;  %v2115_v24 = vpop.f32.mrb[42].mxu1  ;;  %v2847_v23 = vmin.f32 %v12486_v13, 20.0  ;;  %vm3087_vm7 = vcmp.gt.f32.partialorder %v12486_v13, 20.0 }
 0x261   : > { %v2926_v9 = vmul.f32 1.442695, %v2845_v17  ;;  %v12489_v14 = vadd.f32 %v2028_v5, %v12474_v20  ;;  %v2928_v62 = vmul.f32 1.442695, %v2846_v34  ;;  %v12493_v42 = vadd.f32 %v2115_v24, %v12474_v20  ;;  %v2117_v43 = vpop.f32.mrb[43].mxu1 }
 0x262   : > { %9642 = vpow2.f32 %v2924_v0  ;;  %v2864_v27 = vmin.f32 %v12482_v39, 20.0  ;;  %v12501_v1 = vadd.f32 %v2117_v43, %v12474_v20  ;;  %v2930_v11 = vmul.f32 1.442695, %v2847_v23 }
 0x263   : > { %9644 = vpow2.f32 %v2926_v9  ;;  %v2032_v18 = vpop.f32.mrb[44].mxu0  ;;  %v2865_v40 = vmin.f32 %v12489_v14, 20.0  ;;  %v2866_v25 = vmin.f32 %v12493_v42, 20.0  ;;  %vm3104_vm15 = vcmp.gt.f32.partialorder %v12482_v39, 20.0 }
 0x264   : > { %v2964_v3 = vmul.f32 1.442695, %v2864_v27  ;;  %9646 = vpow2.f32 %v2928_v62  ;;  %v2034_v55 = vpop.f32.mrb[45].mxu0  ;;  %v12504_v8 = vadd.f32 %v2032_v18, %v12496_v60  ;;  %v2121_v6 = vpop.f32.mrb[44].mxu1  ;;  %v2867_v22 = vmin.f32 %v12501_v1, 20.0 }
 0x265   : > { %v2966_v2 = vmul.f32 1.442695, %v2865_v40  ;;  %v2968_v10 = vmul.f32 1.442695, %v2866_v25  ;;  %v12508_v59 = vadd.f32 %v2034_v55, %v12496_v60  ;;  %v2123_v57 = vpop.f32.mrb[45].mxu1  ;;  %v12512_v54 = vadd.f32 %v2121_v6, %v12496_v60 }
 0x266   : > { %9648 = vpow2.f32 %v2964_v3  ;;  %v2884_v21 = vmin.f32 %v12504_v8, 20.0  ;;  %v2970_v49 = vmul.f32 1.442695, %v2867_v22  ;;  %v12522_v44 = vadd.f32 %v2123_v57, %v12496_v60 }
 0x267   : > { %v2038_v41 = vpop.f32.mrb[46].mxu0  ;;  %9650 = vpow2.f32 %v2966_v2  ;;  %v2886_v61 = vmin.f32 %v12512_v54, 20.0  ;;  %v2885_v53 = vmin.f32 %v12508_v59, 20.0  ;;  %vm3105_vm3 = vcmp.gt.f32.partialorder %v12489_v14, 20.0 }
 0x268   : > { %v2040_v7 = vpop.f32.mrb[47].mxu0  ;;  %9652 = vpow2.f32 %v2968_v10  ;;  %v3004_v4 = vmul.f32 1.442695, %v2884_v21  ;;  %v2127_v56 = vpop.f32.mrb[46].mxu1  ;;  %v12519_v30 = vadd.f32 %v2038_v41, %v12514_v26  ;;  %v2887_v37 = vmin.f32 %v12522_v44, 20.0 }
 0x269   : > { %v2129_v31 = vpop.f32.mrb[47].mxu1  ;;  %v3008_v45 = vmul.f32 1.442695, %v2886_v61  ;;  %v3006_v51 = vmul.f32 1.442695, %v2885_v53  ;;  %v12526_v35 = vadd.f32 %v2127_v56, %v12514_v26  ;;  %v12530_v0 = vadd.f32 %v2040_v7, %v12514_v26 }
 0x26a   : > { %9654 = vpow2.f32 %v3004_v4  ;;  %v2904_v12 = vmin.f32 %v12519_v30, 20.0  ;;  %v3010_v9 = vmul.f32 1.442695, %v2887_v37  ;;  %v12536_v6 = vadd.f32 %v2129_v31, %v12514_v26 }
 0x26b   : > { %9656 = vpow2.f32 %v2930_v11  ;;  %v2906_v34 = vmin.f32 %v12526_v35, 20.0  ;;  %v2905_v62 = vmin.f32 %v12530_v0, 20.0  ;;  %vm3106_vm1 = vcmp.gt.f32.partialorder %v12493_v42, 20.0 }
 0x26c   : > { %v9643_v28 = vpop.eup %9642  ;;  %9658 = vpow2.f32 %v2970_v49  ;;  %v3044_v15 = vmul.f32 1.442695, %v2904_v12  ;;  %v2907_v53 = vmin.f32 %v12536_v6, 20.0  ;;  %vm3124_vm4 = vcmp.gt.f32.partialorder %v12504_v8, 20.0 }
 0x26d   : > { %v9645_v47 = vpop.eup %9644  ;;  %v3164_v52 = vadd.f32 1.0, %v9643_v28  ;;  %9660 = vpow2.f32 %v3008_v45  ;;  %v3048_v18 = vmul.f32 1.442695, %v2906_v34  ;;  %v3046_v55 = vmul.f32 1.442695, %v2905_v62 }
 0x26e   : > { %v3165_v63 = vadd.f32 1.0, %v9645_v47  ;;  %v9647_v19 = vpop.eup %9646  ;;  %vm3126_vm0 = vcmp.gt.f32.partialorder %v12512_v54, 20.0  ;;  %vm3144_vm5 = vcmp.gt.f32.partialorder %v12519_v30, 20.0  ;;  %vm3146_vm6 = vcmp.gt.f32.partialorder %v12526_v35, 20.0 }
 0x26f   : > { %9662 = vlog2.f32 %v3164_v52  ;;  %v3166_v36 = vadd.f32 1.0, %v9647_v19  ;;  %vm3107_vm8 = vcmp.gt.f32.partialorder %v12501_v1, 20.0  ;;  %vm3125_vm9 = vcmp.gt.f32.partialorder %v12508_v59, 20.0 }
 0x270   : > { %v9649_v58 = vpop.eup %9648  ;;  %9664 = vlog2.f32 %v3165_v63  ;;  %vm3145_vm10 = vcmp.gt.f32.partialorder %v12530_v0, 20.0 }
 0x271   : > { %v9651_v46 = vpop.eup %9650  ;;  %9666 = vlog2.f32 %v3166_v36  ;;  %v3184_v33 = vadd.f32 1.0, %v9649_v58 }
 0x272   : > { %v9653_v17 = vpop.eup %9652  ;;  %v3185_v29 = vadd.f32 1.0, %v9651_v46  ;;  %9668 = vpow2.f32 %v3006_v51 }
 0x273   : > { %9670 = vlog2.f32 %v3184_v33  ;;  %v3186_v5 = vadd.f32 1.0, %v9653_v17  ;;  %v3050_v33 = vmul.f32 1.442695, %v2907_v53 }
 0x274   : > { %9672 = vlog2.f32 %v3185_v29  ;;  %v9655_v27 = vpop.eup %9654 }
 0x275   : > { %9674 = vlog2.f32 %v3186_v5  ;;  %v9657_v24 = vpop.eup %9656  ;;  %v3204_v40 = vadd.f32 1.0, %v9655_v27 }
 0x276   : > { %9676 = vpow2.f32 %v3044_v15  ;;  %v9659_v43 = vpop.eup %9658  ;;  %v3167_v61 = vadd.f32 1.0, %v9657_v24 }
 0x277   : > { %v9661_v3 = vpop.eup %9660  ;;  %9678 = vpow2.f32 %v3010_v9  ;;  %v3187_v56 = vadd.f32 1.0, %v9659_v43 }
 0x278   : > { %9680 = vpow2.f32 %v3048_v18  ;;  %v3206_v57 = vadd.f32 1.0, %v9661_v3 }
 0x279   : > { %v9663_v23 = vpop.eup %9662  ;;  %9682 = vlog2.f32 %v3204_v40 }
 0x27a   : > { %v9665_v25 = vpop.eup %9664  ;;  %v3245_v22 = vmul.f32 0.6931472, %v9663_v23  ;;  %9684 = vpow2.f32 %v3046_v55 }
 0x27b   : > { %v9667_v2 = vpop.eup %9666  ;;  %v3247_v21 = vmul.f32 0.6931472, %v9665_v25  ;;  %9686 = vlog2.f32 %v3206_v57 }
 0x27c   : > { %v9669_v10 = vpop.eup %9668  ;;  %v3249_v11 = vmul.f32 0.6931472, %v9667_v2  ;;  %v3404_v45 = vsel %vm3084_vm12, %v12469_v50, %v3245_v22 }
 0x27d   : > { %v9671_v41 = vpop.eup %9670  ;;  %v3405_v51 = vsel %vm3085_vm13, %v12472_v48, %v3247_v21 }
 0x27e   : > { %v9673_v7 = vpop.eup %9672  ;;  %v3285_v49 = vmul.f32 0.6931472, %v9671_v41  ;;  %v12557_v58 = vsel %vm3086_vm14, %v12478_v38, %v3249_v11 }
 0x27f   : > { %v9675_v4 = vpop.eup %9674  ;;  %v3287_v31 = vmul.f32 0.6931472, %v9673_v7 }
 0x280   : > { %v9677_v28 = vpop.eup %9676  ;;  %v3424_v47 = vsel %vm3104_vm15, %v12482_v39, %v3285_v49  ;;  %v3289_v52 = vmul.f32 0.6931472, %v9675_v4  ;;  %v3205_v39 = vadd.f32 1.0, %v9669_v10 }
 0x281   : > { %v8936_v63 = vpack.c.bf16 %v3424_v47, %v3404_v45  ;;  %v3224_v19 = vadd.f32 1.0, %v9677_v28  ;;  %v3425_v12 = vsel %vm3105_vm3, %v12489_v14, %v3287_v31  ;;  %v9679_v36 = vpop.eup %9678  ;;  %v2198_v37 = vpop.f32.mrb[48].mxu0 }
 0x282   : > { %v12562_v50 = vsel %vm3106_vm1, %v12493_v42, %v3289_v52  ;;  %v8934_v46 = vpack.c.bf16 %v3425_v12, %v3405_v51  ;;  %v12567_v14 = vadd.f32 %v2198_v37, %v12466_v16  ;;  %v2200_v17 = vpop.f32.mrb[49].mxu0  ;;  %v9681_v42 = vpop.eup %9680  ;;  %v3207_v15 = vadd.f32 1.0, %v9679_v36 }
 0x283   : > { %v8944_v48 = vpack.c.bf16 %v12562_v50, %v12557_v58  ;;  %9688 = vlog2.f32 %v3224_v19  ;;  %v12570_v29 = vadd.f32 %v2200_v17, %v12466_v16  ;;  %v9683_v9 = vpop.eup %9682  ;;  %v3226_v27 = vadd.f32 1.0, %v9681_v42 }
 0x284   : > { %9690 = vlog2.f32 %v3167_v61  ;;  %v2287_v38 = vpop.f32.mrb[48].mxu1  ;;  %8935 = vmatprep.subr.bf16.mxu0 %v8934_v46  ;;  %v2848_v5 = vmin.f32 %v12567_v14, 20.0  ;;  %v9685_v23 = vpop.eup %9684  ;;  %v3325_v2 = vmul.f32 0.6931472, %v9683_v9  ;;  %vm3088_vm11 = vcmp.gt.f32.partialorder %v12567_v14, 20.0 }
 0x285   : > { %9692 = vlog2.f32 %v3187_v56  ;;  %v2289_v34 = vpop.f32.mrb[49].mxu1  ;;  %8937 = vmatpush1.bf16.msra.mxu0 %v8936_v63  ;;  %v12574_v24 = vadd.f32 %v2287_v38, %v12466_v16  ;;  %v2849_v62 = vmin.f32 %v12570_v29, 20.0  ;;  %v2204_v43 = vpop.f32.mrb[50].mxu0  ;;  %v3225_v4 = vadd.f32 1.0, %v9685_v23 }
 0x286   : > { %9694 = vlog2.f32 %v3205_v39  ;;  %v2932_v18 = vmul.f32 1.442695, %v2848_v5  ;;  %v12578_v3 = vadd.f32 %v2289_v34, %v12466_v16  ;;  %v2206_v40 = vpop.f32.mrb[51].mxu0  ;;  %v9687_v41 = vpop.eup %9686  ;;  %v12584_v7 = vadd.f32 %v2204_v43, %v12474_v20 }
 0x287   : > { %9696 = vpow2.f32 %v3050_v33  ;;  %v2850_v25 = vmin.f32 %v12574_v24, 20.0  ;;  %v2934_v10 = vmul.f32 1.442695, %v2849_v62  ;;  %v12591_v56 = vadd.f32 %v2206_v40, %v12474_v20 }
 0x288   : > { %9698 = vlog2.f32 %v3226_v27  ;;  %v2293_v55 = vpop.f32.mrb[50].mxu1  ;;  %v2851_v22 = vmin.f32 %v12578_v3, 20.0  ;;  %v2868_v28 = vmin.f32 %v12584_v7, 20.0  ;;  %v12602_v63 = vsel %vm3124_vm4, %v12504_v8, %v3325_v2 }
 0x289   : > { %9700 = vlog2.f32 %v3207_v15  ;;  %v2295_v57 = vpop.f32.mrb[51].mxu1  ;;  %v2936_v21 = vmul.f32 1.442695, %v2850_v25  ;;  %v12587_v11 = vadd.f32 %v2293_v55, %v12474_v20  ;;  %v2210_v49 = vpop.f32.mrb[52].mxu0  ;;  %v3329_v19 = vmul.f32 0.6931472, %v9687_v41 }
 0x28a   : > { %9702 = vpow2.f32 %v2932_v18  ;;  %v2938_v61 = vmul.f32 1.442695, %v2851_v22  ;;  %v12594_v53 = vadd.f32 %v2295_v57, %v12474_v20  ;;  %v2212_v31 = vpop.f32.mrb[53].mxu0  ;;  %v2869_v51 = vmin.f32 %v12591_v56, 20.0 }
 0x28b   : > { %9704 = vpow2.f32 %v2936_v21  ;;  %v2870_v45 = vmin.f32 %v12587_v11, 20.0  ;;  %v2972_v37 = vmul.f32 1.442695, %v2868_v28  ;;  %v12607_v42 = vadd.f32 %v2210_v49, %v12496_v60 }
 0x28c   : > { %v2299_v47 = vpop.f32.mrb[52].mxu1  ;;  %9706 = vpow2.f32 %v2934_v10  ;;  %v2974_v17 = vmul.f32 1.442695, %v2869_v51  ;;  %v2871_v38 = vmin.f32 %v12594_v53, 20.0  ;;  %v12620_v9 = vadd.f32 %v2212_v31, %v12496_v60 }
 0x28d   : > { %v9689_v52 = vpop.eup %9688  ;;  %v2301_v12 = vpop.f32.mrb[53].mxu1  ;;  %9708 = vpow2.f32 %v2938_v61  ;;  %v2976_v46 = vmul.f32 1.442695, %v2870_v45  ;;  %v12617_v34 = vadd.f32 %v2299_v47, %v12496_v60  ;;  %v2888_v23 = vmin.f32 %v12607_v42, 20.0 }
 0x28e   : > { %v9691_v36 = vpop.eup %9690  ;;  %v3365_v39 = vmul.f32 0.6931472, %v9689_v52  ;;  %9710 = vlog2.f32 %v3225_v4  ;;  %v2216_v8 = vpop.f32.mrb[54].mxu0  ;;  %16102 = vst [vmem:[#allocation44_spill] sm:$0xff] %v12620_v9  ;;  %v2978_v40 = vmul.f32 1.442695, %v2871_v38  ;;  %v12633_v49 = vsel %vm3126_vm0, %v12512_v54, %v3329_v19 }
 0x28f   : > { %v9693_v33 = vpop.eup %9692  ;;  %9712 = vpow2.f32 %v2972_v37  ;;  %v2218_v62 = vpop.f32.mrb[55].mxu0  ;;  %v2890_v55 = vmin.f32 %v12617_v34, 20.0  ;;  %v3251_v2 = vmul.f32 0.6931472, %v9691_v36  ;;  %v3012_v57 = vmul.f32 1.442695, %v2888_v23 }
 0x290   : > { %v12609_v15 = vpop.eup %9694  ;;  %v12614_v5 = vsel %vm3144_vm5, %v12519_v30, %v3365_v39  ;;  %v2305_v27 = vpop.f32.mrb[54].mxu1  ;;  %9714 = vpow2.f32 %v2976_v46  ;;  %v2889_v41 = vmin.f32 %v12620_v9, 20.0  ;;  %v12636_v31 = vadd.f32 %v2301_v12, %v12496_v60 }
 0x291   : > { %v9697_v43 = vpop.eup %9696  ;;  %v8940_v18 = vpack.c.bf16 %v12614_v5, %v12602_v63  ;;  %v2307_v25 = vpop.f32.mrb[55].mxu1  ;;  %9716 = vpow2.f32 %v2974_v17  ;;  %v3016_v61 = vmul.f32 1.442695, %v2890_v55  ;;  %v12642_v47 = vadd.f32 %v2216_v8, %v12514_v26 }
 0x292   : > { %v9699_v30 = vpop.eup %9698  ;;  %9718 = vpow2.f32 %v2978_v40  ;;  %v3227_v4 = vadd.f32 1.0, %v9697_v43  ;;  %16103 = vst [vmem:[#allocation23_spill] sm:$0xff] %v12636_v31  ;;  %v3014_v54 = vmul.f32 1.442695, %v2889_v41  ;;  %v2891_v19 = vmin.f32 %v12636_v31, 20.0 }
 0x293   : > { %v12627_v10 = vpop.eup %9700  ;;  %v3369_v22 = vmul.f32 0.6931472, %v9699_v30  ;;  %9720 = vpow2.f32 %v3012_v57  ;;  %v3291_v39 = vmul.f32 0.6931472, %v9693_v33  ;;  %v12648_v17 = vadd.f32 %v2305_v27, %v12514_v26 }
 0x294   : > { %v9703_v21 = vpop.eup %9702  ;;  %9722 = vpow2.f32 %v3016_v61  ;;  %v3018_v46 = vmul.f32 1.442695, %v2891_v19  ;;  %v2908_v8 = vmin.f32 %v12642_v47, 20.0  ;;  %v12653_v43 = vadd.f32 %v2218_v62, %v12514_v26 }
 0x295   : > { %v12639_v28 = vsel %vm3146_vm6, %v12526_v35, %v3369_v22  ;;  %v3168_v45 = vadd.f32 1.0, %v9703_v21  ;;  %v9705_v52 = vpop.eup %9704  ;;  %v12657_v33 = vadd.f32 %v2307_v25, %v12514_v26  ;;  %v3407_v23 = vsel %vm3087_vm7, %v12486_v13, %v3251_v2 }
 0x296   : > { %v9707_v36 = vpop.eup %9706  ;;  %v3170_v12 = vadd.f32 1.0, %v9705_v52  ;;  %16104 = vst [vmem:[#allocation24_spill] sm:$0xff] %v12653_v43  ;;  %v3427_v22 = vsel %vm3107_vm8, %v12501_v1, %v3291_v39  ;;  %v2910_v62 = vmin.f32 %v12648_v17, 20.0  ;;  %v2909_v21 = vmin.f32 %v12653_v43, 20.0 }
 0x297   : > { %9724 = vlog2.f32 %v3168_v45  ;;  %v9709_v37 = vpop.eup %9708  ;;  %v3169_v35 = vadd.f32 1.0, %v9707_v36  ;;  %16105 = vst [vmem:[#allocation25_spill] sm:$0xff] %v12657_v33  ;;  %v3052_v25 = vmul.f32 1.442695, %v2908_v8  ;;  %v3327_v45 = vmul.f32 0.6931472, %v12609_v15 }
 0x298   : > { %9726 = vlog2.f32 %v3227_v4  ;;  %v9711_v38 = vpop.eup %9710  ;;  %v3171_v30 = vadd.f32 1.0, %v9709_v37  ;;  %v2911_v2 = vmin.f32 %v12657_v33, 20.0  ;;  %v8942_v52 = vpack.c.bf16 %v3427_v22, %v3407_v23 }
 0x299   : > { %9728 = vlog2.f32 %v3170_v12  ;;  %v9713_v40 = vpop.eup %9712  ;;  %v3367_v1 = vmul.f32 0.6931472, %v9711_v38  ;;  %v3056_v12 = vmul.f32 1.442695, %v2910_v62  ;;  %v3054_v39 = vmul.f32 1.442695, %v2909_v21 }
 0x29a   : > { %9730 = vpow2.f32 %v3014_v54  ;;  %v9715_v27 = vpop.eup %9714  ;;  %v3188_v55 = vadd.f32 1.0, %v9713_v40  ;;  %8943 = vmatprep.subr.bf16.mxu1 %v8942_v52  ;;  %v3058_v38 = vmul.f32 1.442695, %v2911_v2  ;;  %vm3090_vm12 = vcmp.gt.f32.partialorder %v12574_v24, 20.0 }
 0x29b   : > { %9732 = vlog2.f32 %v3169_v35  ;;  %v9717_v57 = vpop.eup %9716  ;;  %v3190_v41 = vadd.f32 1.0, %v9715_v27  ;;  %8945 = vmatpush1.bf16.msra.mxu1 %v8944_v48  ;;  %v3465_v8 = vsel %vm3145_vm10, %v12530_v0, %v3367_v1  ;;  %vm3108_vm13 = vcmp.gt.f32.partialorder %v12584_v7, 20.0 }
 0x29c   : > { %9734 = vpow2.f32 %v3018_v46  ;;  %v9719_v4 = vpop.eup %9718  ;;  %v3189_v61 = vadd.f32 1.0, %v9717_v57  ;;  %v3445_v46 = vsel %vm3125_vm9, %v12508_v59, %v3327_v45  ;;  %vm3110_vm14 = vcmp.gt.f32.partialorder %v12587_v11, 20.0 }
 0x29d   : > { %9736 = vlog2.f32 %v3188_v55  ;;  %v3191_v13 = vadd.f32 1.0, %v9719_v4  ;;  %v9721_v54 = vpop.eup %9720  ;;  %v8938_v55 = vpack.c.bf16 %v3465_v8, %v3445_v46  ;;  %vm3128_vm15 = vcmp.gt.f32.partialorder %v12607_v42, 20.0 }
 0x29e   : > { %9738 = vlog2.f32 %v3190_v41  ;;  %v9723_v19 = vpop.eup %9722  ;;  %v3208_v36 = vadd.f32 1.0, %v9721_v54  ;;  %vm3130_vm3 = vcmp.gt.f32.partialorder %v12617_v34, 20.0  ;;  %vm3148_vm1 = vcmp.gt.f32.partialorder %v12642_v47, 20.0 }
 0x29f   : > { %9740 = vlog2.f32 %v3171_v30  ;;  %v3210_v15 = vadd.f32 1.0, %v9723_v19  ;;  %8939 = vmatprep.subr.bf16.mxu0 %v8938_v55  ;;  %vm3150_vm4 = vcmp.gt.f32.partialorder %v12648_v17, 20.0  ;;  %vm3127_vm0 = vcmp.gt.f32.partialorder %v12522_v44, 20.0 }
 0x2a0   : > { %9742 = vlog2.f32 %v3189_v61  ;;  %8941 = vmatpush1.bf16.msra.mxu0 %v8940_v18  ;;  %v12693_v61 = vld [vmem:[#allocation3 + $0x20] sm:$0xff]  ;;  %vm3147_vm5 = vcmp.gt.f32.partialorder %v12536_v6, 20.0 }
 0x2a1   : > { %v9725_v37 = vpop.eup %9724  ;;  %9744 = vpow2.f32 %v3052_v25 }
 0x2a2   : > { %v12672_v40 = vpop.eup %9726  ;;  %9746 = vlog2.f32 %v3191_v13  ;;  %v3253_v57 = vmul.f32 0.6931472, %v9725_v37 }
 0x2a3   : > { %v9729_v22 = vpop.eup %9728  ;;  %9748 = vlog2.f32 %v3208_v36  ;;  %8752 = vmatmul.mubr.msk.f32.vlgmr.msra.gmra.mrb[80].mxu0 %vm1941_vm2, %v12693_v61 }
 0x2a4   : > { %v9731_v50 = vpop.eup %9730  ;;  %9750 = vpow2.f32 %v3056_v12  ;;  %v3257_v62 = vmul.f32 0.6931472, %v9729_v22  ;;  %v12700_v1 = vsel %vm3088_vm11, %v12567_v14, %v3253_v57  ;;  %4478 = vmatprep.mubr.f32.mxu0 %v15950_v32 }
 0x2a5   : > { %v2376_v35 = vpop.f32.mrb[56].mxu0  ;;  %v12686_v41 = vpop.eup %9732  ;;  %9752 = vlog2.f32 %v3210_v15  ;;  %16107 = vst [vmem:[#allocation52_spill] sm:$0xff] %v12700_v1  ;;  %v3209_v19 = vadd.f32 1.0, %v9731_v50 }
 0x2a6   : > { %v12675_v23 = vadd.f32 %v2376_v35, %v12466_v16  ;;  %v2465_v27 = vpop.f32.mrb[56].mxu1  ;;  %v2378_v30 = vpop.f32.mrb[57].mxu0  ;;  %9754 = vpow2.f32 %v3054_v39 }
 0x2a7   : > { %v12678_v58 = vadd.f32 %v2465_v27, %v12466_v16  ;;  %v12681_v59 = vadd.f32 %v2378_v30, %v12466_v16  ;;  %v2467_v0 = vpop.f32.mrb[57].mxu1  ;;  %v9735_v25 = vpop.eup %9734  ;;  %9756 = vpow2.f32 %v3058_v38  ;;  %v12716_v38 = vld [vmem:[#allocation3 + $0x28] sm:$0xff]  ;;  %v12723_v30 = vsel %vm3090_vm12, %v12574_v24, %v3257_v62 }
 0x2a8   : > { %v2852_v48 = vmin.f32 %v12675_v23, 20.0  ;;  %v9737_v54 = vpop.eup %9736  ;;  %v12703_v39 = vadd.f32 %v2467_v0, %v12466_v16  ;;  %v3211_v35 = vadd.f32 1.0, %v9735_v25  ;;  %16111 = vst [vmem:[#allocation50_spill] sm:$0xff] %v12723_v30  ;;  %8753 = vmatmul.mubr.msk.f32.gmra.mrb[82].mxu0 %vm1941_vm2, %v12716_v38  ;;  %vm3092_vm6 = vcmp.gt.f32.partialorder %v12675_v23, 20.0 }
 0x2a9   : > { %16106 = vst [vmem:[#allocation45_spill] sm:$0xff] %v12681_v59  ;;  %v2854_v21 = vmin.f32 %v12678_v58, 20.0  ;;  %v2853_v13 = vmin.f32 %v12681_v59, 20.0  ;;  %v9739_v18 = vpop.eup %9738  ;;  %v3293_v36 = vmul.f32 0.6931472, %v9737_v54  ;;  %4484 = vmatprep.mubr.f32.mxu0 %v15950_v32  ;;  %v12749_v54 = vld [vmem:[#allocation3 + $0x30] sm:$0xff] }
 0x2aa   : > { %v2382_v4 = vpop.f32.mrb[58].mxu0  ;;  %v2940_v45 = vmul.f32 1.442695, %v2852_v48  ;;  %16108 = vst [vmem:[#allocation26_spill] sm:$0xff] %v12703_v39  ;;  %v12707_v37 = vpop.eup %9740  ;;  %v3297_v15 = vmul.f32 0.6931472, %v9739_v18 }
 0x2ab   : > { %v2471_v2 = vpop.f32.mrb[58].mxu1  ;;  %v2384_v52 = vpop.f32.mrb[59].mxu0  ;;  %v2944_v63 = vmul.f32 1.442695, %v2854_v21  ;;  %v2942_v12 = vmul.f32 1.442695, %v2853_v13  ;;  %v12710_v14 = vadd.f32 %v2382_v4, %v12474_v20  ;;  %v12728_v55 = vsel %vm3108_vm13, %v12584_v7, %v3293_v36 }
 0x2ac   : > { %v2473_v5 = vpop.f32.mrb[59].mxu1  ;;  %9758 = vpow2.f32 %v2940_v45  ;;  %16109 = vst [vmem:[#allocation48_spill] sm:$0xff] %v12707_v37  ;;  %v12713_v46 = vadd.f32 %v2471_v2, %v12474_v20  ;;  %v12718_v27 = vpop.eup %9742  ;;  %16112 = vst [vmem:[#allocation55_spill] sm:$0xff] %v12728_v55  ;;  %v2855_v22 = vmin.f32 %v12703_v39, 20.0  ;;  %v12736_v21 = vsel %vm3110_vm14, %v12587_v11, %v3297_v15  ;;  %8754 = vmatmul.mubr.msk.f32.gmra.mrb[84].mxu0 %vm1941_vm2, %v12749_v54 }
 0x2ad   : > { %16110 = vst [vmem:[#allocation49_spill] sm:$0xff] %v12718_v27  ;;  %9760 = vpow2.f32 %v2944_v63  ;;  %v9745_v50 = vpop.eup %9744  ;;  %16113 = vst [vmem:[#allocation51_spill] sm:$0xff] %v12736_v21  ;;  %v2872_v24 = vmin.f32 %v12710_v14, 20.0  ;;  %v12752_v18 = vadd.f32 %v2384_v52, %v12474_v20  ;;  %4490 = vmatprep.mubr.f32.mxu0 %v15950_v32  ;;  %vm3094_vm7 = vcmp.gt.f32.partialorder %v12678_v58, 20.0 }
 0x2ae   : > { %v2388_v8 = vpop.f32.mrb[60].mxu0  ;;  %9762 = vpow2.f32 %v2942_v12  ;;  %v12741_v7 = vpop.eup %9746  ;;  %v3228_v25 = vadd.f32 1.0, %v9745_v50  ;;  %v2946_v45 = vmul.f32 1.442695, %v2855_v22  ;;  %v2874_v2 = vmin.f32 %v12713_v46, 20.0 }
 0x2af   : > { %v2477_v57 = vpop.f32.mrb[60].mxu1  ;;  %v2390_v0 = vpop.f32.mrb[61].mxu0  ;;  %16114 = vst [vmem:[#allocation59_spill] sm:$0xff] %v12741_v7  ;;  %9764 = vlog2.f32 %v3209_v19  ;;  %v2980_v11 = vmul.f32 1.442695, %v2872_v24  ;;  %16115 = vst [vmem:[#allocation58_spill] sm:$0xff] %v12752_v18  ;;  %v12755_v19 = vadd.f32 %v2473_v5, %v12474_v20  ;;  %v12775_v39 = vadd.f32 %v2388_v8, %v12496_v60 }
 0x2b0   : > { %v12739_v62 = vpop.f32.mrb[61].mxu1  ;;  %v9749_v13 = vpop.eup %9748  ;;  %9766 = vlog2.f32 %v3211_v35  ;;  %v2984_v22 = vmul.f32 1.442695, %v2874_v2  ;;  %v12771_v2 = vld [vmem:[#allocation3 + $0x38] sm:$0xff]  ;;  %v12789_v8 = vadd.f32 %v2390_v0, %v12496_v60  ;;  %vm3112_vm8 = vcmp.gt.f32.partialorder %v12710_v14, 20.0 }
 0x2b1   : > { %v9751_v63 = vpop.eup %9750  ;;  %9768 = vlog2.f32 %v3228_v25  ;;  %16116 = vst [vmem:[#allocation53_spill] sm:$0xff] %v12755_v19  ;;  %v2873_v25 = vmin.f32 %v12752_v18, 20.0  ;;  %16117 = vst [vmem:[#allocation54_spill] sm:$0xff] %v12771_v2  ;;  %8755 = vmatmul.mubr.msk.f32.gmra.mrb[86].mxu0 %vm1941_vm2, %v12771_v2  ;;  %v12808_v21 = vadd.f32 %v12739_v62, %v12496_v60  ;;  %vm3114_vm9 = vcmp.gt.f32.partialorder %v12713_v46, 20.0 }
 0x2b2   : > { %v2394_v36 = vpop.f32.mrb[62].mxu0  ;;  %v9753_v15 = vpop.eup %9752  ;;  %v3230_v35 = vadd.f32 1.0, %v9751_v63  ;;  %9770 = vpow2.f32 %v2946_v45  ;;  %v2875_v63 = vmin.f32 %v12755_v19, 20.0  ;;  %v12783_v19 = vadd.f32 %v2477_v57, %v12496_v60  ;;  %16118 = vst [vmem:[#allocation56_spill] sm:$0xff] %v12789_v8  ;;  %4650 = vmatprep.mubr.f32.mxu0 %v15950_v32 }
 0x2b3   : > { %v12757_v12 = vpop.f32.mrb[62].mxu1  ;;  %v12759_v50 = vpop.f32.mrb[63].mxu0  ;;  %9772 = vpow2.f32 %v2980_v11  ;;  %v2982_v51 = vmul.f32 1.442695, %v2873_v25  ;;  %v2893_v0 = vmin.f32 %v12789_v8, 20.0  ;;  %16121 = vst [vmem:[#allocation32_spill] sm:$0xff] %v12808_v21 }
 0x2b4   : > { %v12761_v24 = vpop.f32.mrb[63].mxu1  ;;  %v9755_v4 = vpop.eup %9754  ;;  %9774 = vlog2.f32 %v3230_v35  ;;  %v2894_v57 = vmin.f32 %v12783_v19, 20.0  ;;  %v12820_v62 = vadd.f32 %v12757_v12, %v12514_v26  ;;  %vm3132_vm10 = vcmp.gt.f32.partialorder %v12775_v39, 20.0 }
 0x2b5   : > { %v9757_v52 = vpop.eup %9756  ;;  %v3229_v5 = vadd.f32 1.0, %v9755_v4  ;;  %9776 = vpow2.f32 %v2984_v22  ;;  %v2892_v22 = vmin.f32 %v12775_v39, 20.0  ;;  %vm3134_vm11 = vcmp.gt.f32.partialorder %v12783_v19, 20.0 }
 0x2b6   : > { %v12768_v45 = vpop.f32.mrb[64].mxu0  ;;  %v9759_v48 = vpop.eup %9758  ;;  %v3231_v11 = vadd.f32 1.0, %v9757_v52  ;;  %v3333_v52 = vmul.f32 0.6931472, %v9749_v13  ;;  %v2914_v27 = vmin.f32 %v12820_v62, 20.0  ;;  %vm3089_vm12 = vcmp.gt.f32.partialorder %v12570_v29, 20.0 }
 0x2b7   : > { %v12777_v18 = vpop.f32.mrb[64].mxu1  ;;  %v12779_v4 = vpop.f32.mrb[65].mxu0  ;;  %9778 = vlog2.f32 %v3229_v5  ;;  %v3172_v35 = vadd.f32 1.0, %v9759_v48  ;;  %v2986_v48 = vmul.f32 1.442695, %v2875_v63  ;;  %vm3109_vm13 = vcmp.gt.f32.partialorder %v12591_v56, 20.0 }
 0x2b8   : > { %v12785_v59 = vpop.f32.mrb[65].mxu1  ;;  %v9761_v33 = vpop.eup %9760  ;;  %9780 = vlog2.f32 %v3231_v11  ;;  %v3020_v43 = vmul.f32 1.442695, %v2892_v22  ;;  %v3024_v63 = vmul.f32 1.442695, %v2894_v57 }
 0x2b9   : > { %v9763_v25 = vpop.eup %9762  ;;  %9782 = vlog2.f32 %v3172_v35  ;;  %v3174_v5 = vadd.f32 1.0, %v9761_v33  ;;  %v3337_v33 = vmul.f32 0.6931472, %v9753_v15  ;;  %v3331_v22 = vmul.f32 0.6931472, %v12627_v10 }
 0x2ba   : > { %v12794_v31 = vpop.f32.mrb[66].mxu0  ;;  %v12797_v13 = vpop.eup %9764  ;;  %v3173_v11 = vadd.f32 1.0, %v9763_v25  ;;  %9784 = vpow2.f32 %v2982_v51  ;;  %v12814_v51 = vadd.f32 %v2394_v36, %v12514_v26  ;;  %v2895_v15 = vmin.f32 %v12808_v21, 20.0 }
 0x2bb   : > { %16119 = vst [vmem:[#allocation57_spill] sm:$0xff] %v12797_v13  ;;  %v12800_v9 = vpop.f32.mrb[66].mxu1  ;;  %v12802_v30 = vpop.f32.mrb[67].mxu0  ;;  %9786 = vlog2.f32 %v3174_v5  ;;  %v3022_v36 = vmul.f32 1.442695, %v2893_v0  ;;  %v12837_v12 = vsel %vm3130_vm3, %v12617_v34, %v3337_v33  ;;  %vm3111_vm3 = vcmp.gt.f32.partialorder %v12594_v53, 20.0 }
 0x2bc   : > { %v12804_v35 = vpop.eup %9766  ;;  %v12810_v1 = vpop.f32.mrb[67].mxu1  ;;  %9788 = vlog2.f32 %v3173_v11  ;;  %v12827_v11 = vsel %vm3128_vm15, %v12607_v42, %v3333_v52  ;;  %v2912_v10 = vmin.f32 %v12814_v51, 20.0  ;;  %16123 = vst [vmem:[#allocation60_spill] sm:$0xff] %v12837_v12  ;;  %v3026_v2 = vmul.f32 1.442695, %v2895_v15 }
 0x2bd   : > { %16120 = vst [vmem:[#allocation31_spill] sm:$0xff] %v12804_v35  ;;  %v9769_v25 = vpop.eup %9768  ;;  %9790 = vpow2.f32 %v2986_v48  ;;  %16122 = vst [vmem:[#allocation39_spill] sm:$0xff] %v12827_v11  ;;  %v3371_v12 = vmul.f32 0.6931472, %v12672_v40  ;;  %vm3152_vm14 = vcmp.gt.f32.partialorder %v12814_v51, 20.0  ;;  %vm3091_vm15 = vcmp.gt.f32.partialorder %v12578_v3, 20.0 }
 0x2be   : > { %v9771_v8 = vpop.eup %9770  ;;  %v3373_v35 = vmul.f32 0.6931472, %v9769_v25  ;;  %v12822_v5 = vpop.f32.mrb[68].mxu0  ;;  %9792 = vpow2.f32 %v3020_v43  ;;  %v3060_v33 = vmul.f32 1.442695, %v2912_v10 }
 0x2bf   : > { %v9773_v57 = vpop.eup %9772  ;;  %v12830_v25 = vpop.f32.mrb[68].mxu1  ;;  %9794 = vpow2.f32 %v3024_v63  ;;  %v3175_v7 = vadd.f32 1.0, %v9771_v8  ;;  %v12866_v8 = vadd.f32 %v12761_v24, %v12514_v26 }
 0x2c0   : > { %v12832_v48 = vpop.f32.mrb[69].mxu0  ;;  %v9775_v21 = vpop.eup %9774  ;;  %v12842_v13 = vsel %vm3148_vm1, %v12642_v47, %v3373_v35  ;;  %v3192_v42 = vadd.f32 1.0, %v9773_v57  ;;  %vm3154_vm1 = vcmp.gt.f32.partialorder %v12820_v62, 20.0 }
 0x2c1   : > { %16124 = vst [vmem:[#allocation40_spill] sm:$0xff] %v12842_v13  ;;  %v12844_v43 = vpop.f32.mrb[69].mxu1  ;;  %v9777_v52 = vpop.eup %9776  ;;  %v3377_v55 = vmul.f32 0.6931472, %v9775_v21  ;;  %v12862_v21 = vadd.f32 %v12759_v50, %v12514_v26  ;;  %16129 = vst [vmem:[#allocation67_spill] sm:$0xff] %v12866_v8 }
 0x2c2   : > { %v12848_v37 = vpop.eup %9778  ;;  %9796 = vlog2.f32 %v3192_v42  ;;  %v3194_v34 = vadd.f32 1.0, %v9777_v52  ;;  %v12851_v47 = vpop.f32.mrb[70].mxu0 }
 0x2c3   : > { %16125 = vst [vmem:[#allocation61_spill] sm:$0xff] %v12848_v37  ;;  %v12853_v35 = vpop.eup %9780  ;;  %v12858_v63 = vsel %vm3150_vm4, %v12648_v17, %v3377_v55  ;;  %9798 = vpow2.f32 %v3022_v36  ;;  %16128 = vst [vmem:[#allocation66_spill] sm:$0xff] %v12862_v21  ;;  %v12868_v15 = vpop.f32.mrb[70].mxu1  ;;  %v3064_v17 = vmul.f32 1.442695, %v2914_v27  ;;  %v12876_v55 = vadd.f32 %v12768_v45, %v12466_v16 }
 0x2c4   : > { %16126 = vst [vmem:[#allocation62_spill] sm:$0xff] %v12853_v35  ;;  %16127 = vst [vmem:[#allocation63_spill] sm:$0xff] %v12858_v63  ;;  %v12870_v57 = vpop.f32.mrb[71].mxu0  ;;  %v9783_v10 = vpop.eup %9782  ;;  %9800 = vlog2.f32 %v3194_v34  ;;  %v2913_v24 = vmin.f32 %v12862_v21, 20.0  ;;  %v2915_v34 = vmin.f32 %v12866_v8, 20.0  ;;  %v12890_v63 = vsel %vm3127_vm0, %v12522_v44, %v3331_v22 }
 0x2c5   : > { %v12878_v50 = vpop.f32.mrb[71].mxu1  ;;  %v9785_v36 = vpop.eup %9784  ;;  %9802 = vlog2.f32 %v3175_v7  ;;  %v12903_v44 = vadd.f32 %v12777_v18, %v12466_v16  ;;  %vm3096_vm4 = vcmp.gt.f32.partialorder %v12876_v55, 20.0 }
 0x2c6   : > { %v9787_v52 = vpop.eup %9786  ;;  %v3193_v0 = vadd.f32 1.0, %v9785_v36  ;;  %9804 = vpow2.f32 %v3060_v33  ;;  %v12884_v27 = vpop.f32.mrb[72].mxu0  ;;  %v3062_v45 = vmul.f32 1.442695, %v2913_v24  ;;  %v3066_v33 = vmul.f32 1.442695, %v2915_v34 }
 0x2c7   : > { %v12886_v42 = vpop.eup %9788  ;;  %9806 = vpow2.f32 %v3064_v17  ;;  %v12892_v7 = vpop.f32.mrb[72].mxu1  ;;  %v2856_v36 = vmin.f32 %v12876_v55, 20.0  ;;  %v3261_v24 = vmul.f32 0.6931472, %v9783_v10  ;;  %vm3098_vm0 = vcmp.gt.f32.partialorder %v12903_v44, 20.0 }
 0x2c8   : > { %16130 = vst [vmem:[#allocation68_spill] sm:$0xff] %v12886_v42  ;;  %v12894_v21 = vpop.f32.mrb[73].mxu0  ;;  %v9791_v11 = vpop.eup %9790  ;;  %9808 = vpow2.f32 %v3026_v2  ;;  %v12907_v2 = vadd.f32 %v12779_v4, %v12466_v16  ;;  %v12919_v4 = vadd.f32 %v12785_v59, %v12466_v16  ;;  %v3467_v59 = vsel %vm3147_vm5, %v12536_v6, %v3371_v12 }
 0x2c9   : > { %v12898_v8 = vpop.f32.mrb[73].mxu1  ;;  %v9793_v17 = vpop.eup %9792  ;;  %9810 = vlog2.f32 %v3193_v0  ;;  %v2948_v42 = vmul.f32 1.442695, %v2856_v36  ;;  %v2858_v0 = vmin.f32 %v12903_v44, 20.0  ;;  %v12964_v12 = vadd.f32 %v12794_v31, %v12474_v20 }
 0x2ca   : > { %16131 = vst [vmem:[#allocation46_spill] sm:$0xff] %v12898_v8  ;;  %v9795_v40 = vpop.eup %9794  ;;  %v3212_v22 = vadd.f32 1.0, %v9793_v17  ;;  %9812 = vpow2.f32 %v3062_v45  ;;  %16132 = vst [vmem:[#allocation69_spill] sm:$0xff] %v12907_v2  ;;  %v12909_v34 = vpop.f32.mrb[74].mxu0  ;;  %v3265_v17 = vmul.f32 0.6931472, %v9787_v52 }
 0x2cb   : > { %16133 = vst [vmem:[#allocation47_spill] sm:$0xff] %v12909_v34  ;;  %v3214_v10 = vadd.f32 1.0, %v9795_v40  ;;  %9814 = vpow2.f32 %v3066_v33  ;;  %v12913_v13 = vpop.f32.mrb[74].mxu1  ;;  %v12915_v18 = vpop.f32.mrb[75].mxu0  ;;  %v3195_v45 = vadd.f32 1.0, %v9791_v11  ;;  %16135 = vst [vmem:[#allocation65_spill] sm:$0xff] %v12919_v4 }
 0x2cc   : > { %16134 = vst [vmem:[#allocation64_spill] sm:$0xff] %v12915_v18  ;;  %v9797_v35 = vpop.eup %9796  ;;  %9816 = vlog2.f32 %v3212_v22  ;;  %v12921_v36 = vpop.f32.mrb[75].mxu1  ;;  %v2952_v33 = vmul.f32 1.442695, %v2858_v0  ;;  %v2857_v40 = vmin.f32 %v12907_v2, 20.0  ;;  %v12927_v18 = vsel %vm3092_vm6, %v12675_v23, %v3261_v24 }
 0x2cd   : > { %v9799_v34 = vpop.eup %9798  ;;  %v3301_v37 = vmul.f32 0.6931472, %v9797_v35  ;;  %9818 = vlog2.f32 %v3214_v10  ;;  %16136 = vst [vmem:[#allocation71_spill] sm:$0xff] %v12927_v18  ;;  %v2859_v23 = vmin.f32 %v12919_v4, 20.0  ;;  %v12949_v6 = vsel %vm3094_vm7, %v12678_v58, %v3265_v17 }
 0x2ce   : > { %v9801_v8 = vpop.eup %9800  ;;  %v3213_v11 = vadd.f32 1.0, %v9799_v34  ;;  %9820 = vpow2.f32 %v2948_v42  ;;  %v12932_v52 = vpop.f32.mrb[76].mxu0  ;;  %16137 = vst [vmem:[#allocation70_spill] sm:$0xff] %v12949_v6  ;;  %v8946_v4 = vpack.c.bf16 %v3467_v59, %v12890_v63  ;;  %v12972_v63 = vadd.f32 %v12800_v9, %v12474_v20 }
 0x2cf   : > { %v12934_v22 = vpop.eup %9802  ;;  %v12939_v35 = vsel %vm3112_vm8, %v12710_v14, %v3301_v37  ;;  %v3305_v10 = vmul.f32 0.6931472, %v9801_v8  ;;  %9822 = vpow2.f32 %v2952_v33  ;;  %v12942_v24 = vpop.f32.mrb[76].mxu1  ;;  %v2950_v33 = vmul.f32 1.442695, %v2857_v40 }
 0x2d0   : > { %v12944_v42 = vpop.f32.mrb[77].mxu0  ;;  %v9805_v34 = vpop.eup %9804  ;;  %9824 = vlog2.f32 %v3195_v45  ;;  %8947 = vmatprep.subr.bf16.mxu1 %v8946_v4  ;;  %v12976_v40 = vadd.f32 %v12802_v30, %v12474_v20  ;;  %v2876_v4 = vmin.f32 %v12964_v12, 20.0  ;;  %vm3116_vm7 = vcmp.gt.f32.partialorder %v12964_v12, 20.0 }
 0x2d1   : > { %v12954_v37 = vpop.f32.mrb[77].mxu1  ;;  %v9807_v14 = vpop.eup %9806  ;;  %v12957_v8 = vsel %vm3114_vm9, %v12713_v46, %v3305_v10  ;;  %v3232_v0 = vadd.f32 1.0, %v9805_v34  ;;  %9826 = vlog2.f32 %v3213_v11  ;;  %v2954_v46 = vmul.f32 1.442695, %v2859_v23 }
 0x2d2   : > { %v9809_v2 = vpop.eup %9808  ;;  %v3234_v17 = vadd.f32 1.0, %v9807_v14  ;;  %v12966_v45 = vpop.f32.mrb[78].mxu0  ;;  %v16138_v10 = vpack.c.bf16 %v12639_v28, %v12633_v49  ;;  %v2878_v34 = vmin.f32 %v12972_v63, 20.0  ;;  %v2877_v58 = vmin.f32 %v12976_v40, 20.0 }
 0x2d3   : > { %v12968_v18 = vpop.eup %9810  ;;  %9828 = vlog2.f32 %v3232_v0  ;;  %v12978_v11 = vpop.f32.mrb[78].mxu1  ;;  %v3215_v14 = vadd.f32 1.0, %v9809_v2  ;;  %v2988_v0 = vmul.f32 1.442695, %v2876_v4  ;;  %vm3118_vm9 = vcmp.gt.f32.partialorder %v12972_v63, 20.0 }
 0x2d4   : > { %v12980_v59 = vpop.f32.mrb[79].mxu0  ;;  %v9813_v31 = vpop.eup %9812  ;;  %9830 = vlog2.f32 %v3234_v17  ;;  %8949 = vmatpush1.bf16.msra.mxu1 %v16138_v10  ;;  %v12992_v17 = vadd.f32 %v12810_v1, %v12474_v20  ;;  %v2992_v28 = vmul.f32 1.442695, %v2878_v34  ;;  %v13004_v34 = vadd.f32 %v12822_v5, %v12496_v60 }
 0x2d5   : > { %v12986_v23 = vpop.f32.mrb[79].mxu1  ;;  %v9815_v9 = vpop.eup %9814  ;;  %9832 = vpow2.f32 %v2950_v33  ;;  %v3233_v49 = vadd.f32 1.0, %v9813_v31  ;;  %v2990_v33 = vmul.f32 1.442695, %v2877_v58 }
 0x2d6   : > { %16139 = vst [vmem:[#allocation72_spill] sm:$0xff] %v12986_v23  ;;  %v9817_v30 = vpop.eup %9816  ;;  %16140 = vst [vmem:[#allocation73_spill] sm:$0xff] %v12992_v17  ;;  %9834 = vpow2.f32 %v2954_v46  ;;  %v3235_v4 = vadd.f32 1.0, %v9815_v9  ;;  %v2879_v31 = vmin.f32 %v12992_v17, 20.0  ;;  %v13008_v23 = vadd.f32 %v12830_v25, %v12496_v60 }
 0x2d7   : > { %v9819_v6 = vpop.eup %9818  ;;  %8756 = vmatmul.mubr.msk.f32.vlgmr.msra.gmra.mrb[80].mxu1 %vm1941_vm2, %v12693_v61  ;;  %9836 = vpow2.f32 %v2988_v0  ;;  %v3341_v58 = vmul.f32 0.6931472, %v9817_v30  ;;  %v2896_v5 = vmin.f32 %v13004_v34, 20.0 }
 0x2d8   : > { %v9821_v10 = vpop.eup %9820  ;;  %4567 = vmatprep.mubr.f32.mxu1 %v15950_v32  ;;  %9838 = vpow2.f32 %v2992_v28  ;;  %v2898_v25 = vmin.f32 %v13008_v23, 20.0 }
 0x2d9   : > { %v9823_v2 = vpop.eup %9822  ;;  %9840 = vlog2.f32 %v3215_v14  ;;  %v3176_v46 = vadd.f32 1.0, %v9821_v10  ;;  %v3345_v14 = vmul.f32 0.6931472, %v9819_v6  ;;  %v13025_v6 = vadd.f32 %v12832_v48, %v12496_v60 }
 0x2da   : > { %v12999_v1 = vpop.eup %9824  ;;  %9842 = vlog2.f32 %v3233_v49  ;;  %v3178_v0 = vadd.f32 1.0, %v9823_v2  ;;  %v2994_v10 = vmul.f32 1.442695, %v2879_v31  ;;  %v13030_v17 = vsel %vm3132_vm10, %v12775_v39, %v3341_v58 }
 0x2db   : > { %8757 = vmatmul.mubr.msk.f32.gmra.mrb[82].mxu1 %vm1941_vm2, %v12716_v38  ;;  %v13012_v9 = vpop.eup %9826  ;;  %9844 = vpow2.f32 %v2990_v33  ;;  %v3028_v33 = vmul.f32 1.442695, %v2896_v5  ;;  %16142 = vst [vmem:[#allocation28_spill] sm:$0xff] %v13030_v17  ;;  %v13037_v48 = vsel %vm3134_vm11, %v12783_v19, %v3345_v14  ;;  %v13046_v39 = vadd.f32 %v12844_v43, %v12496_v60  ;;  %v16165_v17 = vld [vmem:[#allocation25_spill] sm:$0xff] }
 0x2dc   : > { %16141 = vst [vmem:[#allocation74_spill] sm:$0xff] %v13012_v9  ;;  %4573 = vmatprep.mubr.f32.mxu1 %v15950_v32  ;;  %9846 = vlog2.f32 %v3235_v4  ;;  %v3032_v4 = vmul.f32 1.442695, %v2898_v25  ;;  %16143 = vst [vmem:[#allocation20_spill] sm:$0xff] %v13037_v48  ;;  %v3255_v5 = vmul.f32 0.6931472, %v12686_v41 }
 0x2dd   : > { %v9829_v30 = vpop.eup %9828  ;;  %9848 = vlog2.f32 %v3176_v46  ;;  %v16149_v41 = vld [vmem:[#allocation59_spill] sm:$0xff]  ;;  %vm3151_vm10 = vcmp.gt.f32.partialorder %v16165_v17, 20.0  ;;  %vm3136_vm11 = vcmp.gt.f32.partialorder %v13004_v34, 20.0 }
 0x2de   : > { %v9831_v49 = vpop.eup %9830  ;;  %v3381_v28 = vmul.f32 0.6931472, %v9829_v30  ;;  %9850 = vlog2.f32 %v3178_v0  ;;  %v3299_v48 = vmul.f32 0.6931472, %v16149_v41 }
 0x2df   : > { %v9833_v2 = vpop.eup %9832  ;;  %v3385_v9 = vmul.f32 0.6931472, %v9831_v49  ;;  %8758 = vmatmul.mubr.msk.f32.gmra.mrb[84].mxu1 %vm1941_vm2, %v12749_v54  ;;  %9852 = vpow2.f32 %v3028_v33  ;;  %v16146_v49 = vld [vmem:[#allocation49_spill] sm:$0xff]  ;;  %v16147_v33 = vld [vmem:[#allocation48_spill] sm:$0xff] }
 0x2e0   : > { %v13042_v46 = vsel %vm3152_vm14, %v12814_v51, %v3381_v28  ;;  %4579 = vmatprep.mubr.f32.mxu1 %v15950_v32  ;;  %v9835_v31 = vpop.eup %9834  ;;  %9854 = vpow2.f32 %v3032_v4  ;;  %v2897_v51 = vmin.f32 %v13025_v6, 20.0  ;;  %v3177_v43 = vadd.f32 1.0, %v9833_v2 }
 0x2e1   : > { %16144 = vst [vmem:[#allocation36_spill] sm:$0xff] %v13042_v46  ;;  %v13054_v19 = vsel %vm3154_vm1, %v12820_v62, %v3385_v9  ;;  %v9837_v0 = vpop.eup %9836  ;;  %9856 = vpow2.f32 %v2994_v10  ;;  %v3295_v28 = vmul.f32 0.6931472, %v16146_v49  ;;  %v3259_v58 = vmul.f32 0.6931472, %v16147_v33  ;;  %v16148_v9 = vld [vmem:[#allocation54_spill] sm:$0xff] }
 0x2e2   : > { %16145 = vst [vmem:[#allocation27_spill] sm:$0xff] %v13054_v19  ;;  %v9839_v30 = vpop.eup %9838  ;;  %v3196_v25 = vadd.f32 1.0, %v9837_v0  ;;  %v13064_v62 = vadd.f32 %v12851_v47, %v12514_v26  ;;  %v3179_v14 = vadd.f32 1.0, %v9835_v31  ;;  %v2899_v10 = vmin.f32 %v13046_v39, 20.0  ;;  %v16169_v46 = vld [vmem:[#allocation62_spill] sm:$0xff] }
 0x2e3   : > { %8759 = vmatmul.mubr.msk.f32.gmra.mrb[86].mxu1 %vm1941_vm2, %v16148_v9  ;;  %v13068_v4 = vpop.eup %9840  ;;  %v3198_v2 = vadd.f32 1.0, %v9839_v30  ;;  %v3030_v49 = vmul.f32 1.442695, %v2897_v51  ;;  %v3409_v47 = vsel %vm3089_vm12, %v12570_v29, %v3255_v5  ;;  %v3429_v33 = vsel %vm3109_vm13, %v12591_v56, %v3295_v28 }
 0x2e4   : > { %4739 = vmatprep.mubr.f32.mxu1 %v15950_v32  ;;  %v13073_v0 = vpop.eup %9842  ;;  %9858 = vlog2.f32 %v3196_v25  ;;  %v8950_v30 = vpack.c.bf16 %v3429_v33, %v3409_v47  ;;  %v3411_v41 = vsel %vm3091_vm15, %v12578_v3, %v3259_v58  ;;  %v3431_v25 = vsel %vm3111_vm3, %v12594_v53, %v3299_v48  ;;  %v16150_v58 = vld [vmem:[#allocation55_spill] sm:$0xff]  ;;  %v16151_v47 = vld [vmem:[#allocation52_spill] sm:$0xff]  ;;  %v16154_v33 = vld [vmem:[#allocation50_spill] sm:$0xff] }
 0x2e5   : > { %v9845_v31 = vpop.eup %9844  ;;  %9860 = vlog2.f32 %v3198_v2  ;;  %v8958_v19 = vpack.c.bf16 %v3431_v25, %v3411_v41  ;;  %v2916_v29 = vmin.f32 %v13064_v62, 20.0  ;;  %v3034_v56 = vmul.f32 1.442695, %v2899_v10 }
 0x2e6   : > { %v13087_v51 = vpop.eup %9846  ;;  %9862 = vlog2.f32 %v3177_v43  ;;  %8951 = vmatprep.subr.bf16.mxu0 %v8950_v30  ;;  %v13092_v28 = vadd.f32 %v12868_v15, %v12514_v26  ;;  %v3197_v3 = vadd.f32 1.0, %v9845_v31  ;;  %v16152_v53 = vpack.c.bf16 %v16150_v58, %v16151_v47  ;;  %v16153_v15 = vld [vmem:[#allocation51_spill] sm:$0xff] }
 0x2e7   : > { %v9849_v5 = vpop.eup %9848  ;;  %9864 = vlog2.f32 %v3179_v14  ;;  %8959 = vmatprep.subr.bf16.mxu1 %v8958_v19  ;;  %v3068_v48 = vmul.f32 1.442695, %v2916_v29  ;;  %v13099_v43 = vadd.f32 %v12870_v57, %v12514_v26  ;;  %v13103_v14 = vadd.f32 %v12878_v50, %v12514_v26 }
 0x2e8   : > { %v9851_v2 = vpop.eup %9850  ;;  %8953 = vmatpush1.bf16.msra.mxu0 %v16152_v53  ;;  %9866 = vpow2.f32 %v3030_v49  ;;  %v16155_v19 = vpack.c.bf16 %v16153_v15, %v16154_v33  ;;  %v2918_v31 = vmin.f32 %v13092_v28, 20.0  ;;  %v13112_v30 = vadd.f32 %v12884_v27, %v12466_v16  ;;  %v16156_v27 = vld [vmem:[#allocation44_spill] sm:$0xff] }
 0x2e9   : > { %v9853_v10 = vpop.eup %9852  ;;  %9868 = vpow2.f32 %v3068_v48  ;;  %v2917_v50 = vmin.f32 %v13099_v43, 20.0  ;;  %v2919_v58 = vmin.f32 %v13103_v14, 20.0  ;;  %v3269_v47 = vmul.f32 0.6931472, %v9849_v5  ;;  %v16157_v33 = vld [vmem:[#allocation24_spill] sm:$0xff] }
 0x2ea   : > { %8961 = vmatpush1.bf16.msra.mxu1 %v16155_v19  ;;  %v9855_v57 = vpop.eup %9854  ;;  %v3216_v41 = vadd.f32 1.0, %v9853_v10  ;;  %9870 = vpow2.f32 %v3034_v56  ;;  %v3072_v49 = vmul.f32 1.442695, %v2918_v31  ;;  %v3273_v53 = vmul.f32 0.6931472, %v9851_v2  ;;  %v16158_v19 = vld [vmem:[#allocation23_spill] sm:$0xff] }
 0x2eb   : > { %v9857_v25 = vpop.eup %9856  ;;  %v3218_v29 = vadd.f32 1.0, %v9855_v57  ;;  %9872 = vlog2.f32 %v3197_v3  ;;  %v2860_v15 = vmin.f32 %v13112_v30, 20.0  ;;  %vm3129_vm5 = vcmp.gt.f32.partialorder %v16156_v27, 20.0 }
 0x2ec   : > { %vm3149_vm6 = vcmp.gt.f32.partialorder %v16157_v33, 20.0  ;;  %9874 = vlog2.f32 %v3216_v41  ;;  %v3070_v48 = vmul.f32 1.442695, %v2917_v50  ;;  %v13123_v10 = vadd.f32 %v12892_v7, %v12466_v16 }
 0x2ed   : > { %vm3131_vm8 = vcmp.gt.f32.partialorder %v16158_v19, 20.0  ;;  %9876 = vpow2.f32 %v3072_v49  ;;  %v3074_v5 = vmul.f32 1.442695, %v2919_v58  ;;  %v13129_v2 = vadd.f32 %v12894_v21, %v12466_v16 }
 0x2ee   : > { %v9859_v56 = vpop.eup %9858  ;;  %9878 = vlog2.f32 %v3218_v29  ;;  %v2956_v57 = vmul.f32 1.442695, %v2860_v15  ;;  %v2862_v41 = vmin.f32 %v13123_v10, 20.0  ;;  %v13137_v7 = vsel %vm3096_vm4, %v12876_v55, %v3269_v47  ;;  %v16164_v55 = vld [vmem:[#allocation46_spill] sm:$0xff] }
 0x2ef   : > { %16159 = vst [vmem:[#allocation37_spill] sm:$0xff] %v13129_v2  ;;  %v9861_v3 = vpop.eup %9860  ;;  %v3309_v31 = vmul.f32 0.6931472, %v9859_v56  ;;  %16161 = vst [vmem:[#allocation21_spill] sm:$0xff] %v13137_v7  ;;  %v13142_v49 = vsel %vm3098_vm0, %v12903_v44, %v3273_v53  ;;  %v2861_v58 = vmin.f32 %v13129_v2, 20.0  ;;  %9880 = vpow2.f32 %v3070_v48  ;;  %v16168_v7 = vld [vmem:[#allocation31_spill] sm:$0xff] }
 0x2f0   : > { %v13132_v50 = vpop.eup %9862  ;;  %v3313_v21 = vmul.f32 0.6931472, %v9861_v3  ;;  %v2960_v15 = vmul.f32 1.442695, %v2862_v41  ;;  %v13154_v47 = vadd.f32 %v16164_v55, %v12466_v16  ;;  %9882 = vpow2.f32 %v3074_v5  ;;  %v16167_v55 = vld [vmem:[#allocation61_spill] sm:$0xff] }
 0x2f1   : > { %16160 = vst [vmem:[#allocation38_spill] sm:$0xff] %v13132_v50  ;;  %v13145_v56 = vpop.eup %9864  ;;  %v13150_v29 = vsel %vm3116_vm7, %v12964_v12, %v3309_v31  ;;  %v2958_v3 = vmul.f32 1.442695, %v2861_v58  ;;  %9884 = vpow2.f32 %v2956_v57  ;;  %v16166_v31 = vld [vmem:[#allocation57_spill] sm:$0xff]  ;;  %v3375_v44 = vmul.f32 0.6931472, %v16167_v55 }
 0x2f2   : > { %16162 = vst [vmem:[#allocation22_spill] sm:$0xff] %v13145_v56  ;;  %16163 = vst [vmem:[#allocation35_spill] sm:$0xff] %v13150_v29  ;;  %v13161_v53 = vsel %vm3118_vm9, %v12972_v63, %v3313_v21  ;;  %v9867_v56 = vpop.eup %9866  ;;  %v2863_v16 = vmin.f32 %v13154_v47, 20.0  ;;  %9886 = vpow2.f32 %v2960_v15  ;;  %v3335_v41 = vmul.f32 0.6931472, %v16166_v31  ;;  %v16170_v31 = vld [vmem:[#allocation47_spill] sm:$0xff] }
 0x2f3   : > { %v9869_v48 = vpop.eup %9868  ;;  %v3339_v63 = vmul.f32 0.6931472, %v16168_v7  ;;  %v3199_v5 = vadd.f32 1.0, %v9857_v25  ;;  %v3379_v2 = vmul.f32 0.6931472, %v16169_v46  ;;  %9888 = vpow2.f32 %v2958_v3 }
 0x2f4   : > { %v9871_v21 = vpop.eup %9870  ;;  %v3236_v58 = vadd.f32 1.0, %v9869_v48  ;;  %v2962_v29 = vmul.f32 1.442695, %v2863_v16  ;;  %v3449_v57 = vsel %vm3129_vm5, %v16156_v27, %v3335_v41  ;;  %v3469_v15 = vsel %vm3149_vm6, %v16157_v33, %v3375_v44 }
 0x2f5   : > { %v13171_v50 = vpop.eup %9872  ;;  %v13181_v7 = vadd.f32 %v16170_v31, %v12474_v20  ;;  %v8954_v16 = vpack.c.bf16 %v3469_v15, %v3449_v57  ;;  %v3451_v46 = vsel %vm3131_vm8, %v16158_v19, %v3339_v63  ;;  %v3471_v3 = vsel %vm3151_vm10, %v16165_v17, %v3379_v2  ;;  %v16171_v19 = vld [vmem:[#allocation40_spill] sm:$0xff]  ;;  %v16172_v63 = vld [vmem:[#allocation39_spill] sm:$0xff] }
 0x2f6   : > { %v9875_v25 = vpop.eup %9874  ;;  %9890 = vlog2.f32 %v3236_v58  ;;  %v8962_v48 = vpack.c.bf16 %v3471_v3, %v3451_v46  ;;  %v3217_v41 = vadd.f32 1.0, %v9867_v56  ;;  %v13192_v58 = vadd.f32 %v12913_v13, %v12474_v20  ;;  %v16174_v2 = vld [vmem:[#allocation64_spill] sm:$0xff]  ;;  %v16175_v13 = vld [vmem:[#allocation63_spill] sm:$0xff] }
 0x2f7   : > { %v9877_v27 = vpop.eup %9876  ;;  %9892 = vpow2.f32 %v2962_v29  ;;  %v2880_v33 = vmin.f32 %v13181_v7, 20.0  ;;  %8955 = vmatprep.subr.bf16.mxu0 %v8954_v16  ;;  %v3219_v57 = vadd.f32 1.0, %v9871_v21  ;;  %v16173_v15 = vpack.c.bf16 %v16171_v19, %v16172_v63  ;;  %v16176_v16 = vld [vmem:[#allocation60_spill] sm:$0xff]  ;;  %v16179_v19 = vld [vmem:[#allocation58_spill] sm:$0xff] }
 0x2f8   : > { %v9879_v44 = vpop.eup %9878  ;;  %9894 = vlog2.f32 %v3199_v5  ;;  %v3238_v55 = vadd.f32 1.0, %v9877_v27  ;;  %8963 = vmatprep.subr.bf16.mxu1 %v8962_v48  ;;  %v13199_v29 = vadd.f32 %v16174_v2, %v12474_v20  ;;  %v13203_v56 = vadd.f32 %v12921_v36, %v12474_v20  ;;  %v16180_v2 = vld [vmem:[#allocation26_spill] sm:$0xff] }
 0x2f9   : > { %8957 = vmatpush1.bf16.msra.mxu0 %v16173_v15  ;;  %v2996_v17 = vmul.f32 1.442695, %v2880_v33  ;;  %v9881_v5 = vpop.eup %9880  ;;  %v3349_v31 = vmul.f32 0.6931472, %v9875_v25  ;;  %v16177_v21 = vpack.c.bf16 %v16175_v13, %v16176_v16  ;;  %v2882_v46 = vmin.f32 %v13192_v58, 20.0  ;;  %v16178_v25 = vld [vmem:[#allocation45_spill] sm:$0xff] }
 0x2fa   : > { %9896 = vlog2.f32 %v3238_v55  ;;  %v13211_v3 = vadd.f32 %v12932_v52, %v12496_v60  ;;  %v9883_v27 = vpop.eup %9882  ;;  %v3353_v48 = vmul.f32 0.6931472, %v9879_v44  ;;  %v2881_v33 = vmin.f32 %v13199_v29, 20.0  ;;  %v16181_v13 = vld [vmem:[#allocation53_spill] sm:$0xff] }
 0x2fb   : > { %8965 = vmatpush1.bf16.msra.mxu1 %v16177_v21  ;;  %9898 = vpow2.f32 %v2996_v17  ;;  %v9885_v20 = vpop.eup %9884  ;;  %vm3138_vm12 = vcmp.gt.f32.partialorder %v13008_v23, 20.0  ;;  %vm3156_vm13 = vcmp.gt.f32.partialorder %v13064_v62, 20.0  ;;  %vm3093_vm14 = vcmp.gt.f32.partialorder %v16178_v25, 20.0 }
 0x2fc   : > { %9900 = vlog2.f32 %v3217_v41  ;;  %8760 = vmatmul.mubr.msk.f32.vlgmr.msra.gmra.mrb[88].mxu0 %vm1941_vm2, %v12693_v61  ;;  %v9887_v36 = vpop.eup %9886  ;;  %v3237_v52 = vadd.f32 1.0, %v9881_v5  ;;  %v3180_v44 = vadd.f32 1.0, %v9885_v20  ;;  %v2883_v55 = vmin.f32 %v13203_v56, 20.0 }
 0x2fd   : > { %9902 = vlog2.f32 %v3219_v57  ;;  %4656 = vmatprep.mubr.f32.mxu0 %v15950_v32  ;;  %vm3113_vm15 = vcmp.gt.f32.partialorder %v16179_v19, 20.0  ;;  %v13226_v41 = vsel %vm3136_vm11, %v13004_v34, %v3349_v31  ;;  %vm3158_vm3 = vcmp.gt.f32.partialorder %v13092_v28, 20.0  ;;  %v9889_v17 = vpop.eup %9888 }
 0x2fe   : > { %8764 = vmatmul.mubr.msk.f32.vlgmr.msra.gmra.mrb[88].mxu1 %vm1941_vm2, %v12693_v61  ;;  %v3182_v63 = vadd.f32 1.0, %v9887_v36  ;;  %v3000_v15 = vmul.f32 1.442695, %v2882_v46  ;;  %v2900_v57 = vmin.f32 %v13211_v3, 20.0  ;;  %vm3095_vm1 = vcmp.gt.f32.partialorder %v16180_v2, 20.0 }
 0x2ff   : > { %4745 = vmatprep.mubr.f32.mxu1 %v15950_v32  ;;  %v13235_v61 = vsel %vm3138_vm12, %v13008_v23, %v3353_v48  ;;  %9904 = vlog2.f32 %v3180_v44  ;;  %v2998_v5 = vmul.f32 1.442695, %v2881_v33  ;;  %v13239_v34 = vadd.f32 %v12942_v24, %v12496_v60 }
 0x300   : > { %v9891_v31 = vpop.eup %9890  ;;  %vm3115_vm4 = vcmp.gt.f32.partialorder %v16181_v13, 20.0  ;;  %v3239_v16 = vadd.f32 1.0, %v9883_v27  ;;  %9906 = vlog2.f32 %v3182_v63  ;;  %v13244_v21 = vadd.f32 %v12944_v42, %v12496_v60  ;;  %8761 = vmatmul.mubr.msk.f32.gmra.mrb[90].mxu0 %vm1941_vm2, %v12716_v38 }
 0x301   : > { %v13248_v46 = vadd.f32 %v12954_v37, %v12496_v60  ;;  %v9893_v23 = vpop.eup %9892  ;;  %v3389_v48 = vmul.f32 0.6931472, %v9891_v31  ;;  %9908 = vlog2.f32 %v3237_v52  ;;  %v3002_v24 = vmul.f32 1.442695, %v2883_v55  ;;  %4662 = vmatprep.mubr.f32.mxu0 %v15950_v32  ;;  %v16182_v37 = vld [vmem:[#allocation68_spill] sm:$0xff] }
 0x302   : > { %v2902_v33 = vmin.f32 %v13239_v34, 20.0  ;;  %8765 = vmatmul.mubr.msk.f32.gmra.mrb[90].mxu1 %vm1941_vm2, %v12716_v38  ;;  %v13256_v42 = vpop.eup %9894  ;;  %9910 = vpow2.f32 %v3000_v15  ;;  %v3036_v27 = vmul.f32 1.442695, %v2900_v57  ;;  %v2901_v60 = vmin.f32 %v13244_v21, 20.0 }
 0x303   : > { %v3263_v20 = vmul.f32 0.6931472, %v16182_v37  ;;  %4751 = vmatprep.mubr.f32.mxu1 %v15950_v32  ;;  %v13264_v36 = vsel %vm3156_vm13, %v13064_v62, %v3389_v48  ;;  %9912 = vpow2.f32 %v2998_v5  ;;  %v2903_v38 = vmin.f32 %v13248_v46, 20.0 }
 0x304   : > { %v3040_v52 = vmul.f32 1.442695, %v2902_v33  ;;  %v9897_v44 = vpop.eup %9896  ;;  %v8988_v55 = vpack.c.bf16 %v13264_v36, %v13226_v41  ;;  %v3181_v63 = vadd.f32 1.0, %v9889_v17  ;;  %v3183_v15 = vadd.f32 1.0, %v9893_v23  ;;  %8762 = vmatmul.mubr.msk.f32.gmra.mrb[92].mxu0 %vm1941_vm2, %v12749_v54 }
 0x305   : > { %v3038_v57 = vmul.f32 1.442695, %v2901_v60  ;;  %v9899_v31 = vpop.eup %9898  ;;  %v3393_v37 = vmul.f32 0.6931472, %v9897_v44  ;;  %9914 = vpow2.f32 %v3002_v24  ;;  %v3042_v12 = vmul.f32 1.442695, %v2903_v38  ;;  %4668 = vmatprep.mubr.f32.mxu0 %v15950_v32 }
 0x306   : > { %v3303_v62 = vmul.f32 0.6931472, %v12968_v18  ;;  %8766 = vmatmul.mubr.msk.f32.gmra.mrb[92].mxu1 %vm1941_vm2, %v12749_v54  ;;  %v13275_v5 = vpop.eup %9900  ;;  %v3200_v48 = vadd.f32 1.0, %v9899_v31  ;;  %9916 = vpow2.f32 %v3036_v27  ;;  %v3413_v17 = vsel %vm3093_vm14, %v16178_v25, %v3263_v20  ;;  %v16183_v27 = vld [vmem:[#allocation56_spill] sm:$0xff]  ;;  %v16184_v25 = vld [vmem:[#allocation66_spill] sm:$0xff]  ;;  %v16186_v44 = vld [vmem:[#allocation67_spill] sm:$0xff] }
 0x307   : > { %v3267_v23 = vmul.f32 0.6931472, %v12934_v22  ;;  %4757 = vmatprep.mubr.f32.mxu1 %v15950_v32  ;;  %v13282_v24 = vpop.eup %9902  ;;  %v13287_v54 = vsel %vm3158_vm3, %v13092_v28, %v3393_v37  ;;  %9918 = vpow2.f32 %v3040_v52  ;;  %v3307_v33 = vmul.f32 0.6931472, %v12999_v1  ;;  %v16185_v38 = vld [vmem:[#allocation32_spill] sm:$0xff] }
 0x308   : > { %v3433_v18 = vsel %vm3113_vm15, %v16179_v19, %v3303_v62  ;;  %vm3133_vm0 = vcmp.gt.f32.partialorder %v16183_v27, 20.0  ;;  %vm3153_vm5 = vcmp.gt.f32.partialorder %v16184_v25, 20.0  ;;  %v8996_v22 = vpack.c.bf16 %v13287_v54, %v13235_v61  ;;  %8763 = vmatmul.mubr.msk.f32.gmra.mrb[94].mxu0 %vm1941_vm2, %v16148_v9 }
 0x309   : > { %9920 = vlog2.f32 %v3200_v48  ;;  %v8966_v60 = vpack.c.bf16 %v3433_v18, %v3413_v17  ;;  %v3415_v28 = vsel %vm3095_vm1, %v16180_v2, %v3267_v23  ;;  %v9905_v20 = vpop.eup %9904  ;;  %v3435_v1 = vsel %vm3115_vm4, %v16181_v13, %v3307_v33  ;;  %4828 = vmatprep.mubr.f32.mxu0 %v15950_v32  ;;  %v16191_v18 = vld [vmem:[#allocation69_spill] sm:$0xff] }
 0x30a   : > { %9922 = vpow2.f32 %v3038_v57  ;;  %v13307_v19 = vadd.f32 %v12966_v45, %v12514_v26  ;;  %v13311_v52 = vadd.f32 %v12978_v11, %v12514_v26  ;;  %8767 = vmatmul.mubr.msk.f32.gmra.mrb[94].mxu1 %vm1941_vm2, %v16148_v9  ;;  %v9907_v2 = vpop.eup %9906  ;;  %vm3135_vm6 = vcmp.gt.f32.partialorder %v16185_v38, 20.0  ;;  %v16187_v9 = vld [vmem:[#allocation71_spill] sm:$0xff] }
 0x30b   : > { %vm3155_vm7 = vcmp.gt.f32.partialorder %v16186_v44, 20.0  ;;  %9924 = vlog2.f32 %v3239_v16  ;;  %8967 = vmatprep.subr.bf16.mxu0 %v8966_v60  ;;  %v8974_v13 = vpack.c.bf16 %v3435_v1, %v3415_v28  ;;  %v13320_v45 = vadd.f32 %v12980_v59, %v12514_v26  ;;  %4917 = vmatprep.mubr.f32.mxu1 %v15950_v32  ;;  %v13323_v11 = vpop.eup %9908  ;;  %v16192_v60 = vld [vmem:[#allocation72_spill] sm:$0xff] }
 0x30c   : > { %vm3100_vm8 = vcmp.gt.f32.partialorder %v13112_v30, 20.0  ;;  %vm3102_vm9 = vcmp.gt.f32.partialorder %v13123_v10, 20.0  ;;  %9926 = vlog2.f32 %v3181_v63  ;;  %v16188_v57 = vpack.c.bf16 %v12939_v35, %v16187_v9  ;;  %v9911_v31 = vpop.eup %9910  ;;  %v16189_v63 = vld [vmem:[#allocation70_spill] sm:$0xff] }
 0x30d   : > { %v2920_v16 = vmin.f32 %v13307_v19, 20.0  ;;  %v3277_v37 = vmul.f32 0.6931472, %v9905_v20  ;;  %9928 = vlog2.f32 %v3183_v15  ;;  %vm3120_vm10 = vcmp.gt.f32.partialorder %v13181_v7, 20.0  ;;  %8975 = vmatprep.subr.bf16.mxu1 %v8974_v13  ;;  %v9913_v62 = vpop.eup %9912  ;;  %v16193_v20 = vld [vmem:[#allocation74_spill] sm:$0xff] }
 0x30e   : > { %8969 = vmatpush1.bf16.msra.mxu0 %v16188_v57  ;;  %v2922_v59 = vmin.f32 %v13311_v52, 20.0  ;;  %v3281_v48 = vmul.f32 0.6931472, %v9907_v2  ;;  %v3202_v17 = vadd.f32 1.0, %v9911_v31  ;;  %9930 = vpow2.f32 %v3042_v12  ;;  %v16194_v12 = vld [vmem:[#allocation65_spill] sm:$0xff] }
 0x30f   : > { %v16190_v23 = vpack.c.bf16 %v12957_v8, %v16189_v63  ;;  %v3076_v35 = vmul.f32 1.442695, %v2920_v16  ;;  %vm3097_vm11 = vcmp.gt.f32.partialorder %v16191_v18, 20.0  ;;  %vm3117_vm12 = vcmp.gt.f32.partialorder %v12976_v40, 20.0  ;;  %v9915_v2 = vpop.eup %9914  ;;  %v16195_v16 = vld [vmem:[#allocation73_spill] sm:$0xff] }
 0x310   : > { %v3201_v33 = vadd.f32 1.0, %v9913_v62  ;;  %v2921_v15 = vmin.f32 %v13320_v45, 20.0  ;;  %v13341_v28 = vadd.f32 %v16192_v60, %v12514_v26  ;;  %v3343_v1 = vmul.f32 0.6931472, %v16193_v20  ;;  %v9917_v57 = vpop.eup %9916 }
 0x311   : > { %8977 = vmatpush1.bf16.msra.mxu1 %v16190_v23  ;;  %vm3099_vm13 = vcmp.gt.f32.partialorder %v16194_v12, 20.0  ;;  %9932 = vlog2.f32 %v3202_v17  ;;  %v3383_v8 = vmul.f32 0.6931472, %v13073_v0  ;;  %v3347_v13 = vmul.f32 0.6931472, %v13068_v4  ;;  %v9919_v63 = vpop.eup %9918 }
 0x312   : > { %v3387_v9 = vmul.f32 0.6931472, %v13087_v51  ;;  %vm3119_vm14 = vcmp.gt.f32.partialorder %v16195_v16, 20.0  ;;  %vm3137_vm15 = vcmp.gt.f32.partialorder %v13025_v6, 20.0  ;;  %9934 = vlog2.f32 %v3201_v33 }
 0x313   : > { %v3203_v26 = vadd.f32 1.0, %v9915_v2  ;;  %v3080_v31 = vmul.f32 1.442695, %v2922_v59  ;;  %v2923_v62 = vmin.f32 %v13341_v28, 20.0  ;;  %vm3157_vm3 = vcmp.gt.f32.partialorder %v13099_v43, 20.0  ;;  %v9921_v51 = vpop.eup %9920  ;;  %v16196_v2 = vld [vmem:[#allocation38_spill] sm:$0xff] }
 0x314   : > { %v3220_v17 = vadd.f32 1.0, %v9917_v57  ;;  %9936 = vpow2.f32 %v3076_v35  ;;  %v3453_v4 = vsel %vm3133_vm0, %v16183_v27, %v3343_v1  ;;  %v3473_v0 = vsel %vm3153_vm5, %v16184_v25, %v3383_v8  ;;  %v9923_v35 = vpop.eup %9922 }
 0x315   : > { %vm3139_vm1 = vcmp.gt.f32.partialorder %v13046_v39, 20.0  ;;  %v13362_v59 = vsel %vm3100_vm8, %v13112_v30, %v3277_v37  ;;  %9938 = vlog2.f32 %v3203_v26  ;;  %v3222_v23 = vadd.f32 1.0, %v9919_v63  ;;  %v9925_v37 = vpop.eup %9924 }
 0x316   : > { %v8970_v33 = vpack.c.bf16 %v3473_v0, %v3453_v4  ;;  %vm3159_vm4 = vcmp.gt.f32.partialorder %v13103_v14, 20.0  ;;  %v13368_v27 = vsel %vm3102_vm9, %v13123_v10, %v3281_v48  ;;  %v3317_v25 = vmul.f32 0.6931472, %v9921_v51  ;;  %v9927_v10 = vpop.eup %9926  ;;  %v16197_v48 = vld [vmem:[#allocation37_spill] sm:$0xff]  ;;  %v16203_v0 = vld [vmem:[#allocation20_spill] sm:$0xff] }
 0x317   : > { %vm3122_vm0 = vcmp.gt.f32.partialorder %v13192_v58, 20.0  ;;  %v3455_v60 = vsel %vm3135_vm6, %v16185_v38, %v3347_v13  ;;  %v3475_v30 = vsel %vm3155_vm7, %v16186_v44, %v3387_v9  ;;  %9940 = vlog2.f32 %v3220_v17  ;;  %v16198_v44 = vld [vmem:[#allocation36_spill] sm:$0xff]  ;;  %v9929_v26 = vpop.eup %9928 }
 0x318   : > { %v3078_v20 = vmul.f32 1.442695, %v2921_v15  ;;  %8971 = vmatprep.subr.bf16.mxu0 %v8970_v33  ;;  %v8978_v1 = vpack.c.bf16 %v3475_v30, %v3455_v60  ;;  %v3271_v8 = vmul.f32 0.6931472, %v16196_v2  ;;  %vm3101_vm5 = vcmp.gt.f32.partialorder %v16197_v48, 20.0  ;;  %v16199_v13 = vld [vmem:[#allocation28_spill] sm:$0xff] }
 0x319   : > { %v13382_v57 = vsel %vm3120_vm10, %v13181_v7, %v3317_v25  ;;  %vm3121_vm6 = vcmp.gt.f32.partialorder %v13199_v29, 20.0  ;;  %9942 = vpow2.f32 %v3080_v31  ;;  %v3082_v38 = vmul.f32 1.442695, %v2923_v62  ;;  %v16201_v7 = vld [vmem:[#allocation22_spill] sm:$0xff]  ;;  %v9931_v31 = vpop.eup %9930  ;;  %v16202_v62 = vld [vmem:[#allocation27_spill] sm:$0xff]  ;;  %v13406_v25 = vld [vmem:[#allocation3 + $0x20] sm:$0xff] }
 0x31a   : > { %v16200_v9 = vpack.c.bf16 %v16198_v44, %v16199_v13  ;;  %v3311_v15 = vmul.f32 0.6931472, %v13171_v50  ;;  %vm3103_vm7 = vcmp.gt.f32.partialorder %v13154_v47, 20.0  ;;  %v9000_v63 = vpack.c.bf16 %v13382_v57, %v13362_v59  ;;  %8979 = vmatprep.subr.bf16.mxu1 %v8978_v1  ;;  %v16206_v44 = vld [vmem:[#allocation21_spill] sm:$0xff] }
 0x31b   : > { %9944 = vlog2.f32 %v3222_v23  ;;  %v13392_v17 = vadd.f32 1.0, %v9923_v35  ;;  %v3275_v4 = vmul.f32 0.6931472, %v16201_v7  ;;  %v16204_v51 = vpack.c.bf16 %v16202_v62, %v16203_v0  ;;  %v9933_v1 = vpop.eup %9932 }
 0x31c   : > { %8973 = vmatpush1.bf16.msra.mxu0 %v16200_v9  ;;  %v3417_v50 = vsel %vm3097_vm11, %v16191_v18, %v3271_v8  ;;  %v3437_v33 = vsel %vm3117_vm12, %v12976_v40, %v3311_v15  ;;  %v3315_v23 = vmul.f32 0.6931472, %v13256_v42  ;;  %v3351_v35 = vmul.f32 0.6931472, %v13275_v5 }
 0x31d   : > { %8981 = vmatpush1.bf16.msra.mxu1 %v16204_v51  ;;  %9946 = vpow2.f32 %v3078_v20  ;;  %v8982_v60 = vpack.c.bf16 %v3437_v33, %v3417_v50  ;;  %v3419_v30 = vsel %vm3099_vm13, %v16194_v12, %v3275_v4  ;;  %v3391_v18 = vmul.f32 0.6931472, %v13323_v11  ;;  %v9935_v20 = vpop.eup %9934  ;;  %v13439_v4 = vld [vmem:[#allocation3 + $0x28] sm:$0xff] }
 0x31e   : > { %9948 = vpow2.f32 %v3082_v38  ;;  %v3439_v40 = vsel %vm3119_vm14, %v16195_v16, %v3315_v23  ;;  %v3457_v42 = vsel %vm3137_vm15, %v13025_v6, %v3351_v35  ;;  %v3355_v5 = vmul.f32 0.6931472, %v13282_v24  ;;  %v9937_v38 = vpop.eup %9936  ;;  %v16205_v16 = vld [vmem:[#allocation35_spill] sm:$0xff] }
 0x31f   : > { %8768 = vmatmul.mubr.msk.f32.vlgmr.msra.gmra.mrb[96].mxu0 %vm1941_vm2, %v13406_v25  ;;  %v3321_v2 = vmul.f32 0.6931472, %v9933_v1  ;;  %8983 = vmatprep.subr.bf16.mxu0 %v8982_v60  ;;  %v8990_v11 = vpack.c.bf16 %v3439_v40, %v3419_v30  ;;  %v3477_v12 = vsel %vm3157_vm3, %v13099_v43, %v3391_v18  ;;  %v3395_v8 = vmul.f32 0.6931472, %v9925_v37  ;;  %v9939_v7 = vpop.eup %9938  ;;  %v13481_v30 = vld [vmem:[#allocation3 + $0x38] sm:$0xff] }
 0x320   : > { %4834 = vmatprep.mubr.f32.mxu0 %v15950_v32  ;;  %8772 = vmatmul.mubr.msk.f32.vlgmr.msra.gmra.mrb[96].mxu1 %vm1941_vm2, %v13406_v25  ;;  %v16207_v6 = vpack.c.bf16 %v16205_v16, %v16206_v44  ;;  %v8986_v24 = vpack.c.bf16 %v3477_v12, %v3457_v42  ;;  %v3459_v13 = vsel %vm3139_vm1, %v13046_v39, %v3355_v5  ;;  %v3279_v9 = vmul.f32 0.6931472, %v9927_v10 }
 0x321   : > { %4923 = vmatprep.mubr.f32.mxu1 %v15950_v32  ;;  %v3319_v15 = vmul.f32 0.6931472, %v9935_v20  ;;  %v13437_v43 = vsel %vm3122_vm0, %v13192_v58, %v3321_v2  ;;  %v3240_v37 = vadd.f32 1.0, %v9937_v38  ;;  %8991 = vmatprep.subr.bf16.mxu1 %v8990_v11  ;;  %v3479_v62 = vsel %vm3159_vm4, %v13103_v14, %v3395_v8  ;;  %v9941_v33 = vpop.eup %9940 }
 0x322   : > { %8985 = vmatpush1.bf16.msra.mxu0 %v16207_v6  ;;  %v3283_v39 = vmul.f32 0.6931472, %v9929_v26  ;;  %v9008_v10 = vpack.c.bf16 %v13437_v43, %v13368_v27  ;;  %v3223_v0 = vadd.f32 1.0, %v9931_v31  ;;  %v16208_v58 = vpack.c.bf16 %v13161_v53, %v13142_v49 }
 0x323   : > { %8769 = vmatmul.mubr.msk.f32.gmra.mrb[98].mxu0 %vm1941_vm2, %v13439_v4  ;;  %v8994_v51 = vpack.c.bf16 %v3479_v62, %v3459_v13  ;;  %v3323_v50 = vmul.f32 0.6931472, %v9939_v7  ;;  %vm3123_vm8 = vcmp.gt.f32.partialorder %v13203_v56, 20.0  ;;  %9950 = vlog2.f32 %v3240_v37  ;;  %8987 = vmatprep.subr.bf16.mxu0 %v8986_v24  ;;  %v9943_v53 = vpop.eup %9942  ;;  %v13565_v24 = vpop.permute.xlu1 %5310 }
 0x324   : > { %8993 = vmatpush1.bf16.msra.mxu1 %v16208_v58  ;;  %4840 = vmatprep.mubr.f32.mxu0 %v15950_v32  ;;  %v3421_v14 = vsel %vm3101_vm5, %v16197_v48, %v3279_v9  ;;  %v3441_v49 = vsel %vm3121_vm6, %v13199_v29, %v3319_v15  ;;  %v3423_v26 = vsel %vm3103_vm7, %v13154_v47, %v3283_v39  ;;  %9952 = vlog2.f32 %v13392_v17  ;;  %v13467_v48 = vld [vmem:[#allocation3 + $0x30] sm:$0xff] }
 0x325   : > { %8773 = vmatmul.mubr.msk.f32.gmra.mrb[98].mxu1 %vm1941_vm2, %v13439_v4  ;;  %8995 = vmatprep.subr.bf16.mxu1 %v8994_v51  ;;  %v8998_v27 = vpack.c.bf16 %v3441_v49, %v3421_v14  ;;  %v3443_v31 = vsel %vm3123_vm8, %v13203_v56, %v3323_v50  ;;  %v9945_v23 = vpop.eup %9944  ;;  %v3242_v35 = vadd.f32 1.0, %v9943_v53  ;;  %9954 = vlog2.f32 %v3223_v0 }
 0x326   : > { %4929 = vmatprep.mubr.f32.mxu1 %v15950_v32  ;;  %v9006_v29 = vpack.c.bf16 %v3443_v31, %v3423_v26  ;;  %8989 = vmatpush1.bf16.msra.mxu0 %v8988_v55  ;;  %v3357_v41 = vmul.f32 0.6931472, %v9941_v33  ;;  %vm3140_vm9 = vcmp.gt.f32.partialorder %v13211_v3, 20.0  ;;  %vm3160_vm10 = vcmp.gt.f32.partialorder %v13307_v19, 20.0 }
 0x327   : > { %8770 = vmatmul.mubr.msk.f32.gmra.mrb[100].mxu0 %vm1941_vm2, %v13467_v48  ;;  %v9947_v47 = vpop.eup %9946  ;;  %9956 = vlog2.f32 %v3242_v35  ;;  %8999 = vmatprep.subr.bf16.mxu0 %v8998_v27  ;;  %v3361_v18 = vmul.f32 0.6931472, %v9945_v23  ;;  %vm3142_vm11 = vcmp.gt.f32.partialorder %v13239_v34, 20.0  ;;  %vm3162_vm12 = vcmp.gt.f32.partialorder %v13311_v52, 20.0  ;;  %v13585_v53 = vpop.permute.xlu1 %5320 }
 0x328   : > { %4846 = vmatprep.mubr.f32.mxu0 %v15950_v32  ;;  %v9949_v56 = vpop.eup %9948  ;;  %v3241_v17 = vadd.f32 1.0, %v9947_v47  ;;  %8997 = vmatpush1.bf16.msra.mxu1 %v8996_v22  ;;  %v3460_v22 = vsel %vm3140_vm9, %v13211_v3, %v3357_v41  ;;  %vm3141_vm13 = vcmp.gt.f32.partialorder %v13244_v21, 20.0  ;;  %vm3161_vm14 = vcmp.gt.f32.partialorder %v13320_v45, 20.0 }
 0x329   : > { %8774 = vmatmul.mubr.msk.f32.gmra.mrb[100].mxu1 %vm1941_vm2, %v13467_v48  ;;  %v3243_v60 = vadd.f32 1.0, %v9949_v56  ;;  %9007 = vmatprep.subr.bf16.mxu1 %v9006_v29  ;;  %vm3143_vm15 = vcmp.gt.f32.partialorder %v13248_v46, 20.0  ;;  %vm3163_vm3 = vcmp.gt.f32.partialorder %v13341_v28, 20.0 }
 0x32a   : > { %4935 = vmatprep.mubr.f32.mxu1 %v15950_v32  ;;  %9958 = vlog2.f32 %v3241_v17 }
 0x32b   : > { %8771 = vmatmul.mubr.msk.f32.gmra.mrb[102].mxu0 %vm1941_vm2, %v13481_v30  ;;  %9960 = vlog2.f32 %v3243_v60 }
 0x32c   : > { %5006 = vmatprep.mubr.f32.mxu0 %v15950_v32 }
 0x32d   : > { %8775 = vmatmul.mubr.msk.f32.gmra.mrb[102].mxu1 %vm1941_vm2, %v13481_v30  ;;  %v9951_v36 = vpop.eup %9950 }
 0x32e   : > { %5095 = vmatprep.mubr.f32.mxu1 %v15950_v32  ;;  %v3397_v61 = vmul.f32 0.6931472, %v9951_v36  ;;  %v9953_v55 = vpop.eup %9952 }
 0x32f   : > { %8776 = vmatmul.mubr.msk.f32.vlgmr.msra.gmra.mrb[104].mxu0 %vm1941_vm2, %v13406_v25  ;;  %v9955_v54 = vpop.eup %9954  ;;  %v3359_v3 = vmul.f32 0.6931472, %v9953_v55 }
 0x330   : > { %5012 = vmatprep.mubr.f32.mxu0 %v15950_v32  ;;  %9001 = vmatpush1.bf16.msra.mxu0 %v9000_v63  ;;  %v3480_v1 = vsel %vm3160_vm10, %v13307_v19, %v3397_v61  ;;  %v3462_v63 = vsel %vm3142_vm11, %v13239_v34, %v3361_v18  ;;  %v3363_v5 = vmul.f32 0.6931472, %v9955_v54 }
 0x331   : > { %8780 = vmatmul.mubr.msk.f32.vlgmr.msra.gmra.mrb[104].mxu1 %vm1941_vm2, %v13406_v25  ;;  %v9957_v40 = vpop.eup %9956  ;;  %v9004_v59 = vpack.c.bf16 %v3480_v1, %v3460_v22  ;;  %v3461_v34 = vsel %vm3141_vm13, %v13244_v21, %v3359_v3  ;;  %v13556_v21 = vpop.permute.xlu0 %5305 }
 0x332   : > { %5101 = vmatprep.mubr.f32.mxu1 %v15950_v32  ;;  %9009 = vmatpush1.bf16.msra.mxu1 %v9008_v10  ;;  %v3401_v57 = vmul.f32 0.6931472, %v9957_v40  ;;  %v3463_v38 = vsel %vm3143_vm15, %v13248_v46, %v3363_v5 }
 0x333   : > { %8777 = vmatmul.mubr.msk.f32.gmra.mrb[106].mxu0 %vm1941_vm2, %v13439_v4 }
 0x334   : > { %5018 = vmatprep.mubr.f32.mxu0 %v15950_v32  ;;  %v9959_v19 = vpop.eup %9958  ;;  %v3482_v42 = vsel %vm3162_vm12, %v13311_v52, %v3401_v57 }
 0x335   : > { %8781 = vmatmul.mubr.msk.f32.gmra.mrb[106].mxu1 %vm1941_vm2, %v13439_v4  ;;  %v9961_v20 = vpop.eup %9960  ;;  %v9012_v2 = vpack.c.bf16 %v3482_v42, %v3462_v63  ;;  %v3399_v11 = vmul.f32 0.6931472, %v9959_v19  ;;  %v13575_v39 = vpop.permute.xlu0 %5315 }
 0x336   : > { %5107 = vmatprep.mubr.f32.mxu1 %v15950_v32  ;;  %v3403_v12 = vmul.f32 0.6931472, %v9961_v20 }
 0x337   : > { %8778 = vmatmul.mubr.msk.f32.gmra.mrb[108].mxu0 %vm1941_vm2, %v13467_v48  ;;  %v3481_v52 = vsel %vm3161_vm14, %v13320_v45, %v3399_v11 }
 0x338   : > { %5024 = vmatprep.mubr.f32.mxu0 %v15950_v32  ;;  %v9002_v8 = vpack.c.bf16 %v3481_v52, %v3461_v34  ;;  %v3483_v16 = vsel %vm3163_vm3, %v13341_v28, %v3403_v12 }
 0x339   : > { %8782 = vmatmul.mubr.msk.f32.gmra.mrb[108].mxu1 %vm1941_vm2, %v13467_v48  ;;  %v9010_v44 = vpack.c.bf16 %v3483_v16, %v3463_v38 }
 0x33a   : > { %5113 = vmatprep.mubr.f32.mxu1 %v15950_v32  ;;  %9003 = vmatprep.subr.bf16.mxu0 %v9002_v8 }
 0x33b   : > { %8779 = vmatmul.mubr.msk.f32.gmra.mrb[110].mxu0 %vm1941_vm2, %v13481_v30  ;;  %9011 = vmatprep.subr.bf16.mxu1 %v9010_v44 }
 0x33c   : > { %5184 = vmatprep.mubr.f32.mxu0 %v15950_v32  ;;  %9005 = vmatpush1.bf16.msra.mxu0 %v9004_v59 }
 0x33d   : > { %8783 = vmatmul.mubr.msk.f32.gmra.mrb[110].mxu1 %vm1941_vm2, %v13481_v30 }
 0x33e   : > { %9013 = vmatpush1.bf16.msra.mxu1 %v9012_v2  ;;  %5273 = vmatprep.mubr.f32.mxu1 %v15950_v32 }
 0x33f   : > { %8784 = vmatmul.mubr.msk.f32.vlgmr.msra.gmra.mrb[112].mxu0 %vm1941_vm2, %v13406_v25 }
 0x340   : > { %5190 = vmatprep.mubr.f32.mxu0 %v15950_v32 }
 0x341   : > { %8788 = vmatmul.mubr.msk.f32.vlgmr.msra.gmra.mrb[112].mxu1 %vm1941_vm2, %v13406_v25 }
 0x342   : > { %5279 = vmatprep.mubr.f32.mxu1 %v15950_v32 }
 0x343   : > { %8785 = vmatmul.mubr.msk.f32.gmra.mrb[114].mxu0 %vm1941_vm2, %v13439_v4 }
 0x344   : > { %5196 = vmatprep.mubr.f32.mxu0 %v15950_v32 }
 0x345   : > { %8789 = vmatmul.mubr.msk.f32.gmra.mrb[114].mxu1 %vm1941_vm2, %v13439_v4 }
 0x346   : > { %5285 = vmatprep.mubr.f32.mxu1 %v15950_v32 }
 0x347   : > { %8786 = vmatmul.mubr.msk.f32.gmra.mrb[116].mxu0 %vm1941_vm2, %v13467_v48 }
 0x348   : > { %5202 = vmatprep.mubr.f32.mxu0 %v15950_v32 }
 0x349   : > { %8790 = vmatmul.mubr.msk.f32.gmra.mrb[116].mxu1 %vm1941_vm2, %v13467_v48 }
 0x34a   : > { %5291 = vmatprep.mubr.f32.mxu1 %v15950_v32 }
 0x34b   : > { %8787 = vmatmul.mubr.msk.f32.gmra.mrb[118].mxu0 %vm1941_vm2, %v13481_v30 }
 0x34c   : > { %6149 = vmatprep.mubr.f32.mxu0 %v15950_v32 }
 0x34d   : > { %8791 = vmatmul.mubr.msk.f32.gmra.mrb[118].mxu1 %vm1941_vm2, %v13481_v30 }
 0x34e   : > { %6238 = vmatprep.mubr.f32.mxu1 %v15950_v32 }
 0x376   : > { %v4474_v46 = vpop.f32.mrb[80].mxu0 }
 0x377   : > { %v13559_v45 = vadd.f32 %v13556_v21, %v4474_v46  ;;  %v4476_v28 = vpop.f32.mrb[81].mxu0 }
 0x378   : > { %v13562_v25 = vadd.f32 %v13556_v21, %v4476_v28 }
 0x379   : > { %v5403_v6 = vmin.f32 %v13559_v45, 20.0  ;;  %vm5643_vm1 = vcmp.gt.f32.partialorder %v13559_v45, 20.0 }
 0x37a   : > { %v5404_v13 = vmin.f32 %v13562_v25, 20.0  ;;  %vm5644_vm0 = vcmp.gt.f32.partialorder %v13562_v25, 20.0 }
 0x37b   : > { %v4480_v9 = vpop.f32.mrb[82].mxu0  ;;  %v5483_v15 = vmul.f32 1.442695, %v5403_v6 }
 0x37c   : > { %v13569_v7 = vadd.f32 %v13565_v24, %v4480_v9  ;;  %v4482_v43 = vpop.f32.mrb[83].mxu0  ;;  %v5485_v37 = vmul.f32 1.442695, %v5404_v13 }
 0x37d   : > { %v13572_v4 = vadd.f32 %v13565_v24, %v4482_v43  ;;  %9962 = vpow2.f32 %v5483_v15 }
 0x37e   : > { %v5423_v62 = vmin.f32 %v13569_v7, 20.0  ;;  %9964 = vpow2.f32 %v5485_v37  ;;  %vm5663_vm4 = vcmp.gt.f32.partialorder %v13569_v7, 20.0 }
 0x37f   : > { %v5424_v10 = vmin.f32 %v13572_v4, 20.0  ;;  %v4486_v0 = vpop.f32.mrb[84].mxu0  ;;  %vm5664_vm5 = vcmp.gt.f32.partialorder %v13572_v4, 20.0 }
 0x380   : > { %v5523_v58 = vmul.f32 1.442695, %v5423_v62  ;;  %v13579_v51 = vadd.f32 %v13575_v39, %v4486_v0  ;;  %v4488_v50 = vpop.f32.mrb[85].mxu0 }
 0x381   : > { %v5525_v33 = vmul.f32 1.442695, %v5424_v10  ;;  %v13582_v14 = vadd.f32 %v13575_v39, %v4488_v50 }
 0x382   : > { %9966 = vpow2.f32 %v5523_v58  ;;  %v5443_v49 = vmin.f32 %v13579_v51, 20.0  ;;  %vm5683_vm6 = vcmp.gt.f32.partialorder %v13579_v51, 20.0 }
 0x383   : > { %9968 = vpow2.f32 %v5525_v33  ;;  %v5444_v27 = vmin.f32 %v13582_v14, 20.0  ;;  %vm5684_vm8 = vcmp.gt.f32.partialorder %v13582_v14, 20.0 }
 0x384   : > { %v4492_v26 = vpop.f32.mrb[86].mxu0  ;;  %v5563_v31 = vmul.f32 1.442695, %v5443_v49 }
 0x385   : > { %v13589_v23 = vadd.f32 %v13585_v53, %v4492_v26  ;;  %v4494_v35 = vpop.f32.mrb[87].mxu0  ;;  %v5565_v48 = vmul.f32 1.442695, %v5444_v27 }
 0x386   : > { %v13592_v29 = vadd.f32 %v13585_v53, %v4494_v35  ;;  %9970 = vpow2.f32 %v5563_v31 }
 0x387   : > { %v5463_v47 = vmin.f32 %v13589_v23, 20.0  ;;  %9972 = vpow2.f32 %v5565_v48  ;;  %v9963_v17 = vpop.eup %9962  ;;  %vm5703_vm7 = vcmp.gt.f32.partialorder %v13589_v23, 20.0 }
 0x388   : > { %v5464_v56 = vmin.f32 %v13592_v29, 20.0  ;;  %v9965_v30 = vpop.eup %9964  ;;  %v5723_v41 = vadd.f32 1.0, %v9963_v17  ;;  %vm5704_vm9 = vcmp.gt.f32.partialorder %v13592_v29, 20.0 }
 0x389   : > { %v5603_v60 = vmul.f32 1.442695, %v5463_v47  ;;  %v5724_v61 = vadd.f32 1.0, %v9965_v30 }
 0x38a   : > { %v5605_v36 = vmul.f32 1.442695, %v5464_v56 }
 0x38b   : > { %9974 = vpow2.f32 %v5603_v60 }
 0x38c   : > { %9976 = vlog2.f32 %v5723_v41  ;;  %v9967_v55 = vpop.eup %9966 }
 0x38d   : > { %9978 = vlog2.f32 %v5724_v61  ;;  %v9969_v54 = vpop.eup %9968  ;;  %v5743_v22 = vadd.f32 1.0, %v9967_v55 }
 0x38e   : > { %9980 = vpow2.f32 %v5605_v36  ;;  %v5744_v18 = vadd.f32 1.0, %v9969_v54 }
 0x38f   : > { %9982 = vlog2.f32 %v5743_v22  ;;  %v13631_v22 = vld [vmem:[#allocation3 + $0x40] sm:$0xff] }
 0x390   : > { %v9971_v1 = vpop.eup %9970  ;;  %9984 = vlog2.f32 %v5744_v18 }
 0x391   : > { %v9973_v40 = vpop.eup %9972  ;;  %v5763_v59 = vadd.f32 1.0, %v9971_v1 }
 0x392   : > { %v5764_v57 = vadd.f32 1.0, %v9973_v40 }
 0x393   : > { %9986 = vlog2.f32 %v5763_v59 }
 0x394   : > { %9988 = vlog2.f32 %v5764_v57  ;;  %v13643_v57 = vld [vmem:[#allocation3 + $0x48] sm:$0xff] }
 0x395   : > { %v9975_v3 = vpop.eup %9974 }
 0x396   : > { %v9977_v19 = vpop.eup %9976  ;;  %v5783_v63 = vadd.f32 1.0, %v9975_v3 }
 0x397   : > { %v9979_v42 = vpop.eup %9978  ;;  %v5804_v20 = vmul.f32 0.6931472, %v9977_v19 }
 0x398   : > { %v9981_v5 = vpop.eup %9980  ;;  %9990 = vlog2.f32 %v5783_v63  ;;  %v5806_v12 = vmul.f32 0.6931472, %v9979_v42 }
 0x399   : > { %v5784_v2 = vadd.f32 1.0, %v9981_v5  ;;  %v9983_v11 = vpop.eup %9982  ;;  %v5963_v38 = vsel %vm5643_vm1, %v13559_v45, %v5804_v20 }
 0x39a   : > { %v9985_v34 = vpop.eup %9984  ;;  %v5844_v52 = vmul.f32 0.6931472, %v9983_v11  ;;  %v5964_v28 = vsel %vm5644_vm0, %v13562_v25, %v5806_v12 }
 0x39b   : > { %9992 = vlog2.f32 %v5784_v2  ;;  %v5846_v8 = vmul.f32 0.6931472, %v9985_v34  ;;  %v13650_v2 = vld [vmem:[#allocation3 + $0x50] sm:$0xff] }
 0x39c   : > { %v5983_v16 = vsel %vm5663_vm4, %v13569_v7, %v5844_v52 }
 0x39d   : > { %v9987_v44 = vpop.eup %9986  ;;  %v9016_v46 = vpack.c.bf16 %v5983_v16, %v5963_v38  ;;  %v5984_v6 = vsel %vm5664_vm5, %v13572_v4, %v5846_v8  ;;  %v13658_v16 = vld [vmem:[#allocation3 + $0x58] sm:$0xff] }
 0x39e   : > { %v9014_v13 = vpack.c.bf16 %v5984_v6, %v5964_v28  ;;  %v9989_v9 = vpop.eup %9988  ;;  %v5884_v15 = vmul.f32 0.6931472, %v9987_v44 }
 0x39f   : > { %v5886_v25 = vmul.f32 0.6931472, %v9989_v9 }
 0x3a0   : > { %9015 = vmatprep.subr.bf16.mxu0 %v9014_v13  ;;  %v6003_v58 = vsel %vm5683_vm6, %v13579_v51, %v5884_v15 }
 0x3a1   : > { %9017 = vmatpush1.bf16.msra.mxu0 %v9016_v46  ;;  %v6004_v51 = vsel %vm5684_vm8, %v13582_v14, %v5886_v25 }
 0x3a2   : > { %v9991_v43 = vpop.eup %9990 }
 0x3a3   : > { %v5924_v7 = vmul.f32 0.6931472, %v9991_v43 }
 0x3a5   : > { %v9993_v4 = vpop.eup %9992  ;;  %v6023_v50 = vsel %vm5703_vm7, %v13589_v23, %v5924_v7 }
 0x3a6   : > { %v9020_v27 = vpack.c.bf16 %v6023_v50, %v6003_v58  ;;  %v5926_v26 = vmul.f32 0.6931472, %v9993_v4 }
 0x3a8   : > { %v6024_v23 = vsel %vm5704_vm9, %v13592_v29, %v5926_v26 }
 0x3a9   : > { %v9018_v60 = vpack.c.bf16 %v6024_v23, %v6004_v51 }
 0x3aa   : > { %v4563_v37 = vpop.f32.mrb[80].mxu1 }
 0x3ab   : > { %v13605_v45 = vadd.f32 %v13556_v21, %v4563_v37  ;;  %v4565_v62 = vpop.f32.mrb[81].mxu1  ;;  %9019 = vmatprep.subr.bf16.mxu0 %v9018_v60 }
 0x3ac   : > { %v13608_v10 = vadd.f32 %v13556_v21, %v4565_v62  ;;  %9021 = vmatpush1.bf16.msra.mxu0 %v9020_v27 }
 0x3ad   : > { %v5405_v0 = vmin.f32 %v13605_v45, 20.0  ;;  %vm5645_vm10 = vcmp.gt.f32.partialorder %v13605_v45, 20.0 }
 0x3ae   : > { %v5406_v33 = vmin.f32 %v13608_v10, 20.0  ;;  %v4569_v49 = vpop.f32.mrb[82].mxu1  ;;  %vm5646_vm12 = vcmp.gt.f32.partialorder %v13608_v10, 20.0 }
 0x3af   : > { %v5487_v31 = vmul.f32 1.442695, %v5405_v0  ;;  %v13617_v35 = vadd.f32 %v13565_v24, %v4569_v49  ;;  %v4571_v48 = vpop.f32.mrb[83].mxu1  ;;  %8800 = vmatmul.mubr.msk.f32.vlgmr.msra.gmra.mrb[120].mxu0 %vm1941_vm2, %v13631_v22 }
 0x3b0   : > { %v5489_v47 = vmul.f32 1.442695, %v5406_v33  ;;  %v13622_v56 = vadd.f32 %v13565_v24, %v4571_v48  ;;  %6155 = vmatprep.mubr.f32.mxu0 %v15950_v32 }
 0x3b1   : > { %9994 = vpow2.f32 %v5487_v31  ;;  %v5425_v17 = vmin.f32 %v13617_v35, 20.0  ;;  %vm5665_vm11 = vcmp.gt.f32.partialorder %v13617_v35, 20.0 }
 0x3b2   : > { %9996 = vpow2.f32 %v5489_v47  ;;  %v5426_v30 = vmin.f32 %v13622_v56, 20.0  ;;  %v4575_v41 = vpop.f32.mrb[84].mxu1  ;;  %vm5666_vm13 = vcmp.gt.f32.partialorder %v13622_v56, 20.0 }
 0x3b3   : > { %v5527_v36 = vmul.f32 1.442695, %v5425_v17  ;;  %v13629_v61 = vadd.f32 %v13575_v39, %v4575_v41  ;;  %v4577_v55 = vpop.f32.mrb[85].mxu1  ;;  %8801 = vmatmul.mubr.msk.f32.gmra.mrb[122].mxu0 %vm1941_vm2, %v13643_v57 }
 0x3b4   : > { %v5529_v54 = vmul.f32 1.442695, %v5426_v30  ;;  %v13640_v59 = vadd.f32 %v13575_v39, %v4577_v55  ;;  %6161 = vmatprep.mubr.f32.mxu0 %v15950_v32 }
 0x3b5   : > { %9998 = vpow2.f32 %v5527_v36  ;;  %v5445_v14 = vmin.f32 %v13629_v61, 20.0  ;;  %vm5685_vm14 = vcmp.gt.f32.partialorder %v13629_v61, 20.0 }
 0x3b6   : > { %10000 = vpow2.f32 %v5529_v54  ;;  %v4581_v29 = vpop.f32.mrb[86].mxu1  ;;  %v5446_v20 = vmin.f32 %v13640_v59, 20.0  ;;  %vm5686_vm3 = vcmp.gt.f32.partialorder %v13640_v59, 20.0 }
 0x3b7   : > { %v5567_v18 = vmul.f32 1.442695, %v5445_v14  ;;  %v13635_v1 = vadd.f32 %v13585_v53, %v4581_v29  ;;  %v4583_v40 = vpop.f32.mrb[87].mxu1  ;;  %8802 = vmatmul.mubr.msk.f32.gmra.mrb[124].mxu0 %vm1941_vm2, %v13650_v2 }
 0x3b8   : > { %v13653_v12 = vadd.f32 %v13585_v53, %v4583_v40  ;;  %v5569_v38 = vmul.f32 1.442695, %v5446_v20  ;;  %6167 = vmatprep.mubr.f32.mxu0 %v15950_v32 }
 0x3b9   : > { %10002 = vpow2.f32 %v5567_v18  ;;  %v5465_v3 = vmin.f32 %v13635_v1, 20.0  ;;  %vm5705_vm15 = vcmp.gt.f32.partialorder %v13635_v1, 20.0 }
 0x3ba   : > { %v5466_v46 = vmin.f32 %v13653_v12, 20.0  ;;  %vm5706_vm1 = vcmp.gt.f32.partialorder %v13653_v12, 20.0 }
 0x3bb   : > { %v9995_v19 = vpop.eup %9994  ;;  %v5607_v63 = vmul.f32 1.442695, %v5465_v3  ;;  %8803 = vmatmul.mubr.msk.f32.gmra.mrb[126].mxu0 %vm1941_vm2, %v13658_v16 }
 0x3bc   : > { %v9997_v42 = vpop.eup %9996  ;;  %v5725_v5 = vadd.f32 1.0, %v9995_v19  ;;  %6327 = vmatprep.mubr.f32.mxu0 %v15950_v32  ;;  %v5609_v13 = vmul.f32 1.442695, %v5466_v46 }
 0x3bd   : > { %v5726_v11 = vadd.f32 1.0, %v9997_v42  ;;  %10004 = vpow2.f32 %v5607_v63 }
 0x3be   : > { %10006 = vlog2.f32 %v5725_v5 }
 0x3bf   : > { %v9999_v34 = vpop.eup %9998  ;;  %10008 = vlog2.f32 %v5726_v11 }
 0x3c0   : > { %v10001_v52 = vpop.eup %10000  ;;  %v5745_v8 = vadd.f32 1.0, %v9999_v34 }
 0x3c1   : > { %v5746_v44 = vadd.f32 1.0, %v10001_v52 }
 0x3c2   : > { %10010 = vlog2.f32 %v5745_v8 }
 0x3c3   : > { %v10003_v28 = vpop.eup %10002  ;;  %10012 = vlog2.f32 %v5746_v44 }
 0x3c4   : > { %v5765_v6 = vadd.f32 1.0, %v10003_v28  ;;  %10014 = vpow2.f32 %v5569_v38 }
 0x3c6   : > { %10016 = vlog2.f32 %v5765_v6 }
 0x3c7   : > { %v10005_v9 = vpop.eup %10004  ;;  %10018 = vpow2.f32 %v5609_v13 }
 0x3c8   : > { %v10007_v15 = vpop.eup %10006  ;;  %v5785_v43 = vadd.f32 1.0, %v10005_v9 }
 0x3c9   : > { %v10009_v37 = vpop.eup %10008  ;;  %v5808_v62 = vmul.f32 0.6931472, %v10007_v15 }
 0x3ca   : > { %10020 = vlog2.f32 %v5785_v43  ;;  %v5810_v25 = vmul.f32 0.6931472, %v10009_v37 }
 0x3cb   : > { %v5965_v33 = vsel %vm5645_vm10, %v13605_v45, %v5808_v62 }
 0x3cc   : > { %v10011_v7 = vpop.eup %10010  ;;  %v5966_v31 = vsel %vm5646_vm12, %v13608_v10, %v5810_v25 }
 0x3cd   : > { %v10013_v4 = vpop.eup %10012  ;;  %v5848_v0 = vmul.f32 0.6931472, %v10011_v7 }
 0x3ce   : > { %v10015_v58 = vpop.eup %10014  ;;  %v5850_v50 = vmul.f32 0.6931472, %v10013_v4 }
 0x3cf   : > { %v5985_v49 = vsel %vm5665_vm11, %v13617_v35, %v5848_v0  ;;  %v5766_v47 = vadd.f32 1.0, %v10015_v58  ;;  %v4652_v51 = vpop.f32.mrb[88].mxu0 }
 0x3d0   : > { %v10017_v27 = vpop.eup %10016  ;;  %v9024_v26 = vpack.c.bf16 %v5985_v49, %v5965_v33  ;;  %v5986_v48 = vsel %vm5666_vm13, %v13622_v56, %v5850_v50  ;;  %v13673_v60 = vadd.f32 %v13556_v21, %v4652_v51  ;;  %v4654_v30 = vpop.f32.mrb[89].mxu0 }
 0x3d1   : > { %v9022_v23 = vpack.c.bf16 %v5986_v48, %v5966_v31  ;;  %v5888_v17 = vmul.f32 0.6931472, %v10017_v27  ;;  %v4741_v45 = vpop.f32.mrb[88].mxu1  ;;  %v10019_v41 = vpop.eup %10018  ;;  %v13679_v36 = vadd.f32 %v13556_v21, %v4654_v30  ;;  %10022 = vlog2.f32 %v5766_v47 }
 0x3d2   : > { %v13676_v35 = vadd.f32 %v13556_v21, %v4741_v45  ;;  %v4743_v55 = vpop.f32.mrb[89].mxu1  ;;  %v5407_v56 = vmin.f32 %v13673_v60, 20.0  ;;  %v5786_v19 = vadd.f32 1.0, %v10019_v41  ;;  %vm5647_vm4 = vcmp.gt.f32.partialorder %v13673_v60, 20.0 }
 0x3d3   : > { %9023 = vmatprep.subr.bf16.mxu1 %v9022_v23  ;;  %v13685_v54 = vadd.f32 %v13556_v21, %v4743_v55  ;;  %v5408_v18 = vmin.f32 %v13679_v36, 20.0  ;;  %v4658_v40 = vpop.f32.mrb[90].mxu0  ;;  %v13690_v3 = vsel %vm5685_vm14, %v13629_v61, %v5888_v17 }
 0x3d4   : > { %v10021_v10 = vpop.eup %10020  ;;  %9025 = vmatpush1.bf16.msra.mxu1 %v9024_v26  ;;  %v5409_v29 = vmin.f32 %v13676_v35, 20.0  ;;  %v5491_v63 = vmul.f32 1.442695, %v5407_v56  ;;  %v13697_v52 = vadd.f32 %v13565_v24, %v4658_v40  ;;  %v4660_v8 = vpop.f32.mrb[91].mxu0  ;;  %vm5649_vm0 = vcmp.gt.f32.partialorder %v13676_v35, 20.0 }
 0x3d5   : > { %v5928_v14 = vmul.f32 0.6931472, %v10021_v10  ;;  %v5410_v42 = vmin.f32 %v13685_v54, 20.0  ;;  %v4747_v5 = vpop.f32.mrb[90].mxu1  ;;  %v5493_v34 = vmul.f32 1.442695, %v5408_v18 }
 0x3d6   : > { %v5495_v11 = vmul.f32 1.442695, %v5409_v29  ;;  %v4749_v38 = vpop.f32.mrb[91].mxu1  ;;  %10024 = vpow2.f32 %v5491_v63  ;;  %v13702_v46 = vadd.f32 %v13565_v24, %v4747_v5  ;;  %v5427_v28 = vmin.f32 %v13697_v52, 20.0 }
 0x3d7   : > { %v13694_v20 = vsel %vm5705_vm15, %v13635_v1, %v5928_v14  ;;  %v5497_v61 = vmul.f32 1.442695, %v5410_v42  ;;  %v13706_v1 = vadd.f32 %v13565_v24, %v4660_v8  ;;  %v4664_v6 = vpop.f32.mrb[92].mxu0  ;;  %v13711_v62 = vadd.f32 %v13565_v24, %v4749_v38 }
 0x3d8   : > { %v9028_v44 = vpack.c.bf16 %v13694_v20, %v13690_v3  ;;  %10026 = vpow2.f32 %v5495_v11  ;;  %v5429_v13 = vmin.f32 %v13702_v46, 20.0  ;;  %v4666_v15 = vpop.f32.mrb[93].mxu0  ;;  %v5531_v43 = vmul.f32 1.442695, %v5427_v28 }
 0x3d9   : > { %10028 = vlog2.f32 %v5786_v19  ;;  %v4753_v9 = vpop.f32.mrb[92].mxu1  ;;  %v5428_v37 = vmin.f32 %v13706_v1, 20.0  ;;  %v13714_v4 = vadd.f32 %v13575_v39, %v4664_v6  ;;  %v13720_v50 = vadd.f32 %v13575_v39, %v4666_v15 }
 0x3da   : > { %10030 = vpow2.f32 %v5493_v34  ;;  %v4755_v7 = vpop.f32.mrb[93].mxu1  ;;  %v5535_v25 = vmul.f32 1.442695, %v5429_v13  ;;  %v13717_v58 = vadd.f32 %v13575_v39, %v4753_v9  ;;  %v5430_v48 = vmin.f32 %v13711_v62, 20.0 }
 0x3db   : > { %10032 = vpow2.f32 %v5497_v61  ;;  %v5533_v0 = vmul.f32 1.442695, %v5428_v37  ;;  %v4670_v33 = vpop.f32.mrb[94].mxu0  ;;  %v5447_v49 = vmin.f32 %v13714_v4, 20.0  ;;  %v10023_v31 = vpop.eup %10022  ;;  %v5448_v45 = vmin.f32 %v13720_v50, 20.0 }
 0x3dc   : > { %10034 = vpow2.f32 %v5531_v43  ;;  %v4672_v26 = vpop.f32.mrb[95].mxu0  ;;  %v5449_v47 = vmin.f32 %v13717_v58, 20.0  ;;  %v13727_v30 = vadd.f32 %v13575_v39, %v4755_v7  ;;  %v13730_v55 = vadd.f32 %v13585_v53, %v4670_v33 }
 0x3dd   : > { %10036 = vpow2.f32 %v5535_v25  ;;  %v4759_v27 = vpop.f32.mrb[94].mxu1  ;;  %v5571_v23 = vmul.f32 1.442695, %v5447_v49  ;;  %v5537_v14 = vmul.f32 1.442695, %v5430_v48  ;;  %v13739_v38 = vadd.f32 %v13585_v53, %v4672_v26 }
 0x3de   : > { %10038 = vpow2.f32 %v5533_v0  ;;  %v4761_v51 = vpop.f32.mrb[95].mxu1  ;;  %v5575_v17 = vmul.f32 1.442695, %v5449_v47  ;;  %16209 = vst [vmem:[#allocation33_spill] sm:$0xff] %v13727_v30  ;;  %v5573_v19 = vmul.f32 1.442695, %v5448_v45  ;;  %v13735_v34 = vadd.f32 %v13585_v53, %v4759_v27 }
 0x3df   : > { %10040 = vpow2.f32 %v5571_v23  ;;  %v5450_v63 = vmin.f32 %v13727_v30, 20.0  ;;  %v5890_v42 = vmul.f32 0.6931472, %v10023_v31  ;;  %v5467_v11 = vmin.f32 %v13730_v55, 20.0 }
 0x3e0   : > { %v10025_v41 = vpop.eup %10024  ;;  %10042 = vpow2.f32 %v5575_v17  ;;  %v13743_v9 = vadd.f32 %v13585_v53, %v4761_v51  ;;  %v5469_v0 = vmin.f32 %v13735_v34, 20.0  ;;  %v5468_v27 = vmin.f32 %v13739_v38, 20.0 }
 0x3e1   : > { %v5727_v56 = vadd.f32 1.0, %v10025_v41  ;;  %v5577_v37 = vmul.f32 1.442695, %v5450_v63  ;;  %v6006_v7 = vsel %vm5686_vm3, %v13640_v59, %v5890_v42  ;;  %v5611_v25 = vmul.f32 1.442695, %v5467_v11 }
 0x3e2   : > { %v10027_v10 = vpop.eup %10026  ;;  %16210 = vst [vmem:[#allocation19_spill] sm:$0xff] %v13743_v9  ;;  %v5470_v47 = vmin.f32 %v13743_v9, 20.0  ;;  %v5615_v17 = vmul.f32 1.442695, %v5469_v0  ;;  %vm5667_vm5 = vcmp.gt.f32.partialorder %v13697_v52, 20.0  ;;  %vm5669_vm6 = vcmp.gt.f32.partialorder %v13702_v46, 20.0 }
 0x3e3   : > { %v10029_v29 = vpop.eup %10028  ;;  %v5729_v18 = vadd.f32 1.0, %v10027_v10  ;;  %10044 = vlog2.f32 %v5727_v56  ;;  %v5613_v10 = vmul.f32 1.442695, %v5468_v27  ;;  %vm5687_vm7 = vcmp.gt.f32.partialorder %v13714_v4, 20.0 }
 0x3e4   : > { %v10031_v40 = vpop.eup %10030  ;;  %v5930_v61 = vmul.f32 0.6931472, %v10029_v29  ;;  %vm5707_vm8 = vcmp.gt.f32.partialorder %v13730_v55, 20.0  ;;  %vm5689_vm9 = vcmp.gt.f32.partialorder %v13717_v58, 20.0  ;;  %vm5709_vm10 = vcmp.gt.f32.partialorder %v13735_v34, 20.0 }
 0x3e5   : > { %v10033_v5 = vpop.eup %10032  ;;  %10046 = vlog2.f32 %v5729_v18  ;;  %v5728_v6 = vadd.f32 1.0, %v10031_v40  ;;  %v5617_v18 = vmul.f32 1.442695, %v5470_v47  ;;  %vm5648_vm3 = vcmp.gt.f32.partialorder %v13679_v36, 20.0 }
 0x3e6   : > { %v10035_v8 = vpop.eup %10034  ;;  %10048 = vpow2.f32 %v5537_v14  ;;  %v6026_v33 = vsel %vm5706_vm1, %v13653_v12, %v5930_v61  ;;  %v5730_v49 = vadd.f32 1.0, %v10033_v5  ;;  %vm5668_vm1 = vcmp.gt.f32.partialorder %v13706_v1, 20.0 }
 0x3e7   : > { %v10037_v28 = vpop.eup %10036  ;;  %v5747_v13 = vadd.f32 1.0, %v10035_v8  ;;  %10050 = vpow2.f32 %v5573_v19  ;;  %v9026_v26 = vpack.c.bf16 %v6026_v33, %v6006_v7 }
 0x3e8   : > { %v10039_v15 = vpop.eup %10038  ;;  %v5749_v43 = vadd.f32 1.0, %v10037_v28 }
 0x3e9   : > { %10052 = vlog2.f32 %v5747_v13  ;;  %v10041_v31 = vpop.eup %10040  ;;  %v5748_v48 = vadd.f32 1.0, %v10039_v15  ;;  %9027 = vmatprep.subr.bf16.mxu1 %v9026_v26 }
 0x3ea   : > { %10054 = vlog2.f32 %v5749_v43  ;;  %v5767_v51 = vadd.f32 1.0, %v10041_v31  ;;  %v10043_v59 = vpop.eup %10042  ;;  %9029 = vmatpush1.bf16.msra.mxu1 %v9028_v44 }
 0x3eb   : > { %10056 = vlog2.f32 %v5728_v6  ;;  %v5769_v5 = vadd.f32 1.0, %v10043_v59 }
 0x3ec   : > { %10058 = vpow2.f32 %v5577_v37 }
 0x3ed   : > { %10060 = vpow2.f32 %v5611_v25  ;;  %v10045_v41 = vpop.eup %10044  ;;  %8804 = vmatmul.mubr.msk.f32.vlgmr.msra.gmra.mrb[120].mxu1 %vm1941_vm2, %v13631_v22 }
 0x3ee   : > { %10062 = vlog2.f32 %v5730_v49  ;;  %v5812_v42 = vmul.f32 0.6931472, %v10045_v41  ;;  %6244 = vmatprep.mubr.f32.mxu1 %v15950_v32 }
 0x3ef   : > { %v10047_v29 = vpop.eup %10046  ;;  %10064 = vlog2.f32 %v5748_v48 }
 0x3f0   : > { %v10049_v63 = vpop.eup %10048  ;;  %10066 = vlog2.f32 %v5767_v51  ;;  %v5816_v28 = vmul.f32 0.6931472, %v10047_v29  ;;  %v13785_v31 = vsel %vm5647_vm4, %v13673_v60, %v5812_v42 }
 0x3f1   : > { %10068 = vpow2.f32 %v5615_v17  ;;  %v10051_v61 = vpop.eup %10050  ;;  %v5750_v43 = vadd.f32 1.0, %v10049_v63  ;;  %8805 = vmatmul.mubr.msk.f32.gmra.mrb[122].mxu1 %vm1941_vm2, %v13643_v57 }
 0x3f2   : > { %v4830_v23 = vpop.f32.mrb[96].mxu0  ;;  %10070 = vpow2.f32 %v5613_v10  ;;  %v5768_v47 = vadd.f32 1.0, %v10051_v61  ;;  %6250 = vmatprep.mubr.f32.mxu1 %v15950_v32  ;;  %v13793_v59 = vsel %vm5649_vm0, %v13676_v35, %v5816_v28 }
 0x3f3   : > { %v13751_v45 = vadd.f32 %v13556_v21, %v4830_v23  ;;  %v4832_v12 = vpop.f32.mrb[97].mxu0  ;;  %v4919_v56 = vpop.f32.mrb[96].mxu1  ;;  %10072 = vpow2.f32 %v5617_v18 }
 0x3f4   : > { %v13758_v14 = vadd.f32 %v13556_v21, %v4832_v12  ;;  %v4921_v19 = vpop.f32.mrb[97].mxu1  ;;  %v13764_v3 = vadd.f32 %v13556_v21, %v4919_v56  ;;  %v10053_v15 = vpop.eup %10052 }
 0x3f5   : > { %v5411_v40 = vmin.f32 %v13751_v45, 20.0  ;;  %v13773_v22 = vadd.f32 %v13556_v21, %v4921_v19  ;;  %v10055_v25 = vpop.eup %10054  ;;  %v5852_v0 = vmul.f32 0.6931472, %v10053_v15  ;;  %8806 = vmatmul.mubr.msk.f32.gmra.mrb[124].mxu1 %vm1941_vm2, %v13650_v2  ;;  %vm5651_vm11 = vcmp.gt.f32.partialorder %v13751_v45, 20.0 }
 0x3f6   : > { %16211 = vst [vmem:[#allocation34_spill] sm:$0xff] %v13758_v14  ;;  %v5412_v20 = vmin.f32 %v13758_v14, 20.0  ;;  %v4836_v44 = vpop.f32.mrb[98].mxu0  ;;  %v5413_v6 = vmin.f32 %v13764_v3, 20.0  ;;  %v13780_v26 = vpop.eup %10056  ;;  %v5856_v48 = vmul.f32 0.6931472, %v10055_v25  ;;  %6256 = vmatprep.mubr.f32.mxu1 %v15950_v32 }
 0x3f7   : > { %v5499_v11 = vmul.f32 1.442695, %v5411_v40  ;;  %v4838_v8 = vpop.f32.mrb[99].mxu0  ;;  %16212 = vst [vmem:[#allocation30_spill] sm:$0xff] %v13773_v22  ;;  %v13776_v49 = vadd.f32 %v13565_v24, %v4836_v44  ;;  %v10059_v23 = vpop.eup %10058  ;;  %v13798_v57 = vsel %vm5667_vm5, %v13697_v52, %v5852_v0  ;;  %v5414_v35 = vmin.f32 %v13773_v22, 20.0 }
 0x3f8   : > { %v4925_v13 = vpop.f32.mrb[98].mxu1  ;;  %v5501_v37 = vmul.f32 1.442695, %v5412_v20  ;;  %v5503_v33 = vmul.f32 1.442695, %v5413_v6  ;;  %v10061_v12 = vpop.eup %10060  ;;  %v13806_v10 = vsel %vm5669_vm6, %v13702_v46, %v5856_v48  ;;  %v5770_v20 = vadd.f32 1.0, %v10059_v23 }
 0x3f9   : > { %v4927_v7 = vpop.f32.mrb[99].mxu1  ;;  %10074 = vpow2.f32 %v5499_v11  ;;  %v5431_v60 = vmin.f32 %v13776_v49, 20.0  ;;  %v13809_v29 = vpop.eup %10062  ;;  %v5787_v18 = vadd.f32 1.0, %v10061_v12  ;;  %v13814_v19 = vadd.f32 %v13565_v24, %v4925_v13  ;;  %8807 = vmatmul.mubr.msk.f32.gmra.mrb[126].mxu1 %vm1941_vm2, %v13658_v16 }
 0x3fa   : > { %v4842_v27 = vpop.f32.mrb[100].mxu0  ;;  %10076 = vlog2.f32 %v5769_v5  ;;  %v13820_v46 = vpop.eup %10064  ;;  %v13823_v44 = vadd.f32 %v13565_v24, %v4838_v8  ;;  %v5505_v6 = vmul.f32 1.442695, %v5414_v35  ;;  %v13832_v2 = vadd.f32 %v13565_v24, %v4927_v7  ;;  %6416 = vmatprep.mubr.f32.mxu1 %v15950_v32 }
 0x3fb   : > { %v13787_v51 = vpop.f32.mrb[101].mxu0  ;;  %10078 = vpow2.f32 %v5503_v33  ;;  %v5539_v40 = vmul.f32 1.442695, %v5431_v60  ;;  %v10067_v5 = vpop.eup %10066  ;;  %v5433_v11 = vmin.f32 %v13814_v19, 20.0  ;;  %v13843_v7 = vadd.f32 %v13575_v39, %v4842_v27 }
 0x3fc   : > { %v4931_v17 = vpop.f32.mrb[100].mxu1  ;;  %10080 = vpow2.f32 %v5501_v37  ;;  %16213 = vst [vmem:[#allocation29_spill] sm:$0xff] %v13823_v44  ;;  %v10069_v28 = vpop.eup %10068  ;;  %16214 = vst [vmem:[#allocation42_spill] sm:$0xff] %v13832_v2  ;;  %v5434_v27 = vmin.f32 %v13832_v2, 20.0  ;;  %vm5671_vm12 = vcmp.gt.f32.partialorder %v13776_v49, 20.0  ;;  %vm5653_vm13 = vcmp.gt.f32.partialorder %v13764_v3, 20.0 }
 0x3fd   : > { %v4933_v56 = vpop.f32.mrb[101].mxu1  ;;  %10082 = vlog2.f32 %v5750_v43  ;;  %v10071_v8 = vpop.eup %10070  ;;  %v5789_v15 = vadd.f32 1.0, %v10069_v28  ;;  %v5432_v43 = vmin.f32 %v13823_v44, 20.0  ;;  %v13850_v23 = vadd.f32 %v13575_v39, %v4931_v17 }
 0x3fe   : > { %v13816_v63 = vpop.f32.mrb[102].mxu0  ;;  %10084 = vlog2.f32 %v5787_v18  ;;  %v10073_v25 = vpop.eup %10072  ;;  %v5788_v0 = vadd.f32 1.0, %v10071_v8  ;;  %vm5673_vm14 = vcmp.gt.f32.partialorder %v13814_v19, 20.0  ;;  %vm5691_vm15 = vcmp.gt.f32.partialorder %v13843_v7, 20.0 }
 0x3ff   : > { %v13825_v42 = vpop.f32.mrb[103].mxu0  ;;  %10086 = vpow2.f32 %v5539_v40  ;;  %v5790_v12 = vadd.f32 1.0, %v10073_v25  ;;  %v5541_v28 = vmul.f32 1.442695, %v5432_v43  ;;  %v5451_v25 = vmin.f32 %v13843_v7, 20.0 }
 0x400   : > { %v13829_v61 = vpop.f32.mrb[102].mxu1  ;;  %10088 = vlog2.f32 %v5768_v47  ;;  %v5543_v47 = vmul.f32 1.442695, %v5433_v11  ;;  %v13859_v11 = vadd.f32 %v13575_v39, %v13787_v51  ;;  %v5453_v51 = vmin.f32 %v13850_v23, 20.0 }
 0x401   : > { %v13834_v13 = vpop.f32.mrb[103].mxu1  ;;  %10090 = vlog2.f32 %v5770_v20  ;;  %v5892_v20 = vmul.f32 0.6931472, %v10067_v5  ;;  %v13893_v22 = vadd.f32 %v13585_v53, %v13829_v61  ;;  %v13916_v32 = vadd.f32 %v13585_v53, %v13825_v42 }
 0x402   : > { %v13837_v37 = vpop.f32.mrb[104].mxu0  ;;  %10092 = vlog2.f32 %v5789_v15  ;;  %16215 = vst [vmem:[#allocation41_spill] sm:$0xff] %v13859_v11  ;;  %vm5693_vm4 = vcmp.gt.f32.partialorder %v13850_v23, 20.0  ;;  %vm5650_vm6 = vcmp.gt.f32.partialorder %v13685_v54, 20.0 }
 0x403   : > { %v13845_v33 = vpop.f32.mrb[105].mxu0  ;;  %v10075_v48 = vpop.eup %10074  ;;  %10094 = vpow2.f32 %v5505_v6  ;;  %v13865_v6 = vadd.f32 %v13575_v39, %v4933_v56  ;;  %v5452_v56 = vmin.f32 %v13859_v11, 20.0  ;;  %v13882_v2 = vsel %vm5687_vm7, %v13714_v4, %v5892_v20  ;;  %16221 = vst [vmem:[#allocation13_spill] sm:$0xff] %v13916_v32 }
 0x404   : > { %v13852_v16 = vpop.f32.mrb[104].mxu1  ;;  %v10077_v60 = vpop.eup %10076  ;;  %v5731_v35 = vadd.f32 1.0, %v10075_v48  ;;  %10096 = vlog2.f32 %v5788_v0  ;;  %16217 = vst [vmem:[#allocation9_spill] sm:$0xff] %v13882_v2  ;;  %v5579_v11 = vmul.f32 1.442695, %v5451_v25  ;;  %v13931_v42 = vadd.f32 %v13556_v21, %v13837_v37 }
 0x405   : > { %v13855_v18 = vpop.f32.mrb[105].mxu1  ;;  %v10079_v40 = vpop.eup %10078  ;;  %16216 = vst [vmem:[#allocation43_spill] sm:$0xff] %v13865_v6  ;;  %v5581_v61 = vmul.f32 1.442695, %v5452_v56  ;;  %v13922_v56 = vadd.f32 %v13585_v53, %v13834_v13  ;;  %vm5713_vm5 = vcmp.gt.f32.partialorder %v13893_v22, 20.0  ;;  %vm5670_vm7 = vcmp.gt.f32.partialorder %v13711_v62, 20.0 }
 0x406   : > { %v13861_v17 = vpop.f32.mrb[106].mxu0  ;;  %v10081_v8 = vpop.eup %10080  ;;  %10098 = vlog2.f32 %v5731_v35  ;;  %v5733_v15 = vadd.f32 1.0, %v10079_v40  ;;  %v5896_v35 = vmul.f32 0.6931472, %v10077_v60  ;;  %v5545_v40 = vmul.f32 1.442695, %v5434_v27 }
 0x407   : > { %v13867_v48 = vpop.f32.mrb[107].mxu0  ;;  %v5732_v5 = vadd.f32 1.0, %v10081_v8  ;;  %10100 = vpow2.f32 %v5543_v47  ;;  %v13874_v0 = vpop.eup %10082  ;;  %v5454_v47 = vmin.f32 %v13865_v6, 20.0  ;;  %v13887_v8 = vadd.f32 %v13585_v53, %v13816_v63  ;;  %16222 = vst [vmem:[#allocation14_spill] sm:$0xff] %v13922_v56 }
 0x408   : > { %v13872_v43 = vpop.f32.mrb[106].mxu1  ;;  %10102 = vlog2.f32 %v5790_v12  ;;  %v10085_v41 = vpop.eup %10084  ;;  %v13938_v13 = vsel %vm5689_vm9, %v13717_v58, %v5896_v35  ;;  %vm5708_vm9 = vcmp.gt.f32.partialorder %v13739_v38, 20.0 }
 0x409   : > { %v13877_v52 = vpop.f32.mrb[107].mxu1  ;;  %10104 = vlog2.f32 %v5733_v15  ;;  %v10087_v12 = vpop.eup %10086  ;;  %v5932_v27 = vmul.f32 0.6931472, %v10085_v41  ;;  %v5583_v15 = vmul.f32 1.442695, %v5453_v51  ;;  %v5471_v63 = vmin.f32 %v13887_v8, 20.0 }
 0x40a   : > { %v13889_v60 = vpop.f32.mrb[108].mxu0  ;;  %10106 = vpow2.f32 %v5541_v28  ;;  %v13897_v4 = vpop.eup %10088  ;;  %v5751_v20 = vadd.f32 1.0, %v10087_v12  ;;  %v5473_v28 = vmin.f32 %v13893_v22, 20.0  ;;  %v5585_v12 = vmul.f32 1.442695, %v5454_v47  ;;  %16224 = vst [vmem:[#allocation16_spill] sm:$0xff] %v13938_v13 }
 0x40b   : > { %v13895_v44 = vpop.f32.mrb[109].mxu0  ;;  %16218 = vst [vmem:[#allocation10_spill] sm:$0xff] %v13897_v4  ;;  %10108 = vlog2.f32 %v5732_v5  ;;  %v13902_v14 = vpop.eup %10090  ;;  %v13907_v41 = vsel %vm5707_vm8, %v13730_v55, %v5932_v27  ;;  %vm5711_vm0 = vcmp.gt.f32.partialorder %v13887_v8, 20.0  ;;  %vm5655_vm8 = vcmp.gt.f32.partialorder %v13931_v42, 20.0 }
 0x40c   : > { %v13900_v6 = vpop.f32.mrb[108].mxu1  ;;  %16219 = vst [vmem:[#allocation11_spill] sm:$0xff] %v13902_v14  ;;  %16220 = vst [vmem:[#allocation12_spill] sm:$0xff] %v13907_v41  ;;  %10110 = vpow2.f32 %v5545_v40  ;;  %v10093_v5 = vpop.eup %10092  ;;  %v5619_v40 = vmul.f32 1.442695, %v5471_v63  ;;  %v5415_v41 = vmin.f32 %v13931_v42, 20.0 }
 0x40d   : > { %v13910_v25 = vpop.f32.mrb[109].mxu1  ;;  %10112 = vlog2.f32 %v5751_v20  ;;  %v10095_v55 = vpop.eup %10094  ;;  %v5936_v27 = vmul.f32 0.6931472, %v10093_v5  ;;  %v5623_v47 = vmul.f32 1.442695, %v5473_v28  ;;  %v5472_v20 = vmin.f32 %v13916_v32, 20.0 }
 0x40e   : > { %v13918_v14 = vpop.f32.mrb[110].mxu0  ;;  %10114 = vpow2.f32 %v5579_v11  ;;  %v13926_v9 = vpop.eup %10096  ;;  %v5507_v5 = vmul.f32 1.442695, %v5415_v41 }
 0x40f   : > { %v13924_v4 = vpop.f32.mrb[111].mxu0  ;;  %16223 = vst [vmem:[#allocation15_spill] sm:$0xff] %v13926_v9  ;;  %10116 = vpow2.f32 %v5583_v15  ;;  %v13943_v63 = vsel %vm5709_vm10, %v13735_v34, %v5936_v27  ;;  %v5474_v15 = vmin.f32 %v13922_v56, 20.0  ;;  %v5621_v32 = vmul.f32 1.442695, %v5472_v20 }
 0x410   : > { %v13933_v51 = vpop.f32.mrb[110].mxu1  ;;  %v10099_v11 = vpop.eup %10098  ;;  %16225 = vst [vmem:[#allocation17_spill] sm:$0xff] %v13943_v63  ;;  %10118 = vpow2.f32 %v5581_v61  ;;  %v5734_v61 = vadd.f32 1.0, %v10095_v55  ;;  %v13969_v55 = vadd.f32 %v13556_v21, %v13845_v33  ;;  %vm5688_vm10 = vcmp.gt.f32.partialorder %v13720_v50, 20.0 }
 0x411   : > { %v13946_v28 = vpop.f32.mrb[111].mxu1  ;;  %v10101_v37 = vpop.eup %10100  ;;  %10120 = vpow2.f32 %v5585_v12  ;;  %v5625_v35 = vmul.f32 1.442695, %v5474_v15  ;;  %v5820_v27 = vmul.f32 0.6931472, %v10099_v11  ;;  %v13959_v12 = vadd.f32 %v13556_v21, %v13852_v16 }
 0x412   : > { %v13950_v2 = vpop.eup %10102  ;;  %v5753_v58 = vadd.f32 1.0, %v10101_v37  ;;  %10122 = vpow2.f32 %v5619_v40  ;;  %v13953_v56 = vpop.f32.mrb[112].mxu0  ;;  %16228 = vst [vmem:[#allocation48_spill] sm:$0xff] %v13969_v55 }
 0x413   : > { %16226 = vst [vmem:[#allocation18_spill] sm:$0xff] %v13950_v2  ;;  %v10105_v34 = vpop.eup %10104  ;;  %10124 = vpow2.f32 %v5623_v47  ;;  %v13961_v20 = vpop.f32.mrb[113].mxu0  ;;  %v5417_v41 = vmin.f32 %v13959_v12, 20.0  ;;  %v13974_v37 = vsel %vm5651_vm11, %v13751_v45, %v5820_v27  ;;  %v5416_v27 = vmin.f32 %v13969_v55, 20.0 }
 0x414   : > { %v13955_v9 = vpop.f32.mrb[112].mxu1  ;;  %v10107_v30 = vpop.eup %10106  ;;  %10126 = vlog2.f32 %v5753_v58  ;;  %16229 = vst [vmem:[#allocation54_spill] sm:$0xff] %v13974_v37  ;;  %vm5657_vm11 = vcmp.gt.f32.partialorder %v13959_v12, 20.0 }
 0x415   : > { %v13963_v40 = vpop.f32.mrb[113].mxu1  ;;  %v13965_v15 = vpop.eup %10108  ;;  %v5752_v11 = vadd.f32 1.0, %v10107_v30  ;;  %10128 = vpow2.f32 %v5621_v32 }
 0x416   : > { %16227 = vst [vmem:[#allocation49_spill] sm:$0xff] %v13965_v15  ;;  %v10111_v47 = vpop.eup %10110  ;;  %10130 = vpow2.f32 %v5625_v35  ;;  %v13977_v58 = vpop.f32.mrb[114].mxu0  ;;  %v5511_v15 = vmul.f32 1.442695, %v5417_v41  ;;  %v13983_v35 = vadd.f32 %v13556_v21, %v13855_v18  ;;  %v13997_v18 = vadd.f32 %v13565_v24, %v13861_v17 }
 0x417   : > { %v10113_v16 = vpop.eup %10112  ;;  %10132 = vlog2.f32 %v5734_v61  ;;  %16230 = vst [vmem:[#allocation59_spill] sm:$0xff] %v13977_v58  ;;  %v5754_v63 = vadd.f32 1.0, %v10111_v47  ;;  %v13986_v61 = vpop.f32.mrb[115].mxu0  ;;  %v5824_v47 = vmul.f32 0.6931472, %v10105_v34  ;;  %v14009_v17 = vadd.f32 %v13565_v24, %v13872_v43 }
 0x418   : > { %v13979_v32 = vpop.f32.mrb[114].mxu1  ;;  %v10115_v30 = vpop.eup %10114  ;;  %v5860_v33 = vmul.f32 0.6931472, %v10113_v16  ;;  %10134 = vpow2.f32 %v5507_v5  ;;  %16231 = vst [vmem:[#allocation55_spill] sm:$0xff] %v13983_v35  ;;  %16232 = vst [vmem:[#allocation52_spill] sm:$0xff] %v13986_v61 }
 0x419   : > { %v10117_v13 = vpop.eup %10116  ;;  %10136 = vlog2.f32 %v5752_v11  ;;  %v5771_v45 = vadd.f32 1.0, %v10115_v30  ;;  %v13988_v2 = vpop.f32.mrb[115].mxu1 }
 0x41a   : > { %16233 = vst [vmem:[#allocation51_spill] sm:$0xff] %v13988_v2  ;;  %v10119_v58 = vpop.eup %10118  ;;  %v13993_v5 = vsel %vm5671_vm12, %v13776_v49, %v5860_v33  ;;  %v5773_v41 = vadd.f32 1.0, %v10117_v13  ;;  %10138 = vpow2.f32 %v5511_v15  ;;  %v14001_v55 = vpop.f32.mrb[116].mxu0  ;;  %v5418_v49 = vmin.f32 %v13983_v35, 20.0 }
 0x41b   : > { %16234 = vst [vmem:[#allocation50_spill] sm:$0xff] %v13993_v5  ;;  %v10121_v11 = vpop.eup %10120  ;;  %10140 = vlog2.f32 %v5771_v45  ;;  %v5772_v30 = vadd.f32 1.0, %v10119_v58  ;;  %v14011_v13 = vpop.f32.mrb[117].mxu0  ;;  %v5509_v45 = vmul.f32 1.442695, %v5416_v27  ;;  %v14018_v35 = vadd.f32 %v13565_v24, %v13867_v48 }
 0x41c   : > { %v14003_v2 = vpop.f32.mrb[116].mxu1  ;;  %v10123_v61 = vpop.eup %10122  ;;  %10142 = vlog2.f32 %v5773_v41  ;;  %16235 = vst [vmem:[#allocation44_spill] sm:$0xff] %v14011_v13  ;;  %v5774_v58 = vadd.f32 1.0, %v10121_v11  ;;  %v5435_v41 = vmin.f32 %v13997_v18, 20.0  ;;  %v14023_v5 = vsel %vm5653_vm13, %v13764_v3, %v5824_v47 }
 0x41d   : > { %v14013_v34 = vpop.f32.mrb[117].mxu1  ;;  %v10125_v15 = vpop.eup %10124  ;;  %10144 = vlog2.f32 %v5754_v63  ;;  %v5791_v33 = vadd.f32 1.0, %v10123_v61  ;;  %16237 = vst [vmem:[#allocation23_spill] sm:$0xff] %v14018_v35  ;;  %16238 = vst [vmem:[#allocation46_spill] sm:$0xff] %v14023_v5  ;;  %v5437_v48 = vmin.f32 %v14009_v17, 20.0  ;;  %vm5675_vm12 = vcmp.gt.f32.partialorder %v13997_v18, 20.0 }
 0x41e   : > { %16236 = vst [vmem:[#allocation24_spill] sm:$0xff] %v14013_v34  ;;  %v10127_v16 = vpop.eup %10126  ;;  %10146 = vlog2.f32 %v5772_v30  ;;  %v5793_v37 = vadd.f32 1.0, %v10125_v15  ;;  %v14026_v27 = vpop.f32.mrb[118].mxu0  ;;  %v5513_v15 = vmul.f32 1.442695, %v5418_v49  ;;  %vm5677_vm13 = vcmp.gt.f32.partialorder %v14009_v17, 20.0 }
 0x41f   : > { %v10129_v43 = vpop.eup %10128  ;;  %v5864_v63 = vmul.f32 0.6931472, %v10127_v16  ;;  %10148 = vlog2.f32 %v5791_v33  ;;  %v14031_v34 = vpop.f32.mrb[119].mxu0  ;;  %v14042_v33 = vadd.f32 %v13565_v24, %v13877_v52 }
 0x420   : > { %v14028_v61 = vpop.f32.mrb[118].mxu1  ;;  %v10131_v11 = vpop.eup %10130  ;;  %10150 = vlog2.f32 %v5793_v37  ;;  %v5792_v30 = vadd.f32 1.0, %v10129_v43  ;;  %16239 = vst [vmem:[#allocation25_spill] sm:$0xff] %v14031_v34  ;;  %v5547_v43 = vmul.f32 1.442695, %v5435_v41  ;;  %v5436_v34 = vmin.f32 %v14018_v35, 20.0 }
 0x421   : > { %v14033_v13 = vpop.f32.mrb[119].mxu1  ;;  %v14035_v3 = vpop.eup %10132  ;;  %v14038_v47 = vsel %vm5673_vm14, %v13814_v19, %v5864_v63  ;;  %v5794_v16 = vadd.f32 1.0, %v10131_v11  ;;  %10152 = vpow2.f32 %v5509_v45  ;;  %16242 = vst [vmem:[#allocation31_spill] sm:$0xff] %v14042_v33  ;;  %v14052_v45 = vadd.f32 %v13575_v39, %v13889_v60 }
 0x422   : > { %16240 = vst [vmem:[#allocation57_spill] sm:$0xff] %v14033_v13  ;;  %16241 = vst [vmem:[#allocation61_spill] sm:$0xff] %v14038_v47  ;;  %v10135_v37 = vpop.eup %10134  ;;  %10154 = vlog2.f32 %v5774_v58  ;;  %v5551_v58 = vmul.f32 1.442695, %v5437_v48  ;;  %v14058_v41 = vadd.f32 %v13575_v39, %v13900_v6  ;;  %v14062_v63 = vadd.f32 %v13575_v39, %v13895_v44 }
 0x423   : > { %v14047_v13 = vpop.eup %10136  ;;  %10156 = vlog2.f32 %v5792_v30  ;;  %v5735_v19 = vadd.f32 1.0, %v10135_v37  ;;  %v5438_v60 = vmin.f32 %v14042_v33, 20.0  ;;  %v5455_v37 = vmin.f32 %v14052_v45, 20.0 }
 0x424   : > { %v10139_v52 = vpop.eup %10138  ;;  %10158 = vlog2.f32 %v5794_v16  ;;  %16243 = vst [vmem:[#allocation62_spill] sm:$0xff] %v14062_v63  ;;  %v5549_v16 = vmul.f32 1.442695, %v5436_v34  ;;  %v5457_v48 = vmin.f32 %v14058_v41, 20.0 }
 0x425   : > { %v10141_v11 = vpop.eup %10140  ;;  %v5737_v30 = vadd.f32 1.0, %v10139_v52  ;;  %10160 = vpow2.f32 %v5513_v15  ;;  %v5587_v44 = vmul.f32 1.442695, %v5455_v37  ;;  %v5456_v52 = vmin.f32 %v14062_v63, 20.0 }
 0x426   : > { %v10143_v49 = vpop.eup %10142  ;;  %v5900_v35 = vmul.f32 0.6931472, %v10141_v11  ;;  %10162 = vpow2.f32 %v5547_v43  ;;  %v5591_v15 = vmul.f32 1.442695, %v5457_v48  ;;  %v14075_v11 = vadd.f32 %v13575_v39, %v13910_v25 }
 0x427   : > { %v14067_v5 = vpop.eup %10144  ;;  %v5904_v6 = vmul.f32 0.6931472, %v10143_v49  ;;  %10164 = vlog2.f32 %v5735_v19  ;;  %v5553_v43 = vmul.f32 1.442695, %v5438_v60  ;;  %v5814_v37 = vmul.f32 0.6931472, %v13780_v26 }
 0x428   : > { %v14070_v47 = vpop.eup %10146  ;;  %10166 = vpow2.f32 %v5551_v58  ;;  %v14082_v19 = vsel %vm5691_vm15, %v13843_v7, %v5900_v35  ;;  %v5589_v7 = vmul.f32 1.442695, %v5456_v52  ;;  %v5458_v35 = vmin.f32 %v14075_v11, 20.0 }
 0x429   : > { %v10149_v34 = vpop.eup %10148  ;;  %10168 = vlog2.f32 %v5737_v30  ;;  %v14088_v25 = vsel %vm5693_vm4, %v13850_v23, %v5904_v6  ;;  %v5854_v30 = vmul.f32 0.6931472, %v13820_v46  ;;  %v5968_v46 = vsel %vm5648_vm3, %v13679_v36, %v5814_v37 }
 0x42a   : > { %v10151_v49 = vpop.eup %10150  ;;  %v5940_v58 = vmul.f32 0.6931472, %v10149_v34  ;;  %10170 = vpow2.f32 %v5549_v16  ;;  %v5818_v34 = vmul.f32 0.6931472, %v13809_v29  ;;  %v14120_v36 = vadd.f32 %v13585_v53, %v13918_v14 }
 0x42b   : > { %v10153_v48 = vpop.eup %10152  ;;  %v5944_v63 = vmul.f32 0.6931472, %v10151_v49  ;;  %10172 = vpow2.f32 %v5587_v44  ;;  %v14131_v14 = vadd.f32 %v13585_v53, %v13933_v51  ;;  %v16245_v51 = vpack.c.bf16 %v13806_v10, %v13793_v59 }
 0x42c   : > { %v14091_v60 = vpop.eup %10154  ;;  %v14094_v33 = vsel %vm5711_vm0, %v13887_v8, %v5940_v58  ;;  %10174 = vpow2.f32 %v5591_v15  ;;  %v5988_v8 = vsel %vm5668_vm1, %v13706_v1, %v5854_v30  ;;  %v5736_v15 = vadd.f32 1.0, %v10153_v48 }
 0x42d   : > { %v14097_v26 = vpop.eup %10156  ;;  %v14104_v23 = vsel %vm5713_vm5, %v13893_v22, %v5944_v63  ;;  %v9030_v52 = vpack.c.bf16 %v5988_v8, %v5968_v46  ;;  %10176 = vpow2.f32 %v5553_v43  ;;  %v5858_v22 = vmul.f32 0.6931472, %v13874_v0 }
 0x42e   : > { %v14112_v6 = vpop.eup %10158  ;;  %10178 = vpow2.f32 %v5589_v7  ;;  %v5593_v1 = vmul.f32 1.442695, %v5458_v35  ;;  %v5970_v29 = vsel %vm5650_vm6, %v13685_v54, %v5818_v34  ;;  %v16244_v0 = vpack.c.bf16 %v13798_v57, %v13785_v31 }
 0x42f   : > { %v10161_v49 = vpop.eup %10160  ;;  %9031 = vmatprep.subr.bf16.mxu0 %v9030_v52  ;;  %v5990_v43 = vsel %vm5670_vm7, %v13711_v62, %v5858_v22  ;;  %10180 = vlog2.f32 %v5736_v15  ;;  %v14135_v7 = vadd.f32 %v13585_v53, %v13924_v4  ;;  %v5475_v62 = vmin.f32 %v14120_v36, 20.0 }
 0x430   : > { %v10163_v63 = vpop.eup %10162  ;;  %9033 = vmatpush1.bf16.msra.mxu0 %v16244_v0  ;;  %v9038_v30 = vpack.c.bf16 %v5990_v43, %v5970_v29  ;;  %v5738_v8 = vadd.f32 1.0, %v10161_v49  ;;  %v5477_v4 = vmin.f32 %v14131_v14, 20.0  ;;  %v14147_v22 = vadd.f32 %v13585_v53, %v13946_v28  ;;  %v16246_v0 = vld [vmem:[#allocation33_spill] sm:$0xff] }
 0x431   : > { %v10165_v58 = vpop.eup %10164  ;;  %v5755_v37 = vadd.f32 1.0, %v10163_v63  ;;  %v5476_v49 = vmin.f32 %v14135_v7, 20.0  ;;  %v14152_v59 = vadd.f32 %v13556_v21, %v13953_v56  ;;  %v14156_v10 = vadd.f32 %v13556_v21, %v13955_v9  ;;  %v16247_v9 = vld [vmem:[#allocation19_spill] sm:$0xff] }
 0x432   : > { %v10167_v48 = vpop.eup %10166  ;;  %9039 = vmatprep.subr.bf16.mxu1 %v9038_v30  ;;  %v5828_v57 = vmul.f32 0.6931472, %v10165_v58  ;;  %v5478_v28 = vmin.f32 %v14147_v22, 20.0  ;;  %vm5690_vm14 = vcmp.gt.f32.partialorder %v16246_v0, 20.0  ;;  %vm5710_vm15 = vcmp.gt.f32.partialorder %v16247_v9, 20.0 }
 0x433   : > { %v10169_v35 = vpop.eup %10168  ;;  %10182 = vlog2.f32 %v5755_v37  ;;  %v5757_v54 = vadd.f32 1.0, %v10167_v48  ;;  %9041 = vmatpush1.bf16.msra.mxu1 %v16245_v51  ;;  %v5631_v37 = vmul.f32 1.442695, %v5477_v4  ;;  %v5419_v29 = vmin.f32 %v14152_v59, 20.0 }
 0x434   : > { %v10171_v46 = vpop.eup %10170  ;;  %10184 = vpow2.f32 %v5593_v1  ;;  %v5832_v52 = vmul.f32 0.6931472, %v10169_v35  ;;  %v5627_v1 = vmul.f32 1.442695, %v5475_v62  ;;  %v5421_v56 = vmin.f32 %v14156_v10, 20.0 }
 0x435   : > { %v10173_v31 = vpop.eup %10172  ;;  %10186 = vlog2.f32 %v5757_v54  ;;  %v14169_v48 = vsel %vm5655_vm8, %v13931_v42, %v5828_v57  ;;  %v5629_v35 = vmul.f32 1.442695, %v5476_v49  ;;  %v5756_v54 = vadd.f32 1.0, %v10171_v46  ;;  %v16249_v42 = vld [vmem:[#allocation10_spill] sm:$0xff] }
 0x436   : > { %v10175_v15 = vpop.eup %10174  ;;  %v5775_v34 = vadd.f32 1.0, %v10173_v31  ;;  %10188 = vlog2.f32 %v5738_v8  ;;  %v14172_v30 = vsel %vm5657_vm11, %v13959_v12, %v5832_v52  ;;  %v5633_v62 = vmul.f32 1.442695, %v5478_v28  ;;  %v16250_v12 = vld [vmem:[#allocation15_spill] sm:$0xff] }
 0x437   : > { %v5777_v63 = vadd.f32 1.0, %v10175_v15  ;;  %v10177_v58 = vpop.eup %10176  ;;  %16248 = vst [vmem:[#allocation47_spill] sm:$0xff] %v14172_v30  ;;  %v14176_v8 = vadd.f32 %v13556_v21, %v13961_v20  ;;  %v5515_v51 = vmul.f32 1.442695, %v5419_v29  ;;  %v14182_v4 = vadd.f32 %v13556_v21, %v13963_v40 }
 0x438   : > { %10190 = vlog2.f32 %v5775_v34  ;;  %v10179_v43 = vpop.eup %10178  ;;  %v5894_v57 = vmul.f32 0.6931472, %v16249_v42  ;;  %v5934_v15 = vmul.f32 0.6931472, %v16250_v12  ;;  %v5758_v34 = vadd.f32 1.0, %v10177_v58  ;;  %v16251_v42 = vld [vmem:[#allocation11_spill] sm:$0xff] }
 0x439   : > { %10192 = vlog2.f32 %v5777_v63  ;;  %v14178_v31 = vpop.eup %10180  ;;  %v5519_v46 = vmul.f32 1.442695, %v5421_v56  ;;  %v5420_v49 = vmin.f32 %v14176_v8, 20.0  ;;  %v5422_v28 = vmin.f32 %v14182_v4, 20.0 }
 0x43a   : > { %10194 = vpow2.f32 %v5627_v1  ;;  %v5776_v1 = vadd.f32 1.0, %v10179_v43  ;;  %v6028_v40 = vsel %vm5708_vm9, %v13739_v38, %v5934_v15  ;;  %v5898_v12 = vmul.f32 0.6931472, %v16251_v42 }
 0x43b   : > { %10196 = vpow2.f32 %v5631_v37  ;;  %v5517_v21 = vmul.f32 1.442695, %v5420_v49  ;;  %v6008_v56 = vsel %vm5688_vm10, %v13720_v50, %v5894_v57  ;;  %vm5695_vm0 = vcmp.gt.f32.partialorder %v14052_v45, 20.0 }
 0x43c   : > { %10198 = vpow2.f32 %v5629_v35  ;;  %v9034_v35 = vpack.c.bf16 %v6028_v40, %v6008_v56  ;;  %v16258_v56 = vld [vmem:[#allocation52_spill] sm:$0xff]  ;;  %vm5715_vm6 = vcmp.gt.f32.partialorder %v14120_v36, 20.0  ;;  %vm5697_vm7 = vcmp.gt.f32.partialorder %v14058_v41, 20.0 }
 0x43d   : > { %v10183_v52 = vpop.eup %10182  ;;  %10200 = vpow2.f32 %v5633_v62  ;;  %v16252_v62 = vld [vmem:[#allocation18_spill] sm:$0xff]  ;;  %vm5717_vm8 = vcmp.gt.f32.partialorder %v14131_v14, 20.0 }
 0x43e   : > { %v10185_v63 = vpop.eup %10184  ;;  %v5868_v20 = vmul.f32 0.6931472, %v10183_v52  ;;  %10202 = vpow2.f32 %v5515_v51  ;;  %v5938_v38 = vmul.f32 0.6931472, %v16252_v62  ;;  %v5521_v51 = vmul.f32 1.442695, %v5422_v28  ;;  %9035 = vmatprep.subr.bf16.mxu0 %v9034_v35 }
 0x43f   : > { %v10187_v29 = vpop.eup %10186  ;;  %10204 = vpow2.f32 %v5519_v46  ;;  %v16254_v52 = vld [vmem:[#allocation59_spill] sm:$0xff]  ;;  %v6010_v46 = vsel %vm5690_vm14, %v16246_v0, %v5898_v12  ;;  %v16255_v28 = vld [vmem:[#allocation12_spill] sm:$0xff] }
 0x440   : > { %v14195_v58 = vsel %vm5675_vm12, %v13997_v18, %v5868_v20  ;;  %v5872_v37 = vmul.f32 0.6931472, %v10187_v29  ;;  %v14203_v15 = vpop.eup %10188  ;;  %10206 = vlog2.f32 %v5756_v54  ;;  %v14212_v49 = vadd.f32 %v13565_v24, %v16254_v52  ;;  %v16256_v29 = vld [vmem:[#allocation9_spill] sm:$0xff]  ;;  %v16261_v52 = vld [vmem:[#allocation16_spill] sm:$0xff] }
 0x441   : > { %10208 = vpow2.f32 %v5517_v21  ;;  %v16257_v40 = vpack.c.bf16 %v16255_v28, %v16256_v29  ;;  %v14228_v21 = vadd.f32 %v13565_v24, %v13979_v32  ;;  %v14247_v32 = vadd.f32 %v13575_v39, %v14001_v55  ;;  %v16265_v29 = vld [vmem:[#allocation34_spill] sm:$0xff] }
 0x442   : > { %v14208_v18 = vsel %vm5677_vm13, %v14009_v17, %v5872_v37  ;;  %v10191_v50 = vpop.eup %10190  ;;  %v6030_v17 = vsel %vm5710_vm15, %v16247_v9, %v5938_v38  ;;  %10210 = vlog2.f32 %v5758_v34  ;;  %v5439_v42 = vmin.f32 %v14212_v49, 20.0  ;;  %v16259_v34 = vld [vmem:[#allocation51_spill] sm:$0xff]  ;;  %v16260_v38 = vld [vmem:[#allocation17_spill] sm:$0xff] }
 0x443   : > { %16253 = vst [vmem:[#allocation40_spill] sm:$0xff] %v14208_v18  ;;  %v10193_v54 = vpop.eup %10192  ;;  %v9042_v20 = vpack.c.bf16 %v6030_v17, %v6010_v46  ;;  %9037 = vmatpush1.bf16.msra.mxu0 %v16257_v40  ;;  %10212 = vlog2.f32 %v5776_v1  ;;  %v14232_v9 = vadd.f32 %v13565_v24, %v16258_v56  ;;  %v14236_v35 = vadd.f32 %v13565_v24, %v16259_v34  ;;  %v14241_v46 = vld [vmem:[#allocation3 + $0x40] sm:$0xff]  ;;  %v16266_v40 = vld [vmem:[#allocation29_spill] sm:$0xff] }
 0x444   : > { %v10195_v37 = vpop.eup %10194  ;;  %v5555_v12 = vmul.f32 1.442695, %v5439_v42  ;;  %10214 = vpow2.f32 %v5521_v51  ;;  %v16262_v1 = vpack.c.bf16 %v16260_v38, %v16261_v52  ;;  %16263 = vst [vmem:[#allocation39_spill] sm:$0xff] %v14247_v32  ;;  %v16264_v28 = vmov 0.0   ;;  %v16267_v38 = vld [vmem:[#allocation30_spill] sm:$0xff] }
 0x445   : > { %v5795_v0 = vadd.f32 1.0, %v10195_v37  ;;  %9043 = vmatprep.subr.bf16.mxu1 %v9042_v20  ;;  %v10197_v62 = vpop.eup %10196  ;;  %v5778_v20 = vadd.f32 1.0, %v10185_v63  ;;  %vm5652_vm3 = vcmp.gt.f32.partialorder %v16265_v29, 20.0  ;;  %vm5672_vm1 = vcmp.gt.f32.partialorder %v16266_v40, 20.0 }
 0x446   : > { %9045 = vmatpush1.bf16.msra.mxu1 %v16262_v1  ;;  %8808 = vmatmul.mubr.msk.f32.vlgmr.msra.gmra.mrb[128].mxu0 %vm1941_vm2, %v14241_v46  ;;  %v10199_v17 = vpop.eup %10198  ;;  %v5797_v24 = vadd.f32 1.0, %v10197_v62  ;;  %v5908_v42 = vmul.f32 0.6931472, %v10191_v50  ;;  %v5441_v56 = vmin.f32 %v14228_v21, 20.0  ;;  %vm5654_vm4 = vcmp.gt.f32.partialorder %v16267_v38, 20.0  ;;  %v16268_v62 = vld [vmem:[#allocation42_spill] sm:$0xff] }
 0x447   : > { %10216 = vlog2.f32 %v5795_v0  ;;  %6333 = vmatprep.mubr.f32.mxu0 %v16264_v28  ;;  %v10201_v51 = vpop.eup %10200  ;;  %v5796_v37 = vadd.f32 1.0, %v10199_v17  ;;  %v5440_v55 = vmin.f32 %v14232_v9, 20.0  ;;  %v5442_v63 = vmin.f32 %v14236_v35, 20.0  ;;  %v14266_v17 = vld [vmem:[#allocation3 + $0x48] sm:$0xff] }
 0x448   : > { %10218 = vpow2.f32 %v5555_v12  ;;  %v10203_v34 = vpop.eup %10202  ;;  %vm5674_vm5 = vcmp.gt.f32.partialorder %v16268_v62, 20.0  ;;  %v5798_v50 = vadd.f32 1.0, %v10201_v51  ;;  %v5459_v52 = vmin.f32 %v14247_v32, 20.0 }
 0x449   : > { %10220 = vlog2.f32 %v5797_v24  ;;  %8812 = vmatmul.mubr.msk.f32.vlgmr.msra.gmra.mrb[128].mxu1 %vm1941_vm2, %v14241_v46  ;;  %v10205_v0 = vpop.eup %10204  ;;  %v5739_v12 = vadd.f32 1.0, %v10203_v34  ;;  %v14263_v1 = vadd.f32 %v13575_v39, %v14003_v2  ;;  %v14272_v57 = vmul.f32 0.6931472, %v10193_v54  ;;  %v16270_v34 = vld [vmem:[#allocation44_spill] sm:$0xff] }
 0x44a   : > { %6422 = vmatprep.mubr.f32.mxu1 %v16264_v28  ;;  %8809 = vmatmul.mubr.msk.f32.gmra.mrb[130].mxu0 %vm1941_vm2, %v14266_v17  ;;  %v14270_v24 = vpop.eup %10206  ;;  %10222 = vlog2.f32 %v5778_v20  ;;  %v5741_v51 = vadd.f32 1.0, %v10205_v0  ;;  %v14277_v43 = vadd.f32 %v13575_v39, %v16270_v34  ;;  %v14283_v44 = vsel %vm5695_vm0, %v14052_v45, %v5908_v42 }
 0x44b   : > { %16269 = vst [vmem:[#allocation64_spill] sm:$0xff] %v14263_v1  ;;  %6339 = vmatprep.mubr.f32.mxu0 %v16264_v28  ;;  %v10209_v2 = vpop.eup %10208  ;;  %10224 = vlog2.f32 %v5796_v37  ;;  %v5559_v54 = vmul.f32 1.442695, %v5441_v56  ;;  %v5461_v20 = vmin.f32 %v14263_v1, 20.0  ;;  %v5557_v0 = vmul.f32 1.442695, %v5440_v55 }
 0x44c   : > { %16271 = vst [vmem:[#allocation63_spill] sm:$0xff] %v14277_v43  ;;  %v14287_v16 = vpop.eup %10210  ;;  %10226 = vlog2.f32 %v5739_v12  ;;  %v5561_v34 = vmul.f32 1.442695, %v5442_v63  ;;  %v5460_v32 = vmin.f32 %v14277_v43, 20.0  ;;  %v5595_v42 = vmul.f32 1.442695, %v5459_v52 }
 0x44d   : > { %8813 = vmatmul.mubr.msk.f32.gmra.mrb[130].mxu1 %vm1941_vm2, %v14266_v17  ;;  %v14293_v45 = vpop.eup %10212  ;;  %10228 = vlog2.f32 %v5798_v50  ;;  %v16272_v37 = vld [vmem:[#allocation24_spill] sm:$0xff]  ;;  %v16274_v1 = vld [vmem:[#allocation49_spill] sm:$0xff]  ;;  %v14301_v12 = vld [vmem:[#allocation3 + $0x50] sm:$0xff]  ;;  %v5740_v55 = vadd.f32 1.0, %v10209_v2  ;;  %v5862_v63 = vmul.f32 0.6931472, %v14047_v13 }
 0x44e   : > { %v14297_v56 = vadd.f32 %v13575_v39, %v16272_v37  ;;  %v5822_v30 = vmul.f32 0.6931472, %v16274_v1  ;;  %6428 = vmatprep.mubr.f32.mxu1 %v16264_v28  ;;  %8810 = vmatmul.mubr.msk.f32.gmra.mrb[132].mxu0 %vm1941_vm2, %v14301_v12  ;;  %10230 = vlog2.f32 %v5741_v51  ;;  %v5826_v50 = vmul.f32 0.6931472, %v14035_v3  ;;  %v10215_v52 = vpop.eup %10214 }
 0x44f   : > { %6345 = vmatprep.mubr.f32.mxu0 %v16264_v28  ;;  %10232 = vpow2.f32 %v5559_v54  ;;  %v5599_v39 = vmul.f32 1.442695, %v5461_v20  ;;  %v5597_v37 = vmul.f32 1.442695, %v5460_v32  ;;  %v5992_v13 = vsel %vm5672_vm1, %v16266_v40, %v5862_v63  ;;  %v16276_v40 = vld [vmem:[#allocation41_spill] sm:$0xff]  ;;  %v16278_v63 = vld [vmem:[#allocation50_spill] sm:$0xff] }
 0x450   : > { %16273 = vst [vmem:[#allocation60_spill] sm:$0xff] %v14297_v56  ;;  %v5462_v1 = vmin.f32 %v14297_v56, 20.0  ;;  %10234 = vpow2.f32 %v5557_v0  ;;  %v5972_v18 = vsel %vm5652_vm3, %v16265_v29, %v5822_v30  ;;  %v5866_v3 = vmul.f32 0.6931472, %v14067_v5  ;;  %v14322_v30 = vld [vmem:[#allocation3 + $0x58] sm:$0xff] }
 0x451   : > { %v10217_v43 = vpop.eup %10216  ;;  %8814 = vmatmul.mubr.msk.f32.gmra.mrb[132].mxu1 %vm1941_vm2, %v14301_v12  ;;  %10236 = vpow2.f32 %v5561_v34  ;;  %v9046_v32 = vpack.c.bf16 %v5992_v13, %v5972_v18  ;;  %v5974_v54 = vsel %vm5654_vm4, %v16267_v38, %v5826_v50  ;;  %v14331_v18 = vadd.f32 %v13585_v53, %v14026_v27  ;;  %v16277_v38 = vld [vmem:[#allocation13_spill] sm:$0xff]  ;;  %v16279_v50 = vld [vmem:[#allocation54_spill] sm:$0xff] }
 0x452   : > { %v10219_v51 = vpop.eup %10218  ;;  %v5948_v2 = vmul.f32 0.6931472, %v10217_v43  ;;  %6434 = vmatprep.mubr.f32.mxu1 %v16264_v28  ;;  %8811 = vmatmul.mubr.msk.f32.gmra.mrb[134].mxu0 %vm1941_vm2, %v14322_v30  ;;  %10238 = vpow2.f32 %v5595_v42  ;;  %v5994_v43 = vsel %vm5674_vm5, %v16268_v62, %v5866_v3  ;;  %vm5692_vm9 = vcmp.gt.f32.partialorder %v16276_v40, 20.0 }
 0x453   : > { %v10221_v29 = vpop.eup %10220  ;;  %v5759_v5 = vadd.f32 1.0, %v10219_v51  ;;  %16275 = vst [vmem:[#allocation45_spill] sm:$0xff] %v14331_v18  ;;  %6505 = vmatprep.mubr.f32.mxu0 %v16264_v28  ;;  %vm5712_vm10 = vcmp.gt.f32.partialorder %v16277_v38, 20.0  ;;  %10240 = vpow2.f32 %v5599_v39  ;;  %9047 = vmatprep.subr.bf16.mxu0 %v9046_v32  ;;  %v9054_v34 = vpack.c.bf16 %v5994_v43, %v5974_v54  ;;  %v16282_v51 = vld [vmem:[#allocation25_spill] sm:$0xff]  ;;  %v16284_v54 = vld [vmem:[#allocation43_spill] sm:$0xff] }
 0x454   : > { %v14339_v20 = vsel %vm5715_vm6, %v14120_v36, %v5948_v2  ;;  %v5952_v0 = vmul.f32 0.6931472, %v10221_v29  ;;  %v14341_v62 = vpop.eup %10222  ;;  %v14347_v27 = vsel %vm5697_vm7, %v14058_v41, %v14272_v57  ;;  %v16280_v36 = vpack.c.bf16 %v16278_v63, %v16279_v50  ;;  %v16290_v29 = vld [vmem:[#allocation23_spill] sm:$0xff] }
 0x455   : > { %10242 = vlog2.f32 %v5759_v5  ;;  %v5479_v39 = vmin.f32 %v14331_v18, 20.0  ;;  %8815 = vmatmul.mubr.msk.f32.gmra.mrb[134].mxu1 %vm1941_vm2, %v14322_v30  ;;  %v14357_v13 = vpop.eup %10224  ;;  %v5742_v57 = vadd.f32 1.0, %v10215_v52  ;;  %9055 = vmatprep.subr.bf16.mxu1 %v9054_v34  ;;  %v14366_v3 = vadd.f32 %v13585_v53, %v14028_v61  ;;  %v16285_v52 = vld [vmem:[#allocation61_spill] sm:$0xff]  ;;  %v16286_v5 = vld [vmem:[#allocation46_spill] sm:$0xff]  ;;  %v16292_v18 = vld [vmem:[#allocation55_spill] sm:$0xff] }
 0x456   : > { %9049 = vmatpush1.bf16.msra.mxu0 %v16280_v36  ;;  %v14362_v41 = vsel %vm5717_vm8, %v14131_v14, %v5952_v0  ;;  %v14370_v2 = vadd.f32 %v13585_v53, %v16282_v51  ;;  %6594 = vmatprep.mubr.f32.mxu1 %v16264_v28  ;;  %v10227_v32 = vpop.eup %10226  ;;  %vm5694_vm11 = vcmp.gt.f32.partialorder %v16284_v54, 20.0  ;;  %10244 = vpow2.f32 %v5597_v37  ;;  %v16288_v34 = vld [vmem:[#allocation14_spill] sm:$0xff]  ;;  %v16289_v51 = vld [vmem:[#allocation48_spill] sm:$0xff]  ;;  %v16291_v37 = vld [vmem:[#allocation57_spill] sm:$0xff] }
 0x457   : > { %16281 = vst [vmem:[#allocation58_spill] sm:$0xff] %v14366_v3  ;;  %v5601_v14 = vmul.f32 1.442695, %v5462_v1  ;;  %v16287_v43 = vpack.c.bf16 %v16285_v52, %v16286_v5  ;;  %v5635_v61 = vmul.f32 1.442695, %v5479_v39  ;;  %v14379_v0 = vpop.eup %10228  ;;  %vm5714_vm12 = vcmp.gt.f32.partialorder %v16288_v34, 20.0 }
 0x458   : > { %16283 = vst [vmem:[#allocation26_spill] sm:$0xff] %v14370_v2  ;;  %10246 = vlog2.f32 %v5740_v55  ;;  %v5481_v63 = vmin.f32 %v14366_v3, 20.0  ;;  %v5480_v50 = vmin.f32 %v14370_v2, 20.0  ;;  %v10231_v36 = vpop.eup %10230  ;;  %vm5656_vm13 = vcmp.gt.f32.partialorder %v16289_v51, 20.0 }
 0x459   : > { %9057 = vmatpush1.bf16.msra.mxu1 %v16287_v43  ;;  %vm5676_vm14 = vcmp.gt.f32.partialorder %v16290_v29, 20.0  ;;  %vm5659_vm15 = vcmp.gt.f32.partialorder %v14152_v59, 20.0  ;;  %vm5679_vm3 = vcmp.gt.f32.partialorder %v14212_v49, 20.0  ;;  %10248 = vpow2.f32 %v5635_v61  ;;  %v10233_v39 = vpop.eup %10232 }
 0x45a   : > { %v14390_v1 = vadd.f32 %v13585_v53, %v16291_v37  ;;  %v5836_v55 = vmul.f32 0.6931472, %v10227_v32  ;;  %10250 = vlog2.f32 %v5742_v57  ;;  %v5639_v52 = vmul.f32 1.442695, %v5481_v63  ;;  %v10235_v43 = vpop.eup %10234  ;;  %v16293_v57 = vld [vmem:[#allocation31_spill] sm:$0xff]  ;;  %v16294_v63 = vld [vmem:[#allocation62_spill] sm:$0xff] }
 0x45b   : > { %v5902_v5 = vmul.f32 0.6931472, %v14070_v47  ;;  %v5761_v42 = vadd.f32 1.0, %v10233_v39  ;;  %10252 = vpow2.f32 %v5601_v14  ;;  %v5637_v56 = vmul.f32 1.442695, %v5480_v50  ;;  %v10237_v3 = vpop.eup %10236 }
 0x45c   : > { %v5942_v2 = vmul.f32 0.6931472, %v14097_v26  ;;  %vm5658_vm1 = vcmp.gt.f32.partialorder %v16292_v18, 20.0  ;;  %v5760_v61 = vadd.f32 1.0, %v10235_v43  ;;  %10254 = vpow2.f32 %v5639_v52  ;;  %v10239_v32 = vpop.eup %10238 }
 0x45d   : > { %v5482_v53 = vmin.f32 %v14390_v1, 20.0  ;;  %v5906_v37 = vmul.f32 0.6931472, %v14091_v60  ;;  %vm5678_vm4 = vcmp.gt.f32.partialorder %v16293_v57, 20.0  ;;  %vm5696_vm0 = vcmp.gt.f32.partialorder %v16294_v63, 20.0  ;;  %v10241_v50 = vpop.eup %10240 }
 0x45e   : > { %10256 = vlog2.f32 %v5761_v42  ;;  %v5762_v47 = vadd.f32 1.0, %v10237_v3  ;;  %v6012_v26 = vsel %vm5692_vm9, %v16276_v40, %v5902_v5  ;;  %v6032_v14 = vsel %vm5712_vm10, %v16277_v38, %v5942_v2 }
 0x45f   : > { %vm5698_vm5 = vcmp.gt.f32.partialorder %v14075_v11, 20.0  ;;  %vm5716_vm6 = vcmp.gt.f32.partialorder %v14135_v7, 20.0  ;;  %10258 = vlog2.f32 %v5760_v61  ;;  %v5779_v60 = vadd.f32 1.0, %v10239_v32  ;;  %v10243_v42 = vpop.eup %10242 }
 0x460   : > { %v9050_v39 = vpack.c.bf16 %v6032_v14, %v6012_v26  ;;  %v5946_v52 = vmul.f32 0.6931472, %v14112_v6  ;;  %vm5718_vm7 = vcmp.gt.f32.partialorder %v14147_v22, 20.0  ;;  %v14409_v3 = vmul.f32 0.6931472, %v10231_v36  ;;  %v10245_v61 = vpop.eup %10244 }
 0x461   : > { %10260 = vlog2.f32 %v5762_v47  ;;  %v5781_v40 = vadd.f32 1.0, %v10241_v50  ;;  %v5830_v5 = vmul.f32 0.6931472, %v14178_v31  ;;  %v5876_v38 = vmul.f32 0.6931472, %v10243_v42 }
 0x462   : > { %9051 = vmatprep.subr.bf16.mxu0 %v9050_v39  ;;  %v6014_v2 = vsel %vm5694_vm11, %v16284_v54, %v5906_v37  ;;  %v6034_v43 = vsel %vm5714_vm12, %v16288_v34, %v5946_v52  ;;  %v5870_v6 = vmul.f32 0.6931472, %v14270_v24  ;;  %v14422_v36 = vsel %vm5659_vm15, %v14152_v59, %v5836_v55  ;;  %v10247_v34 = vpop.eup %10246 }
 0x463   : > { %vm5661_vm8 = vcmp.gt.f32.partialorder %v14156_v10, 20.0  ;;  %vm5681_vm9 = vcmp.gt.f32.partialorder %v14228_v21, 20.0  ;;  %10262 = vlog2.f32 %v5779_v60  ;;  %v5641_v31 = vmul.f32 1.442695, %v5482_v53 }
 0x464   : > { %v9058_v32 = vpack.c.bf16 %v6034_v43, %v6014_v2  ;;  %v16295_v54 = vpack.c.bf16 %v14094_v33, %v14082_v19  ;;  %vm5660_vm10 = vcmp.gt.f32.partialorder %v14176_v8, 20.0  ;;  %v14433_v24 = vsel %vm5679_vm3, %v14212_v49, %v5876_v38  ;;  %v10249_v19 = vpop.eup %10248  ;;  %v16298_v43 = vld [vmem:[#allocation40_spill] sm:$0xff] }
 0x465   : > { %vm5680_vm11 = vcmp.gt.f32.partialorder %v14232_v9, 20.0  ;;  %10264 = vpow2.f32 %v5637_v56  ;;  %v5976_v59 = vsel %vm5656_vm13, %v16289_v51, %v5830_v5  ;;  %v5996_v33 = vsel %vm5676_vm14, %v16290_v29, %v5870_v6  ;;  %v10251_v53 = vpop.eup %10250  ;;  %v16299_v6 = vld [vmem:[#allocation47_spill] sm:$0xff] }
 0x466   : > { %9053 = vmatpush1.bf16.msra.mxu0 %v16295_v54  ;;  %vm5662_vm12 = vcmp.gt.f32.partialorder %v14182_v4, 20.0  ;;  %v9080_v55 = vpack.c.bf16 %v14433_v24, %v14422_v36  ;;  %vm5682_vm15 = vcmp.gt.f32.partialorder %v14236_v35, 20.0  ;;  %10266 = vlog2.f32 %v5781_v40  ;;  %9059 = vmatprep.subr.bf16.mxu1 %v9058_v32  ;;  %v10253_v14 = vpop.eup %10252  ;;  %v16307_v24 = vld [vmem:[#allocation63_spill] sm:$0xff] }
 0x467   : > { %v9062_v49 = vpack.c.bf16 %v5996_v33, %v5976_v59  ;;  %v5834_v56 = vmul.f32 0.6931472, %v14203_v15  ;;  %v5780_v37 = vadd.f32 1.0, %v10245_v61  ;;  %v5799_v51 = vadd.f32 1.0, %v10249_v19 }
 0x468   : > { %v16296_v47 = vpack.c.bf16 %v14104_v23, %v14088_v25  ;;  %v5874_v29 = vmul.f32 0.6931472, %v14287_v16  ;;  %v5910_v26 = vmul.f32 0.6931472, %v14293_v45  ;;  %10268 = vpow2.f32 %v5641_v31  ;;  %v10255_v23 = vpop.eup %10254 }
 0x469   : > { %8816 = vmatmul.mubr.msk.f32.vlgmr.msra.gmra.mrb[136].mxu0 %vm1941_vm2, %v14241_v46  ;;  %9063 = vmatprep.subr.bf16.mxu0 %v9062_v49  ;;  %v5978_v15 = vsel %vm5658_vm1, %v16292_v18, %v5834_v56  ;;  %v5950_v50 = vmul.f32 0.6931472, %v14357_v13  ;;  %v5914_v25 = vmul.f32 0.6931472, %v14341_v62  ;;  %10270 = vlog2.f32 %v5799_v51  ;;  %v10257_v39 = vpop.eup %10256 }
 0x46a   : > { %9061 = vmatpush1.bf16.msra.mxu1 %v16296_v47  ;;  %6511 = vmatprep.mubr.f32.mxu0 %v16264_v28  ;;  %v5998_v16 = vsel %vm5678_vm4, %v16293_v57, %v5874_v29  ;;  %v16297_v45 = vpack.c.bf16 %v14195_v58, %v14169_v48  ;;  %v6016_v60 = vsel %vm5696_vm0, %v16294_v63, %v5910_v26  ;;  %v5954_v18 = vmul.f32 0.6931472, %v14379_v0  ;;  %v10259_v58 = vpop.eup %10258 }
 0x46b   : > { %v5801_v13 = vadd.f32 1.0, %v10255_v23  ;;  %v9070_v62 = vpack.c.bf16 %v5998_v16, %v5978_v15  ;;  %v6036_v57 = vsel %vm5716_vm6, %v14135_v7, %v5950_v50  ;;  %v6018_v48 = vsel %vm5698_vm5, %v14075_v11, %v5914_v25  ;;  %v10261_v40 = vpop.eup %10260  ;;  %v16305_v50 = vld [vmem:[#allocation64_spill] sm:$0xff]  ;;  %v16306_v25 = vld [vmem:[#allocation58_spill] sm:$0xff] }
 0x46c   : > { %9065 = vmatpush1.bf16.msra.mxu0 %v16297_v45  ;;  %v5880_v52 = vmul.f32 0.6931472, %v10257_v39  ;;  %v9066_v0 = vpack.c.bf16 %v6036_v57, %v6016_v60  ;;  %v6038_v63 = vsel %vm5718_vm7, %v14147_v22, %v5954_v18  ;;  %v5838_v42 = vmul.f32 0.6931472, %v10247_v34 }
 0x46d   : > { %8820 = vmatmul.mubr.msk.f32.vlgmr.msra.gmra.mrb[136].mxu1 %vm1941_vm2, %v14241_v46  ;;  %8817 = vmatmul.mubr.msk.f32.gmra.mrb[138].mxu0 %vm1941_vm2, %v14266_v17  ;;  %10272 = vlog2.f32 %v5801_v13  ;;  %v9074_v7 = vpack.c.bf16 %v6038_v63, %v6018_v48  ;;  %v5878_v11 = vmul.f32 0.6931472, %v10259_v58  ;;  %v5842_v5 = vmul.f32 0.6931472, %v10251_v53  ;;  %v10263_v32 = vpop.eup %10262 }
 0x46e   : > { %6600 = vmatprep.mubr.f32.mxu1 %v16264_v28  ;;  %9071 = vmatprep.subr.bf16.mxu1 %v9070_v62  ;;  %v14489_v38 = vsel %vm5661_vm8, %v14156_v10, %v14409_v3  ;;  %v14494_v2 = vsel %vm5681_vm9, %v14228_v21, %v5880_v52  ;;  %v5782_v22 = vadd.f32 1.0, %v10253_v14  ;;  %v16300_v61 = vpack.c.bf16 %v16298_v43, %v16299_v6 }
 0x46f   : > { %6517 = vmatprep.mubr.f32.mxu0 %v16264_v28  ;;  %9067 = vmatprep.subr.bf16.mxu0 %v9066_v0  ;;  %v5882_v31 = vmul.f32 0.6931472, %v10261_v40  ;;  %v9088_v54 = vpack.c.bf16 %v14494_v2, %v14489_v38  ;;  %10274 = vlog2.f32 %v5780_v37  ;;  %v5980_v10 = vsel %vm5660_vm10, %v14176_v8, %v5838_v42  ;;  %v10265_v3 = vpop.eup %10264  ;;  %v16309_v0 = vld [vmem:[#allocation60_spill] sm:$0xff] }
 0x470   : > { %9073 = vmatpush1.bf16.msra.mxu1 %v16300_v61  ;;  %v6000_v21 = vsel %vm5680_vm11, %v14232_v9, %v5878_v11  ;;  %v5982_v59 = vsel %vm5662_vm12, %v14182_v4, %v5842_v5  ;;  %v10267_v8 = vpop.eup %10266  ;;  %v5800_v19 = vadd.f32 1.0, %v10265_v3  ;;  %v16301_v9 = vpack.c.bf16 %v14339_v20, %v14283_v44  ;;  %v16303_v20 = vld [vmem:[#allocation39_spill] sm:$0xff]  ;;  %v14601_v5 = vpop.permute.xlu1 %6060 }
 0x471   : > { %8821 = vmatmul.mubr.msk.f32.gmra.mrb[138].mxu1 %vm1941_vm2, %v14266_v17  ;;  %9075 = vmatprep.subr.bf16.mxu1 %v9074_v7  ;;  %v9078_v34 = vpack.c.bf16 %v6000_v21, %v5980_v10  ;;  %v6002_v33 = vsel %vm5682_vm15, %v14236_v35, %v5882_v31  ;;  %10276 = vlog2.f32 %v5782_v22  ;;  %v16302_v56 = vpack.c.bf16 %v14362_v41, %v14347_v27  ;;  %v16304_v41 = vld [vmem:[#allocation45_spill] sm:$0xff] }
 0x472   : > { %6606 = vmatprep.mubr.f32.mxu1 %v16264_v28  ;;  %8818 = vmatmul.mubr.msk.f32.gmra.mrb[140].mxu0 %vm1941_vm2, %v14301_v12  ;;  %v9086_v49 = vpack.c.bf16 %v6002_v33, %v5982_v59  ;;  %v10269_v4 = vpop.eup %10268  ;;  %v5916_v53 = vmul.f32 0.6931472, %v10263_v32  ;;  %10278 = vlog2.f32 %v5800_v19  ;;  %vm5699_vm13 = vcmp.gt.f32.partialorder %v16303_v20, 20.0 }
 0x473   : > { %6523 = vmatprep.mubr.f32.mxu0 %v16264_v28  ;;  %9069 = vmatpush1.bf16.msra.mxu0 %v16301_v9  ;;  %v10271_v35 = vpop.eup %10270  ;;  %v5802_v37 = vadd.f32 1.0, %v10269_v4  ;;  %v5920_v27 = vmul.f32 0.6931472, %v10267_v8  ;;  %vm5719_vm14 = vcmp.gt.f32.partialorder %v16304_v41, 20.0  ;;  %vm5701_vm3 = vcmp.gt.f32.partialorder %v16305_v50, 20.0 }
 0x474   : > { %9077 = vmatpush1.bf16.msra.mxu1 %v16302_v56  ;;  %9079 = vmatprep.subr.bf16.mxu0 %v9078_v34  ;;  %v5956_v44 = vmul.f32 0.6931472, %v10271_v35  ;;  %v6019_v47 = vsel %vm5699_vm13, %v16303_v20, %v5916_v53  ;;  %vm5721_vm1 = vcmp.gt.f32.partialorder %v16306_v25, 20.0  ;;  %vm5700_vm4 = vcmp.gt.f32.partialorder %v16307_v24, 20.0  ;;  %v14613_v21 = vpop.permute.xlu1 %6070 }
 0x475   : > { %8822 = vmatmul.mubr.msk.f32.gmra.mrb[140].mxu1 %vm1941_vm2, %v14301_v12  ;;  %9087 = vmatprep.subr.bf16.mxu1 %v9086_v49  ;;  %10280 = vlog2.f32 %v5802_v37  ;;  %v6021_v23 = vsel %vm5701_vm3, %v16305_v50, %v5920_v27  ;;  %vm5702_vm5 = vcmp.gt.f32.partialorder %v16309_v0, 20.0  ;;  %vm5722_vm6 = vcmp.gt.f32.partialorder %v14390_v1, 20.0 }
 0x476   : > { %6612 = vmatprep.mubr.f32.mxu1 %v16264_v28  ;;  %8819 = vmatmul.mubr.msk.f32.gmra.mrb[142].mxu0 %vm1941_vm2, %v14322_v30  ;;  %v6039_v29 = vsel %vm5719_vm14, %v16304_v41, %v5956_v44 }
 0x477   : > { %6683 = vmatprep.mubr.f32.mxu0 %v16264_v28  ;;  %v10273_v51 = vpop.eup %10272  ;;  %v9084_v26 = vpack.c.bf16 %v6039_v29, %v6019_v47 }
 0x478   : > { %v5960_v14 = vmul.f32 0.6931472, %v10273_v51 }
 0x479   : > { %8823 = vmatmul.mubr.msk.f32.gmra.mrb[142].mxu1 %vm1941_vm2, %v14322_v30  ;;  %v10275_v15 = vpop.eup %10274 }
 0x47a   : > { %6772 = vmatprep.mubr.f32.mxu1 %v16264_v28  ;;  %8824 = vmatmul.mubr.msk.f32.vlgmr.msra.gmra.mrb[144].mxu0 %vm1941_vm2, %v14241_v46  ;;  %v6041_v16 = vsel %vm5721_vm1, %v16306_v25, %v5960_v14  ;;  %v5918_v18 = vmul.f32 0.6931472, %v10275_v15 }
 0x47b   : > { %6689 = vmatprep.mubr.f32.mxu0 %v16264_v28  ;;  %9081 = vmatpush1.bf16.msra.mxu0 %v9080_v55  ;;  %v9092_v45 = vpack.c.bf16 %v6041_v16, %v6021_v23  ;;  %v10277_v60 = vpop.eup %10276  ;;  %v16308_v55 = vld [vmem:[#allocation26_spill] sm:$0xff] }
 0x47c   : > { %v10279_v39 = vpop.eup %10278  ;;  %vm5720_vm0 = vcmp.gt.f32.partialorder %v16308_v55, 20.0  ;;  %v5922_v13 = vmul.f32 0.6931472, %v10277_v60  ;;  %v6020_v57 = vsel %vm5700_vm4, %v16307_v24, %v5918_v18 }
 0x47d   : > { %8828 = vmatmul.mubr.msk.f32.vlgmr.msra.gmra.mrb[144].mxu1 %vm1941_vm2, %v14241_v46  ;;  %v5958_v36 = vmul.f32 0.6931472, %v10279_v39 }
 0x47e   : > { %6778 = vmatprep.mubr.f32.mxu1 %v16264_v28  ;;  %8825 = vmatmul.mubr.msk.f32.gmra.mrb[146].mxu0 %vm1941_vm2, %v14266_v17  ;;  %v6022_v63 = vsel %vm5702_vm5, %v16309_v0, %v5922_v13 }
 0x47f   : > { %9089 = vmatpush1.bf16.msra.mxu1 %v9088_v54  ;;  %6695 = vmatprep.mubr.f32.mxu0 %v16264_v28  ;;  %v10281_v62 = vpop.eup %10280  ;;  %v6040_v48 = vsel %vm5720_vm0, %v16308_v55, %v5958_v36 }
 0x480   : > { %v9082_v58 = vpack.c.bf16 %v6040_v48, %v6020_v57  ;;  %v5962_v52 = vmul.f32 0.6931472, %v10281_v62 }
 0x481   : > { %8829 = vmatmul.mubr.msk.f32.gmra.mrb[146].mxu1 %vm1941_vm2, %v14266_v17 }
 0x482   : > { %6784 = vmatprep.mubr.f32.mxu1 %v16264_v28  ;;  %8826 = vmatmul.mubr.msk.f32.gmra.mrb[148].mxu0 %vm1941_vm2, %v14301_v12  ;;  %v6042_v42 = vsel %vm5722_vm6, %v14390_v1, %v5962_v52  ;;  %v14589_v1 = vpop.permute.xlu0 %6055  ;;  %v6151_v7 = vpop.f32.mrb[120].mxu0 }
 0x483   : > { %6701 = vmatprep.mubr.f32.mxu0 %v16264_v28  ;;  %9083 = vmatprep.subr.bf16.mxu0 %v9082_v58  ;;  %v9090_v40 = vpack.c.bf16 %v6042_v42, %v6022_v63  ;;  %v6153_v11 = vpop.f32.mrb[121].mxu0 }
 0x484   : > { %9085 = vmatpush1.bf16.msra.mxu0 %v9084_v26  ;;  %v14617_v33 = vadd.f32 %v6153_v11, %v14589_v1 }
 0x485   : > { %8830 = vmatmul.mubr.msk.f32.gmra.mrb[148].mxu1 %vm1941_vm2, %v14301_v12  ;;  %9091 = vmatprep.subr.bf16.mxu1 %v9090_v40 }
 0x486   : > { %6790 = vmatprep.mubr.f32.mxu1 %v16264_v28  ;;  %8827 = vmatmul.mubr.msk.f32.gmra.mrb[150].mxu0 %vm1941_vm2, %v14322_v30  ;;  %v6157_v38 = vpop.f32.mrb[122].mxu0  ;;  %v14610_v6 = vpop.permute.xlu0 %6065  ;;  %v6976_v4 = vmin.f32 %v14617_v33, 20.0  ;;  %vm7216_vm11 = vcmp.gt.f32.partialorder %v14617_v33, 20.0 }
 0x487   : > { %6861 = vmatprep.mubr.f32.mxu0 %v16264_v28  ;;  %9093 = vmatpush1.bf16.msra.mxu1 %v9092_v45  ;;  %v6158_v22 = vadd.f32 %v6157_v38, %v14601_v5  ;;  %v6159_v43 = vpop.f32.mrb[123].mxu0 }
 0x488   : > { %v14620_v56 = vadd.f32 %v6159_v43, %v14601_v5  ;;  %v7057_v44 = vmul.f32 1.442695, %v6976_v4 }
 0x489   : > { %8831 = vmatmul.mubr.msk.f32.gmra.mrb[150].mxu1 %vm1941_vm2, %v14322_v30  ;;  %vm7235_vm8 = vcmp.gt.f32.partialorder %v6158_v22, 20.0 }
 0x48a   : > { %6950 = vmatprep.mubr.f32.mxu1 %v16264_v28  ;;  %8832 = vmatmul.mubr.msk.f32.vlgmr.msra.gmra.mrb[152].mxu0 %vm1941_vm2, %v14241_v46  ;;  %v6163_v61 = vpop.f32.mrb[124].mxu0  ;;  %v6996_v37 = vmin.f32 %v14620_v56, 20.0  ;;  %vm7236_vm12 = vcmp.gt.f32.partialorder %v14620_v56, 20.0 }
 0x48b   : > { %6867 = vmatprep.mubr.f32.mxu0 %v16264_v28  ;;  %v6164_v32 = vadd.f32 %v6163_v61, %v14610_v6  ;;  %v6165_v54 = vpop.f32.mrb[125].mxu0 }
 0x48c   : > { %v7097_v27 = vmul.f32 1.442695, %v6996_v37  ;;  %v14625_v26 = vadd.f32 %v6165_v54, %v14610_v6 }
 0x48d   : > { %8836 = vmatmul.mubr.msk.f32.vlgmr.msra.gmra.mrb[152].mxu1 %vm1941_vm2, %v14241_v46  ;;  %v14595_v46 = vadd.f32 %v6151_v7, %v14589_v1  ;;  %v7015_v10 = vmin.f32 %v6164_v32, 20.0  ;;  %vm7255_vm9 = vcmp.gt.f32.partialorder %v6164_v32, 20.0 }
 0x48e   : > { %6956 = vmatprep.mubr.f32.mxu1 %v16264_v28  ;;  %8833 = vmatmul.mubr.msk.f32.gmra.mrb[154].mxu0 %vm1941_vm2, %v14266_v17  ;;  %v6169_v3 = vpop.f32.mrb[126].mxu0  ;;  %v7016_v23 = vmin.f32 %v14625_v26, 20.0  ;;  %vm7256_vm15 = vcmp.gt.f32.partialorder %v14625_v26, 20.0 }
 0x48f   : > { %6873 = vmatprep.mubr.f32.mxu0 %v16264_v28  ;;  %v7135_v34 = vmul.f32 1.442695, %v7015_v10  ;;  %v6170_v59 = vadd.f32 %v6169_v3, %v14613_v21  ;;  %vm7215_vm7 = vcmp.gt.f32.partialorder %v14595_v46, 20.0 }
 0x490   : > { %v7137_v55 = vmul.f32 1.442695, %v7016_v23 }
 0x491   : > { %8837 = vmatmul.mubr.msk.f32.gmra.mrb[154].mxu1 %vm1941_vm2, %v14266_v17  ;;  %v6975_v17 = vmin.f32 %v14595_v46, 20.0  ;;  %v7035_v8 = vmin.f32 %v6170_v59, 20.0  ;;  %vm7275_vm10 = vcmp.gt.f32.partialorder %v6170_v59, 20.0 }
 0x492   : > { %6962 = vmatprep.mubr.f32.mxu1 %v16264_v28  ;;  %8834 = vmatmul.mubr.msk.f32.gmra.mrb[156].mxu0 %vm1941_vm2, %v14301_v12 }
 0x493   : > { %6879 = vmatprep.mubr.f32.mxu0 %v16264_v28  ;;  %v7055_v2 = vmul.f32 1.442695, %v6975_v17  ;;  %v7175_v9 = vmul.f32 1.442695, %v7035_v8 }
 0x495   : > { %8838 = vmatmul.mubr.msk.f32.gmra.mrb[156].mxu1 %vm1941_vm2, %v14301_v12  ;;  %10282 = vpow2.f32 %v7055_v2  ;;  %v6995_v12 = vmin.f32 %v6158_v22, 20.0 }
 0x496   : > { %6968 = vmatprep.mubr.f32.mxu1 %v16264_v28  ;;  %8835 = vmatmul.mubr.msk.f32.gmra.mrb[158].mxu0 %vm1941_vm2, %v14322_v30 }
 0x497   : > { %7693 = vmatprep.mubr.f32.mxu0 %v16264_v28  ;;  %v7095_v31 = vmul.f32 1.442695, %v6995_v12 }
 0x499   : > { %8839 = vmatmul.mubr.msk.f32.gmra.mrb[158].mxu1 %vm1941_vm2, %v14322_v30  ;;  %10284 = vpow2.f32 %v7095_v31  ;;  %v6171_v30 = vpop.f32.mrb[127].mxu0 }
 0x49a   : > { %7764 = vmatprep.mubr.f32.mxu1 %v16264_v28  ;;  %10286 = vpow2.f32 %v7135_v34  ;;  %v14628_v50 = vadd.f32 %v6171_v30, %v14613_v21 }
 0x49b   : > { %10288 = vpow2.f32 %v7175_v9 }
 0x49c   : > { %v7036_v36 = vmin.f32 %v14628_v50, 20.0  ;;  %vm7276_vm13 = vcmp.gt.f32.partialorder %v14628_v50, 20.0 }
 0x49e   : > { %v7177_v48 = vmul.f32 1.442695, %v7036_v36 }
 0x49f   : > { %v10283_v19 = vpop.eup %10282 }
 0x4a0   : > { %v7295_v49 = vadd.f32 1.0, %v10283_v19 }
 0x4a2   : > { %10290 = vlog2.f32 %v7295_v49 }
 0x4a3   : > { %v10285_v53 = vpop.eup %10284 }
 0x4a4   : > { %v7315_v35 = vadd.f32 1.0, %v10285_v53  ;;  %v10287_v20 = vpop.eup %10286 }
 0x4a5   : > { %v7335_v41 = vadd.f32 1.0, %v10287_v20  ;;  %v10289_v51 = vpop.eup %10288 }
 0x4a6   : > { %10292 = vlog2.f32 %v7315_v35  ;;  %v7355_v29 = vadd.f32 1.0, %v10289_v51 }
 0x4a7   : > { %10294 = vpow2.f32 %v7057_v44 }
 0x4a8   : > { %10296 = vlog2.f32 %v7335_v41 }
 0x4a9   : > { %10298 = vpow2.f32 %v7097_v27 }
 0x4aa   : > { %10300 = vlog2.f32 %v7355_v29 }
 0x4ab   : > { %10302 = vpow2.f32 %v7137_v55 }
 0x4ac   : > { %v10291_v47 = vpop.eup %10290 }
 0x4ad   : > { %v7376_v14 = vmul.f32 0.6931472, %v10291_v47 }
 0x4af   : > { %v7535_v45 = vsel %vm7215_vm7, %v14595_v46, %v7376_v14 }
 0x4b0   : > { %v10293_v15 = vpop.eup %10292 }
 0x4b1   : > { %v7416_v25 = vmul.f32 0.6931472, %v10293_v15  ;;  %v10295_v16 = vpop.eup %10294 }
 0x4b2   : > { %v10297_v18 = vpop.eup %10296  ;;  %v7296_v13 = vadd.f32 1.0, %v10295_v16 }
 0x4b3   : > { %v7555_v60 = vsel %vm7235_vm8, %v6158_v22, %v7416_v25  ;;  %v10299_v24 = vpop.eup %10298  ;;  %v7456_v62 = vmul.f32 0.6931472, %v10297_v18 }
 0x4b4   : > { %v9096_v39 = vpack.c.bf16 %v7555_v60, %v7535_v45  ;;  %v10301_v57 = vpop.eup %10300  ;;  %v7316_v58 = vadd.f32 1.0, %v10299_v24  ;;  %10304 = vlog2.f32 %v7296_v13 }
 0x4b5   : > { %v7496_v52 = vmul.f32 0.6931472, %v10301_v57  ;;  %v14634_v0 = vsel %vm7255_vm9, %v6164_v32, %v7456_v62  ;;  %10306 = vpow2.f32 %v7177_v48  ;;  %v10303_v40 = vpop.eup %10302 }
 0x4b6   : > { %10308 = vlog2.f32 %v7316_v58  ;;  %v7336_v43 = vadd.f32 1.0, %v10303_v40 }
 0x4b7   : > { %v14636_v63 = vsel %vm7275_vm10, %v6170_v59, %v7496_v52 }
 0x4b8   : > { %v9100_v42 = vpack.c.bf16 %v14636_v63, %v14634_v0  ;;  %10310 = vlog2.f32 %v7336_v43 }
 0x4be   : > { %v10305_v7 = vpop.eup %10304 }
 0x4bf   : > { %v10307_v46 = vpop.eup %10306  ;;  %v7378_v38 = vmul.f32 0.6931472, %v10305_v7 }
 0x4c0   : > { %v10309_v11 = vpop.eup %10308  ;;  %v6240_v17 = vpop.f32.mrb[120].mxu1  ;;  %v7356_v61 = vadd.f32 1.0, %v10307_v46 }
 0x4c1   : > { %v14641_v2 = vadd.f32 %v6240_v17, %v14589_v1  ;;  %v6242_v22 = vpop.f32.mrb[121].mxu1  ;;  %v7418_v31 = vmul.f32 0.6931472, %v10309_v11  ;;  %v7536_v3 = vsel %vm7216_vm11, %v14617_v33, %v7378_v38 }
 0x4c2   : > { %v14644_v12 = vadd.f32 %v6242_v22, %v14589_v1  ;;  %10312 = vlog2.f32 %v7356_v61  ;;  %v10311_v23 = vpop.eup %10310 }
 0x4c3   : > { %v6977_v32 = vmin.f32 %v14641_v2, 20.0  ;;  %v7556_v34 = vsel %vm7236_vm12, %v14620_v56, %v7418_v31  ;;  %v7458_v62 = vmul.f32 0.6931472, %v10311_v23  ;;  %vm7217_vm14 = vcmp.gt.f32.partialorder %v14641_v2, 20.0 }
 0x4c4   : > { %v6978_v54 = vmin.f32 %v14644_v12, 20.0  ;;  %v6246_v10 = vpop.f32.mrb[122].mxu1  ;;  %v9094_v19 = vpack.c.bf16 %v7556_v34, %v7536_v3  ;;  %vm7218_vm1 = vcmp.gt.f32.partialorder %v14644_v12, 20.0 }
 0x4c5   : > { %v7059_v59 = vmul.f32 1.442695, %v6977_v32  ;;  %v14653_v30 = vadd.f32 %v6246_v10, %v14601_v5  ;;  %v6248_v8 = vpop.f32.mrb[123].mxu1  ;;  %v7576_v7 = vsel %vm7256_vm15, %v14625_v26, %v7458_v62  ;;  %v7615_v26 = vld [vmem:[%s15622_s4] sm:$0x1] }
 0x4c6   : > { %v7061_v9 = vmul.f32 1.442695, %v6978_v54  ;;  %v14656_v49 = vadd.f32 %v6248_v8, %v14601_v5  ;;  %9095 = vmatprep.subr.bf16.mxu0 %v9094_v19 }
 0x4c7   : > { %10314 = vpow2.f32 %v7059_v59  ;;  %v6997_v4 = vmin.f32 %v14653_v30, 20.0  ;;  %9097 = vmatpush1.bf16.msra.mxu0 %v9096_v39  ;;  %vm7237_vm3 = vcmp.gt.f32.partialorder %v14653_v30, 20.0 }
 0x4c8   : > { %10316 = vpow2.f32 %v7061_v9  ;;  %v6998_v33 = vmin.f32 %v14656_v49, 20.0  ;;  %v6252_v56 = vpop.f32.mrb[124].mxu1  ;;  %vm7238_vm4 = vcmp.gt.f32.partialorder %v14656_v49, 20.0 }
 0x4c9   : > { %v7099_v53 = vmul.f32 1.442695, %v6997_v4  ;;  %v14661_v35 = vadd.f32 %v6252_v56, %v14610_v6  ;;  %v6254_v37 = vpop.f32.mrb[125].mxu1 }
 0x4ca   : > { %v7101_v44 = vmul.f32 1.442695, %v6998_v33  ;;  %v14664_v20 = vadd.f32 %v6254_v37, %v14610_v6 }
 0x4cb   : > { %10318 = vpow2.f32 %v7099_v53  ;;  %v7017_v27 = vmin.f32 %v14661_v35, 20.0  ;;  %vm7257_vm0 = vcmp.gt.f32.partialorder %v14661_v35, 20.0 }
 0x4cc   : > { %10320 = vpow2.f32 %v7101_v44  ;;  %v7018_v41 = vmin.f32 %v14664_v20, 20.0  ;;  %v6258_v51 = vpop.f32.mrb[126].mxu1  ;;  %v10313_v45 = vpop.eup %10312  ;;  %vm7258_vm6 = vcmp.gt.f32.partialorder %v14664_v20, 20.0 }
 0x4cd   : > { %v7139_v47 = vmul.f32 1.442695, %v7017_v27  ;;  %v14669_v29 = vadd.f32 %v6258_v51, %v14613_v21  ;;  %v6260_v14 = vpop.f32.mrb[127].mxu1  ;;  %v7498_v48 = vmul.f32 0.6931472, %v10313_v45 }
 0x4ce   : > { %v7141_v15 = vmul.f32 1.442695, %v7018_v41  ;;  %v14672_v25 = vadd.f32 %v6260_v14, %v14613_v21 }
 0x4cf   : > { %10322 = vpow2.f32 %v7139_v47  ;;  %v7037_v16 = vmin.f32 %v14669_v29, 20.0  ;;  %v7596_v46 = vsel %vm7276_vm13, %v14628_v50, %v7498_v48  ;;  %vm7277_vm5 = vcmp.gt.f32.partialorder %v14669_v29, 20.0 }
 0x4d0   : > { %10324 = vpow2.f32 %v7141_v15  ;;  %v7038_v60 = vmin.f32 %v14672_v25, 20.0  ;;  %v9098_v11 = vpack.c.bf16 %v7596_v46, %v7576_v7  ;;  %vm7278_vm7 = vcmp.gt.f32.partialorder %v14672_v25, 20.0 }
 0x4d1   : > { %v10315_v18 = vpop.eup %10314  ;;  %v7179_v39 = vmul.f32 1.442695, %v7037_v16 }
 0x4d2   : > { %v10317_v36 = vpop.eup %10316  ;;  %v7297_v24 = vadd.f32 1.0, %v10315_v18  ;;  %v7181_v55 = vmul.f32 1.442695, %v7038_v60  ;;  %9099 = vmatprep.subr.bf16.mxu0 %v9098_v11 }
 0x4d3   : > { %v7298_v13 = vadd.f32 1.0, %v10317_v36  ;;  %10326 = vpow2.f32 %v7179_v39  ;;  %9101 = vmatpush1.bf16.msra.mxu0 %v9100_v42 }
 0x4d4   : > { %10328 = vlog2.f32 %v7297_v24 }
 0x4d5   : > { %v10319_v57 = vpop.eup %10318  ;;  %10330 = vlog2.f32 %v7298_v13 }
 0x4d6   : > { %v10321_v58 = vpop.eup %10320  ;;  %v7317_v52 = vadd.f32 1.0, %v10319_v57  ;;  %10332 = vpow2.f32 %v7181_v55  ;;  %8840 = vmatmul.mubr.msk.f32.vlgmr.msra.gmra.mrb[160].mxu0 %vm1941_vm2, %v7615_v26 }
 0x4d7   : > { %v7318_v40 = vadd.f32 1.0, %v10321_v58  ;;  %7835 = vmatprep.mubr.f32.mxu0 %v16264_v28 }
 0x4d8   : > { %10334 = vlog2.f32 %v7317_v52 }
 0x4d9   : > { %v10323_v17 = vpop.eup %10322  ;;  %10336 = vlog2.f32 %v7318_v40 }
 0x4da   : > { %v10325_v38 = vpop.eup %10324  ;;  %v7337_v22 = vadd.f32 1.0, %v10323_v17 }
 0x4db   : > { %v7338_v43 = vadd.f32 1.0, %v10325_v38 }
 0x4dc   : > { %10338 = vlog2.f32 %v7337_v22 }
 0x4dd   : > { %v10327_v61 = vpop.eup %10326  ;;  %10340 = vlog2.f32 %v7338_v43 }
 0x4de   : > { %v10329_v31 = vpop.eup %10328  ;;  %v7357_v32 = vadd.f32 1.0, %v10327_v61 }
 0x4df   : > { %v10331_v54 = vpop.eup %10330  ;;  %v7380_v10 = vmul.f32 0.6931472, %v10329_v31 }
 0x4e0   : > { %v10333_v50 = vpop.eup %10332  ;;  %10342 = vlog2.f32 %v7357_v32  ;;  %v7382_v63 = vmul.f32 0.6931472, %v10331_v54 }
 0x4e1   : > { %v7358_v3 = vadd.f32 1.0, %v10333_v50  ;;  %v7537_v8 = vsel %vm7217_vm14, %v14641_v2, %v7380_v10 }
 0x4e2   : > { %v10335_v0 = vpop.eup %10334  ;;  %v7538_v33 = vsel %vm7218_vm1, %v14644_v12, %v7382_v63 }
 0x4e3   : > { %v10337_v42 = vpop.eup %10336  ;;  %v7420_v34 = vmul.f32 0.6931472, %v10335_v0  ;;  %10344 = vlog2.f32 %v7358_v3 }
 0x4e4   : > { %v7422_v59 = vmul.f32 0.6931472, %v10337_v42 }
 0x4e5   : > { %v7557_v19 = vsel %vm7237_vm3, %v14653_v30, %v7420_v34 }
 0x4e6   : > { %v10339_v9 = vpop.eup %10338  ;;  %v9104_v4 = vpack.c.bf16 %v7557_v19, %v7537_v8  ;;  %v7558_v56 = vsel %vm7238_vm4, %v14656_v49, %v7422_v59 }
 0x4e7   : > { %v9102_v53 = vpack.c.bf16 %v7558_v56, %v7538_v33  ;;  %v10341_v37 = vpop.eup %10340  ;;  %v7460_v44 = vmul.f32 0.6931472, %v10339_v9 }
 0x4e8   : > { %v7462_v2 = vmul.f32 0.6931472, %v10341_v37 }
 0x4e9   : > { %9103 = vmatprep.subr.bf16.mxu1 %v9102_v53  ;;  %v7577_v51 = vsel %vm7257_vm0, %v14661_v35, %v7460_v44 }
 0x4ea   : > { %v10343_v27 = vpop.eup %10342  ;;  %9105 = vmatpush1.bf16.msra.mxu1 %v9104_v4  ;;  %v7578_v49 = vsel %vm7258_vm6, %v14664_v20, %v7462_v2 }
 0x4eb   : > { %v7500_v41 = vmul.f32 0.6931472, %v10343_v27 }
 0x4ed   : > { %v10345_v30 = vpop.eup %10344  ;;  %v7597_v47 = vsel %vm7277_vm5, %v14669_v29, %v7500_v41 }
 0x4ee   : > { %v9108_v12 = vpack.c.bf16 %v7597_v47, %v7577_v51  ;;  %v7502_v14 = vmul.f32 0.6931472, %v10345_v30 }
 0x4f0   : > { %v7598_v15 = vsel %vm7278_vm7, %v14672_v25, %v7502_v14 }
 0x4f1   : > { %v9106_v23 = vpack.c.bf16 %v7598_v15, %v7578_v49 }
 0x4f3   : > { %9107 = vmatprep.subr.bf16.mxu1 %v9106_v23 }
 0x4f4   : > { %9109 = vmatpush1.bf16.msra.mxu1 %v9108_v12 }
 0x4f7   : > { %8841 = vmatmul.mubr.msk.f32.vlgmr.msra.gmra.mrb[160].mxu1 %vm1941_vm2, %v7615_v26 }
 0x4f8   : > { %7906 = vmatprep.mubr.f32.mxu1 %v16264_v28 }
 0x519   : > { %v6329_v35 = vpop.f32.mrb[128].mxu0 }
 0x51a   : > { %v14707_v29 = vadd.f32 %v6329_v35, %v14589_v1  ;;  %v6331_v16 = vpop.f32.mrb[129].mxu0 }
 0x51b   : > { %v14710_v45 = vadd.f32 %v6331_v16, %v14589_v1 }
 0x51c   : > { %v6979_v60 = vmin.f32 %v14707_v29, 20.0  ;;  %v6418_v20 = vpop.f32.mrb[128].mxu1  ;;  %vm7219_vm8 = vcmp.gt.f32.partialorder %v14707_v29, 20.0 }
 0x51d   : > { %v14714_v25 = vadd.f32 %v6418_v20, %v14589_v1  ;;  %v6980_v18 = vmin.f32 %v14710_v45, 20.0  ;;  %v6420_v39 = vpop.f32.mrb[129].mxu1  ;;  %v6335_v36 = vpop.f32.mrb[130].mxu0  ;;  %vm7220_vm5 = vcmp.gt.f32.partialorder %v14710_v45, 20.0 }
 0x51e   : > { %v7063_v24 = vmul.f32 1.442695, %v6979_v60  ;;  %v14718_v55 = vadd.f32 %v6420_v39, %v14589_v1  ;;  %v14721_v13 = vadd.f32 %v6335_v36, %v14601_v5  ;;  %v6337_v62 = vpop.f32.mrb[131].mxu0 }
 0x51f   : > { %v6981_v57 = vmin.f32 %v14714_v25, 20.0  ;;  %v7065_v48 = vmul.f32 1.442695, %v6980_v18  ;;  %v14725_v58 = vadd.f32 %v6337_v62, %v14601_v5  ;;  %vm7221_vm9 = vcmp.gt.f32.partialorder %v14714_v25, 20.0 }
 0x520   : > { %10346 = vpow2.f32 %v7063_v24  ;;  %v6982_v52 = vmin.f32 %v14718_v55, 20.0  ;;  %v6999_v40 = vmin.f32 %v14721_v13, 20.0  ;;  %v6424_v7 = vpop.f32.mrb[130].mxu1  ;;  %vm7239_vm10 = vcmp.gt.f32.partialorder %v14721_v13, 20.0 }
 0x521   : > { %v7067_v46 = vmul.f32 1.442695, %v6981_v57  ;;  %v14730_v11 = vadd.f32 %v6424_v7, %v14601_v5  ;;  %v6426_v17 = vpop.f32.mrb[131].mxu1  ;;  %v6341_v38 = vpop.f32.mrb[132].mxu0  ;;  %10348 = vpow2.f32 %v7065_v48  ;;  %v7000_v61 = vmin.f32 %v14725_v58, 20.0 }
 0x522   : > { %v7069_v22 = vmul.f32 1.442695, %v6982_v52  ;;  %v7103_v43 = vmul.f32 1.442695, %v6999_v40  ;;  %v14735_v32 = vadd.f32 %v6426_v17, %v14601_v5  ;;  %v6343_v54 = vpop.f32.mrb[133].mxu0  ;;  %v14738_v50 = vadd.f32 %v6341_v38, %v14610_v6 }
 0x523   : > { %10350 = vpow2.f32 %v7067_v46  ;;  %v7001_v31 = vmin.f32 %v14730_v11, 20.0  ;;  %v7105_v26 = vmul.f32 1.442695, %v7000_v61  ;;  %v14742_v63 = vadd.f32 %v6343_v54, %v14610_v6 }
 0x524   : > { %10352 = vpow2.f32 %v7069_v22  ;;  %v6430_v10 = vpop.f32.mrb[132].mxu1  ;;  %v7002_v0 = vmin.f32 %v14735_v32, 20.0  ;;  %v7019_v59 = vmin.f32 %v14738_v50, 20.0  ;;  %vm7241_vm11 = vcmp.gt.f32.partialorder %v14730_v11, 20.0 }
 0x525   : > { %10354 = vpow2.f32 %v7103_v43  ;;  %v7107_v3 = vmul.f32 1.442695, %v7001_v31  ;;  %v6432_v42 = vpop.f32.mrb[133].mxu1  ;;  %v6347_v34 = vpop.f32.mrb[134].mxu0  ;;  %v14746_v8 = vadd.f32 %v6430_v10, %v14610_v6  ;;  %v7020_v37 = vmin.f32 %v14742_v63, 20.0 }
 0x526   : > { %10356 = vpow2.f32 %v7105_v26  ;;  %v6349_v19 = vpop.f32.mrb[135].mxu0  ;;  %v7109_v9 = vmul.f32 1.442695, %v7002_v0  ;;  %v7143_v4 = vmul.f32 1.442695, %v7019_v59  ;;  %v14750_v56 = vadd.f32 %v6432_v42, %v14610_v6 }
 0x527   : > { %10358 = vpow2.f32 %v7107_v3  ;;  %v7021_v33 = vmin.f32 %v14746_v8, 20.0  ;;  %v14754_v44 = vadd.f32 %v6347_v34, %v14613_v21  ;;  %v7145_v14 = vmul.f32 1.442695, %v7020_v37 }
 0x528   : > { %16310 = vst [vmem:[#allocation53_spill] sm:$0xff] %v14750_v56  ;;  %v6436_v53 = vpop.f32.mrb[134].mxu1  ;;  %10360 = vpow2.f32 %v7109_v9  ;;  %v7022_v51 = vmin.f32 %v14750_v56, 20.0  ;;  %v14762_v24 = vadd.f32 %v6349_v19, %v14613_v21  ;;  %vm7259_vm12 = vcmp.gt.f32.partialorder %v14738_v50, 20.0 }
 0x529   : > { %v6438_v27 = vpop.f32.mrb[135].mxu1  ;;  %10362 = vpow2.f32 %v7143_v4  ;;  %v7147_v2 = vmul.f32 1.442695, %v7021_v33  ;;  %v7039_v49 = vmin.f32 %v14754_v44, 20.0  ;;  %v14759_v35 = vadd.f32 %v6436_v53, %v14613_v21 }
 0x52a   : > { %v10347_v41 = vpop.eup %10346  ;;  %v7149_v60 = vmul.f32 1.442695, %v7022_v51  ;;  %16311 = vst [vmem:[#allocation68_spill] sm:$0xff] %v14762_v24  ;;  %v7040_v38 = vmin.f32 %v14762_v24, 20.0  ;;  %v14767_v10 = vadd.f32 %v6438_v27, %v14613_v21  ;;  %vm7279_vm15 = vcmp.gt.f32.partialorder %v14754_v44, 20.0 }
 0x52b   : > { %v7299_v30 = vadd.f32 1.0, %v10347_v41  ;;  %v10349_v47 = vpop.eup %10348  ;;  %10364 = vpow2.f32 %v7147_v2  ;;  %v7183_v36 = vmul.f32 1.442695, %v7039_v49  ;;  %v7041_v48 = vmin.f32 %v14759_v35, 20.0 }
 0x52c   : > { %v7300_v62 = vadd.f32 1.0, %v10349_v47  ;;  %16312 = vst [vmem:[#allocation56_spill] sm:$0xff] %v14767_v10  ;;  %v7185_v42 = vmul.f32 1.442695, %v7040_v38  ;;  %v7042_v41 = vmin.f32 %v14767_v10, 20.0  ;;  %vm7261_vm13 = vcmp.gt.f32.partialorder %v14746_v8, 20.0 }
 0x52d   : > { %v10351_v12 = vpop.eup %10350  ;;  %10366 = vlog2.f32 %v7299_v30  ;;  %v7187_v43 = vmul.f32 1.442695, %v7041_v48  ;;  %vm7281_vm14 = vcmp.gt.f32.partialorder %v14759_v35, 20.0  ;;  %vm7240_vm6 = vcmp.gt.f32.partialorder %v14725_v58, 20.0 }
 0x52e   : > { %v10353_v15 = vpop.eup %10352  ;;  %v7301_v23 = vadd.f32 1.0, %v10351_v12 }
 0x52f   : > { %v10355_v16 = vpop.eup %10354  ;;  %v7302_v40 = vadd.f32 1.0, %v10353_v15 }
 0x530   : > { %v10357_v20 = vpop.eup %10356  ;;  %10368 = vlog2.f32 %v7301_v23  ;;  %v7319_v18 = vadd.f32 1.0, %v10355_v16 }
 0x531   : > { %v10359_v39 = vpop.eup %10358  ;;  %10370 = vpow2.f32 %v7145_v14  ;;  %v7320_v46 = vadd.f32 1.0, %v10357_v20 }
 0x532   : > { %10372 = vlog2.f32 %v7319_v18  ;;  %v7321_v57 = vadd.f32 1.0, %v10359_v39  ;;  %v10361_v52 = vpop.eup %10360 }
 0x533   : > { %10374 = vpow2.f32 %v7149_v60  ;;  %v10363_v7 = vpop.eup %10362  ;;  %v7322_v17 = vadd.f32 1.0, %v10361_v52 }
 0x534   : > { %10376 = vlog2.f32 %v7321_v57  ;;  %v7339_v31 = vadd.f32 1.0, %v10363_v7 }
 0x535   : > { %10378 = vpow2.f32 %v7183_v36  ;;  %v10365_v22 = vpop.eup %10364 }
 0x536   : > { %10380 = vlog2.f32 %v7300_v62  ;;  %v7341_v26 = vadd.f32 1.0, %v10365_v22 }
 0x537   : > { %v10367_v61 = vpop.eup %10366  ;;  %10382 = vlog2.f32 %v7302_v40 }
 0x538   : > { %10384 = vlog2.f32 %v7320_v46  ;;  %v7384_v59 = vmul.f32 0.6931472, %v10367_v61 }
 0x539   : > { %10386 = vlog2.f32 %v7322_v17 }
 0x53a   : > { %v10369_v34 = vpop.eup %10368  ;;  %10388 = vpow2.f32 %v7187_v43  ;;  %v14788_v23 = vsel %vm7219_vm8, %v14707_v29, %v7384_v59 }
 0x53b   : > { %v10371_v4 = vpop.eup %10370  ;;  %10390 = vlog2.f32 %v7339_v31  ;;  %v7388_v12 = vmul.f32 0.6931472, %v10369_v34 }
 0x53c   : > { %v6507_v54 = vpop.f32.mrb[136].mxu0  ;;  %v10373_v27 = vpop.eup %10372  ;;  %10392 = vlog2.f32 %v7341_v26  ;;  %v7340_v16 = vadd.f32 1.0, %v10371_v4  ;;  %v7189_v26 = vmul.f32 1.442695, %v7042_v41 }
 0x53d   : > { %v14770_v3 = vadd.f32 %v6507_v54, %v14589_v1  ;;  %v6509_v0 = vpop.f32.mrb[137].mxu0  ;;  %v10375_v47 = vpop.eup %10374  ;;  %v7424_v14 = vmul.f32 0.6931472, %v10373_v27  ;;  %10394 = vpow2.f32 %v7185_v42 }
 0x53e   : > { %v14782_v30 = vadd.f32 %v6509_v0, %v14589_v1  ;;  %v10377_v15 = vpop.eup %10376  ;;  %v7342_v7 = vadd.f32 1.0, %v10375_v47 }
 0x53f   : > { %v6983_v19 = vmin.f32 %v14770_v3, 20.0  ;;  %v10379_v18 = vpop.eup %10378  ;;  %v14796_v39 = vsel %vm7239_vm10, %v14721_v13, %v7424_v14  ;;  %v7428_v36 = vmul.f32 0.6931472, %v10377_v15  ;;  %v14811_v13 = vsel %vm7221_vm9, %v14714_v25, %v7388_v12 }
 0x540   : > { %v6596_v9 = vpop.f32.mrb[136].mxu1  ;;  %v6513_v37 = vpop.f32.mrb[138].mxu0  ;;  %16313 = vst [vmem:[#allocation66_spill] sm:$0xff] %v14782_v30  ;;  %v7359_v46 = vadd.f32 1.0, %v10379_v18  ;;  %v6984_v17 = vmin.f32 %v14782_v30, 20.0  ;;  %vm7223_vm3 = vcmp.gt.f32.partialorder %v14770_v3, 20.0 }
 0x541   : > { %v14778_v33 = vadd.f32 %v6596_v9, %v14589_v1  ;;  %v6598_v53 = vpop.f32.mrb[137].mxu1  ;;  %v7071_v2 = vmul.f32 1.442695, %v6983_v19  ;;  %v6515_v51 = vpop.f32.mrb[139].mxu0  ;;  %v14799_v57 = vadd.f32 %v6513_v37, %v14601_v5  ;;  %v14816_v43 = vsel %vm7241_vm11, %v14730_v11, %v7428_v36 }
 0x542   : > { %v14791_v60 = vadd.f32 %v6598_v53, %v14589_v1  ;;  %v14801_v52 = vpop.eup %10380  ;;  %v14830_v59 = vadd.f32 %v6515_v51, %v14601_v5  ;;  %v7073_v53 = vmul.f32 1.442695, %v6984_v17  ;;  %vm7222_vm9 = vcmp.gt.f32.partialorder %v14718_v55, 20.0 }
 0x543   : > { %v6985_v49 = vmin.f32 %v14778_v33, 20.0  ;;  %10396 = vpow2.f32 %v7071_v2  ;;  %v14806_v22 = vpop.eup %10382  ;;  %v7003_v61 = vmin.f32 %v14799_v57, 20.0  ;;  %vm7225_vm1 = vcmp.gt.f32.partialorder %v14778_v33, 20.0 }
 0x544   : > { %16314 = vst [vmem:[#allocation32_spill] sm:$0xff] %v14791_v60  ;;  %v6602_v20 = vpop.f32.mrb[138].mxu1  ;;  %v14819_v31 = vpop.eup %10384  ;;  %v6986_v0 = vmin.f32 %v14791_v60, 20.0  ;;  %16315 = vst [vmem:[#allocation67_spill] sm:$0xff] %v14830_v59  ;;  %v7004_v51 = vmin.f32 %v14830_v59, 20.0  ;;  %vm7243_vm4 = vcmp.gt.f32.partialorder %v14799_v57, 20.0 }
 0x545   : > { %v7075_v62 = vmul.f32 1.442695, %v6985_v49  ;;  %v6604_v48 = vpop.f32.mrb[139].mxu1  ;;  %v6519_v29 = vpop.f32.mrb[140].mxu0  ;;  %v7111_v34 = vmul.f32 1.442695, %v7003_v61  ;;  %v14827_v11 = vadd.f32 %v6602_v20, %v14601_v5 }
 0x546   : > { %v6521_v38 = vpop.f32.mrb[141].mxu0  ;;  %v14824_v25 = vpop.eup %10386  ;;  %v14836_v47 = vadd.f32 %v6604_v48, %v14601_v5  ;;  %v7077_v14 = vmul.f32 1.442695, %v6986_v0  ;;  %v14844_v48 = vadd.f32 %v6519_v29, %v14610_v6  ;;  %vm7242_vm10 = vcmp.gt.f32.partialorder %v14735_v32, 20.0 }
 0x547   : > { %10398 = vpow2.f32 %v7075_v62  ;;  %v10389_v4 = vpop.eup %10388  ;;  %v7005_v2 = vmin.f32 %v14827_v11, 20.0  ;;  %vm7245_vm0 = vcmp.gt.f32.partialorder %v14827_v11, 20.0 }
 0x548   : > { %10400 = vlog2.f32 %v7359_v46  ;;  %v6608_v42 = vpop.f32.mrb[140].mxu1  ;;  %v10391_v27 = vpop.eup %10390  ;;  %v7361_v41 = vadd.f32 1.0, %v10389_v4  ;;  %16316 = vst [vmem:[#allocation71_spill] sm:$0xff] %v14836_v47  ;;  %v7006_v61 = vmin.f32 %v14836_v47, 20.0  ;;  %v14854_v4 = vadd.f32 %v6521_v38, %v14610_v6 }
 0x549   : > { %10402 = vlog2.f32 %v7340_v16  ;;  %v6610_v19 = vpop.f32.mrb[141].mxu1  ;;  %v6525_v9 = vpop.f32.mrb[142].mxu0  ;;  %v7115_v16 = vmul.f32 1.442695, %v7005_v2  ;;  %v7464_v62 = vmul.f32 0.6931472, %v10391_v27 }
 0x54a   : > { %10404 = vlog2.f32 %v7342_v7  ;;  %v14832_v37 = vpop.f32.mrb[143].mxu0  ;;  %v10393_v12 = vpop.eup %10392  ;;  %v7113_v7 = vmul.f32 1.442695, %v7004_v51  ;;  %16317 = vst [vmem:[#allocation70_spill] sm:$0xff] %v14854_v4  ;;  %v7024_v54 = vmin.f32 %v14854_v4, 20.0  ;;  %v14876_v60 = vadd.f32 %v6610_v19, %v14610_v6 }
 0x54b   : > { %10406 = vpow2.f32 %v7111_v34  ;;  %v10395_v15 = vpop.eup %10394  ;;  %v7023_v34 = vmin.f32 %v14844_v48, 20.0  ;;  %v7468_v47 = vmul.f32 0.6931472, %v10393_v12  ;;  %vm7263_vm7 = vcmp.gt.f32.partialorder %v14844_v48, 20.0 }
 0x54c   : > { %10408 = vpow2.f32 %v7189_v26  ;;  %v6614_v49 = vpop.f32.mrb[142].mxu1  ;;  %v14850_v26 = vadd.f32 %v6608_v42, %v14610_v6  ;;  %v7360_v0 = vadd.f32 1.0, %v10395_v15  ;;  %16321 = vst [vmem:[#allocation65_spill] sm:$0xff] %v14876_v60 }
 0x54d   : > { %10410 = vlog2.f32 %v7361_v41  ;;  %v14839_v20 = vpop.f32.mrb[143].mxu1  ;;  %v14841_v18 = vpop.f32.mrb[144].mxu0  ;;  %v7151_v51 = vmul.f32 1.442695, %v7023_v34 }
 0x54e   : > { %v10397_v36 = vpop.eup %10396  ;;  %10412 = vpow2.f32 %v7073_v53  ;;  %v14846_v46 = vpop.f32.mrb[145].mxu0  ;;  %v7025_v27 = vmin.f32 %v14850_v26, 20.0  ;;  %vm7265_vm8 = vcmp.gt.f32.partialorder %v14850_v26, 20.0 }
 0x54f   : > { %v7303_v17 = vadd.f32 1.0, %v10397_v36  ;;  %10414 = vpow2.f32 %v7115_v16  ;;  %v14870_v16 = vsel %vm7259_vm12, %v14738_v50, %v7464_v62 }
 0x550   : > { %10416 = vpow2.f32 %v7077_v14  ;;  %v14856_v53 = vpop.f32.mrb[144].mxu1  ;;  %16319 = vst [vmem:[#allocation72_spill] sm:$0xff] %v14870_v16  ;;  %v7155_v62 = vmul.f32 1.442695, %v7025_v27 }
 0x551   : > { %v10399_v29 = vpop.eup %10398  ;;  %10418 = vlog2.f32 %v7303_v17  ;;  %v14860_v41 = vpop.f32.mrb[145].mxu1  ;;  %v7117_v17 = vmul.f32 1.442695, %v7006_v61  ;;  %v14889_v61 = vadd.f32 %v6614_v49, %v14613_v21 }
 0x552   : > { %v14862_v2 = vpop.f32.mrb[146].mxu0  ;;  %v10401_v42 = vpop.eup %10400  ;;  %v7305_v14 = vadd.f32 1.0, %v10399_v29  ;;  %10420 = vpow2.f32 %v7113_v7  ;;  %v14879_v7 = vadd.f32 %v6525_v9, %v14613_v21 }
 0x553   : > { %v14865_v38 = vpop.f32.mrb[147].mxu0  ;;  %v14867_v15 = vpop.eup %10402  ;;  %v7504_v36 = vmul.f32 0.6931472, %v10401_v42  ;;  %10422 = vlog2.f32 %v7360_v0  ;;  %v7045_v59 = vmin.f32 %v14889_v61, 20.0  ;;  %vm7285_vm12 = vcmp.gt.f32.partialorder %v14889_v61, 20.0 }
 0x554   : > { %16318 = vst [vmem:[#allocation69_spill] sm:$0xff] %v14867_v15  ;;  %v14873_v40 = vpop.eup %10404  ;;  %v14881_v34 = vpop.f32.mrb[146].mxu1  ;;  %10424 = vlog2.f32 %v7305_v14  ;;  %v7043_v49 = vmin.f32 %v14879_v7, 20.0  ;;  %vm7283_vm11 = vcmp.gt.f32.partialorder %v14879_v7, 20.0 }
 0x555   : > { %16320 = vst [vmem:[#allocation74_spill] sm:$0xff] %v14873_v40  ;;  %v10407_v29 = vpop.eup %10406  ;;  %v14886_v50 = vsel %vm7279_vm15, %v14754_v44, %v7504_v36  ;;  %v14891_v12 = vpop.f32.mrb[147].mxu1  ;;  %10426 = vpow2.f32 %v7151_v51  ;;  %v7153_v44 = vmul.f32 1.442695, %v7024_v54  ;;  %v7026_v36 = vmin.f32 %v14876_v60, 20.0 }
 0x556   : > { %16322 = vst [vmem:[#allocation73_spill] sm:$0xff] %v14886_v50  ;;  %v14893_v19 = vpop.f32.mrb[148].mxu0  ;;  %v10409_v0 = vpop.eup %10408  ;;  %v7323_v42 = vadd.f32 1.0, %v10407_v29  ;;  %10428 = vpow2.f32 %v7117_v17  ;;  %v14906_v51 = vsel %vm7261_vm13, %v14746_v8, %v7468_v47  ;;  %v7191_v17 = vmul.f32 1.442695, %v7043_v49 }
 0x557   : > { %v14897_v4 = vpop.f32.mrb[149].mxu0  ;;  %v10411_v28 = vpop.eup %10410  ;;  %16323 = vst [vmem:[#allocation38_spill] sm:$0xff] %v14906_v51  ;;  %v7195_v16 = vmul.f32 1.442695, %v7045_v59  ;;  %v14918_v50 = vadd.f32 %v14832_v37, %v14613_v21  ;;  %v7362_v49 = vadd.f32 1.0, %v10409_v0 }
 0x558   : > { %v10413_v27 = vpop.eup %10412  ;;  %v7508_v14 = vmul.f32 0.6931472, %v10411_v28  ;;  %10430 = vlog2.f32 %v7323_v42  ;;  %v14903_v30 = vpop.f32.mrb[148].mxu1  ;;  %v7157_v15 = vmul.f32 1.442695, %v7026_v36 }
 0x559   : > { %v10415_v29 = vpop.eup %10414  ;;  %10432 = vpow2.f32 %v7155_v62  ;;  %v14909_v54 = vpop.f32.mrb[149].mxu1  ;;  %16325 = vst [vmem:[#allocation36_spill] sm:$0xff] %v14918_v50  ;;  %v7304_v37 = vadd.f32 1.0, %v10413_v27  ;;  %v14944_v27 = vadd.f32 %v14839_v20, %v14613_v21 }
 0x55a   : > { %v14911_v9 = vpop.f32.mrb[150].mxu0  ;;  %v10417_v28 = vpop.eup %10416  ;;  %v14914_v42 = vsel %vm7281_vm14, %v14759_v35, %v7508_v14  ;;  %v7325_v60 = vadd.f32 1.0, %v10415_v29  ;;  %10434 = vpow2.f32 %v7153_v44  ;;  %v14926_v35 = vadd.f32 %v14841_v18, %v14589_v1 }
 0x55b   : > { %16324 = vst [vmem:[#allocation37_spill] sm:$0xff] %v14914_v42  ;;  %v14920_v8 = vpop.f32.mrb[151].mxu0  ;;  %v10419_v47 = vpop.eup %10418  ;;  %v14933_v14 = vadd.f32 %v14856_v53, %v14589_v1  ;;  %v7306_v44 = vadd.f32 1.0, %v10417_v28  ;;  %v7044_v18 = vmin.f32 %v14918_v50, 20.0  ;;  %16327 = vst [vmem:[#allocation22_spill] sm:$0xff] %v14944_v27 }
 0x55c   : > { %v10421_v40 = vpop.eup %10420  ;;  %10436 = vlog2.f32 %v7325_v60  ;;  %v14928_v59 = vpop.f32.mrb[150].mxu1  ;;  %v7392_v60 = vmul.f32 0.6931472, %v10419_v47  ;;  %v6987_v53 = vmin.f32 %v14926_v35, 20.0  ;;  %vm7227_vm15 = vcmp.gt.f32.partialorder %v14926_v35, 20.0 }
 0x55d   : > { %10438 = vpow2.f32 %v7191_v17  ;;  %v14935_v29 = vpop.f32.mrb[151].mxu1  ;;  %v14937_v0 = vpop.eup %10422  ;;  %v7324_v51 = vadd.f32 1.0, %v10421_v40  ;;  %v6989_v20 = vmin.f32 %v14933_v14, 20.0  ;;  %vm7229_vm13 = vcmp.gt.f32.partialorder %v14933_v14, 20.0 }
 0x55e   : > { %16326 = vst [vmem:[#allocation28_spill] sm:$0xff] %v14937_v0  ;;  %10440 = vpow2.f32 %v7195_v16  ;;  %v14940_v36 = vpop.f32.mrb[152].mxu0  ;;  %v10425_v62 = vpop.eup %10424  ;;  %v7079_v47 = vmul.f32 1.442695, %v6987_v53  ;;  %v14960_v0 = vsel %vm7223_vm3, %v14770_v3, %v7392_v60  ;;  %v14973_v60 = vadd.f32 %v14862_v2, %v14601_v5 }
 0x55f   : > { %10442 = vlog2.f32 %v7362_v49  ;;  %v14947_v17 = vpop.f32.mrb[153].mxu0  ;;  %v10427_v42 = vpop.eup %10426  ;;  %16330 = vst [vmem:[#allocation35_spill] sm:$0xff] %v14960_v0 }
 0x560   : > { %16328 = vst [vmem:[#allocation27_spill] sm:$0xff] %v14947_v17  ;;  %10444 = vpow2.f32 %v7157_v15  ;;  %v14952_v16 = vpop.f32.mrb[152].mxu1  ;;  %v10429_v28 = vpop.eup %10428  ;;  %v7343_v40 = vadd.f32 1.0, %v10427_v42  ;;  %v7193_v17 = vmul.f32 1.442695, %v7044_v18  ;;  %v14964_v15 = vadd.f32 %v14846_v46, %v14589_v1 }
 0x561   : > { %10446 = vlog2.f32 %v7304_v37  ;;  %v14955_v49 = vpop.f32.mrb[153].mxu1  ;;  %v14966_v10 = vpop.f32.mrb[154].mxu0  ;;  %v7396_v37 = vmul.f32 0.6931472, %v10425_v62  ;;  %v7326_v56 = vadd.f32 1.0, %v10429_v28  ;;  %vm7247_vm14 = vcmp.gt.f32.partialorder %v14973_v60, 20.0 }
 0x562   : > { %16329 = vst [vmem:[#allocation20_spill] sm:$0xff] %v14955_v49  ;;  %v10431_v50 = vpop.eup %10430  ;;  %10448 = vlog2.f32 %v7306_v44  ;;  %16331 = vst [vmem:[#allocation21_spill] sm:$0xff] %v14964_v15  ;;  %v7046_v49 = vmin.f32 %v14944_v27, 20.0  ;;  %v14969_v24 = vpop.f32.mrb[155].mxu0 }
 0x563   : > { %v10433_v42 = vpop.eup %10432  ;;  %v7432_v53 = vmul.f32 0.6931472, %v10431_v50  ;;  %10450 = vlog2.f32 %v7324_v51  ;;  %v7083_v50 = vmul.f32 1.442695, %v6989_v20  ;;  %v14984_v51 = vadd.f32 %v14881_v34, %v14601_v5 }
 0x564   : > { %10452 = vlog2.f32 %v7343_v40  ;;  %v7345_v3 = vadd.f32 1.0, %v10433_v42  ;;  %v14975_v44 = vpop.f32.mrb[154].mxu1  ;;  %v10435_v46 = vpop.eup %10434  ;;  %v6988_v40 = vmin.f32 %v14964_v15, 20.0  ;;  %v14993_v42 = vadd.f32 %v14860_v41, %v14589_v1 }
 0x565   : > { %v14980_v62 = vsel %vm7243_vm4, %v14799_v57, %v7432_v53  ;;  %10454 = vpow2.f32 %v7079_v47  ;;  %v14986_v18 = vpop.f32.mrb[155].mxu1  ;;  %v14995_v57 = vpop.f32.mrb[156].mxu0  ;;  %v15000_v34 = vsel %vm7225_vm1, %v14778_v33, %v7396_v37  ;;  %v7197_v53 = vmul.f32 1.442695, %v7046_v49 }
 0x566   : > { %16332 = vst [vmem:[#allocation33_spill] sm:$0xff] %v14980_v62  ;;  %v10437_v28 = vpop.eup %10436  ;;  %10456 = vlog2.f32 %v7345_v3  ;;  %16333 = vst [vmem:[#allocation19_spill] sm:$0xff] %v14993_v42  ;;  %v15002_v27 = vpop.f32.mrb[157].mxu0  ;;  %v7344_v2 = vadd.f32 1.0, %v10435_v46  ;;  %v7007_v41 = vmin.f32 %v14973_v60, 20.0  ;;  %vm7249_vm3 = vcmp.gt.f32.partialorder %v14984_v51, 20.0 }
 0x567   : > { %v10439_v47 = vpop.eup %10438  ;;  %16334 = vst [vmem:[#allocation10_spill] sm:$0xff] %v15000_v34  ;;  %v7436_v20 = vmul.f32 0.6931472, %v10437_v28  ;;  %10458 = vpow2.f32 %v7193_v17  ;;  %16335 = vst [vmem:[#allocation15_spill] sm:$0xff] %v15002_v27  ;;  %v7009_v17 = vmin.f32 %v14984_v51, 20.0  ;;  %vm7260_vm1 = vcmp.gt.f32.partialorder %v14742_v63, 20.0 }
 0x568   : > { %v10441_v3 = vpop.eup %10440  ;;  %10460 = vlog2.f32 %v7326_v56  ;;  %v7363_v15 = vadd.f32 1.0, %v10439_v47  ;;  %v15005_v0 = vpop.f32.mrb[156].mxu1  ;;  %v7081_v28 = vmul.f32 1.442695, %v6988_v40  ;;  %v6990_v47 = vmin.f32 %v14993_v42, 20.0 }
 0x569   : > { %16336 = vst [vmem:[#allocation11_spill] sm:$0xff] %v15005_v0  ;;  %v15007_v62 = vpop.eup %10442  ;;  %v15012_v33 = vsel %vm7245_vm0, %v14827_v11, %v7436_v20  ;;  %v7365_v37 = vadd.f32 1.0, %v10441_v3  ;;  %10462 = vpow2.f32 %v7083_v50  ;;  %v15015_v49 = vpop.f32.mrb[157].mxu1  ;;  %v7119_v11 = vmul.f32 1.442695, %v7007_v41 }
 0x56a   : > { %16337 = vst [vmem:[#allocation18_spill] sm:$0xff] %v15012_v33  ;;  %v10445_v56 = vpop.eup %10444  ;;  %10464 = vlog2.f32 %v7363_v15  ;;  %v15020_v27 = vpop.f32.mrb[158].mxu0  ;;  %v15026_v50 = vadd.f32 %v14865_v38, %v14601_v5  ;;  %v7123_v46 = vmul.f32 1.442695, %v7009_v17  ;;  %v15034_v15 = vadd.f32 %v14891_v12, %v14601_v5 }
 0x56b   : > { %16338 = vst [vmem:[#allocation59_spill] sm:$0xff] %v15020_v27  ;;  %v15022_v0 = vpop.eup %10446  ;;  %10466 = vlog2.f32 %v7365_v37  ;;  %v15028_v20 = vpop.f32.mrb[159].mxu0  ;;  %v15038_v40 = vadd.f32 %v14893_v19, %v14610_v6  ;;  %v7346_v38 = vadd.f32 1.0, %v10445_v56  ;;  %v7085_v17 = vmul.f32 1.442695, %v6990_v47 }
 0x56c   : > { %16339 = vst [vmem:[#allocation12_spill] sm:$0xff] %v15026_v50  ;;  %16340 = vst [vmem:[#allocation9_spill] sm:$0xff] %v15028_v20  ;;  %v15030_v3 = vpop.eup %10448  ;;  %10468 = vpow2.f32 %v7197_v53  ;;  %v15040_v37 = vpop.f32.mrb[158].mxu1  ;;  %v7008_v42 = vmin.f32 %v15026_v50, 20.0  ;;  %v7010_v12 = vmin.f32 %v15034_v15, 20.0  ;;  %v15050_v33 = vadd.f32 %v14903_v30, %v14610_v6 }
 0x56d   : > { %16341 = vst [vmem:[#allocation52_spill] sm:$0xff] %v15034_v15  ;;  %16342 = vst [vmem:[#allocation51_spill] sm:$0xff] %v15040_v37  ;;  %v15042_v41 = vpop.eup %10450  ;;  %10470 = vlog2.f32 %v7344_v2  ;;  %v15045_v34 = vpop.f32.mrb[159].mxu1  ;;  %v7027_v2 = vmin.f32 %v15038_v40, 20.0 }
 0x56e   : > { %16343 = vst [vmem:[#allocation17_spill] sm:$0xff] %v15045_v34  ;;  %v10453_v53 = vpop.eup %10452  ;;  %10472 = vpow2.f32 %v7081_v28  ;;  %v7121_v34 = vmul.f32 1.442695, %v7008_v42  ;;  %v7386_v28 = vmul.f32 0.6931472, %v14801_v52  ;;  %v7029_v37 = vmin.f32 %v15050_v33, 20.0 }
 0x56f   : > { %v10455_v19 = vpop.eup %10454  ;;  %10474 = vpow2.f32 %v7119_v11  ;;  %v7472_v15 = vmul.f32 0.6931472, %v10453_v53  ;;  %v7159_v30 = vmul.f32 1.442695, %v7027_v2  ;;  %v7125_v11 = vmul.f32 1.442695, %v7010_v12 }
 0x570   : > { %v10457_v56 = vpop.eup %10456  ;;  %v7307_v50 = vadd.f32 1.0, %v10455_v19  ;;  %10476 = vpow2.f32 %v7123_v46  ;;  %v15066_v42 = vadd.f32 %v14897_v4, %v14610_v6  ;;  %v7163_v53 = vmul.f32 1.442695, %v7029_v37 }
 0x571   : > { %v10459_v47 = vpop.eup %10458  ;;  %10478 = vlog2.f32 %v7346_v38  ;;  %v7476_v52 = vmul.f32 0.6931472, %v10457_v56  ;;  %v15072_v12 = vsel %vm7263_vm7, %v14844_v48, %v7472_v15  ;;  %v15076_v4 = vadd.f32 %v14909_v54, %v14610_v6 }
 0x572   : > { %v15057_v20 = vpop.eup %10460  ;;  %10480 = vpow2.f32 %v7085_v17  ;;  %v7364_v38 = vadd.f32 1.0, %v10459_v47  ;;  %v7426_v47 = vmul.f32 0.6931472, %v14819_v31 }
 0x573   : > { %v10463_v27 = vpop.eup %10462  ;;  %10482 = vlog2.f32 %v7307_v50  ;;  %v15084_v37 = vsel %vm7265_vm8, %v14850_v26, %v7476_v52  ;;  %v7540_v26 = vsel %vm7220_vm5, %v14710_v45, %v7386_v28  ;;  %vm7269_vm8 = vcmp.gt.f32.partialorder %v15050_v33, 20.0 }
 0x574   : > { %v10465_v46 = vpop.eup %10464  ;;  %10484 = vpow2.f32 %v7121_v34  ;;  %v7309_v2 = vadd.f32 1.0, %v10463_v27  ;;  %v7028_v27 = vmin.f32 %v15066_v42, 20.0 }
 0x575   : > { %v10467_v17 = vpop.eup %10466  ;;  %v7512_v19 = vmul.f32 0.6931472, %v10465_v46  ;;  %10486 = vpow2.f32 %v7159_v30 }
 0x576   : > { %v10469_v50 = vpop.eup %10468  ;;  %v7516_v56 = vmul.f32 0.6931472, %v10467_v17  ;;  %10488 = vpow2.f32 %v7125_v11  ;;  %v7161_v54 = vmul.f32 1.442695, %v7028_v27 }
 0x577   : > { %v15079_v34 = vpop.eup %10470  ;;  %v15089_v48 = vsel %vm7283_vm11, %v14879_v7, %v7512_v19  ;;  %10490 = vpow2.f32 %v7163_v53  ;;  %v7560_v7 = vsel %vm7240_vm6, %v14725_v58, %v7426_v47  ;;  %v7366_v52 = vadd.f32 1.0, %v10469_v50 }
 0x578   : > { %v10473_v15 = vpop.eup %10472  ;;  %v15097_v31 = vsel %vm7285_vm12, %v14889_v61, %v7516_v56  ;;  %10492 = vlog2.f32 %v7309_v2  ;;  %v9110_v46 = vpack.c.bf16 %v7560_v7, %v7540_v26  ;;  %v7030_v61 = vmin.f32 %v15076_v4, 20.0 }
 0x579   : > { %v10475_v30 = vpop.eup %10474  ;;  %v7390_v19 = vmul.f32 0.6931472, %v14806_v22  ;;  %v7430_v56 = vmul.f32 0.6931472, %v14824_v25  ;;  %v15114_v58 = vadd.f32 %v14911_v9, %v14613_v21  ;;  %v15118_v2 = vadd.f32 %v14928_v59, %v14613_v21 }
 0x57a   : > { %v10477_v53 = vpop.eup %10476  ;;  %v7327_v17 = vadd.f32 1.0, %v10475_v30  ;;  %9111 = vmatprep.subr.bf16.mxu0 %v9110_v46  ;;  %v16344_v47 = vpack.c.bf16 %v14796_v39, %v14788_v23  ;;  %v15131_v9 = vadd.f32 %v14920_v8, %v14613_v21  ;;  %v7308_v27 = vadd.f32 1.0, %v10473_v15 }
 0x57b   : > { %v15110_v45 = vpop.eup %10478  ;;  %v7329_v28 = vadd.f32 1.0, %v10477_v53  ;;  %v7542_v22 = vsel %vm7222_vm9, %v14718_v55, %v7390_v19  ;;  %v7562_v25 = vsel %vm7242_vm10, %v14735_v32, %v7430_v56  ;;  %v7047_v7 = vmin.f32 %v15114_v58, 20.0 }
 0x57c   : > { %v10481_v50 = vpop.eup %10480  ;;  %10494 = vlog2.f32 %v7327_v17  ;;  %9113 = vmatpush1.bf16.msra.mxu0 %v16344_v47  ;;  %v9118_v26 = vpack.c.bf16 %v7562_v25, %v7542_v22  ;;  %v7165_v55 = vmul.f32 1.442695, %v7030_v61  ;;  %v7049_v46 = vmin.f32 %v15118_v2, 20.0  ;;  %v16347_v25 = vld [vmem:[#allocation68_spill] sm:$0xff] }
 0x57d   : > { %v10483_v59 = vpop.eup %10482  ;;  %10496 = vlog2.f32 %v7329_v28  ;;  %v15843_v53 = vlaneseq  ;;  %v7199_v23 = vmul.f32 1.442695, %v7047_v7  ;;  %v7310_v8 = vadd.f32 1.0, %v10481_v50 }
 0x57e   : > { %v10485_v30 = vpop.eup %10484  ;;  %10498 = vlog2.f32 %v7364_v38  ;;  %9119 = vmatprep.subr.bf16.mxu1 %v9118_v26  ;;  %v16345_v15 = vpack.c.bf16 %v14816_v43, %v14811_v13  ;;  %v7048_v17 = vmin.f32 %v15131_v9, 20.0  ;;  %v15144_v61 = vadd.f32 %v14935_v29, %v14613_v21 }
 0x57f   : > { %v10487_v32 = vpop.eup %10486  ;;  %10500 = vlog2.f32 %v7366_v52  ;;  %v7203_v19 = vmul.f32 1.442695, %v7049_v46  ;;  %v15152_v13 = vadd.f32 %v14952_v16, %v14589_v1  ;;  %v7400_v29 = vmul.f32 0.6931472, %v10483_v59  ;;  %v16348_v16 = vld [vmem:[#allocation56_spill] sm:$0xff]  ;;  %v16349_v59 = vld [vmem:[#allocation27_spill] sm:$0xff] }
 0x580   : > { %v10489_v39 = vpop.eup %10488  ;;  %10502 = vpow2.f32 %v7161_v54  ;;  %9121 = vmatpush1.bf16.msra.mxu1 %v16345_v15  ;;  %v7347_v52 = vadd.f32 1.0, %v10487_v32  ;;  %v15148_v54 = vadd.f32 %v14940_v36, %v14589_v1  ;;  %v7050_v28 = vmin.f32 %v15144_v61, 20.0  ;;  %v16346_v36 = vld [vmem:[#allocation53_spill] sm:$0xff] }
 0x581   : > { %v10491_v38 = vpop.eup %10490  ;;  %10504 = vlog2.f32 %v7308_v27  ;;  %v7201_v50 = vmul.f32 1.442695, %v7048_v17  ;;  %vm7262_vm4 = vcmp.gt.f32.partialorder %v16346_v36, 20.0  ;;  %vm7280_vm0 = vcmp.gt.f32.partialorder %v16347_v25, 20.0  ;;  %v16350_v17 = vld [vmem:[#allocation20_spill] sm:$0xff] }
 0x582   : > { %10506 = vpow2.f32 %v7165_v55  ;;  %v10493_v43 = vpop.eup %10492  ;;  %v7349_v56 = vadd.f32 1.0, %v10491_v38  ;;  %v6991_v22 = vmin.f32 %v15148_v54, 20.0  ;;  %vm7282_vm5 = vcmp.gt.f32.partialorder %v16348_v16, 20.0 }
 0x583   : > { %10508 = vpow2.f32 %v7199_v23  ;;  %v7328_v47 = vadd.f32 1.0, %v10485_v30  ;;  %v7205_v27 = vmul.f32 1.442695, %v7050_v28  ;;  %v6993_v26 = vmin.f32 %v15152_v13, 20.0 }
 0x584   : > { %10510 = vlog2.f32 %v7310_v8  ;;  %v7404_v55 = vmul.f32 0.6931472, %v10493_v43  ;;  %v7087_v46 = vmul.f32 1.442695, %v6991_v22  ;;  %v15164_v32 = vadd.f32 %v16349_v59, %v14589_v1 }
 0x585   : > { %10512 = vlog2.f32 %v7347_v52  ;;  %v7091_v15 = vmul.f32 1.442695, %v6993_v26  ;;  %v15168_v38 = vadd.f32 %v16350_v17, %v14589_v1  ;;  %v15175_v52 = vsel %vm7227_vm15, %v14926_v35, %v7400_v29 }
 0x586   : > { %v10495_v7 = vpop.eup %10494  ;;  %10514 = vpow2.f32 %v7203_v19  ;;  %v6992_v43 = vmin.f32 %v15164_v32, 20.0  ;;  %v7330_v1 = vadd.f32 1.0, %v10489_v39  ;;  %v15189_v35 = vsel %vm7229_vm13, %v14933_v14, %v7404_v55  ;;  %v16353_v55 = vld [vmem:[#allocation28_spill] sm:$0xff]  ;;  %v16369_v39 = vld [vmem:[#allocation15_spill] sm:$0xff] }
 0x587   : > { %v10497_v23 = vpop.eup %10496  ;;  %v7440_v8 = vmul.f32 0.6931472, %v10495_v7  ;;  %10516 = vlog2.f32 %v7349_v56  ;;  %v6994_v22 = vmin.f32 %v15168_v38, 20.0  ;;  %16351 = vst [vmem:[#allocation16_spill] sm:$0xff] %v15189_v35  ;;  %v16352_v7 = vld [vmem:[#allocation69_spill] sm:$0xff]  ;;  %vm7267_vm6 = vcmp.gt.f32.partialorder %v15038_v40, 20.0 }
 0x588   : > { %v15170_v30 = vpop.eup %10498  ;;  %v7444_v19 = vmul.f32 0.6931472, %v10497_v23  ;;  %10518 = vpow2.f32 %v7201_v50  ;;  %v7466_v59 = vmul.f32 0.6931472, %v16352_v7  ;;  %v7506_v23 = vmul.f32 0.6931472, %v16353_v55 }
 0x589   : > { %v15178_v28 = vpop.eup %10500  ;;  %v15183_v56 = vsel %vm7247_vm14, %v14973_v60, %v7440_v8  ;;  %10520 = vpow2.f32 %v7205_v27  ;;  %v7089_v27 = vmul.f32 1.442695, %v6992_v43  ;;  %v16354_v8 = vld [vmem:[#allocation74_spill] sm:$0xff]  ;;  %v7510_v29 = vmul.f32 0.6931472, %v15007_v62 }
 0x58a   : > { %v10503_v26 = vpop.eup %10502  ;;  %v15196_v50 = vsel %vm7249_vm3, %v14984_v51, %v7444_v19  ;;  %10522 = vpow2.f32 %v7087_v46  ;;  %v7470_v17 = vmul.f32 0.6931472, %v16354_v8  ;;  %v7093_v46 = vmul.f32 1.442695, %v6994_v22 }
 0x58b   : > { %v15198_v60 = vpop.eup %10504  ;;  %10524 = vpow2.f32 %v7091_v15  ;;  %v7580_v19 = vsel %vm7260_vm1, %v14742_v63, %v7466_v59  ;;  %v15211_v15 = vadd.f32 %v14966_v10, %v14601_v5  ;;  %v7600_v7 = vsel %vm7280_vm0, %v16347_v25, %v7506_v23 }
 0x58c   : > { %v10507_v14 = vpop.eup %10506  ;;  %10526 = vlog2.f32 %v7328_v47  ;;  %v7582_v62 = vsel %vm7262_vm4, %v16346_v36, %v7470_v17  ;;  %v9114_v22 = vpack.c.bf16 %v7600_v7, %v7580_v19  ;;  %v15225_v55 = vshrl.u32 %v15843_v53, 7  ;;  %v16357_v19 = vld [vmem:[#allocation73_spill] sm:$0xff] }
 0x58d   : > { %v10509_v51 = vpop.eup %10508  ;;  %10528 = vlog2.f32 %v7330_v1  ;;  %v7602_v1 = vsel %vm7282_vm5, %v16348_v16, %v7510_v29  ;;  %v7011_v8 = vmin.f32 %v15211_v15, 20.0  ;;  %v15230_v25 = vadd.f32 %v14975_v44, %v14601_v5  ;;  %v16360_v7 = vld [vmem:[#allocation37_spill] sm:$0xff] }
 0x58e   : > { %v15213_v43 = vpop.eup %10510  ;;  %v7367_v47 = vadd.f32 1.0, %v10509_v51  ;;  %10530 = vpow2.f32 %v7089_v27  ;;  %v9122_v10 = vpack.c.bf16 %v7602_v1, %v7582_v62  ;;  %16355 = vst [vmem:[#allocation34_spill] sm:$0xff] %v15225_v55  ;;  %v7348_v23 = vadd.f32 1.0, %v10503_v26  ;;  %9115 = vmatprep.subr.bf16.mxu0 %v9114_v22  ;;  %v16361_v26 = vld [vmem:[#allocation38_spill] sm:$0xff] }
 0x58f   : > { %v10513_v63 = vpop.eup %10512  ;;  %v15234_v16 = vadd.f32 %v14969_v24, %v14601_v5  ;;  %v15238_v29 = vadd.f32 %v14986_v18, %v14601_v5  ;;  %v7350_v51 = vadd.f32 1.0, %v10507_v14  ;;  %v16362_v62 = vpack.c.bf16 %v16360_v7, %v16361_v26 }
 0x590   : > { %v10515_v59 = vpop.eup %10514  ;;  %10532 = vlog2.f32 %v7367_v47  ;;  %9123 = vmatprep.subr.bf16.mxu1 %v9122_v10  ;;  %v16358_v47 = vld [vmem:[#allocation72_spill] sm:$0xff]  ;;  %v7127_v1 = vmul.f32 1.442695, %v7011_v8  ;;  %v15248_v24 = vadd.f32 %v14995_v57, %v14610_v6  ;;  %v7480_v5 = vmul.f32 0.6931472, %v10513_v63 }
 0x591   : > { %v10517_v36 = vpop.eup %10516  ;;  %v7369_v17 = vadd.f32 1.0, %v10515_v59  ;;  %16356 = vst [vmem:[#allocation29_spill] sm:$0xff] %v15238_v29  ;;  %10534 = vpow2.f32 %v7093_v46  ;;  %v16359_v44 = vpack.c.bf16 %v16357_v19, %v16358_v47  ;;  %9125 = vmatpush1.bf16.msra.mxu1 %v16362_v62  ;;  %v7013_v18 = vmin.f32 %v15230_v25, 20.0  ;;  %v16364_v46 = vld [vmem:[#allocation66_spill] sm:$0xff]  ;;  %v16365_v19 = vld [vmem:[#allocation67_spill] sm:$0xff] }
 0x592   : > { %v10519_v27 = vpop.eup %10518  ;;  %16363 = vst [vmem:[#allocation30_spill] sm:$0xff] %v15248_v24  ;;  %vm7224_vm7 = vcmp.gt.f32.partialorder %v16364_v46, 20.0  ;;  %v7484_v10 = vmul.f32 0.6931472, %v10517_v36  ;;  %v7012_v59 = vmin.f32 %v15234_v16, 20.0  ;;  %vm7244_vm9 = vcmp.gt.f32.partialorder %v16365_v19, 20.0 }
 0x593   : > { %9117 = vmatpush1.bf16.msra.mxu0 %v16359_v44  ;;  %v10521_v22 = vpop.eup %10520  ;;  %10536 = vlog2.f32 %v7369_v17  ;;  %v7368_v57 = vadd.f32 1.0, %v10519_v27  ;;  %v7014_v63 = vmin.f32 %v15238_v29, 20.0  ;;  %v15260_v17 = vld [vmem:[%s15622_s4] sm:$0x1]  ;;  %vm7287_vm10 = vcmp.gt.f32.partialorder %v15114_v58, 20.0 }
 0x594   : > { %v10523_v14 = vpop.eup %10522  ;;  %10538 = vpow2.f32 %v7127_v1  ;;  %8843 = vmatmul.mubr.msk.f32.vlgmr.msra.gmra.mrb[162].mxu1 %vm1941_vm2, %v15260_v17  ;;  %v7031_v27 = vmin.f32 %v15248_v24, 20.0  ;;  %v16366_v44 = vmov 0.0   ;;  %v15277_v26 = vsel %vm7267_vm6, %v15038_v40, %v7480_v5  ;;  %v16367_v62 = vld [vmem:[#allocation11_spill] sm:$0xff]  ;;  %v16370_v5 = vld [vmem:[#allocation32_spill] sm:$0xff] }
 0x595   : > { %v10525_v8 = vpop.eup %10524  ;;  %10540 = vlog2.f32 %v7348_v23  ;;  %v7311_v47 = vadd.f32 1.0, %v10523_v14  ;;  %8048 = vmatprep.mubr.f32.mxu1 %v16366_v44  ;;  %vm7289_vm11 = vcmp.gt.f32.partialorder %v15118_v2, 20.0  ;;  %v15282_v1 = vadd.f32 %v16367_v62, %v14610_v6 }
 0x596   : > { %8842 = vmatmul.mubr.msk.f32.vlgmr.msra.gmra.mrb[162].mxu0 %vm1941_vm2, %v15260_v17  ;;  %v15266_v36 = vpop.eup %10526  ;;  %10542 = vlog2.f32 %v7350_v51  ;;  %v7313_v23 = vadd.f32 1.0, %v10525_v8  ;;  %v7131_v51 = vmul.f32 1.442695, %v7013_v18  ;;  %v15287_v14 = vsel %vm7269_vm8, %v15050_v33, %v7484_v10 }
 0x597   : > { %7977 = vmatprep.mubr.f32.mxu0 %v16366_v44  ;;  %v15272_v7 = vpop.eup %10528  ;;  %10544 = vlog2.f32 %v7311_v47  ;;  %16368 = vst [vmem:[#allocation42_spill] sm:$0xff] %v15282_v1  ;;  %v7370_v8 = vadd.f32 1.0, %v10521_v22  ;;  %v7129_v53 = vmul.f32 1.442695, %v7012_v59  ;;  %v15291_v11 = vadd.f32 %v16369_v39, %v14610_v6  ;;  %v16371_v47 = vld [vmem:[#allocation71_spill] sm:$0xff] }
 0x598   : > { %v10531_v40 = vpop.eup %10530  ;;  %vm7226_vm12 = vcmp.gt.f32.partialorder %v16370_v5, 20.0  ;;  %vm7246_vm15 = vcmp.gt.f32.partialorder %v16371_v47, 20.0  ;;  %10546 = vlog2.f32 %v7368_v57  ;;  %v7133_v18 = vmul.f32 1.442695, %v7014_v63 }
 0x599   : > { %v7033_v62 = vmin.f32 %v15282_v1, 20.0  ;;  %v15298_v24 = vadd.f32 %v15015_v49, %v14610_v6  ;;  %10548 = vlog2.f32 %v7313_v23  ;;  %v7167_v22 = vmul.f32 1.442695, %v7031_v27 }
 0x59a   : > { %v10533_v33 = vpop.eup %10532  ;;  %v7032_v10 = vmin.f32 %v15291_v11, 20.0  ;;  %v7394_v39 = vmul.f32 0.6931472, %v15022_v0  ;;  %10550 = vpow2.f32 %v7131_v51  ;;  %v7312_v63 = vadd.f32 1.0, %v10531_v40  ;;  %v16389_v51 = vld [vmem:[#allocation19_spill] sm:$0xff] }
 0x59b   : > { %v7520_v59 = vmul.f32 0.6931472, %v10533_v33  ;;  %v7171_v55 = vmul.f32 1.442695, %v7033_v62  ;;  %v7034_v29 = vmin.f32 %v15298_v24, 20.0  ;;  %v10535_v57 = vpop.eup %10534  ;;  %10552 = vpow2.f32 %v7129_v53  ;;  %v16372_v62 = vld [vmem:[#allocation70_spill] sm:$0xff] }
 0x59c   : > { %v7169_v1 = vmul.f32 1.442695, %v7032_v10  ;;  %v7434_v35 = vmul.f32 0.6931472, %v15042_v41  ;;  %10554 = vpow2.f32 %v7133_v18  ;;  %v7544_v0 = vsel %vm7224_vm7, %v16364_v46, %v7394_v39  ;;  %v16374_v10 = vld [vmem:[#allocation36_spill] sm:$0xff] }
 0x59d   : > { %v10537_v6 = vpop.eup %10536  ;;  %v15307_v49 = vsel %vm7287_vm10, %v15114_v58, %v7520_v59  ;;  %v7173_v23 = vmul.f32 1.442695, %v7034_v29  ;;  %10556 = vpow2.f32 %v7167_v22  ;;  %vm7231_vm13 = vcmp.gt.f32.partialorder %v15148_v54, 20.0  ;;  %v16375_v59 = vld [vmem:[#allocation51_spill] sm:$0xff] }
 0x59e   : > { %v10539_v27 = vpop.eup %10538  ;;  %v7524_v53 = vmul.f32 0.6931472, %v10537_v6  ;;  %v7564_v41 = vsel %vm7244_vm9, %v16365_v19, %v7434_v35  ;;  %10558 = vpow2.f32 %v7171_v55  ;;  %v7398_v18 = vmul.f32 0.6931472, %v15030_v3  ;;  %v16373_v19 = vld [vmem:[#allocation59_spill] sm:$0xff]  ;;  %v16376_v6 = vld [vmem:[#allocation33_spill] sm:$0xff] }
 0x59f   : > { %v15317_v40 = vpop.eup %10540  ;;  %v7331_v58 = vadd.f32 1.0, %v10539_v27  ;;  %v9126_v29 = vpack.c.bf16 %v7564_v41, %v7544_v0  ;;  %vm7264_vm14 = vcmp.gt.f32.partialorder %v16372_v62, 20.0  ;;  %10560 = vpow2.f32 %v7169_v1  ;;  %v16377_v0 = vld [vmem:[#allocation35_spill] sm:$0xff] }
 0x5a0   : > { %v15321_v46 = vpop.eup %10542  ;;  %v15327_v33 = vsel %vm7289_vm11, %v15118_v2, %v7524_v53  ;;  %v7438_v35 = vmul.f32 0.6931472, %v15057_v20  ;;  %v15332_v22 = vadd.f32 %v16373_v19, %v14613_v21  ;;  %vm7284_vm3 = vcmp.gt.f32.partialorder %v16374_v10, 20.0 }
 0x5a1   : > { %v10545_v55 = vpop.eup %10544  ;;  %v7314_v39 = vadd.f32 1.0, %v10535_v57  ;;  %10562 = vlog2.f32 %v7331_v58  ;;  %9127 = vmatprep.subr.bf16.mxu0 %v9126_v29  ;;  %v15339_v2 = vadd.f32 %v16375_v59, %v14613_v21  ;;  %v7546_v20 = vsel %vm7226_vm12, %v16370_v5, %v7398_v18  ;;  %v16379_v5 = vld [vmem:[#allocation65_spill] sm:$0xff]  ;;  %v16380_v29 = vld [vmem:[#allocation22_spill] sm:$0xff] }
 0x5a2   : > { %10564 = vpow2.f32 %v7173_v23  ;;  %v7566_v1 = vsel %vm7246_vm15, %v16371_v47, %v7438_v35  ;;  %v16378_v27 = vpack.c.bf16 %v16376_v6, %v16377_v0  ;;  %v7051_v57 = vmin.f32 %v15332_v22, 20.0  ;;  %v15351_v53 = vpop.eup %10546  ;;  %v16381_v35 = vld [vmem:[#allocation9_spill] sm:$0xff] }
 0x5a3   : > { %10566 = vlog2.f32 %v7370_v8  ;;  %vm7233_vm1 = vcmp.gt.f32.partialorder %v15152_v13, 20.0  ;;  %v9134_v23 = vpack.c.bf16 %v7566_v1, %v7546_v20  ;;  %v7053_v41 = vmin.f32 %v15339_v2, 20.0  ;;  %v10549_v58 = vpop.eup %10548  ;;  %v16382_v20 = vld [vmem:[#allocation17_spill] sm:$0xff] }
 0x5a4   : > { %9129 = vmatpush1.bf16.msra.mxu0 %v16378_v27  ;;  %vm7266_vm4 = vcmp.gt.f32.partialorder %v16379_v5, 20.0  ;;  %vm7286_vm0 = vcmp.gt.f32.partialorder %v16380_v29, 20.0  ;;  %v7408_v47 = vmul.f32 0.6931472, %v10545_v55  ;;  %10568 = vlog2.f32 %v7312_v63  ;;  %v10551_v59 = vpop.eup %10550  ;;  %v16384_v27 = vld [vmem:[#allocation21_spill] sm:$0xff]  ;;  %v16385_v55 = vld [vmem:[#allocation12_spill] sm:$0xff] }
 0x5a5   : > { %v7207_v18 = vmul.f32 1.442695, %v7051_v57  ;;  %v15359_v19 = vadd.f32 %v16381_v35, %v14613_v21  ;;  %10570 = vlog2.f32 %v7314_v39  ;;  %9135 = vmatprep.subr.bf16.mxu1 %v9134_v23  ;;  %v7211_v8 = vmul.f32 1.442695, %v7053_v41  ;;  %v10553_v0 = vpop.eup %10552  ;;  %v16386_v57 = vld [vmem:[#allocation18_spill] sm:$0xff] }
 0x5a6   : > { %v15363_v1 = vadd.f32 %v16382_v20, %v14613_v21  ;;  %v7474_v6 = vmul.f32 0.6931472, %v15079_v34  ;;  %vm7228_vm5 = vcmp.gt.f32.partialorder %v16384_v27, 20.0  ;;  %vm7248_vm6 = vcmp.gt.f32.partialorder %v16385_v55, 20.0  ;;  %v16387_v35 = vld [vmem:[#allocation10_spill] sm:$0xff]  ;;  %v10555_v23 = vpop.eup %10554 }
 0x5a7   : > { %vm7251_vm7 = vcmp.gt.f32.partialorder %v15211_v15, 20.0  ;;  %v7333_v63 = vadd.f32 1.0, %v10551_v59  ;;  %v16388_v3 = vpack.c.bf16 %v16386_v57, %v16387_v35  ;;  %10572 = vpow2.f32 %v7207_v18  ;;  %v10557_v20 = vpop.eup %10556  ;;  %v16390_v35 = vld [vmem:[#allocation52_spill] sm:$0xff] }
 0x5a8   : > { %16383 = vst [vmem:[#allocation44_spill] sm:$0xff] %v15363_v1  ;;  %v7052_v39 = vmin.f32 %v15359_v19, 20.0  ;;  %v7412_v21 = vmul.f32 0.6931472, %v10549_v58  ;;  %v7332_v41 = vadd.f32 1.0, %v10553_v0  ;;  %10574 = vpow2.f32 %v7211_v8  ;;  %v10559_v18 = vpop.eup %10558 }
 0x5a9   : > { %9137 = vmatpush1.bf16.msra.mxu1 %v16388_v3  ;;  %v7054_v34 = vmin.f32 %v15363_v1, 20.0  ;;  %vm7230_vm8 = vcmp.gt.f32.partialorder %v16389_v51, 20.0  ;;  %v15378_v59 = vsel %vm7231_vm13, %v15148_v54, %v7408_v47  ;;  %10576 = vlog2.f32 %v7333_v63  ;;  %v10561_v1 = vpop.eup %10560 }
 0x5aa   : > { %v7334_v57 = vadd.f32 1.0, %v10555_v23  ;;  %v7514_v3 = vmul.f32 0.6931472, %v15170_v30  ;;  %vm7250_vm9 = vcmp.gt.f32.partialorder %v16390_v35, 20.0  ;;  %vm7268_vm10 = vcmp.gt.f32.partialorder %v15066_v42, 20.0 }
 0x5ab   : > { %10578 = vlog2.f32 %v7332_v41  ;;  %v7351_v58 = vadd.f32 1.0, %v10557_v20  ;;  %v7209_v8 = vmul.f32 1.442695, %v7052_v39  ;;  %v7584_v0 = vsel %vm7264_vm14, %v16372_v62, %v7474_v6  ;;  %v10563_v63 = vpop.eup %10562 }
 0x5ac   : > { %vm7288_vm11 = vcmp.gt.f32.partialorder %v15131_v9, 20.0  ;;  %10580 = vlog2.f32 %v7334_v57  ;;  %v7353_v54 = vadd.f32 1.0, %v10559_v18  ;;  %v7604_v30 = vsel %vm7284_vm3, %v16374_v10, %v7514_v3  ;;  %v10565_v41 = vpop.eup %10564 }
 0x5ad   : > { %v7478_v47 = vmul.f32 0.6931472, %v15110_v45  ;;  %vm7270_vm12 = vcmp.gt.f32.partialorder %v15076_v4, 20.0  ;;  %vm7290_vm15 = vcmp.gt.f32.partialorder %v15144_v61, 20.0  ;;  %v15396_v62 = vsel %vm7233_vm1, %v15152_v13, %v7412_v21  ;;  %v10567_v57 = vpop.eup %10566 }
 0x5ae   : > { %v7213_v6 = vmul.f32 1.442695, %v7054_v34  ;;  %v9130_v39 = vpack.c.bf16 %v7604_v30, %v7584_v0  ;;  %v7518_v23 = vmul.f32 0.6931472, %v15178_v28  ;;  %v7448_v20 = vmul.f32 0.6931472, %v10563_v63  ;;  %v10569_v34 = vpop.eup %10568 }
 0x5af   : > { %vm7253_vm13 = vcmp.gt.f32.partialorder %v15230_v25, 20.0  ;;  %10582 = vlog2.f32 %v7351_v58  ;;  %v15400_v45 = vadd.f32 1.0, %v10561_v1  ;;  %v7402_v10 = vmul.f32 0.6931472, %v15198_v60  ;;  %v10571_v18 = vpop.eup %10570 }
 0x5b0   : > { %10584 = vlog2.f32 %v7353_v54  ;;  %9131 = vmatprep.subr.bf16.mxu0 %v9130_v39  ;;  %v7586_v13 = vsel %vm7266_vm4, %v16379_v5, %v7478_v47  ;;  %v7606_v28 = vsel %vm7286_vm0, %v16380_v29, %v7518_v23  ;;  %v7442_v21 = vmul.f32 0.6931472, %v15266_v36 }
 0x5b1   : > { %vm7232_vm14 = vcmp.gt.f32.partialorder %v15164_v32, 20.0  ;;  %v15414_v60 = vsel %vm7251_vm7, %v15211_v15, %v7448_v20  ;;  %v15416_v1 = vadd.f32 1.0, %v10565_v41  ;;  %10586 = vpow2.f32 %v7209_v8  ;;  %v10573_v8 = vpop.eup %10572 }
 0x5b2   : > { %v9138_v3 = vpack.c.bf16 %v7606_v28, %v7586_v13  ;;  %v16391_v5 = vpack.c.bf16 %v15089_v48, %v15072_v12  ;;  %vm7234_vm3 = vcmp.gt.f32.partialorder %v15168_v38, 20.0  ;;  %v9160_v36 = vpack.c.bf16 %v15414_v60, %v15378_v59  ;;  %v10575_v54 = vpop.eup %10574 }
 0x5b3   : > { %v7548_v29 = vsel %vm7228_vm5, %v16384_v27, %v7402_v10  ;;  %v7568_v15 = vsel %vm7248_vm6, %v16385_v55, %v7442_v21  ;;  %v7406_v58 = vmul.f32 0.6931472, %v15213_v43  ;;  %10588 = vpow2.f32 %v7213_v6 }
 0x5b4   : > { %9133 = vmatpush1.bf16.msra.mxu0 %v16391_v5  ;;  %9139 = vmatprep.subr.bf16.mxu1 %v9138_v3  ;;  %v9142_v12 = vpack.c.bf16 %v7568_v15, %v7548_v29  ;;  %v7446_v48 = vmul.f32 0.6931472, %v15272_v7  ;;  %v7482_v0 = vmul.f32 0.6931472, %v15317_v40  ;;  %v7371_v30 = vadd.f32 1.0, %v10573_v8  ;;  %v10577_v7 = vpop.eup %10576 }
 0x5b5   : > { %v16392_v47 = vpack.c.bf16 %v15097_v31, %v15084_v37  ;;  %v7550_v43 = vsel %vm7230_vm8, %v16389_v51, %v7406_v58  ;;  %v7522_v27 = vmul.f32 0.6931472, %v15351_v53  ;;  %v7486_v55 = vmul.f32 0.6931472, %v15321_v46  ;;  %v10579_v6 = vpop.eup %10578 }
 0x5b6   : > { %v7373_v63 = vadd.f32 1.0, %v10575_v54  ;;  %9143 = vmatprep.subr.bf16.mxu0 %v9142_v12  ;;  %v7570_v40 = vsel %vm7250_vm9, %v16390_v35, %v7446_v48  ;;  %v7588_v37 = vsel %vm7268_vm10, %v15066_v42, %v7482_v0  ;;  %v7526_v31 = vmul.f32 0.6931472, %v10567_v57  ;;  %v10581_v35 = vpop.eup %10580  ;;  %v16400_v0 = vld [vmem:[#allocation30_spill] sm:$0xff] }
 0x5b7   : > { %9141 = vmatpush1.bf16.msra.mxu1 %v16392_v47  ;;  %8844 = vmatmul.mubr.msk.f32.vlgmr.msra.gmra.mrb[164].mxu0 %vm1941_vm2, %v15260_v17  ;;  %v7452_v51 = vmul.f32 0.6931472, %v10577_v7  ;;  %10590 = vlog2.f32 %v7371_v30  ;;  %v9150_v53 = vpack.c.bf16 %v7570_v40, %v7550_v43  ;;  %v16393_v46 = vpack.c.bf16 %v15183_v56, %v15175_v52  ;;  %v7695_v30 = vpop.f32.mrb[160].mxu0 }
 0x5b8   : > { %8119 = vmatprep.mubr.f32.mxu0 %v16366_v44  ;;  %v7608_v39 = vsel %vm7288_vm11, %v15131_v9, %v7522_v27  ;;  %10592 = vlog2.f32 %v7373_v63  ;;  %v7590_v23 = vsel %vm7270_vm12, %v15076_v4, %v7486_v55  ;;  %v7610_v41 = vsel %vm7290_vm15, %v15144_v61, %v7526_v31  ;;  %v16394_v4 = vld [vmem:[#allocation16_spill] sm:$0xff]  ;;  %v7697_v7 = vpop.f32.mrb[161].mxu0 }
 0x5b9   : > { %9145 = vmatpush1.bf16.msra.mxu0 %v16393_v46  ;;  %v9146_v42 = vpack.c.bf16 %v7608_v39, %v7588_v37  ;;  %v7573_v52 = vsel %vm7253_vm13, %v15230_v25, %v7452_v51  ;;  %9151 = vmatprep.subr.bf16.mxu1 %v9150_v53  ;;  %v9154_v9 = vpack.c.bf16 %v7610_v41, %v7590_v23  ;;  %v7410_v56 = vmul.f32 0.6931472, %v10569_v34  ;;  %v10583_v10 = vpop.eup %10582  ;;  %v16396_v25 = vld [vmem:[#allocation29_spill] sm:$0xff] }
 0x5ba   : > { %8845 = vmatmul.mubr.msk.f32.vlgmr.msra.gmra.mrb[164].mxu1 %vm1941_vm2, %v15260_v17  ;;  %v7450_v20 = vmul.f32 0.6931472, %v10579_v6  ;;  %v9168_v57 = vpack.c.bf16 %v7573_v52, %v15396_v62  ;;  %vm7252_vm1 = vcmp.gt.f32.partialorder %v15234_v16, 20.0  ;;  %v16395_v13 = vpack.c.bf16 %v15196_v50, %v16394_v4  ;;  %v10585_v21 = vpop.eup %10584 }
 0x5bb   : > { %8190 = vmatprep.mubr.f32.mxu1 %v16366_v44  ;;  %9147 = vmatprep.subr.bf16.mxu0 %v9146_v42  ;;  %v7414_v61 = vmul.f32 0.6931472, %v10571_v18  ;;  %v7454_v28 = vmul.f32 0.6931472, %v10581_v35  ;;  %vm7254_vm4 = vcmp.gt.f32.partialorder %v16396_v25, 20.0  ;;  %10594 = vlog2.f32 %v15400_v45  ;;  %v10587_v3 = vpop.eup %10586  ;;  %v16402_v42 = vld [vmem:[#allocation44_spill] sm:$0xff] }
 0x5bc   : > { %9153 = vmatpush1.bf16.msra.mxu1 %v16395_v13  ;;  %v16397_v34 = vpack.c.bf16 %v15307_v49, %v15277_v26  ;;  %v7552_v62 = vsel %vm7232_vm14, %v15164_v32, %v7410_v56  ;;  %v7572_v50 = vsel %vm7252_vm1, %v15234_v16, %v7450_v20  ;;  %10596 = vlog2.f32 %v15416_v1  ;;  %v16399_v32 = vld [vmem:[#allocation34_spill] sm:$0xff] }
 0x5bd   : > { %9155 = vmatprep.subr.bf16.mxu1 %v9154_v9  ;;  %v9158_v5 = vpack.c.bf16 %v7572_v50, %v7552_v62  ;;  %v7554_v18 = vsel %vm7234_vm3, %v15168_v38, %v7414_v61  ;;  %v7574_v29 = vsel %vm7254_vm4, %v16396_v25, %v7454_v28  ;;  %v7372_v45 = vadd.f32 1.0, %v10587_v3  ;;  %v10589_v26 = vpop.eup %10588  ;;  %v7620_v38 = vpop.permute.xlu0 %7619 }
 0x5be   : > { %9149 = vmatpush1.bf16.msra.mxu0 %v16397_v34  ;;  %v9166_v15 = vpack.c.bf16 %v7574_v29, %v7554_v18  ;;  %v16398_v49 = vpack.c.bf16 %v15327_v33, %v15287_v14  ;;  %v7624_v16 = vsub.s32 0, %v16399_v32  ;;  %v7374_v58 = vadd.f32 1.0, %v10589_v26 }
 0x5bf   : > { %10598 = vlog2.f32 %v7372_v45  ;;  %9159 = vmatprep.subr.bf16.mxu0 %v9158_v5  ;;  %v7488_v8 = vmul.f32 0.6931472, %v10583_v10  ;;  %v7492_v14 = vmul.f32 0.6931472, %v10585_v21  ;;  %vm7271_vm0 = vcmp.gt.f32.partialorder %v16400_v0, 20.0 }
 0x5c0   : > { %9157 = vmatpush1.bf16.msra.mxu1 %v16398_v49  ;;  %10600 = vlog2.f32 %v7374_v58  ;;  %v15500_v48 = vrot.slane %v7620_v38, %v7624_v16  ;;  %vm7291_vm5 = vcmp.gt.f32.partialorder %v15332_v22, 20.0  ;;  %vm7293_vm7 = vcmp.gt.f32.partialorder %v15339_v2, 20.0 }
 0x5c1   : > { %8846 = vmatmul.mubr.msk.f32.vlgmr.msra.gmra.mrb[166].mxu0 %vm1941_vm2, %v15260_v17  ;;  %9167 = vmatprep.subr.bf16.mxu1 %v9166_v15  ;;  %v10591_v1 = vpop.eup %10590  ;;  %v7591_v60 = vsel %vm7271_vm0, %v16400_v0, %v7488_v8  ;;  %vm7272_vm8 = vcmp.gt.f32.partialorder %v15291_v11, 20.0  ;;  %vm7292_vm9 = vcmp.gt.f32.partialorder %v15359_v19, 20.0  ;;  %vm7274_vm10 = vcmp.gt.f32.partialorder %v15298_v24, 20.0 }
 0x5c2   : > { %9161 = vmatpush1.bf16.msra.mxu0 %v9160_v36  ;;  %8261 = vmatprep.mubr.f32.mxu0 %v16366_v44  ;;  %v10593_v33 = vpop.eup %10592  ;;  %v7528_v12 = vmul.f32 0.6931472, %v10591_v1  ;;  %v16401_v36 = vld [vmem:[#allocation42_spill] sm:$0xff]  ;;  %v7696_v55 = vadd.f32 %v7695_v30, %v15500_v48  ;;  %v7698_v40 = vadd.f32 %v7697_v7, %v15500_v48  ;;  %vm7294_vm11 = vcmp.gt.f32.partialorder %v16402_v42, 20.0 }
 0x5c3   : > { %8847 = vmatmul.mubr.msk.f32.vlgmr.msra.gmra.mrb[166].mxu1 %vm1941_vm2, %v15260_v17  ;;  %v7532_v59 = vmul.f32 0.6931472, %v10593_v33  ;;  %vm7273_vm6 = vcmp.gt.f32.partialorder %v16401_v36, 20.0 }
 0x5c4   : > { %9169 = vmatpush1.bf16.msra.mxu1 %v9168_v57  ;;  %8332 = vmatprep.mubr.f32.mxu1 %v16366_v44  ;;  %v7611_v54 = vsel %vm7291_vm5, %v15332_v22, %v7528_v12  ;;  %v7593_v43 = vsel %vm7273_vm6, %v16401_v36, %v7492_v14  ;;  %v8359_v6 = vcombine.low %v7696_v55, %v7698_v40 }
 0x5c5   : > { %v10595_v47 = vpop.eup %10594  ;;  %v9164_v44 = vpack.c.bf16 %v7611_v54, %v7591_v60  ;;  %v7613_v27 = vsel %vm7293_vm7, %v15339_v2, %v7532_v59 }
 0x5c6   : > { %v9172_v63 = vpack.c.bf16 %v7613_v27, %v7593_v43  ;;  %v10597_v37 = vpop.eup %10596  ;;  %v7490_v31 = vmul.f32 0.6931472, %v10595_v47 }
 0x5c7   : > { %v7494_v53 = vmul.f32 0.6931472, %v10597_v37 }
 0x5c8   : > { %v7592_v39 = vsel %vm7272_vm8, %v15291_v11, %v7490_v31  ;;  %v10724_v11 = vmov 1966171168  }
 0x5c9   : > { %v10599_v51 = vpop.eup %10598  ;;  %v7594_v41 = vsel %vm7274_vm10, %v15298_v24, %v7494_v53 }
 0x5ca   : > { %v7530_v22 = vmul.f32 0.6931472, %v10599_v51  ;;  %v10601_v46 = vpop.eup %10600  ;;  %v7766_v20 = vpop.f32.mrb[160].mxu1 }
 0x5cb   : > { %v7534_v35 = vmul.f32 0.6931472, %v10601_v46  ;;  %v7767_v24 = vadd.f32 %v7766_v20, %v15500_v48  ;;  %v7768_v57 = vpop.f32.mrb[161].mxu1 }
 0x5cc   : > { %v7612_v2 = vsel %vm7292_vm9, %v15359_v19, %v7530_v22  ;;  %v8364_v19 = vunpack.c.l.s4 %v10724_v11  ;;  %v7769_v4 = vadd.f32 %v7768_v57, %v15500_v48 }
 0x5cd   : > { %v9162_v23 = vpack.c.bf16 %v7612_v2, %v7592_v39  ;;  %v7614_v52 = vsel %vm7294_vm11, %v16402_v42, %v7534_v35 }
 0x5ce   : > { %v9170_v9 = vpack.c.bf16 %v7614_v52, %v7594_v41  ;;  %v8365_v56 = vunpack.c.0.s8 %v8364_v19  ;;  %v8360_v61 = vcombine.low %v7767_v24, %v7769_v4 }
 0x5cf   : > { %9163 = vmatprep.subr.bf16.mxu0 %v9162_v23 }
 0x5d0   : > { %9165 = vmatpush1.bf16.msra.mxu0 %v9164_v44  ;;  %9171 = vmatprep.subr.bf16.mxu1 %v9170_v9  ;;  %v15525_v10 = vsub.s32 %v8365_v56, %v16399_v32 }
 0x5d1   : > { %9173 = vmatpush1.bf16.msra.mxu1 %v9172_v63 }
 0x5d2   : > { %v8369_v13 = vrot.slane %v8359_v6, %v15525_v10  ;;  %v8376_v28 = vrot.slane %v8360_v61, %v15525_v10 }
 0x5d3   : > { %8848 = vmatmul.mubr.msk.f32.vlgmr.msra.gmra.mrb[168].mxu0 %vm1941_vm2, %v15260_v17 }
 0x5d4   : > { %8849 = vmatmul.mubr.msk.f32.vlgmr.msra.gmra.mrb[168].mxu1 %vm1941_vm2, %v15260_v17  ;;  %v8391_v21 = vcombine.low %v8369_v13, %v8376_v28  ;;  %v16403_v13 = vlaneseq }
 0x5d6   : > { %v8399_v32 = vrot.slane %v8391_v21, %v15525_v10  ;;  %vm8488_vm2 = vcmp.lt.s32.totalorder %v16403_v13, 512 }
 0x667   : > { %v7908_v17 = vpop.f32.mrb[162].mxu1 }
 0x668   : > { %v7909_v62 = vadd.f32 %v7908_v17, %v15500_v48  ;;  %v7910_v3 = vpop.f32.mrb[163].mxu1 }
 0x669   : > { %v7837_v25 = vpop.f32.mrb[162].mxu0  ;;  %v7911_v18 = vadd.f32 %v7910_v3, %v15500_v48 }
 0x66a   : > { %v7838_v34 = vadd.f32 %v7837_v25, %v15500_v48  ;;  %v7839_v50 = vpop.f32.mrb[163].mxu0 }
 0x66b   : > { %v7840_v5 = vadd.f32 %v7839_v50, %v15500_v48  ;;  %v8362_v45 = vcombine.low %v7909_v62, %v7911_v18 }
 0x66d   : > { %v8361_v29 = vcombine.low %v7838_v34, %v7840_v5  ;;  %v8390_v26 = vrot.slane %v8362_v45, %v15525_v10 }
 0x66f   : > { %v8383_v15 = vrot.slane %v8361_v29, %v15525_v10 }
 0x671   : > { %v8392_v49 = vcombine.low %v8383_v15, %v8390_v26 }
 0x673   : > { %v8406_v16 = vrot.slane %v8392_v49, %v15525_v10 }
 0x675   : > { %v8407_v58 = vcombine.low %v8399_v32, %v8406_v16 }
 0x677   : > { %8484 = vst [vmem:[%s15542_s27] sm:$0xff] %v8407_v58 }
 0x68a   : > { %v7979_v38 = vpop.f32.mrb[164].mxu0 }
 0x68b   : > { %v7980_v8 = vadd.f32 %v7979_v38, %v15500_v48  ;;  %v7981_v1 = vpop.f32.mrb[165].mxu0 }
 0x68c   : > { %v7982_v14 = vadd.f32 %v7981_v1, %v15500_v48 }
 0x68d   : > { %v8050_v33 = vpop.f32.mrb[164].mxu1 }
 0x68e   : > { %v8051_v12 = vadd.f32 %v8050_v33, %v15500_v48  ;;  %v8408_v0 = vcombine.low %v7980_v8, %v7982_v14  ;;  %v8052_v59 = vpop.f32.mrb[165].mxu1 }
 0x68f   : > { %v8053_v60 = vadd.f32 %v8052_v59, %v15500_v48 }
 0x690   : > { %v8418_v36 = vrot.slane %v8408_v0, %v15525_v10 }
 0x691   : > { %v8409_v54 = vcombine.low %v8051_v12, %v8053_v60 }
 0x693   : > { %v8425_v30 = vrot.slane %v8409_v54, %v15525_v10 }
 0x694   : > { %v8121_v47 = vpop.f32.mrb[166].mxu0 }
 0x695   : > { %v8122_v43 = vadd.f32 %v8121_v47, %v15500_v48  ;;  %v8123_v44 = vpop.f32.mrb[167].mxu0  ;;  %v8440_v27 = vcombine.low %v8418_v36, %v8425_v30 }
 0x696   : > { %v8124_v55 = vadd.f32 %v8123_v44, %v15500_v48  ;;  %v8192_v7 = vpop.f32.mrb[166].mxu1 }
 0x697   : > { %v8193_v63 = vadd.f32 %v8192_v7, %v15500_v48  ;;  %v8194_v37 = vpop.f32.mrb[167].mxu1  ;;  %v8448_v46 = vrot.slane %v8440_v27, %v15525_v10 }
 0x698   : > { %v8410_v40 = vcombine.low %v8122_v43, %v8124_v55  ;;  %v8195_v31 = vadd.f32 %v8194_v37, %v15500_v48 }
 0x69a   : > { %v8432_v6 = vrot.slane %v8410_v40, %v15525_v10  ;;  %v8411_v51 = vcombine.low %v8193_v63, %v8195_v31 }
 0x69c   : > { %v8439_v22 = vrot.slane %v8411_v51, %v15525_v10 }
 0x69e   : > { %v8441_v53 = vcombine.low %v8432_v6, %v8439_v22 }
 0x6a0   : > { %v8455_v39 = vrot.slane %v8441_v53, %v15525_v10 }
 0x6a2   : > { %v8456_v2 = vcombine.low %v8448_v46, %v8455_v39 }
 0x6a4   : > { %8485 = vst [vmem:[%s15542_s27 + $0x8] sm:$0xff] %v8456_v2 }
 0x6a6   : > { %v8263_v35 = vpop.f32.mrb[168].mxu0 }
 0x6a7   : > { %v8264_v42 = vadd.f32 %v8263_v35, %v15500_v48  ;;  %v8265_v23 = vpop.f32.mrb[169].mxu0  ;;  %v8334_v41 = vpop.f32.mrb[168].mxu1 }
 0x6a8   : > { %v8266_v52 = vadd.f32 %v8265_v23, %v15500_v48  ;;  %v8335_v9 = vadd.f32 %v8334_v41, %v15500_v48  ;;  %v8336_v11 = vpop.f32.mrb[169].mxu1 }
 0x6a9   : > { %v8337_v56 = vadd.f32 %v8336_v11, %v15500_v48 }
 0x6aa   : > { %v8457_v19 = vcombine.low %v8264_v42, %v8266_v52 }
 0x6ab   : > { %v8458_v24 = vcombine.low %v8335_v9, %v8337_v56 }
 0x6ac   : > { %v8465_v20 = vrot.slane %v8457_v19, %v15525_v10 }
 0x6ad   : > { %v8472_v57 = vrot.slane %v8458_v24, %v15525_v10 }
 0x6af   : > { %v8473_v4 = vcombine.low %v8465_v20, %v8472_v57 }
 0x6b1   : > { %v8480_v61 = vrot.slane %v8473_v4, %v15525_v10 }
 0x6b3   : > { %8490 = vst.msk [vmem:[%s15542_s27 + $0x10] sm:$0xf] %vm8488_vm2, %v8480_v61 }
 0x6b4   : > { %10664 = shalt.err (!%p10661_p7)
}
 0x6b5   : > { %s10665_s14 = scalar_lea.hbm %s15573_s12, 320  ;;  %s10669_s20 = scalar_lea.hbm %s15624_s6, 640 }
 0x6b6   : > { %p10666_p8 = scmp.ne.s32.totalorder %s15573_s12, %s10665_s14  ;;  %p10670_p1 = scmp.lt.u32.totalorder %s15573_s12, %s15624_s6 }
 0x6b7   : > { %p10671_p0 = scmp.lt.u32.totalorder %s10669_s20, %s10665_s14  ;;  %p10673_p6 = scmp.lt.u32.totalorder %s10665_s14, %s15573_s12 }
 0x6b8   : > { %p10667_p11 = pnand %p10666_p8, %p16404_p9 }
 0x6b9   : > { %p10672_p5 = por %p10671_p0, %p10670_p1 }
 0x6ba   : > { %p10668_p13 = pneg %p10667_p11 }
 0x6bb   : > { %p10674_p10 = por %p10673_p6, %p10672_p5 }
 0x6bd   : > { %p10675_p12 = pnand %p10674_p10, %p10668_p13 }
 0x6bf   : > { %10678 = shalt.err (!%p10675_p12)
}
 0x6c0   : > { %9259 = dma.vmem_to_hbm [thread:$0]  (%p16404_p9), %s15575_s30, 320, %s15573_s12, %s8492_s13  }
 0x6c1 PF: > { %p9271_p2 = scmp.ge.s32.totalorder %s10717_s26, 2  ;;  %s8518_s27 = sand.u32 1, %s10705_s23  }
 0x6c2   : > { %p16405_p3 = scmp.ne.s32.totalorder %s15855_s9, 0  ;;  %s8519_s29 = scalar_lea.sflag [#allocation5], %s8518_s27 }
 0x6c4   : > { %p9266_p4 = pnand %p9271_p2, %p16405_p3 }
 0x6c6   : > { %10700 = dma.done.wait (!%p9266_p4), %s8519_s29, 320  }
 0x6c7   : > { %10702 = vsyncadd (!%p9266_p4), %s8519_s29, 4294966976  ;;  %p19_p7 = scmp.ge.s32.totalorder %s10789_s28, 4   ;;  %s16406_s23 = smov %s10709_s24 }
 0x6c8   : > { %s16407_s24 = smov %s10713_s25  ;;  %s16408_s25 = smov %s10800_s7 }
 0x6c9   : > { %s16409_s26 = smov %s10789_s28  ;;  %21 = sbr.rel (!%p19_p7) target bundleno = 7 (0x7), region = 90 }
 0x6d0   :  { %8524 = vsyncpa [#allocation4], 1 }
 0x6d1   :  { %8526 = vsyncpa [#allocation4 + $0x1], 1 }
 0x6d2   :  { %8527 = vsyncpa [#allocation5], 1 }
 0x6d3   :  { %8529 = vsyncpa [#allocation5 + $0x1], 1 }

</bundles_post_ra>
